<compile_context>
chip_gen: v6e
topology: v6e:2x2x1
jax: 0.10.0
libtpu: 0.0.40
codegen_flags: <defaults>
</compile_context>

<pallas_src>
import functools
import math

import jax
import jax.numpy as jnp
from jax.experimental import pallas as pl
from jax.experimental.pallas import tpu as pltpu

LANE = 128  # TPU lane width


def _round_up(x, m):
    return ((x + m - 1) // m) * m


def _choose_tm(m, kp):
    """Adaptive M tile: big tiles for big matmuls, capped so A-tile + the fully
    VMEM-resident weight block fit comfortably on v7x (64 MiB/TC)."""
    if m < 128:
        return _round_up(max(m, 16), 16)  # single tile; bf16 packs (16,128)
    if m >= 4096:
        tm = 512
    elif m >= 1024:
        tm = 256
    else:
        tm = 128
    if kp >= 4096:
        tm = min(tm, 256)
    return tm


# ---------------------------------------------------------------------------
# Pallas kernel: out = act(A @ B + bias)   (A, B bf16; f32 accumulate/epilogue,
# store in o_ref.dtype which is bf16 for decoder convs, f32 for encoder convs)
# ---------------------------------------------------------------------------
def _mm_bias_act_kernel(a_ref, b_ref, bias_ref, o_ref, *, activation):
    acc = jnp.dot(a_ref[...], b_ref[...], preferred_element_type=jnp.float32)
    acc = acc + bias_ref[...]
    if activation == "relu":
        acc = jnp.maximum(acc, 0.0)
    elif activation == "tanh":
        acc = jnp.tanh(acc)
    o_ref[...] = acc.astype(o_ref.dtype)


def pallas_matmul_bias_act(a_bf16, w_p, bias_p, n_out, activation="none",
                           out_dtype=jnp.float32):
    """a_bf16: (M, K) bf16, w_p: (Kp, Np) bf16 (pre-padded), bias_p: (1, Np) f32.

    Returns (M, n_out) in out_dtype.  Weights are fully VMEM-resident (single
    N block, constant index map), grid iterates over M tiles only.
    """
    M, K = a_bf16.shape
    Kp, Np = w_p.shape
    assert Kp % LANE == 0 and Np % LANE == 0 and K <= Kp and n_out <= Np

    TM = _choose_tm(M, Kp)
    Mp = _round_up(M, TM)

    a_p = jnp.pad(a_bf16, ((0, Mp - M), (0, Kp - K)))

    # VMEM working set: double-buffered A tile + resident B + out tile + bias,
    # plus headroom; clamped to <= 40 MiB for v7x (64 MiB physical per TC).
    out_bytes = jnp.dtype(out_dtype).itemsize
    vmem = 2 * (TM * Kp * 2 + Kp * Np * 2 + TM * Np * out_bytes + Np * 4) + (4 << 20)
    vmem = int(min(max(vmem, 32 << 20), 40 << 20))

    out = pl.pallas_call(
        functools.partial(_mm_bias_act_kernel, activation=activation),
        out_shape=jax.ShapeDtypeStruct((Mp, Np), out_dtype),
        grid=(Mp // TM,),
        in_specs=[
            pl.BlockSpec((TM, Kp), lambda i: (i, 0)),   # A row-tile, full K
            pl.BlockSpec((Kp, Np), lambda i: (0, 0)),   # B fully resident in VMEM
            pl.BlockSpec((1, Np), lambda i: (0, 0)),    # bias, resident
        ],
        out_specs=pl.BlockSpec((TM, Np), lambda i: (i, 0)),
        compiler_params=pltpu.CompilerParams(
            dimension_semantics=("parallel",),
            vmem_limit_bytes=vmem,
            allow_input_fusion=[True, False, False],    # fuse pad/im2col into A
        ),
    )(a_p, w_p, bias_p)
    return out[:M, :n_out]


def xla_matmul_bias_act(a_bf16, wmat, bias, activation="none",
                        out_dtype=jnp.float32):
    """Fallback for degenerate shapes (tiny M, narrow N, heavily-padded K):
    plain XLA dot with the same bf16 x bf16 -> f32 contraction + fused epilogue."""
    acc = jnp.dot(a_bf16, wmat, preferred_element_type=jnp.float32)
    acc = acc + bias[None, :]
    if activation == "relu":
        acc = jnp.maximum(acc, 0.0)
    elif activation == "tanh":
        acc = jnp.tanh(acc)
    return acc.astype(out_dtype)


# ---------------------------------------------------------------------------
# Conv via im2col + matmul (weights pre-transformed at init)
# ---------------------------------------------------------------------------
def prep_conv(w, b, stride=1, padding=0):
    """w: torch layout (Cout, Cin, kh, kw) f32; b: (Cout,) or None.

    Pre-transform once: (kh*kw*Cin, Cout) bf16; padded copies (K/N multiples of
    128) for the Pallas path, unpadded copies for the XLA fallback path.
    """
    cout, cin, kh, kw = (int(d) for d in w.shape)
    K = kh * kw * cin
    Kp = _round_up(K, LANE)
    Np = _round_up(cout, LANE)
    wmat = jnp.transpose(w, (2, 3, 1, 0)).reshape(K, cout).astype(jnp.bfloat16)
    wmat_p = jnp.pad(wmat, ((0, Kp - K), (0, Np - cout)))
    bias = (b if b is not None else jnp.zeros((cout,), jnp.float32)).astype(jnp.float32)
    bias_p = jnp.pad(bias, (0, Np - cout)).reshape(1, Np)
    return {"wmat": wmat, "bias": bias, "wmat_p": wmat_p, "bias_p": bias_p,
            "cout": cout, "cin": cin, "kh": kh, "kw": kw,
            "stride": int(stride), "padding": int(padding)}


def conv2d(x, cp, activation="none", out_dtype=jnp.float32):
    """x: NHWC; cp: prepared conv params."""
    N, H, W, C = x.shape
    kh, kw = cp["kh"], cp["kw"]
    stride, padding = cp["stride"], cp["padding"]
    assert C == cp["cin"]
    Ho = (H + 2 * padding - kh) // stride + 1
    Wo = (W + 2 * padding - kw) // stride + 1

    xp = x
    if padding:
        xp = jnp.pad(x, ((0, 0), (padding, padding), (padding, padding), (0, 0)))

    # TODO(synk): im2col still materializes kh*kw x activation bytes; a halo'd
    # direct-conv Pallas kernel (shifted jnp.dot taps inside the block) would
    # remove the 9x read amplification for the 3x3 decoder convs.
    cols = []
    for i in range(kh):
        for j in range(kw):
            cols.append(xp[:, i:i + stride * Ho:stride, j:j + stride * Wo:stride, :])
    patches = cols[0] if len(cols) == 1 else jnp.concatenate(cols, axis=-1)
    M = N * Ho * Wo
    a = patches.reshape(M, kh * kw * C).astype(jnp.bfloat16)

    # Dispatch: Pallas for the big, lane-friendly matmuls; XLA for degenerate
    # shapes (tiny M, Cout < 128, the K=147 conv1, the Cout=1 final conv).
    if M >= 512 and cp["cout"] >= 128:
        y = pallas_matmul_bias_act(a, cp["wmat_p"], cp["bias_p"], cp["cout"],
                                   activation, out_dtype)
    else:
        y = xla_matmul_bias_act(a, cp["wmat"], cp["bias"], activation, out_dtype)
    return y.reshape(N, Ho, Wo, cp["cout"])


# ---------------------------------------------------------------------------
# Other (glue) ops -- fused by XLA under jit
# ---------------------------------------------------------------------------
def batchnorm(x, gamma, beta, eps=1e-5):
    # training-mode BN (batch statistics, biased variance), as a freshly built
    # torch module in train() would use in forward()
    mean = jnp.mean(x, axis=(0, 1, 2), keepdims=True)
    var = jnp.mean(jnp.square(x - mean), axis=(0, 1, 2), keepdims=True)
    return (x - mean) * jax.lax.rsqrt(var + eps) * gamma + beta


def relu(x):
    return jnp.maximum(x, 0.0)


def maxpool2x2(x):
    N, H, W, C = x.shape
    return x.reshape(N, H // 2, 2, W // 2, 2, C).max(axis=(2, 4))


def upsample_bilinear_2x(x):
    # nn.Upsample(scale_factor=2, mode='bilinear')  (align_corners=False)
    dt = x.dtype
    xf = x.astype(jnp.float32)
    N, H, W, C = xf.shape

    def indices(in_len):
        o = jnp.arange(2 * in_len, dtype=jnp.float32)
        src = jnp.maximum((o + 0.5) * 0.5 - 0.5, 0.0)
        i0 = jnp.floor(src).astype(jnp.int32)
        i1 = jnp.minimum(i0 + 1, in_len - 1)
        w1 = src - i0.astype(jnp.float32)
        return i0, i1, w1

    h0, h1, wh = indices(H)
    w0, w1, ww = indices(W)
    xh = (xf[:, h0, :, :] * (1.0 - wh)[None, :, None, None]
          + xf[:, h1, :, :] * wh[None, :, None, None])
    out = (xh[:, :, w0, :] * (1.0 - ww)[None, None, :, None]
           + xh[:, :, w1, :] * ww[None, None, :, None])
    return out.astype(dt)  # keep decoder activations bf16 between kernels


# ---------------------------------------------------------------------------
# Parameter initialization (deterministic, synthetic) + matmul-ready prep
# ---------------------------------------------------------------------------
def init_conv_weights(key, cout, cin, kh, kw, bias=True):
    k1, k2 = jax.random.split(key)
    fan_in = cin * kh * kw
    bound = 1.0 / math.sqrt(fan_in)
    w = jax.random.uniform(k1, (cout, cin, kh, kw), jnp.float32, -bound, bound)
    b = (jax.random.uniform(k2, (cout,), jnp.float32, -bound, bound)
         if bias else None)
    return w, b


def init_basic_block(key, inplanes, planes, stride, downsample):
    keys = jax.random.split(key, 3)
    p = {}
    w1, _ = init_conv_weights(keys[0], planes, inplanes, 3, 3, bias=False)
    p["conv1"] = prep_conv(w1, None, stride=stride, padding=1)
    p["bn1"] = (jnp.ones((planes,), jnp.float32), jnp.zeros((planes,), jnp.float32))
    w2, _ = init_conv_weights(keys[1], planes, planes, 3, 3, bias=False)
    p["conv2"] = prep_conv(w2, None, stride=1, padding=1)
    p["bn2"] = (jnp.ones((planes,), jnp.float32), jnp.zeros((planes,), jnp.float32))
    if downsample:
        wd, _ = init_conv_weights(keys[2], planes, inplanes, 1, 1, bias=False)
        p["down_conv"] = prep_conv(wd, None, stride=stride, padding=0)
        p["down_bn"] = (jnp.ones((planes,), jnp.float32),
                        jnp.zeros((planes,), jnp.float32))
    return p


def init_layer(key, inplanes, planes, blocks, stride):
    keys = jax.random.split(key, blocks)
    layer = []
    for i in range(blocks):
        s = stride if i == 0 else 1
        ds = (i == 0) and (stride != 1 or inplanes != planes)
        layer.append(init_basic_block(keys[i],
                                      inplanes if i == 0 else planes,
                                      planes, s, ds))
    return layer


def init_decoder_block(key, in_c, mid_c, out_c):
    k1, k2 = jax.random.split(key)
    w1, b1 = init_conv_weights(k1, mid_c, in_c, 3, 3, bias=True)
    w2, b2 = init_conv_weights(k2, out_c, mid_c, 3, 3, bias=True)
    return {"type": "decoder",
            "c1": prep_conv(w1, b1, stride=1, padding=1),
            "c2": prep_conv(w2, b2, stride=1, padding=1)}


def init_convrelu(key, in_c, out_c):
    w, b = init_conv_weights(key, out_c, in_c, 3, 3, bias=True)
    return {"type": "convrelu", "c": prep_conv(w, b, stride=1, padding=1)}


def init_mdenet(key, num_classes=1, num_filters=32):
    keys = iter(jax.random.split(key, 64))
    nf = num_filters
    P = {}
    # encoder (ResNet34)
    w1, _ = init_conv_weights(next(keys), 64, 3, 7, 7, bias=False)
    P["conv1"] = prep_conv(w1, None, stride=2, padding=3)
    P["bn1"] = (jnp.ones((64,), jnp.float32), jnp.zeros((64,), jnp.float32))
    P["layer1"] = init_layer(next(keys), 64, 64, 3, 1)
    P["layer2"] = init_layer(next(keys), 64, 128, 4, 2)
    P["layer3"] = init_layer(next(keys), 128, 256, 6, 2)
    P["layer4"] = init_layer(next(keys), 256, 512, 3, 2)
    # decoders (is_deconv=False -> bilinear upsample + 2x ConvRelu)
    dec_specs = {
        "dec1_5": (512, nf * 8 * 2, nf * 8),
        "dec1_4": (nf * 8, nf * 8 * 2, nf * 4),
        "dec1_3": (nf * 4, nf * 4 * 2, nf * 2),
        "dec1_2": (nf * 2, nf * 2 * 2, nf * 2 * 2),
        "dec1_1": (nf * 2 * 2, nf * 2 * 2, nf),
        "dec2_4": (256, nf * 8 * 2, nf * 4),
        "dec2_3": (nf * 4, nf * 4 * 2, nf * 2),
        "dec2_2": (nf * 2, nf * 2 * 2, nf * 2 * 2),
        "dec2_1": (nf * 2 * 2, nf * 2 * 2, nf),
        "dec3_3": (128, nf * 4 * 2, nf * 2),
        "dec3_2": (nf * 2, nf * 2 * 2, nf * 2 * 2),
        "dec3_1": (nf * 2 * 2, nf * 2 * 2, nf),
        "dec4_2": (64, nf * 2 * 2, nf * 2 * 2),
        "dec4_1": (nf * 2 * 2, nf * 2 * 2, nf),
        "dec5_2": (64, nf * 2 * 2, nf * 2 * 2),
        "dec5_1": (nf * 2 * 2, nf * 2 * 2, nf),
    }
    for name, (ic, mc, oc) in dec_specs.items():
        P[name] = init_decoder_block(next(keys), ic, mc, oc)
    for name in ["dec1_0", "dec2_0", "dec3_0", "dec4_0", "dec5_0"]:
        P[name] = init_convrelu(next(keys), nf, nf)
    wf, bf = init_conv_weights(next(keys), num_classes, 5 * nf, 1, 1, bias=True)
    P["final"] = prep_conv(wf, bf, stride=1, padding=0)
    P["num_classes"] = num_classes
    return P


# ---------------------------------------------------------------------------
# Forward
# ---------------------------------------------------------------------------
def basic_block_fwd(x, p):
    identity = x
    out = conv2d(x, p["conv1"])                     # f32 out: BN consumer
    out = relu(batchnorm(out, *p["bn1"]))
    out = conv2d(out, p["conv2"])
    out = batchnorm(out, *p["bn2"])
    if "down_conv" in p:
        identity = conv2d(x, p["down_conv"])
        identity = batchnorm(identity, *p["down_bn"])
    return relu(out + identity)


def run_layer(x, layer):
    for blk in layer:
        x = basic_block_fwd(x, blk)
    return x


def apply_dec(x, p):
    # decoder activations stay bf16 between kernels (halves HBM traffic)
    if p["type"] == "decoder":
        x = upsample_bilinear_2x(x)
        x = conv2d(x, p["c1"], activation="relu", out_dtype=jnp.bfloat16)
        x = conv2d(x, p["c2"], activation="relu", out_dtype=jnp.bfloat16)
        return x
    return conv2d(x, p["c"], activation="relu", out_dtype=jnp.bfloat16)  # ConvRelu


def mdenet_forward(x_nchw, params):
    x = jnp.transpose(x_nchw, (0, 2, 3, 1)).astype(jnp.float32)  # NCHW -> NHWC

    # conv1 = Sequential(resnet.conv1, resnet.bn1, relu, MaxPool2d(2, 2))
    c = conv2d(x, params["conv1"])
    c = relu(batchnorm(c, *params["bn1"]))
    conv1 = maxpool2x2(c)

    conv2 = run_layer(conv1, params["layer1"])
    conv3 = run_layer(conv2, params["layer2"])
    conv4 = run_layer(conv3, params["layer3"])
    conv5 = run_layer(conv4, params["layer4"])

    def chain(start, names):
        h = start
        for n in names:
            h = apply_dec(h, params[n])
        return h

    # TODO(synk): the dec*_1 / dec*_0 stages share identical (M,K,N); a batched
    # (group-indexed weights) Pallas call would merge 15 convs into 3 launches.
    d1 = chain(conv5, ["dec1_5", "dec1_4", "dec1_3", "dec1_2", "dec1_1", "dec1_0"])
    d2 = chain(conv4, ["dec2_4", "dec2_3", "dec2_2", "dec2_1", "dec2_0"])
    d3 = chain(conv3, ["dec3_3", "dec3_2", "dec3_1", "dec3_0"])
    d4 = chain(conv2, ["dec4_2", "dec4_1", "dec4_0"])
    d5 = chain(conv1, ["dec5_2", "dec5_1", "dec5_0"])

    cat = jnp.concatenate([d1, d2, d3, d4, d5], axis=-1)  # torch cat dim=1
    if params["num_classes"] > 1:
        out = conv2d(cat, params["final"], activation="none", out_dtype=jnp.float32)
        out = jax.nn.log_softmax(out, axis=-1)
    else:
        out = conv2d(cat, params["final"], activation="tanh", out_dtype=jnp.float32)
    return jnp.transpose(out, (0, 3, 1, 2))  # NHWC -> NCHW


# ---------------------------------------------------------------------------
if __name__ == "__main__":
    key = jax.random.PRNGKey(0)
    pkey, xkey = jax.random.split(key)
    params = init_mdenet(pkey, num_classes=1, num_filters=32)

    # small input consistent with the module: 3-channel image, H,W divisible by 32
    x = jax.random.normal(xkey, (2, 3, 64, 64), jnp.float32)

    # jit the whole forward; params are closed over (static config like strides /
    # block types stays Python-level, arrays become baked-in device constants).
    fwd = jax.jit(functools.partial(mdenet_forward, params=params))

    out = jax.block_until_ready(fwd(x))
    assert out.shape == (2, 1, 64, 64)
    assert bool(jnp.all(jnp.isfinite(out)))
    print("KERNEL_OK")
</pallas_src>

<mosaic_0001>
module attributes {stable_mosaic.version = 11 : i64} {
  func.func @_mm_bias_act_kernel(%arg0: i32, %arg1: memref<128x1152xbf16, #tpu.memory_space<vmem>>, %arg2: memref<1152x256xbf16, #tpu.memory_space<vmem>>, %arg3: memref<1x256xf32, #tpu.memory_space<vmem>>, %arg4: memref<128x256xbf16, #tpu.memory_space<vmem>>) attributes {dimension_semantics = [#tpu.dimension_semantics<parallel>], iteration_bounds = array<i64: 4>, scalar_prefetch = 0 : i64, scratch_operands = 0 : i64, tpu.core_type = #tpu.core_type<tc>, window_params = [{transform_indices = @transform_0, window_bounds = array<i64: 128, 1152>}, {pipeline_mode = #tpu.pipeline_mode<synchronous>, transform_indices = @transform_1, window_bounds = array<i64: 1152, 256>}, {pipeline_mode = #tpu.pipeline_mode<synchronous>, transform_indices = @transform_2, window_bounds = array<i64: 1, 256>}, {transform_indices = @transform_3, window_bounds = array<i64: 128, 256>}]} {
    %c0 = arith.constant 0 : index
    %c0_0 = arith.constant 0 : index
    %0 = vector.load %arg1[%c0, %c0_0] : memref<128x1152xbf16, #tpu.memory_space<vmem>>, vector<128x1152xbf16>
    %c0_1 = arith.constant 0 : index
    %c0_2 = arith.constant 0 : index
    %1 = vector.load %arg2[%c0_1, %c0_2] : memref<1152x256xbf16, #tpu.memory_space<vmem>>, vector<1152x256xbf16>
    %cst = arith.constant dense<0.000000e+00> : vector<128x256xf32>
    %2 = tpu.matmul %0, %1, %cst {dimension_numbers = #tpu.dot_dimension_numbers<[1], [0], [0], [1], [0, 0, 1, 1], [], []>} : vector<128x1152xbf16>, vector<1152x256xbf16>, vector<128x256xf32> -> vector<128x256xf32>
    %c0_3 = arith.constant 0 : index
    %c0_4 = arith.constant 0 : index
    %3 = vector.load %arg3[%c0_3, %c0_4] : memref<1x256xf32, #tpu.memory_space<vmem>>, vector<1x256xf32>
    %4 = vector.broadcast %3 : vector<1x256xf32> to vector<128x256xf32>
    %5 = arith.addf %2, %4 : vector<128x256xf32>
    %cst_5 = arith.constant 0.000000e+00 : f32
    %6 = vector.broadcast %cst_5 : f32 to vector<128x256xf32>
    %7 = arith.maximumf %5, %6 : vector<128x256xf32>
    %8 = arith.truncf %7 : vector<128x256xf32> to vector<128x256xbf16>
    %c0_6 = arith.constant 0 : index
    %c0_7 = arith.constant 0 : index
    %9 = vector.load %arg4[%c0_6, %c0_7] : memref<128x256xbf16, #tpu.memory_space<vmem>>, vector<128x256xbf16>
    tpu.vector_store %arg4[%c0_6, %c0_7], %8 {strides = array<i32>} : memref<128x256xbf16, #tpu.memory_space<vmem>>, vector<128x256xbf16>,
    return
  }
  func.func @transform_0(%arg0: i32) -> (i32, i32) {
    %c0_i32 = arith.constant 0 : i32
    %c0_i32_0 = arith.constant 0 : i32
    return %arg0, %c0_i32 : i32, i32
  }
  func.func @transform_1(%arg0: i32) -> (i32, i32) {
    %c0_i32 = arith.constant 0 : i32
    %c0_i32_0 = arith.constant 0 : i32
    %c0_i32_1 = arith.constant 0 : i32
    return %c0_i32, %c0_i32_0 : i32, i32
  }
  func.func @transform_2(%arg0: i32) -> (i32, i32) {
    %c0_i32 = arith.constant 0 : i32
    %c0_i32_0 = arith.constant 0 : i32
    %c0_i32_1 = arith.constant 0 : i32
    return %c0_i32, %c0_i32_0 : i32, i32
  }
  func.func @transform_3(%arg0: i32) -> (i32, i32) {
    %c0_i32 = arith.constant 0 : i32
    %c0_i32_0 = arith.constant 0 : i32
    return %arg0, %c0_i32 : i32, i32
  }
}

module attributes {stable_mosaic.version = 11 : i64} {
  func.func @_mm_bias_act_kernel(%arg0: i32, %arg1: memref<256x640xbf16, #tpu.memory_space<vmem>>, %arg2: memref<640x128xbf16, #tpu.memory_space<vmem>>, %arg3: memref<1x128xf32, #tpu.memory_space<vmem>>, %arg4: memref<256x128xbf16, #tpu.memory_space<vmem>>) attributes {dimension_semantics = [#tpu.dimension_semantics<parallel>], iteration_bounds = array<i64: 8>, scalar_prefetch = 0 : i64, scratch_operands = 0 : i64, tpu.core_type = #tpu.core_type<tc>, window_params = [{transform_indices = @transform_0, window_bounds = array<i64: 256, 640>}, {pipeline_mode = #tpu.pipeline_mode<synchronous>, transform_indices = @transform_1, window_bounds = array<i64: 640, 128>}, {pipeline_mode = #tpu.pipeline_mode<synchronous>, transform_indices = @transform_2, window_bounds = array<i64: 1, 128>}, {transform_indices = @transform_3, window_bounds = array<i64: 256, 128>}]} {
    %c0 = arith.constant 0 : index
    %c0_0 = arith.constant 0 : index
    %0 = vector.load %arg1[%c0, %c0_0] : memref<256x640xbf16, #tpu.memory_space<vmem>>, vector<256x640xbf16>
    %c0_1 = arith.constant 0 : index
    %c0_2 = arith.constant 0 : index
    %1 = vector.load %arg2[%c0_1, %c0_2] : memref<640x128xbf16, #tpu.memory_space<vmem>>, vector<640x128xbf16>
    %cst = arith.constant dense<0.000000e+00> : vector<256x128xf32>
    %2 = tpu.matmul %0, %1, %cst {dimension_numbers = #tpu.dot_dimension_numbers<[1], [0], [0], [1], [0, 0, 1, 1], [], []>} : vector<256x640xbf16>, vector<640x128xbf16>, vector<256x128xf32> -> vector<256x128xf32>
    %c0_3 = arith.constant 0 : index
    %c0_4 = arith.constant 0 : index
    %3 = vector.load %arg3[%c0_3, %c0_4] : memref<1x128xf32, #tpu.memory_space<vmem>>, vector<1x128xf32>
    %4 = vector.broadcast %3 : vector<1x128xf32> to vector<256x128xf32>
    %5 = arith.addf %2, %4 : vector<256x128xf32>
    %cst_5 = arith.constant 0.000000e+00 : f32
    %6 = vector.broadcast %cst_5 : f32 to vector<256x128xf32>
    %7 = arith.maximumf %5, %6 : vector<256x128xf32>
    %8 = arith.truncf %7 : vector<256x128xf32> to vector<256x128xbf16>
    %c0_6 = arith.constant 0 : index
    %c0_7 = arith.constant 0 : index
    %9 = vector.load %arg4[%c0_6, %c0_7] : memref<256x128xbf16, #tpu.memory_space<vmem>>, vector<256x128xbf16>
    tpu.vector_store %arg4[%c0_6, %c0_7], %8 {strides = array<i32>} : memref<256x128xbf16, #tpu.memory_space<vmem>>, vector<256x128xbf16>,
    return
  }
  func.func @transform_0(%arg0: i32) -> (i32, i32) {
    %c0_i32 = arith.constant 0 : i32
    %c0_i32_0 = arith.constant 0 : i32
    return %arg0, %c0_i32 : i32, i32
  }
  func.func @transform_1(%arg0: i32) -> (i32, i32) {
    %c0_i32 = arith.constant 0 : i32
    %c0_i32_0 = arith.constant 0 : i32
    %c0_i32_1 = arith.constant 0 : i32
    return %c0_i32, %c0_i32_0 : i32, i32
  }
  func.func @transform_2(%arg0: i32) -> (i32, i32) {
    %c0_i32 = arith.constant 0 : i32
    %c0_i32_0 = arith.constant 0 : i32
    %c0_i32_1 = arith.constant 0 : i32
    return %c0_i32, %c0_i32_0 : i32, i32
  }
  func.func @transform_3(%arg0: i32) -> (i32, i32) {
    %c0_i32 = arith.constant 0 : i32
    %c0_i32_0 = arith.constant 0 : i32
    return %arg0, %c0_i32 : i32, i32
  }
}

module attributes {stable_mosaic.version = 11 : i64} {
  func.func @_mm_bias_act_kernel(%arg0: i32, %arg1: memref<256x1152xbf16, #tpu.memory_space<vmem>>, %arg2: memref<1152x128xbf16, #tpu.memory_space<vmem>>, %arg3: memref<1x128xf32, #tpu.memory_space<vmem>>, %arg4: memref<256x128xbf16, #tpu.memory_space<vmem>>) attributes {dimension_semantics = [#tpu.dimension_semantics<parallel>], iteration_bounds = array<i64: 8>, scalar_prefetch = 0 : i64, scratch_operands = 0 : i64, tpu.core_type = #tpu.core_type<tc>, window_params = [{transform_indices = @transform_0, window_bounds = array<i64: 256, 1152>}, {pipeline_mode = #tpu.pipeline_mode<synchronous>, transform_indices = @transform_1, window_bounds = array<i64: 1152, 128>}, {pipeline_mode = #tpu.pipeline_mode<synchronous>, transform_indices = @transform_2, window_bounds = array<i64: 1, 128>}, {transform_indices = @transform_3, window_bounds = array<i64: 256, 128>}]} {
    %c0 = arith.constant 0 : index
    %c0_0 = arith.constant 0 : index
    %0 = vector.load %arg1[%c0, %c0_0] : memref<256x1152xbf16, #tpu.memory_space<vmem>>, vector<256x1152xbf16>
    %c0_1 = arith.constant 0 : index
    %c0_2 = arith.constant 0 : index
    %1 = vector.load %arg2[%c0_1, %c0_2] : memref<1152x128xbf16, #tpu.memory_space<vmem>>, vector<1152x128xbf16>
    %cst = arith.constant dense<0.000000e+00> : vector<256x128xf32>
    %2 = tpu.matmul %0, %1, %cst {dimension_numbers = #tpu.dot_dimension_numbers<[1], [0], [0], [1], [0, 0, 1, 1], [], []>} : vector<256x1152xbf16>, vector<1152x128xbf16>, vector<256x128xf32> -> vector<256x128xf32>
    %c0_3 = arith.constant 0 : index
    %c0_4 = arith.constant 0 : index
    %3 = vector.load %arg3[%c0_3, %c0_4] : memref<1x128xf32, #tpu.memory_space<vmem>>, vector<1x128xf32>
    %4 = vector.broadcast %3 : vector<1x128xf32> to vector<256x128xf32>
    %5 = arith.addf %2, %4 : vector<256x128xf32>
    %cst_5 = arith.constant 0.000000e+00 : f32
    %6 = vector.broadcast %cst_5 : f32 to vector<256x128xf32>
    %7 = arith.maximumf %5, %6 : vector<256x128xf32>
    %8 = arith.truncf %7 : vector<256x128xf32> to vector<256x128xbf16>
    %c0_6 = arith.constant 0 : index
    %c0_7 = arith.constant 0 : index
    %9 = vector.load %arg4[%c0_6, %c0_7] : memref<256x128xbf16, #tpu.memory_space<vmem>>, vector<256x128xbf16>
    tpu.vector_store %arg4[%c0_6, %c0_7], %8 {strides = array<i32>} : memref<256x128xbf16, #tpu.memory_space<vmem>>, vector<256x128xbf16>,
    return
  }
  func.func @transform_0(%arg0: i32) -> (i32, i32) {
    %c0_i32 = arith.constant 0 : i32
    %c0_i32_0 = arith.constant 0 : i32
    return %arg0, %c0_i32 : i32, i32
  }
  func.func @transform_1(%arg0: i32) -> (i32, i32) {
    %c0_i32 = arith.constant 0 : i32
    %c0_i32_0 = arith.constant 0 : i32
    %c0_i32_1 = arith.constant 0 : i32
    return %c0_i32, %c0_i32_0 : i32, i32
  }
  func.func @transform_2(%arg0: i32) -> (i32, i32) {
    %c0_i32 = arith.constant 0 : i32
    %c0_i32_0 = arith.constant 0 : i32
    %c0_i32_1 = arith.constant 0 : i32
    return %c0_i32, %c0_i32_0 : i32, i32
  }
  func.func @transform_3(%arg0: i32) -> (i32, i32) {
    %c0_i32 = arith.constant 0 : i32
    %c0_i32_0 = arith.constant 0 : i32
    return %arg0, %c0_i32 : i32, i32
  }
}

module attributes {stable_mosaic.version = 11 : i64} {
  func.func @_mm_bias_act_kernel(%arg0: i32, %arg1: memref<512x1152xbf16, #tpu.memory_space<vmem>>, %arg2: memref<1152x128xbf16, #tpu.memory_space<vmem>>, %arg3: memref<1x128xf32, #tpu.memory_space<vmem>>, %arg4: memref<512x128xbf16, #tpu.memory_space<vmem>>) attributes {dimension_semantics = [#tpu.dimension_semantics<parallel>], iteration_bounds = array<i64: 16>, scalar_prefetch = 0 : i64, scratch_operands = 0 : i64, tpu.core_type = #tpu.core_type<tc>, window_params = [{transform_indices = @transform_0, window_bounds = array<i64: 512, 1152>}, {pipeline_mode = #tpu.pipeline_mode<synchronous>, transform_indices = @transform_1, window_bounds = array<i64: 1152, 128>}, {pipeline_mode = #tpu.pipeline_mode<synchronous>, transform_indices = @transform_2, window_bounds = array<i64: 1, 128>}, {transform_indices = @transform_3, window_bounds = array<i64: 512, 128>}]} {
    %c0 = arith.constant 0 : index
    %c0_0 = arith.constant 0 : index
    %0 = vector.load %arg1[%c0, %c0_0] : memref<512x1152xbf16, #tpu.memory_space<vmem>>, vector<512x1152xbf16>
    %c0_1 = arith.constant 0 : index
    %c0_2 = arith.constant 0 : index
    %1 = vector.load %arg2[%c0_1, %c0_2] : memref<1152x128xbf16, #tpu.memory_space<vmem>>, vector<1152x128xbf16>
    %cst = arith.constant dense<0.000000e+00> : vector<512x128xf32>
    %2 = tpu.matmul %0, %1, %cst {dimension_numbers = #tpu.dot_dimension_numbers<[1], [0], [0], [1], [0, 0, 1, 1], [], []>} : vector<512x1152xbf16>, vector<1152x128xbf16>, vector<512x128xf32> -> vector<512x128xf32>
    %c0_3 = arith.constant 0 : index
    %c0_4 = arith.constant 0 : index
    %3 = vector.load %arg3[%c0_3, %c0_4] : memref<1x128xf32, #tpu.memory_space<vmem>>, vector<1x128xf32>
    %4 = vector.broadcast %3 : vector<1x128xf32> to vector<512x128xf32>
    %5 = arith.addf %2, %4 : vector<512x128xf32>
    %cst_5 = arith.constant 0.000000e+00 : f32
    %6 = vector.broadcast %cst_5 : f32 to vector<512x128xf32>
    %7 = arith.maximumf %5, %6 : vector<512x128xf32>
    %8 = arith.truncf %7 : vector<512x128xf32> to vector<512x128xbf16>
    %c0_6 = arith.constant 0 : index
    %c0_7 = arith.constant 0 : index
    %9 = vector.load %arg4[%c0_6, %c0_7] : memref<512x128xbf16, #tpu.memory_space<vmem>>, vector<512x128xbf16>
    tpu.vector_store %arg4[%c0_6, %c0_7], %8 {strides = array<i32>} : memref<512x128xbf16, #tpu.memory_space<vmem>>, vector<512x128xbf16>,
    return
  }
  func.func @transform_0(%arg0: i32) -> (i32, i32) {
    %c0_i32 = arith.constant 0 : i32
    %c0_i32_0 = arith.constant 0 : i32
    return %arg0, %c0_i32 : i32, i32
  }
  func.func @transform_1(%arg0: i32) -> (i32, i32) {
    %c0_i32 = arith.constant 0 : i32
    %c0_i32_0 = arith.constant 0 : i32
    %c0_i32_1 = arith.constant 0 : i32
    return %c0_i32, %c0_i32_0 : i32, i32
  }
  func.func @transform_2(%arg0: i32) -> (i32, i32) {
    %c0_i32 = arith.constant 0 : i32
    %c0_i32_0 = arith.constant 0 : i32
    %c0_i32_1 = arith.constant 0 : i32
    return %c0_i32, %c0_i32_0 : i32, i32
  }
  func.func @transform_3(%arg0: i32) -> (i32, i32) {
    %c0_i32 = arith.constant 0 : i32
    %c0_i32_0 = arith.constant 0 : i32
    return %arg0, %c0_i32 : i32, i32
  }
}

</mosaic_0001>

<bundles_post_ra>
// kernel: mdenet_forward.29
= control target key start
LH: loop header
LB: loop body
LE: loop exit
PB: predicated region body
PF: predicated region fallthrough
CT: control target
= control target key end

     0   :  { %s2907_s12 = smov 0   ;;  %s3721_s0 = inlined_call_operand.vmem [shape: bf16[512,1152], index: 0, kind: input, shape index: {}]   ;;  %s3722_s1 = inlined_call_operand.vmem [shape: bf16[1152,256], index: 1, kind: input, shape index: {}]   ;;  %s3723_s2 = inlined_call_operand.vmem [shape: f32[1,256], index: 2, kind: input, shape index: {}]   ;;  %s3724_s3 = inlined_call_operand.vmem [shape: bf16[512,256], index: 3, kind: output, shape index: {}]  }
   0x1 LB: > { %s2271_s13 = sadd.s32 4294967295, %s2884_s12   ;;  %p2275_p0 = scmp.ge.s32.totalorder %s2884_s12, 1  ;;  %s2884_s12 = sphi %s2907_s12, %s13_s12  }
   0x2   : > { %p139_p1 = scmp.lt.s32.totalorder %s2884_s12, 5 }
   0x4   : > { %p140_p2 = pnand %p2275_p0, %p139_p1 }
   0x6   : > { %143 = sbr.rel (%p140_p2) target bundleno = 435 (0x1b3), region = 32 }
   0xb   : > { %v2558_v0 = vld [vmem:[%s3722_s1 + $0x74] ss:$8 sps:$4 sm:$0xff]   ;;  %v2562_v2 = vld [vmem:[%s3722_s1 + $0x70] ss:$8 sps:$4 sm:$0xff]   ;;  %v2564_v4 = vld [vmem:[%s3722_s1 + $0x64] ss:$8 sps:$4 sm:$0xff]  }
   0xc   : > { %v2560_v1 = vld [vmem:[%s3722_s1 + $0x174] ss:$8 sps:$4 sm:$0xff]   ;;  %1504 = vmatprep.subr.bf16.mxu0 %v2558_v0  ;;  %v2563_v3 = vld [vmem:[%s3722_s1 + $0x170] ss:$8 sps:$4 sm:$0xff]   ;;  %v2566_v5 = vld [vmem:[%s3722_s1 + $0x164] ss:$8 sps:$4 sm:$0xff]  }
   0xd   : > { %1617 = vmatprep.subr.bf16.mxu1 %v2560_v1  ;;  %1505 = vmatpush1.bf16.msra.mxu0 %v2562_v2  ;;  %v2568_v6 = vld [vmem:[%s3722_s1 + $0x60] ss:$8 sps:$4 sm:$0xff]   ;;  %v2570_v8 = vld [vmem:[%s3722_s1 + $0x54] ss:$8 sps:$4 sm:$0xff]   ;;  %v2574_v10 = vld [vmem:[%s3722_s1 + $0x50] ss:$8 sps:$4 sm:$0xff]  }
   0xe   : > { %1618 = vmatpush1.bf16.msra.mxu1 %v2563_v3  ;;  %1506 = vmatprep.subr.bf16.mxu0 %v2564_v4  ;;  %v2569_v7 = vld [vmem:[%s3722_s1 + $0x160] ss:$8 sps:$4 sm:$0xff]   ;;  %v2572_v9 = vld [vmem:[%s3722_s1 + $0x154] ss:$8 sps:$4 sm:$0xff]   ;;  %v2575_v11 = vld [vmem:[%s3722_s1 + $0x150] ss:$8 sps:$4 sm:$0xff]  }
   0xf   : > { %1619 = vmatprep.subr.bf16.mxu1 %v2566_v5  ;;  %v2576_v12 = vld [vmem:[%s3722_s1 + $0x44] ss:$8 sps:$4 sm:$0xff]   ;;  %v2580_v14 = vld [vmem:[%s3722_s1 + $0x40] ss:$8 sps:$4 sm:$0xff]   ;;  %v2582_v16 = vld [vmem:[%s3722_s1 + $0x34] ss:$8 sps:$4 sm:$0xff]  }
  0x10   : > { %v2578_v13 = vld [vmem:[%s3722_s1 + $0x144] ss:$8 sps:$4 sm:$0xff]   ;;  %v2581_v15 = vld [vmem:[%s3722_s1 + $0x140] ss:$8 sps:$4 sm:$0xff]   ;;  %v2584_v17 = vld [vmem:[%s3722_s1 + $0x134] ss:$8 sps:$4 sm:$0xff]  }
  0x11   : > { %1507 = vmatpush1.bf16.msra.mxu0 %v2568_v6  ;;  %v2586_v18 = vld [vmem:[%s3722_s1 + $0x30] ss:$8 sps:$4 sm:$0xff]   ;;  %v2588_v20 = vld [vmem:[%s3722_s1 + $0x24] ss:$8 sps:$4 sm:$0xff]   ;;  %v2592_v22 = vld [vmem:[%s3722_s1 + $0x20] ss:$8 sps:$4 sm:$0xff]  }
  0x12   : > { %1620 = vmatpush1.bf16.msra.mxu1 %v2569_v7  ;;  %1508 = vmatprep.subr.bf16.mxu0 %v2570_v8  ;;  %v2587_v19 = vld [vmem:[%s3722_s1 + $0x130] ss:$8 sps:$4 sm:$0xff]   ;;  %v2590_v21 = vld [vmem:[%s3722_s1 + $0x124] ss:$8 sps:$4 sm:$0xff]   ;;  %v2593_v23 = vld [vmem:[%s3722_s1 + $0x120] ss:$8 sps:$4 sm:$0xff]  }
  0x13   : > { %1621 = vmatprep.subr.bf16.mxu1 %v2572_v9  ;;  %v2594_v24 = vld [vmem:[%s3722_s1 + $0x14] ss:$8 sps:$4 sm:$0xff]   ;;  %v2598_v26 = vld [vmem:[%s3722_s1 + $0x10] ss:$8 sps:$4 sm:$0xff]   ;;  %v2600_v28 = vld [vmem:[%s3722_s1 + $0x4] ss:$8 sps:$4 sm:$0xff]  }
  0x14   : > { %v2596_v25 = vld [vmem:[%s3722_s1 + $0x114] ss:$8 sps:$4 sm:$0xff]   ;;  %v2599_v27 = vld [vmem:[%s3722_s1 + $0x110] ss:$8 sps:$4 sm:$0xff]   ;;  %v2602_v29 = vld [vmem:[%s3722_s1 + $0x104] ss:$8 sps:$4 sm:$0xff]  }
  0x15   : > { %1509 = vmatpush1.bf16.msra.mxu0 %v2574_v10  ;;  %s2276_s24 = sshll.u32 %s2271_s13, 4  ;;  %v2604_v30 = vld [vmem:[%s3722_s1] ss:$8 sps:$4 sm:$0xff]   ;;  %v2606_v32 = vld [vmem:[%s3722_s1 + $0xf4] ss:$8 sps:$4 sm:$0xff]  }
  0x16   : > { %1622 = vmatpush1.bf16.msra.mxu1 %v2575_v11  ;;  %1510 = vmatprep.subr.bf16.mxu0 %v2576_v12  ;;  %v2605_v31 = vld [vmem:[%s3722_s1 + $0x100] ss:$8 sps:$4 sm:$0xff]   ;;  %p166_p3 = scmp.lt.s32.totalorder %s2276_s24, 63  ;;  %v2608_v33 = vld [vmem:[%s3722_s1 + $0x1f4] ss:$8 sps:$4 sm:$0xff]  }
  0x17   : > { %1623 = vmatprep.subr.bf16.mxu1 %v2578_v13  ;;  %v2610_v34 = vld [vmem:[%s3722_s1 + $0xf0] ss:$8 sps:$4 sm:$0xff]   ;;  %v2612_v36 = vld [vmem:[%s3722_s1 + $0xe4] ss:$8 sps:$4 sm:$0xff]   ;;  %v2616_v38 = vld [vmem:[%s3722_s1 + $0xe0] ss:$8 sps:$4 sm:$0xff]  }
  0x18   : > { %v2611_v35 = vld [vmem:[%s3722_s1 + $0x1f0] ss:$8 sps:$4 sm:$0xff]   ;;  %s3776_s24 = smov (!%p166_p3, %s2276_s24), 63  ;;  %v2614_v37 = vld [vmem:[%s3722_s1 + $0x1e4] ss:$8 sps:$4 sm:$0xff]  }
  0x19   : > { %1511 = vmatpush1.bf16.msra.mxu0 %v2580_v14  ;;  %v2617_v39 = vld [vmem:[%s3722_s1 + $0x1e0] ss:$8 sps:$4 sm:$0xff]   ;;  %v2618_v40 = vld [vmem:[%s3722_s1 + $0xd4] ss:$8 sps:$4 sm:$0xff]   ;;  %s2548_s21 = smul.u32 36, %s3776_s24 }
  0x1a   : > { %1624 = vmatpush1.bf16.msra.mxu1 %v2581_v15  ;;  %1512 = vmatprep.subr.bf16.mxu0 %v2582_v16  ;;  %v2620_v41 = vld [vmem:[%s3722_s1 + $0x1d4] ss:$8 sps:$4 sm:$0xff]   ;;  %v2622_v42 = vld [vmem:[%s3722_s1 + $0xd0] ss:$8 sps:$4 sm:$0xff]   ;;  %v2624_v44 = vld [vmem:[%s3722_s1 + $0xc4] ss:$8 sps:$4 sm:$0xff]  }
  0x1b   : > { %1625 = vmatprep.subr.bf16.mxu1 %v2584_v17  ;;  %v2623_v43 = vld [vmem:[%s3722_s1 + $0x1d0] ss:$8 sps:$4 sm:$0xff]   ;;  %s3058_s13 = scalar_lea.vmem %s3721_s0, %s2548_s21  ;;  %v2626_v45 = vld [vmem:[%s3722_s1 + $0x1c4] ss:$8 sps:$4 sm:$0xff]   ;;  %v2628_v46 = vld [vmem:[%s3722_s1 + $0xc0] ss:$8 sps:$4 sm:$0xff]  }
  0x1c   : > { %v2629_v47 = vld [vmem:[%s3722_s1 + $0x1c0] ss:$8 sps:$4 sm:$0xff]   ;;  %v2630_v48 = vld [vmem:[%s3722_s1 + $0xb4] ss:$8 sps:$4 sm:$0xff]   ;;  %v2659_v51 = vld [vmem:[%s3058_s13 + $0xc] ss:$36 sps:$4 sm:$0xff]  }
  0x1d   : > { %1513 = vmatpush1.bf16.msra.mxu0 %v2586_v18  ;;  %v2656_v49 = vld [vmem:[%s3058_s13 + $0x4] ss:$36 sps:$4 sm:$0xff]   ;;  %v2632_v50 = vld [vmem:[%s3722_s1 + $0x1b4] ss:$8 sps:$4 sm:$0xff]   ;;  %v2634_v52 = vld [vmem:[%s3722_s1 + $0xb0] ss:$8 sps:$4 sm:$0xff]   ;;  %1649 = vmatprep.mubr.bf16.mxu1 %v2659_v51 }
  0x1e   : > { %1626 = vmatpush1.bf16.msra.mxu1 %v2587_v19  ;;  %1514 = vmatprep.subr.bf16.mxu0 %v2588_v20  ;;  %v2635_v53 = vld [vmem:[%s3722_s1 + $0x1b0] ss:$8 sps:$4 sm:$0xff]   ;;  %v2636_v54 = vld [vmem:[%s3722_s1 + $0xa4] ss:$8 sps:$4 sm:$0xff]   ;;  %v2640_v56 = vld [vmem:[%s3722_s1 + $0xa0] ss:$8 sps:$4 sm:$0xff]  }
  0x1f   : > { %1627 = vmatprep.subr.bf16.mxu1 %v2590_v21  ;;  %1536 = vmatprep.mubr.bf16.mxu0 %v2656_v49  ;;  %v2638_v55 = vld [vmem:[%s3722_s1 + $0x1a4] ss:$8 sps:$4 sm:$0xff]   ;;  %v2641_v57 = vld [vmem:[%s3722_s1 + $0x1a0] ss:$8 sps:$4 sm:$0xff]   ;;  %v2642_v58 = vld [vmem:[%s3722_s1 + $0x94] ss:$8 sps:$4 sm:$0xff]  }
  0x20   : > { %v2644_v59 = vld [vmem:[%s3722_s1 + $0x194] ss:$8 sps:$4 sm:$0xff]   ;;  %v2646_v60 = vld [vmem:[%s3722_s1 + $0x90] ss:$8 sps:$4 sm:$0xff]   ;;  %v2648_v62 = vld [vmem:[%s3722_s1 + $0x84] ss:$8 sps:$4 sm:$0xff]  }
  0x21   : > { %1515 = vmatpush1.bf16.msra.mxu0 %v2592_v22  ;;  %v2647_v61 = vld [vmem:[%s3722_s1 + $0x190] ss:$8 sps:$4 sm:$0xff]   ;;  %v2650_v63 = vld [vmem:[%s3722_s1 + $0x184] ss:$8 sps:$4 sm:$0xff]   ;;  %v2652_v0 = vld [vmem:[%s3722_s1 + $0x80] ss:$8 sps:$4 sm:$0xff]  }
  0x22   : > { %1628 = vmatpush1.bf16.msra.mxu1 %v2593_v23  ;;  %1516 = vmatprep.subr.bf16.mxu0 %v2594_v24  ;;  %v2653_v1 = vld [vmem:[%s3722_s1 + $0x180] ss:$8 sps:$4 sm:$0xff]   ;;  %v2662_v2 = vld [vmem:[%s3722_s1 + $0x274] ss:$8 sps:$4 sm:$0xff]   ;;  %v2660_v6 = vld [vmem:[%s3722_s1 + $0x270] ss:$8 sps:$4 sm:$0xff]  }
  0x23   : > { %1629 = vmatprep.subr.bf16.mxu1 %v2596_v25  ;;  %v2665_v3 = vld [vmem:[%s3722_s1 + $0x374] ss:$8 sps:$4 sm:$0xff]   ;;  %v2654_v4 = vld [vmem:[%s3058_s13] ss:$36 sps:$4 sm:$0xff]   ;;  %v2657_v5 = vld [vmem:[%s3058_s13 + $0x8] ss:$36 sps:$4 sm:$0xff]  }
  0x24   : > { %v2663_v7 = vld [vmem:[%s3722_s1 + $0x370] ss:$8 sps:$4 sm:$0xff]   ;;  %v2668_v8 = vld [vmem:[%s3722_s1 + $0x264] ss:$8 sps:$4 sm:$0xff]   ;;  %v2666_v12 = vld [vmem:[%s3722_s1 + $0x260] ss:$8 sps:$4 sm:$0xff]  }
  0x25   : > { %1517 = vmatpush1.bf16.msra.mxu0 %v2598_v26  ;;  %v2671_v9 = vld [vmem:[%s3722_s1 + $0x364] ss:$8 sps:$4 sm:$0xff]   ;;  %v2674_v11 = vld [vmem:[%s3058_s13 + $0x54] ss:$36 sps:$4 sm:$0xff]   ;;  %v2669_v13 = vld [vmem:[%s3722_s1 + $0x360] ss:$8 sps:$4 sm:$0xff]  }
  0x26   : > { %1630 = vmatpush1.bf16.msra.mxu1 %v2599_v27  ;;  %1518 = vmatprep.subr.bf16.mxu0 %v2600_v28  ;;  %v2672_v10 = vld [vmem:[%s3058_s13 + $0x4c] ss:$36 sps:$4 sm:$0xff]   ;;  %v2680_v14 = vld [vmem:[%s3722_s1 + $0x254] ss:$8 sps:$4 sm:$0xff]   ;;  %v2684_v24 = vld [vmem:[%s3722_s1 + $0x240] ss:$8 sps:$4 sm:$0xff]  }
  0x27   : > { %1631 = vmatprep.subr.bf16.mxu1 %v2602_v29  ;;  %v2683_v15 = vld [vmem:[%s3722_s1 + $0x354] ss:$8 sps:$4 sm:$0xff]   ;;  %v2676_v16 = vld [vmem:[%s3058_s13 + $0x48] ss:$36 sps:$4 sm:$0xff]   ;;  %v2678_v18 = vld [vmem:[%s3722_s1 + $0x250] ss:$8 sps:$4 sm:$0xff]  }
  0x28   : > { %v2677_v17 = vld [vmem:[%s3058_s13 + $0x50] ss:$36 sps:$4 sm:$0xff]   ;;  %v2686_v20 = vld [vmem:[%s3722_s1 + $0x244] ss:$8 sps:$4 sm:$0xff]   ;;  %v2692_v23 = vld [vmem:[%s3058_s13 + $0x9c] ss:$36 sps:$4 sm:$0xff]  }
  0x29   : > { %1519 = vmatpush1.bf16.msra.mxu0 %v2604_v30  ;;  %v2681_v19 = vld [vmem:[%s3722_s1 + $0x350] ss:$8 sps:$4 sm:$0xff]   ;;  %v2689_v21 = vld [vmem:[%s3722_s1 + $0x344] ss:$8 sps:$4 sm:$0xff]   ;;  %v2687_v25 = vld [vmem:[%s3722_s1 + $0x340] ss:$8 sps:$4 sm:$0xff]  }
  0x2a   : > { %1632 = vmatpush1.bf16.msra.mxu1 %v2605_v31  ;;  %1520 = vmatprep.subr.bf16.mxu0 %v2606_v32  ;;  %v2690_v22 = vld [vmem:[%s3058_s13 + $0x94] ss:$36 sps:$4 sm:$0xff]   ;;  %v2704_v32 = vld [vmem:[%s3722_s1 + $0x224] ss:$8 sps:$4 sm:$0xff]   ;;  %v2723_v49 = vld [vmem:[%s3722_s1 + $0x300] ss:$8 sps:$4 sm:$0xff]  }
  0x2b   : > { %1633 = vmatprep.subr.bf16.mxu1 %v2608_v33  ;;  %v2698_v26 = vld [vmem:[%s3722_s1 + $0x234] ss:$8 sps:$4 sm:$0xff]   ;;  %v2696_v30 = vld [vmem:[%s3722_s1 + $0x230] ss:$8 sps:$4 sm:$0xff]   ;;  %v2707_v33 = vld [vmem:[%s3722_s1 + $0x324] ss:$8 sps:$4 sm:$0xff]  }
  0x2c   : > { %v2701_v27 = vld [vmem:[%s3722_s1 + $0x334] ss:$8 sps:$4 sm:$0xff]   ;;  %v2699_v31 = vld [vmem:[%s3722_s1 + $0x330] ss:$8 sps:$4 sm:$0xff]  }
  0x2d   : > { %1521 = vmatpush2.bf16.msra.mxu0 %v2610_v34  ;;  %v2694_v28 = vld [vmem:[%s3058_s13 + $0x90] ss:$36 sps:$4 sm:$0xff]   ;;  %v2695_v29 = vld [vmem:[%s3058_s13 + $0x98] ss:$36 sps:$4 sm:$0xff]  }
  0x2e   : > { %1634 = vmatpush2.bf16.msra.mxu1 %v2611_v35  ;;  %1522 = vmatprep.subr.bf16.mxu0 %v2612_v36  ;;  %v2708_v34 = vld [vmem:[%s3058_s13 + $0xdc] ss:$36 sps:$4 sm:$0xff]   ;;  %v2710_v35 = vld [vmem:[%s3058_s13 + $0xe4] ss:$36 sps:$4 sm:$0xff]  }
  0x2f   : > { %1635 = vmatprep.subr.bf16.mxu1 %v2614_v37  ;;  %v2702_v36 = vld [vmem:[%s3722_s1 + $0x220] ss:$8 sps:$4 sm:$0xff]   ;;  %v2737_v51 = vld [vmem:[%s3722_s1 + $0x3f4] ss:$8 sps:$4 sm:$0xff]  }
  0x30   : > { %v2705_v37 = vld [vmem:[%s3722_s1 + $0x320] ss:$8 sps:$4 sm:$0xff]  }
  0x31   : > { %1523 = vmatpush2.bf16.msra.mxu0 %v2616_v38  ;;  %v2716_v38 = vld [vmem:[%s3722_s1 + $0x214] ss:$8 sps:$4 sm:$0xff]  }
  0x32   : > { %1636 = vmatpush2.bf16.msra.mxu1 %v2617_v39  ;;  %1524 = vmatprep.subr.bf16.mxu0 %v2618_v40  ;;  %v2719_v39 = vld [vmem:[%s3722_s1 + $0x314] ss:$8 sps:$4 sm:$0xff]  }
  0x33   : > { %1637 = vmatprep.subr.bf16.mxu1 %v2620_v41  ;;  %v2712_v40 = vld [vmem:[%s3058_s13 + $0xd8] ss:$36 sps:$4 sm:$0xff]   ;;  %v2713_v41 = vld [vmem:[%s3058_s13 + $0xe0] ss:$36 sps:$4 sm:$0xff]  }
  0x35   : > { %1525 = vmatpush2.bf16.msra.mxu0 %v2622_v42  ;;  %v2714_v42 = vld [vmem:[%s3722_s1 + $0x210] ss:$8 sps:$4 sm:$0xff]  }
  0x36   : > { %1638 = vmatpush2.bf16.msra.mxu1 %v2623_v43  ;;  %1526 = vmatprep.subr.bf16.mxu0 %v2624_v44  ;;  %v2717_v43 = vld [vmem:[%s3722_s1 + $0x310] ss:$8 sps:$4 sm:$0xff]   ;;  %v2722_v44 = vld [vmem:[%s3722_s1 + $0x204] ss:$8 sps:$4 sm:$0xff]  }
  0x37   : > { %1639 = vmatprep.subr.bf16.mxu1 %v2626_v45  ;;  %v2725_v45 = vld [vmem:[%s3722_s1 + $0x304] ss:$8 sps:$4 sm:$0xff]  }
  0x39   : > { %1527 = vmatpush2.bf16.msra.mxu0 %v2628_v46  ;;  %v2726_v46 = vld [vmem:[%s3058_s13 + $0x124] ss:$36 sps:$4 sm:$0xff]  }
  0x3a   : > { %1640 = vmatpush2.bf16.msra.mxu1 %v2629_v47  ;;  %1528 = vmatprep.subr.bf16.mxu0 %v2630_v48  ;;  %v2728_v47 = vld [vmem:[%s3058_s13 + $0x12c] ss:$36 sps:$4 sm:$0xff]   ;;  %v2720_v48 = vld [vmem:[%s3722_s1 + $0x200] ss:$8 sps:$4 sm:$0xff]  }
  0x3b   : > { %1641 = vmatprep.subr.bf16.mxu1 %v2632_v50  ;;  %v2734_v50 = vld [vmem:[%s3722_s1 + $0x2f4] ss:$8 sps:$4 sm:$0xff]  }
  0x3d   : > { %1529 = vmatpush2.bf16.msra.mxu0 %v2634_v52  ;;  %v2730_v52 = vld [vmem:[%s3058_s13 + $0x120] ss:$36 sps:$4 sm:$0xff]  }
  0x3e   : > { %1642 = vmatpush2.bf16.msra.mxu1 %v2635_v53  ;;  %1530 = vmatprep.subr.bf16.mxu0 %v2636_v54  ;;  %v2731_v53 = vld [vmem:[%s3058_s13 + $0x128] ss:$36 sps:$4 sm:$0xff]   ;;  %v2732_v54 = vld [vmem:[%s3722_s1 + $0x2f0] ss:$8 sps:$4 sm:$0xff]  }
  0x3f   : > { %1643 = vmatprep.subr.bf16.mxu1 %v2638_v55  ;;  %v2735_v55 = vld [vmem:[%s3722_s1 + $0x3f0] ss:$8 sps:$4 sm:$0xff]  }
  0x41   : > { %1531 = vmatpush2.bf16.msra.mxu0 %v2640_v56  ;;  %v2740_v56 = vld [vmem:[%s3722_s1 + $0x2e4] ss:$8 sps:$4 sm:$0xff]  }
  0x42   : > { %1644 = vmatpush2.bf16.msra.mxu1 %v2641_v57  ;;  %1532 = vmatprep.subr.bf16.mxu0 %v2642_v58  ;;  %v2743_v57 = vld [vmem:[%s3722_s1 + $0x3e4] ss:$8 sps:$4 sm:$0xff]  }
  0x43   : > { %1645 = vmatprep.subr.bf16.mxu1 %v2644_v59  ;;  %v2744_v58 = vld [vmem:[%s3058_s13 + $0x16c] ss:$36 sps:$4 sm:$0xff]   ;;  %v2746_v59 = vld [vmem:[%s3058_s13 + $0x174] ss:$36 sps:$4 sm:$0xff]  }
  0x45   : > { %1533 = vmatpush2.bf16.msra.mxu0 %v2646_v60  ;;  %v2738_v60 = vld [vmem:[%s3722_s1 + $0x2e0] ss:$8 sps:$4 sm:$0xff]  }
  0x46   : > { %1646 = vmatpush2.bf16.msra.mxu1 %v2647_v61  ;;  %1534 = vmatprep.subr.bf16.mxu0 %v2648_v62  ;;  %v2741_v61 = vld [vmem:[%s3722_s1 + $0x3e0] ss:$8 sps:$4 sm:$0xff]   ;;  %v2752_v62 = vld [vmem:[%s3722_s1 + $0x2d4] ss:$8 sps:$4 sm:$0xff]  }
  0x47   : > { %1647 = vmatprep.subr.bf16.mxu1 %v2650_v63  ;;  %v2755_v63 = vld [vmem:[%s3722_s1 + $0x3d4] ss:$8 sps:$4 sm:$0xff]  }
  0x49   : > { %1535 = vmatpush2.bf16.msra.mxu0 %v2652_v0  ;;  %v2748_v0 = vld [vmem:[%s3058_s13 + $0x168] ss:$36 sps:$4 sm:$0xff]  }
  0x4a   : > { %1648 = vmatpush2.bf16.msra.mxu1 %v2653_v1  ;;  %1730 = vmatprep.subr.bf16.mxu0 %v2662_v2  ;;  %v2749_v1 = vld [vmem:[%s3058_s13 + $0x170] ss:$36 sps:$4 sm:$0xff]  }
  0x4b   : > { %1843 = vmatprep.subr.bf16.mxu1 %v2665_v3  ;;  %v2750_v2 = vld [vmem:[%s3722_s1 + $0x2d0] ss:$8 sps:$4 sm:$0xff]  }
  0x4c   : > { %1537 = vmatmul.mubr.bf16.vlgmr.msra.gmra.mxu0 %v2654_v4  ;;  %v2753_v3 = vld [vmem:[%s3722_s1 + $0x3d0] ss:$8 sps:$4 sm:$0xff]   ;;  %v2758_v4 = vld [vmem:[%s3722_s1 + $0x2c4] ss:$8 sps:$4 sm:$0xff]  }
  0x4d   : > { %1650 = vmatmul.mubr.bf16.vlgmr.msra.gmra.mxu1 %v2657_v5  ;;  %1731 = vmatpush1.bf16.msra.mxu0 %v2660_v6  ;;  %v2761_v5 = vld [vmem:[%s3722_s1 + $0x3c4] ss:$8 sps:$4 sm:$0xff]   ;;  %v2762_v6 = vld [vmem:[%s3058_s13 + $0x1b4] ss:$36 sps:$4 sm:$0xff]  }
  0x4e   : > { %1844 = vmatpush1.bf16.msra.mxu1 %v2663_v7  ;;  %1732 = vmatprep.subr.bf16.mxu0 %v2668_v8  ;;  %v2764_v7 = vld [vmem:[%s3058_s13 + $0x1bc] ss:$36 sps:$4 sm:$0xff]  }
  0x4f   : > { %1845 = vmatprep.subr.bf16.mxu1 %v2671_v9  ;;  %1546 = vmatprep.mubr.bf16.mxu0 %v2672_v10  ;;  %v2756_v8 = vld [vmem:[%s3722_s1 + $0x2c0] ss:$8 sps:$4 sm:$0xff]   ;;  %v2770_v10 = vld [vmem:[%s3722_s1 + $0x2b4] ss:$8 sps:$4 sm:$0xff]  }
  0x50   : > { %1659 = vmatprep.mubr.bf16.mxu1 %v2674_v11  ;;  %v2759_v9 = vld [vmem:[%s3722_s1 + $0x3c0] ss:$8 sps:$4 sm:$0xff]   ;;  %v2773_v11 = vld [vmem:[%s3722_s1 + $0x3b4] ss:$8 sps:$4 sm:$0xff]  }
  0x51   : > { %1733 = vmatpush1.bf16.msra.mxu0 %v2666_v12  ;;  %v2766_v12 = vld [vmem:[%s3058_s13 + $0x1b0] ss:$36 sps:$4 sm:$0xff]  }
  0x52   : > { %1846 = vmatpush1.bf16.msra.mxu1 %v2669_v13  ;;  %1734 = vmatprep.subr.bf16.mxu0 %v2680_v14  ;;  %v2767_v13 = vld [vmem:[%s3058_s13 + $0x1b8] ss:$36 sps:$4 sm:$0xff]  }
  0x53   : > { %1847 = vmatprep.subr.bf16.mxu1 %v2683_v15  ;;  %v2768_v14 = vld [vmem:[%s3722_s1 + $0x2b0] ss:$8 sps:$4 sm:$0xff]  }
  0x54   : > { %1547 = vmatmul.mubr.bf16.gmra.mxu0 %v2676_v16  ;;  %v2771_v15 = vld [vmem:[%s3722_s1 + $0x3b0] ss:$8 sps:$4 sm:$0xff]   ;;  %v2776_v16 = vld [vmem:[%s3722_s1 + $0x2a4] ss:$8 sps:$4 sm:$0xff]  }
  0x55   : > { %1660 = vmatmul.mubr.bf16.gmra.mxu1 %v2677_v17  ;;  %1735 = vmatpush1.bf16.msra.mxu0 %v2678_v18  ;;  %v2779_v17 = vld [vmem:[%s3722_s1 + $0x3a4] ss:$8 sps:$4 sm:$0xff]   ;;  %v2780_v18 = vld [vmem:[%s3058_s13 + $0x1fc] ss:$36 sps:$4 sm:$0xff]  }
  0x56   : > { %1848 = vmatpush1.bf16.msra.mxu1 %v2681_v19  ;;  %1736 = vmatprep.subr.bf16.mxu0 %v2686_v20  ;;  %v2782_v19 = vld [vmem:[%s3058_s13 + $0x204] ss:$36 sps:$4 sm:$0xff]  }
  0x57   : > { %1849 = vmatprep.subr.bf16.mxu1 %v2689_v21  ;;  %1556 = vmatprep.mubr.bf16.mxu0 %v2690_v22  ;;  %v2774_v20 = vld [vmem:[%s3722_s1 + $0x2a0] ss:$8 sps:$4 sm:$0xff]   ;;  %v2788_v22 = vld [vmem:[%s3722_s1 + $0x294] ss:$8 sps:$4 sm:$0xff]  }
  0x58   : > { %1669 = vmatprep.mubr.bf16.mxu1 %v2692_v23  ;;  %v2777_v21 = vld [vmem:[%s3722_s1 + $0x3a0] ss:$8 sps:$4 sm:$0xff]   ;;  %v2791_v23 = vld [vmem:[%s3722_s1 + $0x394] ss:$8 sps:$4 sm:$0xff]  }
  0x59   : > { %1737 = vmatpush1.bf16.msra.mxu0 %v2684_v24  ;;  %v2784_v24 = vld [vmem:[%s3058_s13 + $0x1f8] ss:$36 sps:$4 sm:$0xff]  }
  0x5a   : > { %1850 = vmatpush1.bf16.msra.mxu1 %v2687_v25  ;;  %1738 = vmatprep.subr.bf16.mxu0 %v2698_v26  ;;  %v2785_v25 = vld [vmem:[%s3058_s13 + $0x200] ss:$36 sps:$4 sm:$0xff]   ;;  %v2786_v26 = vld [vmem:[%s3722_s1 + $0x290] ss:$8 sps:$4 sm:$0xff]  }
  0x5b   : > { %1851 = vmatprep.subr.bf16.mxu1 %v2701_v27  ;;  %v2789_v27 = vld [vmem:[%s3722_s1 + $0x390] ss:$8 sps:$4 sm:$0xff]  }
  0x5c   : > { %1557 = vmatmul.mubr.bf16.gmra.mxu0 %v2694_v28  ;;  %v2794_v28 = vld [vmem:[%s3722_s1 + $0x284] ss:$8 sps:$4 sm:$0xff]  }
  0x5d   : > { %1670 = vmatmul.mubr.bf16.gmra.mxu1 %v2695_v29  ;;  %1739 = vmatpush1.bf16.msra.mxu0 %v2696_v30  ;;  %v2797_v29 = vld [vmem:[%s3722_s1 + $0x384] ss:$8 sps:$4 sm:$0xff]   ;;  %v2800_v30 = vld [vmem:[%s3058_s13 + $0x14] ss:$36 sps:$4 sm:$0xff]  }
  0x5e   : > { %1852 = vmatpush1.bf16.msra.mxu1 %v2699_v31  ;;  %1740 = vmatprep.subr.bf16.mxu0 %v2704_v32  ;;  %v2803_v31 = vld [vmem:[%s3058_s13 + $0x1c] ss:$36 sps:$4 sm:$0xff]  }
  0x5f   : > { %1853 = vmatprep.subr.bf16.mxu1 %v2707_v33  ;;  %1566 = vmatprep.mubr.bf16.mxu0 %v2708_v34  ;;  %v2792_v32 = vld [vmem:[%s3722_s1 + $0x280] ss:$8 sps:$4 sm:$0xff]   ;;  %v2806_v34 = vld [vmem:[%s3722_s1 + $0x474] ss:$8 sps:$4 sm:$0xff]  }
  0x60   : > { %1679 = vmatprep.mubr.bf16.mxu1 %v2710_v35  ;;  %v2795_v33 = vld [vmem:[%s3722_s1 + $0x380] ss:$8 sps:$4 sm:$0xff]   ;;  %v2798_v35 = vld [vmem:[%s3058_s13 + $0x10] ss:$36 sps:$4 sm:$0xff]  }
  0x61   : > { %1741 = vmatpush1.bf16.msra.mxu0 %v2702_v36  ;;  %v2801_v36 = vld [vmem:[%s3058_s13 + $0x18] ss:$36 sps:$4 sm:$0xff]  }
  0x62   : > { %1854 = vmatpush1.bf16.msra.mxu1 %v2705_v37  ;;  %1742 = vmatprep.subr.bf16.mxu0 %v2716_v38  ;;  %v2804_v37 = vld [vmem:[%s3722_s1 + $0x470] ss:$8 sps:$4 sm:$0xff]   ;;  %v2807_v38 = vld [vmem:[%s3058_s13 + $0x5c] ss:$36 sps:$4 sm:$0xff]  }
  0x63   : > { %1855 = vmatprep.subr.bf16.mxu1 %v2719_v39  ;;  %v2809_v39 = vld [vmem:[%s3058_s13 + $0x64] ss:$36 sps:$4 sm:$0xff]  }
  0x64   : > { %1567 = vmatmul.mubr.bf16.gmra.mxu0 %v2712_v40  ;;  %v2815_v40 = vld [vmem:[%s3722_s1 + $0x464] ss:$8 sps:$4 sm:$0xff]  }
  0x65   : > { %1680 = vmatmul.mubr.bf16.gmra.mxu1 %v2713_v41  ;;  %1743 = vmatpush1.bf16.msra.mxu0 %v2714_v42  ;;  %v2813_v41 = vld [vmem:[%s3722_s1 + $0x460] ss:$8 sps:$4 sm:$0xff]   ;;  %v2824_v42 = vld [vmem:[%s3722_s1 + $0x454] ss:$8 sps:$4 sm:$0xff]  }
  0x66   : > { %1856 = vmatpush1.bf16.msra.mxu1 %v2717_v43  ;;  %1744 = vmatprep.subr.bf16.mxu0 %v2722_v44  ;;  %v2811_v43 = vld [vmem:[%s3058_s13 + $0x58] ss:$36 sps:$4 sm:$0xff]   ;;  %v2812_v44 = vld [vmem:[%s3058_s13 + $0x60] ss:$36 sps:$4 sm:$0xff]  }
  0x67   : > { %1857 = vmatprep.subr.bf16.mxu1 %v2725_v45  ;;  %1576 = vmatprep.mubr.bf16.mxu0 %v2726_v46  ;;  %v2816_v45 = vld [vmem:[%s3058_s13 + $0xa4] ss:$36 sps:$4 sm:$0xff]   ;;  %v2818_v46 = vld [vmem:[%s3058_s13 + $0xac] ss:$36 sps:$4 sm:$0xff]  }
  0x68   : > { %1689 = vmatprep.mubr.bf16.mxu1 %v2728_v47  ;;  %v2822_v47 = vld [vmem:[%s3722_s1 + $0x450] ss:$8 sps:$4 sm:$0xff]  }
  0x69   : > { %1745 = vmatpush1.bf16.msra.mxu0 %v2720_v48  ;;  %v2833_v48 = vld [vmem:[%s3722_s1 + $0x444] ss:$8 sps:$4 sm:$0xff]  }
  0x6a   : > { %1858 = vmatpush1.bf16.msra.mxu1 %v2723_v49  ;;  %1746 = vmatprep.subr.bf16.mxu0 %v2734_v50  ;;  %v2820_v49 = vld [vmem:[%s3058_s13 + $0xa0] ss:$36 sps:$4 sm:$0xff]   ;;  %v2821_v50 = vld [vmem:[%s3058_s13 + $0xa8] ss:$36 sps:$4 sm:$0xff]  }
  0x6b   : > { %1859 = vmatprep.subr.bf16.mxu1 %v2737_v51  ;;  %v2831_v51 = vld [vmem:[%s3722_s1 + $0x440] ss:$8 sps:$4 sm:$0xff]  }
  0x6c   : > { %1577 = vmatmul.mubr.bf16.gmra.mxu0 %v2730_v52  ;;  %v2842_v52 = vld [vmem:[%s3722_s1 + $0x434] ss:$8 sps:$4 sm:$0xff]  }
  0x6d   : > { %1690 = vmatmul.mubr.bf16.gmra.mxu1 %v2731_v53  ;;  %1747 = vmatpush2.bf16.msra.mxu0 %v2732_v54  ;;  %v2825_v53 = vld [vmem:[%s3058_s13 + $0xec] ss:$36 sps:$4 sm:$0xff]   ;;  %v2827_v54 = vld [vmem:[%s3058_s13 + $0xf4] ss:$36 sps:$4 sm:$0xff]  }
  0x6e   : > { %1860 = vmatpush2.bf16.msra.mxu1 %v2735_v55  ;;  %1748 = vmatprep.subr.bf16.mxu0 %v2740_v56  ;;  %v2840_v55 = vld [vmem:[%s3722_s1 + $0x430] ss:$8 sps:$4 sm:$0xff]   ;;  %v2851_v56 = vld [vmem:[%s3722_s1 + $0x424] ss:$8 sps:$4 sm:$0xff]  }
  0x6f   : > { %1861 = vmatprep.subr.bf16.mxu1 %v2743_v57  ;;  %1586 = vmatprep.mubr.bf16.mxu0 %v2744_v58  ;;  %v2849_v57 = vld [vmem:[%s3722_s1 + $0x420] ss:$8 sps:$4 sm:$0xff]   ;;  %v2860_v58 = vld [vmem:[%s3722_s1 + $0x414] ss:$8 sps:$4 sm:$0xff]  }
  0x70   : > { %1699 = vmatprep.mubr.bf16.mxu1 %v2746_v59  ;;  %v2829_v59 = vld [vmem:[%s3058_s13 + $0xe8] ss:$36 sps:$4 sm:$0xff]  }
  0x71   : > { %1749 = vmatpush2.bf16.msra.mxu0 %v2738_v60  ;;  %v2830_v60 = vld [vmem:[%s3058_s13 + $0xf0] ss:$36 sps:$4 sm:$0xff]  }
  0x72   : > { %1862 = vmatpush2.bf16.msra.mxu1 %v2741_v61  ;;  %1750 = vmatprep.subr.bf16.mxu0 %v2752_v62  ;;  %v2834_v61 = vld [vmem:[%s3058_s13 + $0x134] ss:$36 sps:$4 sm:$0xff]   ;;  %v2836_v62 = vld [vmem:[%s3058_s13 + $0x13c] ss:$36 sps:$4 sm:$0xff]  }
  0x73   : > { %1863 = vmatprep.subr.bf16.mxu1 %v2755_v63  ;;  %v2858_v63 = vld [vmem:[%s3722_s1 + $0x410] ss:$8 sps:$4 sm:$0xff]  }
  0x74   : > { %1587 = vmatmul.mubr.bf16.gmra.mxu0 %v2748_v0  ;;  %v2869_v0 = vld [vmem:[%s3722_s1 + $0x404] ss:$8 sps:$4 sm:$0xff]  }
  0x75   : > { %1700 = vmatmul.mubr.bf16.gmra.mxu1 %v2749_v1  ;;  %1751 = vmatpush2.bf16.msra.mxu0 %v2750_v2  ;;  %v2867_v1 = vld [vmem:[%s3722_s1 + $0x400] ss:$8 sps:$4 sm:$0xff]   ;;  %v2838_v2 = vld [vmem:[%s3058_s13 + $0x130] ss:$36 sps:$4 sm:$0xff]  }
  0x76   : > { %1864 = vmatpush2.bf16.msra.mxu1 %v2753_v3  ;;  %1752 = vmatprep.subr.bf16.mxu0 %v2758_v4  ;;  %v2839_v3 = vld [vmem:[%s3058_s13 + $0x138] ss:$36 sps:$4 sm:$0xff]  }
  0x77   : > { %1865 = vmatprep.subr.bf16.mxu1 %v2761_v5  ;;  %1596 = vmatprep.mubr.bf16.mxu0 %v2762_v6  ;;  %v2843_v4 = vld [vmem:[%s3058_s13 + $0x17c] ss:$36 sps:$4 sm:$0xff]   ;;  %v2845_v5 = vld [vmem:[%s3058_s13 + $0x184] ss:$36 sps:$4 sm:$0xff]  }
  0x78   : > { %1709 = vmatprep.mubr.bf16.mxu1 %v2764_v7  ;;  %v2847_v6 = vld [vmem:[%s3058_s13 + $0x178] ss:$36 sps:$4 sm:$0xff]   ;;  %v2848_v7 = vld [vmem:[%s3058_s13 + $0x180] ss:$36 sps:$4 sm:$0xff]  }
  0x79   : > { %1753 = vmatpush2.bf16.msra.mxu0 %v2756_v8  ;;  %v2852_v8 = vld [vmem:[%s3058_s13 + $0x1c4] ss:$36 sps:$4 sm:$0xff]  }
  0x7a   : > { %1866 = vmatpush2.bf16.msra.mxu1 %v2759_v9  ;;  %1754 = vmatprep.subr.bf16.mxu0 %v2770_v10  ;;  %v2854_v9 = vld [vmem:[%s3058_s13 + $0x1cc] ss:$36 sps:$4 sm:$0xff]   ;;  %v2856_v10 = vld [vmem:[%s3058_s13 + $0x1c0] ss:$36 sps:$4 sm:$0xff]  }
  0x7b   : > { %1867 = vmatprep.subr.bf16.mxu1 %v2773_v11  ;;  %v2857_v11 = vld [vmem:[%s3058_s13 + $0x1c8] ss:$36 sps:$4 sm:$0xff]  }
  0x7c   : > { %1597 = vmatmul.mubr.bf16.gmra.mxu0 %v2766_v12  ;;  %v2861_v12 = vld [vmem:[%s3058_s13 + $0x20c] ss:$36 sps:$4 sm:$0xff]  }
  0x7d   : > { %1710 = vmatmul.mubr.bf16.gmra.mxu1 %v2767_v13  ;;  %1755 = vmatpush2.bf16.msra.mxu0 %v2768_v14  ;;  %v2863_v13 = vld [vmem:[%s3058_s13 + $0x214] ss:$36 sps:$4 sm:$0xff]   ;;  %v2865_v14 = vld [vmem:[%s3058_s13 + $0x208] ss:$36 sps:$4 sm:$0xff]  }
  0x7e   : > { %1868 = vmatpush2.bf16.msra.mxu1 %v2771_v15  ;;  %1756 = vmatprep.subr.bf16.mxu0 %v2776_v16  ;;  %v2866_v15 = vld [vmem:[%s3058_s13 + $0x210] ss:$36 sps:$4 sm:$0xff]   ;;  %v2886_v16 = vmov 0  }
  0x7f   : > { %1869 = vmatprep.subr.bf16.mxu1 %v2779_v17  ;;  %1606 = vmatprep.mubr.bf16.mxu0 %v2780_v18  ;;  %v2870_v17 = vld [vmem:[%s3058_s13 + $0x20] ss:$36 sps:$4 sm:$0xff]  }
  0x80   : > { %1719 = vmatprep.mubr.bf16.mxu1 %v2782_v19  ;;  %v2871_v18 = vld [vmem:[%s3058_s13 + $0x140] ss:$36 sps:$4 sm:$0xff]   ;;  %v2872_v19 = vld [vmem:[%s3058_s13 + $0x68] ss:$36 sps:$4 sm:$0xff]  }
  0x81   : > { %1757 = vmatpush2.bf16.msra.mxu0 %v2774_v20  ;;  %v2873_v20 = vld [vmem:[%s3058_s13 + $0x188] ss:$36 sps:$4 sm:$0xff]  }
  0x82   : > { %1870 = vmatpush2.bf16.msra.mxu1 %v2777_v21  ;;  %1758 = vmatprep.subr.bf16.mxu0 %v2788_v22  ;;  %v2874_v21 = vld [vmem:[%s3058_s13 + $0xb0] ss:$36 sps:$4 sm:$0xff]  }
  0x83   : > { %1871 = vmatprep.subr.bf16.mxu1 %v2791_v23  ;;  %v2875_v22 = vld [vmem:[%s3058_s13 + $0x1d0] ss:$36 sps:$4 sm:$0xff]   ;;  %v2876_v23 = vld [vmem:[%s3058_s13 + $0xf8] ss:$36 sps:$4 sm:$0xff]  }
  0x84   : > { %1607 = vmatmul.mubr.bf16.gmra.mxu0 %v2784_v24  ;;  %v2877_v24 = vld [vmem:[%s3058_s13 + $0x218] ss:$36 sps:$4 sm:$0xff]   ;;  %s2515_s13 = sshll.u32 %s3776_s24, 3 }
  0x85   : > { %1720 = vmatmul.mubr.bf16.gmra.mxu1 %v2785_v25  ;;  %1759 = vmatpush2.bf16.msra.mxu0 %v2786_v26  ;;  %v406_v25 = vlaneseq  ;;  %s3647_s18 = scalar_lea.vmem %s3724_s3, %s2515_s13 }
  0x86   : > { %1872 = vmatpush2.bf16.msra.mxu1 %v2789_v27  ;;  %1760 = vmatprep.subr.bf16.mxu0 %v2794_v28  ;;  %v404_v28 = vld [vmem:[%s3723_s2] sm:$0x3] }
  0x87   : > { %1873 = vmatprep.subr.bf16.mxu1 %v2797_v29  ;;  %1762 = vmatprep.mubr.bf16.mxu0 %v2800_v30  ;;  %v407_v26 = vshrl.u32 %v406_v25, 7 }
  0x88   : > { %1875 = vmatprep.mubr.bf16.mxu1 %v2803_v31 }
  0x89   : > { %1761 = vmatpush2.bf16.msra.mxu0 %v2792_v32  ;;  %v408_v27 = vsub.s32 0, %v407_v26  ;;  %v412_v29 = vsub.s32 1, %v407_v26 }
  0x8a   : > { %1874 = vmatpush2.bf16.msra.mxu1 %v2795_v33  ;;  %1956 = vmatprep.subr.bf16.mxu0 %v2806_v34 }
  0x8b   : > { %2532 = vmatprep.subr.bf16.mxu1 %v2806_v34  ;;  %v3432_v30 = vrot.slane %v404_v28, %v408_v27  ;;  %v3434_v31 = vrot.slane %v404_v28, %v412_v29 }
  0x8c   : > { %1763 = vmatmul.mubr.bf16.vlgmr.msra.gmra.mxu0 %v2798_v35 }
  0x8d   : > { %1876 = vmatmul.mubr.bf16.vlgmr.msra.gmra.mxu1 %v2801_v36  ;;  %1957 = vmatpush1.bf16.msra.mxu0 %v2804_v37 }
  0x8e   : > { %2540 = vmatpush1.bf16.msra.mxu1 %v2804_v37  ;;  %1772 = vmatprep.mubr.bf16.mxu0 %v2807_v38 }
  0x8f   : > { %1885 = vmatprep.mubr.bf16.mxu1 %v2809_v39  ;;  %1958 = vmatprep.subr.bf16.mxu0 %v2815_v40 }
  0x90   : > { %2533 = vmatprep.subr.bf16.mxu1 %v2815_v40 }
  0x91   : > { %1959 = vmatpush1.bf16.msra.mxu0 %v2813_v41 }
  0x92   : > { %2541 = vmatpush1.bf16.msra.mxu1 %v2813_v41  ;;  %1960 = vmatprep.subr.bf16.mxu0 %v2824_v42 }
  0x93   : > { %2534 = vmatprep.subr.bf16.mxu1 %v2824_v42 }
  0x94   : > { %1773 = vmatmul.mubr.bf16.gmra.mxu0 %v2811_v43 }
  0x95   : > { %1886 = vmatmul.mubr.bf16.gmra.mxu1 %v2812_v44  ;;  %1782 = vmatprep.mubr.bf16.mxu0 %v2816_v45 }
  0x96   : > { %1895 = vmatprep.mubr.bf16.mxu1 %v2818_v46  ;;  %1961 = vmatpush1.bf16.msra.mxu0 %v2822_v47 }
  0x97   : > { %2542 = vmatpush1.bf16.msra.mxu1 %v2822_v47  ;;  %1962 = vmatprep.subr.bf16.mxu0 %v2833_v48 }
  0x98   : > { %2535 = vmatprep.subr.bf16.mxu1 %v2833_v48 }
  0x9a   : > { %1963 = vmatpush1.bf16.msra.mxu0 %v2831_v51 }
  0x9b   : > { %2543 = vmatpush1.bf16.msra.mxu1 %v2831_v51  ;;  %1964 = vmatprep.subr.bf16.mxu0 %v2842_v52 }
  0x9c   : > { %2536 = vmatprep.subr.bf16.mxu1 %v2842_v52  ;;  %1783 = vmatmul.mubr.bf16.gmra.mxu0 %v2820_v49 }
  0x9d   : > { %1896 = vmatmul.mubr.bf16.gmra.mxu1 %v2821_v50  ;;  %1792 = vmatprep.mubr.bf16.mxu0 %v2825_v53 }
  0x9e   : > { %1905 = vmatprep.mubr.bf16.mxu1 %v2827_v54  ;;  %1965 = vmatpush1.bf16.msra.mxu0 %v2840_v55 }
  0x9f   : > { %2544 = vmatpush1.bf16.msra.mxu1 %v2840_v55  ;;  %1966 = vmatprep.subr.bf16.mxu0 %v2851_v56 }
  0xa0   : > { %2537 = vmatprep.subr.bf16.mxu1 %v2851_v56 }
  0xa2   : > { %1967 = vmatpush1.bf16.msra.mxu0 %v2849_v57 }
  0xa3   : > { %2545 = vmatpush1.bf16.msra.mxu1 %v2849_v57  ;;  %1968 = vmatprep.subr.bf16.mxu0 %v2860_v58 }
  0xa4   : > { %2538 = vmatprep.subr.bf16.mxu1 %v2860_v58  ;;  %1793 = vmatmul.mubr.bf16.gmra.mxu0 %v2829_v59 }
  0xa5   : > { %1906 = vmatmul.mubr.bf16.gmra.mxu1 %v2830_v60  ;;  %1802 = vmatprep.mubr.bf16.mxu0 %v2834_v61 }
  0xa6   : > { %1915 = vmatprep.mubr.bf16.mxu1 %v2836_v62  ;;  %1969 = vmatpush1.bf16.msra.mxu0 %v2858_v63 }
  0xa7   : > { %2546 = vmatpush1.bf16.msra.mxu1 %v2858_v63  ;;  %1970 = vmatprep.subr.bf16.mxu0 %v2869_v0 }
  0xa8   : > { %2539 = vmatprep.subr.bf16.mxu1 %v2869_v0 }
  0xaa   : > { %1971 = vmatpush1.bf16.msra.mxu0 %v2867_v1 }
  0xab   : > { %2547 = vmatpush1.bf16.msra.mxu1 %v2867_v1 }
  0xac   : > { %1803 = vmatmul.mubr.bf16.gmra.mxu0 %v2838_v2 }
  0xad   : > { %1916 = vmatmul.mubr.bf16.gmra.mxu1 %v2839_v3  ;;  %1812 = vmatprep.mubr.bf16.mxu0 %v2843_v4 }
  0xae   : > { %1925 = vmatprep.mubr.bf16.mxu1 %v2845_v5 }
  0xb4   : > { %1813 = vmatmul.mubr.bf16.gmra.mxu0 %v2847_v6 }
  0xb5   : > { %1926 = vmatmul.mubr.bf16.gmra.mxu1 %v2848_v7  ;;  %1822 = vmatprep.mubr.bf16.mxu0 %v2852_v8 }
  0xb6   : > { %1935 = vmatprep.mubr.bf16.mxu1 %v2854_v9 }
  0xbc   : > { %1823 = vmatmul.mubr.bf16.gmra.mxu0 %v2856_v10 }
  0xbd   : > { %1936 = vmatmul.mubr.bf16.gmra.mxu1 %v2857_v11  ;;  %1832 = vmatprep.mubr.bf16.mxu0 %v2861_v12 }
  0xbe   : > { %1945 = vmatprep.mubr.bf16.mxu1 %v2863_v13 }
  0xc4   : > { %1833 = vmatmul.mubr.bf16.gmra.mxu0 %v2865_v14 }
  0xc5   : > { %1946 = vmatmul.mubr.bf16.gmra.mxu1 %v2866_v15  ;;  %1988 = vmatprep.mubr.bf16.mxu0 %v2886_v16 }
  0xc6   : > { %2028 = vmatprep.mubr.bf16.mxu1 %v2886_v16 }
  0xcc   : > { %1989 = vmatmul.mubr.bf16.vlgmr.msra.gmra.mxu0 %v2870_v17 }
  0xcd   : > { %2029 = vmatmul.mubr.bf16.vlgmr.msra.gmra.mxu1 %v2871_v18  ;;  %1998 = vmatprep.mubr.bf16.mxu0 %v2886_v16 }
  0xce   : > { %2038 = vmatprep.mubr.bf16.mxu1 %v2886_v16 }
  0xd4   : > { %1999 = vmatmul.mubr.bf16.gmra.mxu0 %v2872_v19 }
  0xd5   : > { %2039 = vmatmul.mubr.bf16.gmra.mxu1 %v2873_v20  ;;  %2008 = vmatprep.mubr.bf16.mxu0 %v2886_v16 }
  0xd6   : > { %2048 = vmatprep.mubr.bf16.mxu1 %v2886_v16 }
  0xdc   : > { %2009 = vmatmul.mubr.bf16.gmra.mxu0 %v2874_v21 }
  0xdd   : > { %2049 = vmatmul.mubr.bf16.gmra.mxu1 %v2875_v22  ;;  %2018 = vmatprep.mubr.bf16.mxu0 %v2886_v16 }
  0xde   : > { %2058 = vmatprep.mubr.bf16.mxu1 %v2886_v16 }
  0xe4   : > { %2019 = vmatmul.mubr.bf16.gmra.mxu0 %v2876_v23 }
  0xe5   : > { %2059 = vmatmul.mubr.bf16.gmra.mxu1 %v2877_v24 }
 0x10c   : > { %v1538_v32 = vpop.f32.mrf.mxu0 }
 0x10d   : > { %v1651_v33 = vpop.f32.mrf.mxu1  ;;  %v1539_v34 = vadd.f32 %v1538_v32, %v3432_v30 }
 0x10e   : > { %v1540_v35 = vpop.f32.mrf.mxu0 }
 0x10f   : > { %v1653_v36 = vpop.f32.mrf.mxu1  ;;  %v3437_v37 = vadd.f32 %v1651_v33, %v1539_v34  ;;  %v1541_v38 = vadd.f32 %v1540_v35, %v3434_v31 }
 0x110   : > { %v1542_v39 = vpop.f32.mrf.mxu0 }
 0x111   : > { %v1655_v40 = vpop.f32.mrf.mxu1  ;;  %v3440_v41 = vadd.f32 %v1653_v36, %v1541_v38  ;;  %v1543_v42 = vadd.f32 %v1542_v39, %v3432_v30 }
 0x112   : > { %v1544_v43 = vpop.f32.mrf.mxu0 }
 0x113   : > { %v1657_v44 = vpop.f32.mrf.mxu1  ;;  %v3443_v45 = vadd.f32 %v1655_v40, %v1543_v42  ;;  %v1545_v46 = vadd.f32 %v1544_v43, %v3434_v31 }
 0x114   : > { %v1548_v47 = vpop.f32.mrf.mxu0 }
 0x115   : > { %v1661_v48 = vpop.f32.mrf.mxu1  ;;  %v3446_v49 = vadd.f32 %v1657_v44, %v1545_v46  ;;  %v1549_v50 = vadd.f32 %v1548_v47, %v3432_v30 }
 0x116   : > { %v1550_v51 = vpop.f32.mrf.mxu0 }
 0x117   : > { %v1663_v52 = vpop.f32.mrf.mxu1  ;;  %v3449_v53 = vadd.f32 %v1661_v48, %v1549_v50  ;;  %v1551_v54 = vadd.f32 %v1550_v51, %v3434_v31 }
 0x118   : > { %v1552_v55 = vpop.f32.mrf.mxu0 }
 0x119   : > { %v1665_v56 = vpop.f32.mrf.mxu1  ;;  %v3452_v57 = vadd.f32 %v1663_v52, %v1551_v54  ;;  %v1553_v58 = vadd.f32 %v1552_v55, %v3432_v30 }
 0x11a   : > { %v1554_v59 = vpop.f32.mrf.mxu0 }
 0x11b   : > { %v1667_v60 = vpop.f32.mrf.mxu1  ;;  %v3455_v61 = vadd.f32 %v1665_v56, %v1553_v58  ;;  %v1555_v62 = vadd.f32 %v1554_v59, %v3434_v31 }
 0x11c   : > { %v1558_v63 = vpop.f32.mrf.mxu0 }
 0x11d   : > { %v1671_v0 = vpop.f32.mrf.mxu1  ;;  %v3458_v1 = vadd.f32 %v1667_v60, %v1555_v62  ;;  %v1559_v2 = vadd.f32 %v1558_v63, %v3432_v30 }
 0x11e   : > { %v1560_v3 = vpop.f32.mrf.mxu0 }
 0x11f   : > { %v1673_v4 = vpop.f32.mrf.mxu1  ;;  %v3461_v5 = vadd.f32 %v1671_v0, %v1559_v2  ;;  %v1561_v6 = vadd.f32 %v1560_v3, %v3434_v31 }
 0x120   : > { %v1562_v7 = vpop.f32.mrf.mxu0 }
 0x121   : > { %v1675_v8 = vpop.f32.mrf.mxu1  ;;  %v3464_v9 = vadd.f32 %v1673_v4, %v1561_v6  ;;  %v1563_v10 = vadd.f32 %v1562_v7, %v3432_v30 }
 0x122   : > { %v1564_v11 = vpop.f32.mrf.mxu0 }
 0x123   : > { %v1677_v12 = vpop.f32.mrf.mxu1  ;;  %v3467_v13 = vadd.f32 %v1675_v8, %v1563_v10  ;;  %v1565_v14 = vadd.f32 %v1564_v11, %v3434_v31 }
 0x124   : > { %v1568_v15 = vpop.f32.mrf.mxu0 }
 0x125   : > { %v1681_v16 = vpop.f32.mrf.mxu1  ;;  %v3470_v17 = vadd.f32 %v1677_v12, %v1565_v14  ;;  %v1569_v18 = vadd.f32 %v1568_v15, %v3432_v30 }
 0x126   : > { %v1570_v19 = vpop.f32.mrf.mxu0 }
 0x127   : > { %v1683_v20 = vpop.f32.mrf.mxu1  ;;  %v3473_v21 = vadd.f32 %v1681_v16, %v1569_v18  ;;  %v1571_v22 = vadd.f32 %v1570_v19, %v3434_v31 }
 0x128   : > { %v1572_v23 = vpop.f32.mrf.mxu0 }
 0x129   : > { %v1685_v24 = vpop.f32.mrf.mxu1  ;;  %v3476_v25 = vadd.f32 %v1683_v20, %v1571_v22  ;;  %v1573_v26 = vadd.f32 %v1572_v23, %v3432_v30 }
 0x12a   : > { %v1574_v27 = vpop.f32.mrf.mxu0 }
 0x12b   : > { %3725 = vst [vmem:[#allocation2_spill] sm:$0xff] %v3476_v25  ;;  %v1687_v28 = vpop.f32.mrf.mxu1  ;;  %v3479_v29 = vadd.f32 %v1685_v24, %v1573_v26  ;;  %v1575_v32 = vadd.f32 %v1574_v27, %v3434_v31 }
 0x12c   : > { %v1578_v33 = vpop.f32.mrf.mxu0 }
 0x12d   : > { %v1691_v34 = vpop.f32.mrf.mxu1  ;;  %v3482_v35 = vadd.f32 %v1687_v28, %v1575_v32  ;;  %v1579_v36 = vadd.f32 %v1578_v33, %v3432_v30 }
 0x12e   : > { %v1580_v38 = vpop.f32.mrf.mxu0 }
 0x12f   : > { %3726 = vst [vmem:[#allocation3_spill] sm:$0xff] %v3482_v35  ;;  %v1693_v39 = vpop.f32.mrf.mxu1  ;;  %v3485_v40 = vadd.f32 %v1691_v34, %v1579_v36  ;;  %v1581_v42 = vadd.f32 %v1580_v38, %v3434_v31 }
 0x130   : > { %v1582_v43 = vpop.f32.mrf.mxu0 }
 0x131   : > { %v1695_v44 = vpop.f32.mrf.mxu1  ;;  %v3488_v46 = vadd.f32 %v1693_v39, %v1581_v42  ;;  %v1583_v47 = vadd.f32 %v1582_v43, %v3432_v30 }
 0x132   : > { %v1584_v48 = vpop.f32.mrf.mxu0 }
 0x133   : > { %v1697_v50 = vpop.f32.mrf.mxu1  ;;  %v3491_v51 = vadd.f32 %v1695_v44, %v1583_v47  ;;  %v1585_v52 = vadd.f32 %v1584_v48, %v3434_v31 }
 0x134   : > { %v1588_v54 = vpop.f32.mrf.mxu0 }
 0x135   : > { %v1701_v55 = vpop.f32.mrf.mxu1  ;;  %v3494_v56 = vadd.f32 %v1697_v50, %v1585_v52  ;;  %v1589_v58 = vadd.f32 %v1588_v54, %v3432_v30 }
 0x136   : > { %v1590_v59 = vpop.f32.mrf.mxu0 }
 0x137   : > { %v1703_v60 = vpop.f32.mrf.mxu1  ;;  %v3497_v62 = vadd.f32 %v1701_v55, %v1589_v58  ;;  %v1591_v63 = vadd.f32 %v1590_v59, %v3434_v31 }
 0x138   : > { %v1592_v0 = vpop.f32.mrf.mxu0 }
 0x139   : > { %v1705_v2 = vpop.f32.mrf.mxu1  ;;  %v3500_v3 = vadd.f32 %v1703_v60, %v1591_v63  ;;  %v1593_v4 = vadd.f32 %v1592_v0, %v3432_v30 }
 0x13a   : > { %v1594_v6 = vpop.f32.mrf.mxu0 }
 0x13b   : > { %v1707_v7 = vpop.f32.mrf.mxu1  ;;  %v3503_v8 = vadd.f32 %v1705_v2, %v1593_v4  ;;  %v1595_v10 = vadd.f32 %v1594_v6, %v3434_v31 }
 0x13c   : > { %v1598_v11 = vpop.f32.mrf.mxu0 }
 0x13d   : > { %v1711_v12 = vpop.f32.mrf.mxu1  ;;  %v3506_v14 = vadd.f32 %v1707_v7, %v1595_v10  ;;  %v1599_v15 = vadd.f32 %v1598_v11, %v3432_v30 }
 0x13e   : > { %v1600_v16 = vpop.f32.mrf.mxu0 }
 0x13f   : > { %v1713_v18 = vpop.f32.mrf.mxu1  ;;  %v3509_v19 = vadd.f32 %v1711_v12, %v1599_v15  ;;  %v1601_v20 = vadd.f32 %v1600_v16, %v3434_v31 }
 0x140   : > { %v1602_v22 = vpop.f32.mrf.mxu0 }
 0x141   : > { %v1715_v23 = vpop.f32.mrf.mxu1  ;;  %v3512_v24 = vadd.f32 %v1713_v18, %v1601_v20  ;;  %v1603_v26 = vadd.f32 %v1602_v22, %v3432_v30 }
 0x142   : > { %v1604_v27 = vpop.f32.mrf.mxu0 }
 0x143   : > { %v1717_v28 = vpop.f32.mrf.mxu1  ;;  %v3515_v32 = vadd.f32 %v1715_v23, %v1603_v26  ;;  %v1605_v33 = vadd.f32 %v1604_v27, %v3434_v31 }
 0x144   : > { %v1608_v34 = vpop.f32.mrf.mxu0 }
 0x145   : > { %v1721_v36 = vpop.f32.mrf.mxu1  ;;  %v3518_v38 = vadd.f32 %v1717_v28, %v1605_v33  ;;  %v1609_v39 = vadd.f32 %v1608_v34, %v3432_v30 }
 0x146   : > { %v1610_v42 = vpop.f32.mrf.mxu0 }
 0x147   : > { %3727 = vst [vmem:[#allocation4_spill] sm:$0xff] %v3518_v38  ;;  %v1723_v43 = vpop.f32.mrf.mxu1  ;;  %v3521_v44 = vadd.f32 %v1721_v36, %v1609_v39  ;;  %v1611_v47 = vadd.f32 %v1610_v42, %v3434_v31 }
 0x148   : > { %v1612_v48 = vpop.f32.mrf.mxu0 }
 0x149   : > { %3728 = vst [vmem:[#allocation5_spill] sm:$0xff] %v3521_v44  ;;  %v1725_v50 = vpop.f32.mrf.mxu1  ;;  %v3524_v52 = vadd.f32 %v1723_v43, %v1611_v47  ;;  %v1613_v54 = vadd.f32 %v1612_v48, %v3432_v30 }
 0x14a   : > { %v1614_v55 = vpop.f32.mrf.mxu0 }
 0x14b   : > { %3729 = vst [vmem:[#allocation6_spill] sm:$0xff] %v3524_v52  ;;  %v1727_v58 = vpop.f32.mrf.mxu1  ;;  %v3527_v59 = vadd.f32 %v1725_v50, %v1613_v54  ;;  %v1615_v60 = vadd.f32 %v1614_v55, %v3434_v31 }
 0x14c   : > { %v1764_v63 = vpop.f32.mrf.mxu0 }
 0x14d   : > { %3730 = vst [vmem:[#allocation7_spill] sm:$0xff] %v3527_v59  ;;  %v1877_v0 = vpop.f32.mrf.mxu1  ;;  %v3530_v2 = vadd.f32 %v1727_v58, %v1615_v60  ;;  %v1765_v4 = vadd.f32 %v1764_v63, %v3437_v37 }
 0x14e   : > { %v3533_v6 = vpop.f32.mrf.mxu0 }
 0x14f   : > { %3731 = vst [vmem:[#allocation8_spill] sm:$0xff] %v3530_v2  ;;  %v3535_v7 = vpop.f32.mrf.mxu1  ;;  %v3537_v10 = vadd.f32 %v1877_v0, %v1765_v4 }
 0x150   : > { %v1768_v11 = vpop.f32.mrf.mxu0 }
 0x151   : > { %v1881_v30 = vpop.f32.mrf.mxu1  ;;  %v1769_v12 = vadd.f32 %v1768_v11, %v3443_v45 }
 0x152   : > { %v3540_v15 = vpop.f32.mrf.mxu0 }
 0x153   : > { %v3542_v16 = vpop.f32.mrf.mxu1  ;;  %v3544_v31 = vadd.f32 %v1881_v30, %v1769_v12 }
 0x154   : > { %v1774_v18 = vpop.f32.mrf.mxu0 }
 0x155   : > { %v1887_v20 = vpop.f32.mrf.mxu1  ;;  %v1775_v37 = vadd.f32 %v1774_v18, %v3449_v53 }
 0x156   : > { %v3547_v22 = vpop.f32.mrf.mxu0 }
 0x157   : > { %v3549_v23 = vpop.f32.mrf.mxu1  ;;  %v3551_v26 = vadd.f32 %v1887_v20, %v1775_v37 }
 0x158   : > { %v1778_v27 = vpop.f32.mrf.mxu0 }
 0x159   : > { %v1891_v28 = vpop.f32.mrf.mxu1  ;;  %v1779_v45 = vadd.f32 %v1778_v27, %v3455_v61 }
 0x15a   : > { %v3554_v33 = vpop.f32.mrf.mxu0 }
 0x15b   : > { %v3556_v34 = vpop.f32.mrf.mxu1  ;;  %v3558_v36 = vadd.f32 %v1891_v28, %v1779_v45 }
 0x15c   : > { %v1784_v39 = vpop.f32.mrf.mxu0 }
 0x15d   : > { %v1897_v42 = vpop.f32.mrf.mxu1  ;;  %v1785_v53 = vadd.f32 %v1784_v39, %v3461_v5 }
 0x15e   : > { %v3561_v43 = vpop.f32.mrf.mxu0 }
 0x15f   : > { %v3563_v47 = vpop.f32.mrf.mxu1  ;;  %v3565_v48 = vadd.f32 %v1897_v42, %v1785_v53 }
 0x160   : > { %v1788_v50 = vpop.f32.mrf.mxu0 }
 0x161   : > { %3732 = vst [vmem:[#allocation9_spill] sm:$0xff] %v3565_v48  ;;  %v1901_v54 = vpop.f32.mrf.mxu1  ;;  %v1789_v61 = vadd.f32 %v1788_v50, %v3467_v13 }
 0x162   : > { %v3568_v55 = vpop.f32.mrf.mxu0 }
 0x163   : > { %v3570_v58 = vpop.f32.mrf.mxu1  ;;  %v3572_v60 = vadd.f32 %v1901_v54, %v1789_v61 }
 0x164   : > { %3733 = vst [vmem:[#allocation10_spill] sm:$0xff] %v3570_v58  ;;  %v1794_v63 = vpop.f32.mrf.mxu0 }
 0x165   : > { %3734 = vst [vmem:[#allocation11_spill] sm:$0xff] %v3572_v60  ;;  %v1907_v0 = vpop.f32.mrf.mxu1  ;;  %v1795_v5 = vadd.f32 %v1794_v63, %v3473_v21 }
 0x166   : > { %v3575_v4 = vpop.f32.mrf.mxu0 }
 0x167   : > { %3735 = vst [vmem:[#allocation12_spill] sm:$0xff] %v3575_v4  ;;  %v3577_v11 = vpop.f32.mrf.mxu1  ;;  %v3579_v30 = vadd.f32 %v1907_v0, %v1795_v5 }
 0x168   : > { %3736 = vst [vmem:[#allocation13_spill] sm:$0xff] %v3577_v11  ;;  %v1798_v12 = vpop.f32.mrf.mxu0 }
 0x169   : > { %3737 = vst [vmem:[#allocation14_spill] sm:$0xff] %v3579_v30  ;;  %v1911_v18 = vpop.f32.mrf.mxu1  ;;  %v1799_v13 = vadd.f32 %v1798_v12, %v3479_v29 }
 0x16a   : > { %v3582_v20 = vpop.f32.mrf.mxu0 }
 0x16b   : > { %3738 = vst [vmem:[#allocation15_spill] sm:$0xff] %v3582_v20  ;;  %v3584_v37 = vpop.f32.mrf.mxu1  ;;  %v3586_v27 = vadd.f32 %v1911_v18, %v1799_v13 }
 0x16c   : > { %3739 = vst [vmem:[#allocation16_spill] sm:$0xff] %v3584_v37  ;;  %v1804_v28 = vpop.f32.mrf.mxu0 }
 0x16d   : > { %3740 = vst [vmem:[#allocation17_spill] sm:$0xff] %v3586_v27  ;;  %v1917_v45 = vpop.f32.mrf.mxu1  ;;  %v1805_v4 = vadd.f32 %v1804_v28, %v3485_v40 }
 0x16e   : > { %v1806_v39 = vpop.f32.mrf.mxu0 }
 0x16f   : > { %v1919_v21 = vpop.f32.mrf.mxu1 }
 0x170   : > { %v1808_v42 = vpop.f32.mrf.mxu0 }
 0x171   : > { %v1921_v53 = vpop.f32.mrf.mxu1 }
 0x172   : > { %v1810_v50 = vpop.f32.mrf.mxu0 }
 0x173   : > { %v1923_v54 = vpop.f32.mrf.mxu1 }
 0x174   : > { %v1814_v61 = vpop.f32.mrf.mxu0 }
 0x175   : > { %v1927_v63 = vpop.f32.mrf.mxu1 }
 0x176   : > { %v1816_v0 = vpop.f32.mrf.mxu0 }
 0x177   : > { %v3588_v5 = vpop.f32.mrf.mxu1 }
 0x178   : > { %v1818_v29 = vpop.f32.mrf.mxu0 }
 0x179   : > { %v3590_v12 = vpop.f32.mrf.mxu1 }
 0x17a   : > { %v3592_v30 = vpop.f32.mrf.mxu0 }
 0x17b   : > { %v3594_v18 = vpop.f32.mrf.mxu1 }
 0x17c   : > { %v3596_v13 = vpop.f32.mrf.mxu0 }
 0x17d   : > { %v3598_v27 = vpop.f32.mrf.mxu1 }
 0x17e   : > { %v3600_v37 = vpop.f32.mrf.mxu0 }
 0x17f   : > { %v3602_v2 = vpop.f32.mrf.mxu1 }
 0x180   : > { %v3604_v59 = vpop.f32.mrf.mxu0 }
 0x181   : > { %v3606_v20 = vpop.f32.mrf.mxu1 }
 0x182   : > { %3741 = vst [vmem:[#allocation18_spill] sm:$0xff] %v3606_v20  ;;  %v3608_v35 = vpop.f32.mrf.mxu0  ;;  %v1767_v20 = vadd.f32 %v3533_v6, %v3440_v41  ;;  %v1771_v41 = vadd.f32 %v3540_v15, %v3446_v49 }
 0x183   : > { %3742 = vst [vmem:[#allocation19_spill] sm:$0xff] %v3608_v35  ;;  %v3610_v11 = vpop.f32.mrf.mxu1  ;;  %v1807_v35 = vadd.f32 %v1806_v39, %v3488_v46  ;;  %v1811_v46 = vadd.f32 %v1810_v50, %v3494_v56 }
 0x184   : > { %3743 = vst [vmem:[#allocation20_spill] sm:$0xff] %v3610_v11  ;;  %v3612_v60 = vpop.f32.mrf.mxu0  ;;  %v1880_v40 = vadd.f32 %v3535_v7, %v1767_v20  ;;  %v1884_v56 = vadd.f32 %v3542_v16, %v1771_v41  ;;  %v1781_v16 = vadd.f32 %v3554_v33, %v3458_v1 }
 0x185   : > { %3744 = vst [vmem:[#allocation21_spill] sm:$0xff] %v3612_v60  ;;  %v3614_v58 = vpop.f32.mrf.mxu1  ;;  %v1920_v28 = vadd.f32 %v1919_v21, %v1807_v35  ;;  %v1817_v35 = vadd.f32 %v1816_v0, %v3500_v3  ;;  %v1924_v20 = vadd.f32 %v1923_v54, %v1811_v46 }
 0x186   : > { %3745 = vst [vmem:[#allocation22_spill] sm:$0xff] %v3614_v58  ;;  %v3616_v52 = vpop.f32.mrf.mxu0  ;;  %v1918_v58 = vadd.f32 %v1917_v45, %v1805_v4  ;;  %v1777_v4 = vadd.f32 %v3547_v22, %v3452_v57 }
 0x187   : > { %3746 = vst [vmem:[#allocation23_spill] sm:$0xff] %v3616_v52  ;;  %v3618_v44 = vpop.f32.mrf.mxu1  ;;  %v1809_v52 = vadd.f32 %v1808_v42, %v3491_v51  ;;  %v1815_v51 = vadd.f32 %v1814_v61, %v3497_v62 }
 0x188   : > { %3747 = vst [vmem:[#allocation24_spill] sm:$0xff] %v3618_v44  ;;  %v3621_v25 = vpop.f32.mrf.mxu0  ;;  %v1890_v22 = vadd.f32 %v3549_v23, %v1777_v4 }
 0x189   : > { %3748 = vst [vmem:[#allocation25_spill] sm:$0xff] %v3621_v25  ;;  %v3623_v48 = vpop.f32.mrf.mxu1  ;;  %v1922_v7 = vadd.f32 %v1921_v53, %v1809_v52  ;;  %v1819_v53 = vadd.f32 %v1818_v29, %v3503_v8  ;;  %v1787_v29 = vadd.f32 %v3561_v43, %v3464_v9  ;;  %v1894_v43 = vadd.f32 %v3556_v34, %v1781_v16 }
 0x18a   : > { %3749 = vst [vmem:[#allocation26_spill] sm:$0xff] %v3623_v48  ;;  %v3628_v11 = vpop.f32.mrf.mxu0  ;;  %v1791_v34 = vadd.f32 %v3568_v55, %v3470_v17 }
 0x18b   : > { %v3630_v60 = vpop.f32.mrf.mxu1 }
 0x18c   : > { %v1990_v44 = vpop.f32.mrf.mxu0 }
 0x18d   : > { %v2030_v38 = vpop.f32.mrf.mxu1  ;;  %v1991_v48 = vadd.f32 %v1990_v44, %v3537_v10 }
 0x18e   : > { %v2031_v25 = vadd.f32 %v2030_v38, %v1918_v58  ;;  %v1992_v6 = vpop.f32.mrf.mxu0 }
 0x18f   : > { %v2032_v39 = vpop.f32.mrf.mxu1  ;;  %v1993_v45 = vadd.f32 %v1992_v6, %v1880_v40  ;;  %v2069_v10 = vmax.f32 %v1991_v48, 0.0  ;;  %v1821_v40 = vadd.f32 %v3592_v30, %v3506_v14  ;;  %v1932_v6 = vadd.f32 %v3590_v12, %v1819_v53  ;;  %v3755_v53 = vld [vmem:[#allocation5_spill] sm:$0xff] }
 0x190   : > { %v2033_v42 = vadd.f32 %v2032_v39, %v1920_v28  ;;  %v1994_v44 = vpop.f32.mrf.mxu0  ;;  %v2085_v58 = vmax.f32 %v2031_v25, 0.0  ;;  %v1928_v25 = vadd.f32 %v1927_v63, %v1815_v51 }
 0x191   : > { %v2034_v38 = vpop.f32.mrf.mxu1  ;;  %v2070_v49 = vmax.f32 %v1993_v45, 0.0  ;;  %v1995_v57 = vadd.f32 %v1994_v44, %v3544_v31  ;;  %v1930_v31 = vadd.f32 %v3588_v5, %v1817_v35  ;;  %v1825_v5 = vadd.f32 %v3596_v13, %v3509_v19 }
 0x192   : > { %v2086_v15 = vmax.f32 %v2033_v42, 0.0  ;;  %v2035_v62 = vadd.f32 %v2034_v38, %v1922_v7  ;;  %v1996_v3 = vpop.f32.mrf.mxu0  ;;  %v1934_v19 = vadd.f32 %v3594_v18, %v1821_v40  ;;  %v1900_v44 = vadd.f32 %v3563_v47, %v1787_v29  ;;  %v3752_v47 = vld [vmem:[#allocation9_spill] sm:$0xff]  ;;  %v3758_v40 = vld [vmem:[#allocation6_spill] sm:$0xff] }
 0x193   : > { %v2036_v52 = vpop.f32.mrf.mxu1  ;;  %v2516_v48 = vpack.c.bf16 %v2070_v49, %v2069_v10  ;;  %v1997_v50 = vadd.f32 %v1996_v3, %v1884_v56  ;;  %v2071_v28 = vmax.f32 %v1995_v57, 0.0  ;;  %v1938_v38 = vadd.f32 %v3598_v27, %v1825_v5  ;;  %v3750_v57 = vld [vmem:[#allocation4_spill] sm:$0xff] }
 0x194   : > { %v2524_v21 = vpack.c.bf16 %v2086_v15, %v2085_v58  ;;  %v2037_v54 = vadd.f32 %v2036_v52, %v1924_v20  ;;  %v2000_v61 = vpop.f32.mrf.mxu0  ;;  %v2087_v41 = vmax.f32 %v2035_v62, 0.0  ;;  %v1829_v18 = vadd.f32 %v3604_v59, %v3515_v32  ;;  %v3751_v62 = vld [vmem:[#allocation19_spill] sm:$0xff]  ;;  %v3753_v59 = vld [vmem:[#allocation2_spill] sm:$0xff] }
 0x195   : > { %v2040_v0 = vpop.f32.mrf.mxu1  ;;  %2197 = vst [vmem:[%s3647_s18] sm:$0xff] %v2516_v48  ;;  %v2001_v23 = vadd.f32 %v2000_v61, %v3551_v26  ;;  %v2072_v46 = vmax.f32 %v1997_v50, 0.0  ;;  %v1827_v26 = vadd.f32 %v3600_v37, %v3512_v24  ;;  %v1831_v3 = vadd.f32 %v3751_v62, %v3750_v57  ;;  %v3756_v50 = vld [vmem:[#allocation21_spill] sm:$0xff]  ;;  %v3771_v57 = vld [vmem:[#allocation14_spill] sm:$0xff] }
 0x196   : > { %2205 = vst [vmem:[%s3647_s18 + $0x40] sm:$0xff] %v2524_v21  ;;  %v2041_v63 = vadd.f32 %v2040_v0, %v1928_v25  ;;  %v2088_v1 = vmax.f32 %v2037_v54, 0.0  ;;  %v2002_v33 = vpop.f32.mrf.mxu0  ;;  %v3754_v21 = vld [vmem:[#allocation12_spill] sm:$0xff]  ;;  %v3757_v0 = vld [vmem:[#allocation18_spill] sm:$0xff] }
 0x197   : > { %v2042_v8 = vpop.f32.mrf.mxu1  ;;  %v2003_v14 = vadd.f32 %v2002_v33, %v1890_v22  ;;  %v2517_v39 = vpack.c.bf16 %v2072_v46, %v2071_v28  ;;  %v2073_v42 = vmax.f32 %v2001_v23, 0.0  ;;  %v1940_v20 = vadd.f32 %v3602_v2, %v1827_v26  ;;  %v3759_v23 = vld [vmem:[#allocation23_spill] sm:$0xff] }
 0x198   : > { %v2043_v30 = vadd.f32 %v2042_v8, %v1930_v31  ;;  %v2525_v4 = vpack.c.bf16 %v2088_v1, %v2087_v41  ;;  %v2004_v51 = vpop.f32.mrf.mxu0  ;;  %v2089_v7 = vmax.f32 %v2041_v63, 0.0  ;;  %v1797_v16 = vadd.f32 %v3754_v21, %v3753_v59 }
 0x199   : > { %v2044_v45 = vpop.f32.mrf.mxu1  ;;  %v2074_v35 = vmax.f32 %v2003_v14, 0.0  ;;  %2198 = vst [vmem:[%s3647_s18 + $0x8] sm:$0xff] %v2517_v39  ;;  %v2005_v13 = vadd.f32 %v2004_v51, %v3558_v36  ;;  %v1835_v2 = vadd.f32 %v3756_v50, %v3755_v53  ;;  %v1942_v31 = vadd.f32 %v3757_v0, %v1829_v18  ;;  %v3760_v14 = vld [vmem:[#allocation10_spill] sm:$0xff]  ;;  %v3762_v39 = vld [vmem:[#allocation11_spill] sm:$0xff]  ;;  %v3773_v0 = vld [vmem:[#allocation16_spill] sm:$0xff] }
 0x19a   : > { %v2090_v9 = vmax.f32 %v2043_v30, 0.0  ;;  %2206 = vst [vmem:[%s3647_s18 + $0x48] sm:$0xff] %v2525_v4  ;;  %v2045_v12 = vadd.f32 %v2044_v45, %v1932_v6  ;;  %v2006_v24 = vpop.f32.mrf.mxu0  ;;  %v1837_v63 = vadd.f32 %v3759_v23, %v3758_v40  ;;  %v1904_v30 = vadd.f32 %v3760_v14, %v1791_v34  ;;  %v3761_v6 = vld [vmem:[#allocation20_spill] sm:$0xff]  ;;  %v3774_v23 = vld [vmem:[#allocation17_spill] sm:$0xff] }
 0x19b   : > { %v2046_v37 = vpop.f32.mrf.mxu1  ;;  %v2518_v10 = vpack.c.bf16 %v2074_v35, %v2073_v42  ;;  %v2007_v49 = vadd.f32 %v2006_v24, %v1894_v43  ;;  %v2075_v22 = vmax.f32 %v2005_v13, 0.0  ;;  %v1944_v26 = vadd.f32 %v3761_v6, %v1831_v3  ;;  %v3766_v24 = vld [vmem:[#allocation15_spill] sm:$0xff] }
 0x19c   : > { %v2526_v58 = vpack.c.bf16 %v2090_v9, %v2089_v7  ;;  %v2047_v15 = vadd.f32 %v2046_v37, %v1934_v19  ;;  %v2010_v36 = vpop.f32.mrf.mxu0  ;;  %v2091_v25 = vmax.f32 %v2045_v12, 0.0  ;;  %v3763_v7 = vld [vmem:[#allocation13_spill] sm:$0xff]  ;;  %v3764_v9 = vld [vmem:[#allocation22_spill] sm:$0xff]  ;;  %v3765_v12 = vld [vmem:[#allocation3_spill] sm:$0xff] }
 0x19d   : > { %v2050_v56 = vpop.f32.mrf.mxu1  ;;  %2199 = vst [vmem:[%s3647_s18 + $0x10] sm:$0xff] %v2518_v10  ;;  %v2011_v27 = vadd.f32 %v2010_v36, %v3752_v47  ;;  %v2076_v17 = vmax.f32 %v2007_v49, 0.0  ;;  %v1910_v35 = vadd.f32 %v3763_v7, %v1797_v16  ;;  %v1948_v43 = vadd.f32 %v3764_v9, %v1835_v2 }
 0x19e   : > { %2207 = vst [vmem:[%s3647_s18 + $0x50] sm:$0xff] %v2526_v58  ;;  %v2051_v52 = vadd.f32 %v2050_v56, %v1938_v38  ;;  %v2092_v55 = vmax.f32 %v2047_v15, 0.0  ;;  %v2012_v48 = vpop.f32.mrf.mxu0  ;;  %v1801_v37 = vadd.f32 %v3766_v24, %v3765_v12  ;;  %v3768_v38 = vld [vmem:[#allocation25_spill] sm:$0xff]  ;;  %v3769_v15 = vld [vmem:[#allocation24_spill] sm:$0xff] }
 0x19f   : > { %v2052_v32 = vpop.f32.mrf.mxu1  ;;  %v2013_v54 = vadd.f32 %v2012_v48, %v1900_v44  ;;  %v2519_v28 = vpack.c.bf16 %v2076_v17, %v2075_v22  ;;  %v2077_v33 = vmax.f32 %v2011_v27, 0.0  ;;  %v3767_v44 = vld [vmem:[#allocation7_spill] sm:$0xff]  ;;  %v1950_v36 = vadd.f32 %v3769_v15, %v1837_v63  ;;  %v3770_v56 = vld [vmem:[#allocation8_spill] sm:$0xff] }
 0x1a0   : > { %v2053_v61 = vadd.f32 %v2052_v32, %v1940_v20  ;;  %v2527_v41 = vpack.c.bf16 %v2092_v55, %v2091_v25  ;;  %v2014_v46 = vpop.f32.mrf.mxu0  ;;  %v2093_v8 = vmax.f32 %v2051_v52, 0.0  ;;  %v1839_v10 = vadd.f32 %v3768_v38, %v3767_v44  ;;  %v3772_v32 = vld [vmem:[#allocation26_spill] sm:$0xff] }
 0x1a1   : > { %v2054_v1 = vpop.f32.mrf.mxu1  ;;  %v2078_v29 = vmax.f32 %v2013_v54, 0.0  ;;  %2200 = vst [vmem:[%s3647_s18 + $0x18] sm:$0xff] %v2519_v28  ;;  %v2015_v4 = vadd.f32 %v2014_v46, %v3762_v39  ;;  %v1841_v20 = vadd.f32 %v3628_v11, %v3770_v56 }
 0x1a2   : > { %v2094_v5 = vmax.f32 %v2053_v61, 0.0  ;;  %2208 = vst [vmem:[%s3647_s18 + $0x58] sm:$0xff] %v2527_v41  ;;  %v2055_v51 = vadd.f32 %v2054_v1, %v1942_v31  ;;  %v2016_v45 = vpop.f32.mrf.mxu0  ;;  %v1952_v59 = vadd.f32 %v3772_v32, %v1839_v10  ;;  %v1914_v31 = vadd.f32 %v3773_v0, %v1801_v37 }
 0x1a3   : > { %v2056_v42 = vpop.f32.mrf.mxu1  ;;  %v2520_v19 = vpack.c.bf16 %v2078_v29, %v2077_v33  ;;  %v2017_v58 = vadd.f32 %v2016_v45, %v1904_v30  ;;  %v2079_v47 = vmax.f32 %v2015_v4, 0.0  ;;  %v1954_v40 = vadd.f32 %v3630_v60, %v1841_v20 }
 0x1a4   : > { %v2528_v13 = vpack.c.bf16 %v2094_v5, %v2093_v8  ;;  %v2057_v34 = vadd.f32 %v2056_v42, %v1944_v26  ;;  %v2020_v18 = vpop.f32.mrf.mxu0  ;;  %v2095_v27 = vmax.f32 %v2055_v51, 0.0 }
 0x1a5   : > { %v2060_v49 = vpop.f32.mrf.mxu1  ;;  %2201 = vst [vmem:[%s3647_s18 + $0x20] sm:$0xff] %v2520_v19  ;;  %v2021_v62 = vadd.f32 %v2020_v18, %v3771_v57  ;;  %v2080_v52 = vmax.f32 %v2017_v58, 0.0 }
 0x1a6   : > { %2209 = vst [vmem:[%s3647_s18 + $0x60] sm:$0xff] %v2528_v13  ;;  %v2061_v3 = vadd.f32 %v2060_v49, %v1948_v43  ;;  %v2096_v22 = vmax.f32 %v2057_v34, 0.0  ;;  %v2022_v25 = vpop.f32.mrf.mxu0 }
 0x1a7   : > { %v2062_v17 = vpop.f32.mrf.mxu1  ;;  %v2023_v55 = vadd.f32 %v2022_v25, %v1910_v35  ;;  %v2521_v21 = vpack.c.bf16 %v2080_v52, %v2079_v47  ;;  %v2081_v50 = vmax.f32 %v2021_v62, 0.0 }
 0x1a8   : > { %v2063_v48 = vadd.f32 %v2062_v17, %v1950_v36  ;;  %v2529_v16 = vpack.c.bf16 %v2096_v22, %v2095_v27  ;;  %v2024_v11 = vpop.f32.mrf.mxu0  ;;  %v2097_v2 = vmax.f32 %v2061_v3, 0.0 }
 0x1a9   : > { %v2064_v53 = vpop.f32.mrf.mxu1  ;;  %v2082_v54 = vmax.f32 %v2023_v55, 0.0  ;;  %2202 = vst [vmem:[%s3647_s18 + $0x28] sm:$0xff] %v2521_v21  ;;  %v2025_v63 = vadd.f32 %v2024_v11, %v3774_v23 }
 0x1aa   : > { %v2098_v61 = vmax.f32 %v2063_v48, 0.0  ;;  %2210 = vst [vmem:[%s3647_s18 + $0x68] sm:$0xff] %v2529_v16  ;;  %v2065_v28 = vadd.f32 %v2064_v53, %v1952_v59  ;;  %v2026_v41 = vpop.f32.mrf.mxu0 }
 0x1ab   : > { %v2066_v46 = vpop.f32.mrf.mxu1  ;;  %v2522_v1 = vpack.c.bf16 %v2082_v54, %v2081_v50  ;;  %v2027_v8 = vadd.f32 %v2026_v41, %v1914_v31  ;;  %v2083_v5 = vmax.f32 %v2025_v63, 0.0 }
 0x1ac   : > { %v2530_v33 = vpack.c.bf16 %v2098_v61, %v2097_v2  ;;  %v2067_v29 = vadd.f32 %v2066_v46, %v1954_v40  ;;  %v2099_v14 = vmax.f32 %v2065_v28, 0.0 }
 0x1ad   : > { %2203 = vst [vmem:[%s3647_s18 + $0x30] sm:$0xff] %v2522_v1  ;;  %v2084_v30 = vmax.f32 %v2027_v8, 0.0 }
 0x1ae   : > { %2211 = vst [vmem:[%s3647_s18 + $0x70] sm:$0xff] %v2530_v33  ;;  %v2100_v6 = vmax.f32 %v2067_v29, 0.0 }
 0x1af   : > { %v2523_v60 = vpack.c.bf16 %v2084_v30, %v2083_v5 }
 0x1b0   : > { %v2531_v26 = vpack.c.bf16 %v2100_v6, %v2099_v14 }
 0x1b1   : > { %2204 = vst [vmem:[%s3647_s18 + $0x38] sm:$0xff] %v2523_v60 }
 0x1b2   : > { %2212 = vst [vmem:[%s3647_s18 + $0x78] sm:$0xff] %v2531_v26 }
 0x1b3 PF: > { %s13_s12 = sadd.s32 1, %s2884_s12  }
 0x1b4   : > { %p10_p4 = scmp.ge.s32.totalorder %s13_s12, 6  }
 0x1b6   :  { %12 = sbr.rel (!%p10_p4) target bundleno = 1 (0x1), region = 62 }

// kernel: mdenet_forward.37
= control target key start
LH: loop header
LB: loop body
LE: loop exit
PB: predicated region body
PF: predicated region fallthrough
CT: control target
= control target key end

     0   :  { %s5559_s17 = smov 0   ;;  %s6340_s0 = inlined_call_operand.vmem [shape: bf16[640,128], index: 0, kind: input, shape index: {}]   ;;  %s6341_s1 = inlined_call_operand.vmem [shape: f32[1,128], index: 1, kind: input, shape index: {}]   ;;  %s6342_s2 = inlined_call_operand.vmem [shape: bf16[2048,576], index: 2, kind: input, shape index: {}]   ;;  %s6343_s3 = inlined_call_operand.<no memory space> [shape: bf16[], index: 3, kind: input, shape index: {}]   ;;  %s6344_s4 = inlined_call_operand.vmem [shape: bf16[2048,128], index: 4, kind: output, shape index: {}]  }
   0x1   :  { %v9_v0 = vstv %s6343_s3 }
   0x2   :  { %v5557_v1 = vunpack.i.l.bf16 %v9_v0 }
   0x4   :  { %6346 = vst [vmem:[#allocation8_spill] sm:$0xff] %v5557_v1 }
   0x5 LB: > { %s4280_s18 = sadd.s32 4294967295, %s5526_s17   ;;  %p4284_p0 = scmp.ge.s32.totalorder %s5526_s17, 1  ;;  %s5526_s17 = sphi %s5559_s17, %s19_s17  }
   0x6   : > { %p145_p1 = scmp.lt.s32.totalorder %s5526_s17, 9 }
   0x8   : > { %p146_p2 = pnand %p4284_p0, %p145_p1 }
   0xa   : > { %149 = sbr.rel (%p146_p2) target bundleno = 410 (0x19a), region = 32 }
   0xb   : > { %v6347_v1 = vld [vmem:[#allocation8_spill] sm:$0xff] }
   0xf   : > { %v5414_v2 = vld [vmem:[%s6340_s0 + $0x78] sm:$0xff]   ;;  %s4285_s3 = sshll.u32 %s4280_s18, 5  ;;  %v5416_v4 = vld [vmem:[%s6340_s0 + $0x70] sm:$0xff]   ;;  %v5418_v6 = vld [vmem:[%s6340_s0 + $0x68] sm:$0xff]   ;;  %v250_v7 = vlaneseq }
  0x10   : > { %v5415_v3 = vld [vmem:[%s6340_s0 + $0x38] sm:$0xff]   ;;  %p171_p3 = scmp.lt.s32.totalorder %s4285_s3, 255  ;;  %5092 = vmatprep.subr.bf16.mxu0 %v5414_v2  ;;  %5388 = vmatprep.subr.bf16.mxu1 %v5414_v2  ;;  %v5417_v5 = vld [vmem:[%s6340_s0 + $0x30] sm:$0xff]   ;;  %v5419_v8 = vld [vmem:[%s6340_s0 + $0x28] sm:$0xff]  }
  0x11   : > { %5093 = vmatpush3.bf16.msra.mxu0 %v5415_v3  ;;  %5396 = vmatpush3.bf16.msra.mxu1 %v5415_v3  ;;  %v5420_v9 = vld [vmem:[%s6340_s0 + $0x60] sm:$0xff]   ;;  %v251_v10 = vand.u32 127, %v250_v7  ;;  %v5422_v12 = vld [vmem:[%s6340_s0 + $0x58] sm:$0xff]   ;;  %v5424_v15 = vld [vmem:[%s6340_s0 + $0x50] sm:$0xff]  }
  0x12   : > { %5094 = vmatprep.subr.bf16.mxu0 %v5416_v4  ;;  %5389 = vmatprep.subr.bf16.mxu1 %v5416_v4  ;;  %s6393_s3 = smov (!%p171_p3, %s4285_s3), 255  ;;  %v5421_v11 = vld [vmem:[%s6340_s0 + $0x20] sm:$0xff]   ;;  %v5423_v14 = vld [vmem:[%s6340_s0 + $0x18] sm:$0xff]   ;;  %v5425_v18 = vld [vmem:[%s6340_s0 + $0x10] sm:$0xff]  }
  0x13   : > { %s5404_s7 = smul.u32 20, %s6393_s3  ;;  %v5597_v13 = vadd.s32 512, %v251_v10  ;;  %v5426_v28 = vld [vmem:[%s6340_s0 + $0x48] sm:$0xff]   ;;  %v5428_v33 = vld [vmem:[%s6340_s0 + $0x40] sm:$0xff]   ;;  %v5436_v35 = vld [vmem:[%s6340_s0 + $0xf8] sm:$0xff]   ;;  %s4288_s5 = sshll.u32 %s6393_s3, 2 }
  0x14   : > { %v5427_v31 = vld [vmem:[%s6340_s0 + $0x8] sm:$0xff]   ;;  %v5429_v34 = vld [vmem:[%s6340_s0] sm:$0xff]   ;;  %v5439_v38 = vld [vmem:[%s6340_s0 + $0x138] sm:$0xff]  }
  0x15   : > { %5095 = vmatpush3.bf16.msra.mxu0 %v5417_v5  ;;  %5397 = vmatpush3.bf16.msra.mxu1 %v5417_v5  ;;  %s5602_s14 = scalar_lea.vmem %s6342_s2, %s5404_s7  ;;  %vm253_vm0 = vcmp.lt.s32.totalorder %v5597_v13, 576  ;;  %v5437_v55 = vld [vmem:[%s6340_s0 + $0xb8] sm:$0xff]   ;;  %v5438_v57 = vld [vmem:[%s6340_s0 + $0xf0] sm:$0xff]   ;;  %v5445_v59 = vld [vmem:[%s6340_s0 + $0xe8] sm:$0xff]   ;;  %s6215_s7 = scalar_lea.vmem %s6344_s4, %s4288_s5 }
  0x16   : > { %5096 = vmatprep.subr.bf16.mxu0 %v5418_v6  ;;  %5390 = vmatprep.subr.bf16.mxu1 %v5418_v6  ;;  %v183_v16 = vld [vmem:[%s5602_s14] sm:$0xff]   ;;  %v4292_v17 = vld [vmem:[%s5602_s14 + $0x10] sm:$0xff]   ;;  %v5430_v21 = vld [vmem:[%s5602_s14 + $0x18] sm:$0xff]  }
  0x17   : > { %194 = vst [vmem:[#allocation7] sm:$0xff] %v183_v16   ;;  %v248_v19 = vunpack.c.l.bf16 %v4292_v17  ;;  %v4642_v20 = vunpack.c.h.bf16 %v4292_v17  ;;  %v5618_v22 = vld [vmem:[%s5602_s14 + $0x1e0] sm:$0xff]   ;;  %v4412_v23 = vld [vmem:[%s5602_s14 + $0x1f0] sm:$0xff]   ;;  %4649 = vst [vmem:[#allocation7 + $0x18] sm:$0xff] %v5430_v21  }
  0x18   : > { %v2144_v25 = vunpack.c.l.bf16 %v4412_v23  ;;  %v4882_v26 = vunpack.c.h.bf16 %v4412_v23  ;;  %v5435_v27 = vld [vmem:[%s5602_s14 + $0x1f8] sm:$0xff]   ;;  %v5644_v36 = vld [vmem:[%s5602_s14 + $0x28] sm:$0xff]   ;;  %v5442_v41 = vld [vmem:[%s5602_s14 + $0x40] sm:$0xff]  }
  0x19   : > { %5097 = vmatpush3.bf16.msra.mxu0 %v5419_v8  ;;  %5398 = vmatpush3.bf16.msra.mxu1 %v5419_v8  ;;  %v254_v24 = vsel %vm253_vm0, %v248_v19, %v6347_v1  ;;  %4889 = vst [vmem:[#allocation7 + $0x1f8] sm:$0xff] %v5435_v27   ;;  %v4302_v37 = vld [vmem:[%s5602_s14 + $0x38] sm:$0xff]   ;;  %v5652_v42 = vld [vmem:[%s5602_s14 + $0x208] sm:$0xff]   ;;  %4669 = vst [vmem:[#allocation7 + $0x40] sm:$0xff] %v5442_v41  }
  0x1a   : > { %5098 = vmatprep.subr.bf16.mxu0 %v5420_v9  ;;  %5391 = vmatprep.subr.bf16.mxu1 %v5420_v9  ;;  %v4643_v29 = vpack.c.bf16 %v4642_v20, %v254_v24  ;;  %v2150_v30 = vsel %vm253_vm0, %v2144_v25, %v6347_v1  ;;  %v406_v39 = vunpack.c.l.bf16 %v4302_v37  ;;  %v4662_v40 = vunpack.c.h.bf16 %v4302_v37  ;;  %v4422_v43 = vld [vmem:[%s5602_s14 + $0x218] sm:$0xff]   ;;  %v5444_v50 = vld [vmem:[%s5602_s14 + $0x220] sm:$0xff]   ;;  %v5440_v58 = vld [vmem:[%s6340_s0 + $0xb0] sm:$0xff]  }
  0x1b   : > { %v4883_v32 = vpack.c.bf16 %v4882_v26, %v2150_v30  ;;  %v2302_v47 = vunpack.c.l.bf16 %v4422_v43  ;;  %v4902_v48 = vunpack.c.h.bf16 %v4422_v43  ;;  %4909 = vst [vmem:[#allocation7 + $0x220] sm:$0xff] %v5444_v50   ;;  %v5677_v60 = vld [vmem:[%s5602_s14 + $0x50] sm:$0xff]   ;;  %v4312_v61 = vld [vmem:[%s5602_s14 + $0x60] sm:$0xff]   ;;  %v5450_v0 = vld [vmem:[%s5602_s14 + $0x68] sm:$0xff]  }
  0x1c   : > { %4644 = vst [vmem:[#allocation7 + $0x10] sm:$0xff] %v4643_v29   ;;  %v412_v46 = vsel %vm253_vm0, %v406_v39, %v6347_v1  ;;  %v564_v62 = vunpack.c.l.bf16 %v4312_v61  ;;  %v4682_v63 = vunpack.c.h.bf16 %v4312_v61  ;;  %v5446_v2 = vld [vmem:[%s6340_s0 + $0xa8] sm:$0xff]   ;;  %v5685_v3 = vld [vmem:[%s5602_s14 + $0x230] sm:$0xff]   ;;  %v4432_v4 = vld [vmem:[%s5602_s14 + $0x240] sm:$0xff]  }
  0x1d   : > { %5099 = vmatpush3.bf16.msra.mxu0 %v5421_v11  ;;  %5399 = vmatpush3.bf16.msra.mxu1 %v5421_v11  ;;  %4884 = vst [vmem:[#allocation7 + $0x1f0] sm:$0xff] %v4883_v32   ;;  %v4663_v49 = vpack.c.bf16 %v4662_v40, %v412_v46  ;;  %v2308_v52 = vsel %vm253_vm0, %v2302_v47, %v6347_v1  ;;  %4689 = vst [vmem:[#allocation7 + $0x68] sm:$0xff] %v5450_v0   ;;  %v2460_v7 = vunpack.c.l.bf16 %v4432_v4  ;;  %v5454_v20 = vld [vmem:[%s6340_s0 + $0x130] sm:$0xff]   ;;  %v5448_v21 = vld [vmem:[%s6340_s0 + $0xa0] sm:$0xff]  }
  0x1e   : > { %5100 = vmatprep.subr.bf16.mxu0 %v5422_v12  ;;  %5392 = vmatprep.subr.bf16.mxu1 %v5422_v12  ;;  %v5433_v45 = vld [vmem:[#allocation7 + $0x4] ss:$20 sps:$4 sm:$0xff]   ;;  %v4903_v56 = vpack.c.bf16 %v4902_v48, %v2308_v52  ;;  %v570_v6 = vsel %vm253_vm0, %v564_v62, %v6347_v1  ;;  %v4922_v8 = vunpack.c.h.bf16 %v4432_v4  ;;  %v5455_v23 = vld [vmem:[%s6340_s0 + $0x98] sm:$0xff]   ;;  %v5456_v26 = vld [vmem:[%s6340_s0 + $0xd0] sm:$0xff]  }
  0x1f   : > { %3581 = vmatprep.mubr.bf16.mxu0 %v5433_v45  ;;  %4664 = vst [vmem:[#allocation7 + $0x38] sm:$0xff] %v4663_v49   ;;  %v4683_v11 = vpack.c.bf16 %v4682_v63, %v570_v6  ;;  %v5452_v12 = vld [vmem:[%s5602_s14 + $0x248] sm:$0xff]   ;;  %v2466_v16 = vsel %vm253_vm0, %v2460_v7, %v6347_v1  ;;  %v5715_v24 = vld [vmem:[%s5602_s14 + $0x78] sm:$0xff]   ;;  %v5459_v29 = vld [vmem:[%s5602_s14 + $0x90] sm:$0xff]  }
  0x20   : > { %4904 = vst [vmem:[#allocation7 + $0x218] sm:$0xff] %v4903_v56   ;;  %v4923_v19 = vpack.c.bf16 %v4922_v8, %v2466_v16  ;;  %4929 = vst [vmem:[#allocation7 + $0x248] sm:$0xff] %v5452_v12   ;;  %v4322_v25 = vld [vmem:[%s5602_s14 + $0x88] sm:$0xff]   ;;  %v5723_v30 = vld [vmem:[%s5602_s14 + $0x258] sm:$0xff]  }
  0x21   : > { %5101 = vmatpush3.bf16.msra.mxu0 %v5423_v14  ;;  %5400 = vmatpush3.bf16.msra.mxu1 %v5423_v14  ;;  %4684 = vst [vmem:[#allocation7 + $0x60] sm:$0xff] %v4683_v11   ;;  %v722_v27 = vunpack.c.l.bf16 %v4322_v25  ;;  %4709 = vst [vmem:[#allocation7 + $0x90] sm:$0xff] %v5459_v29   ;;  %v5457_v43 = vld [vmem:[%s6340_s0 + $0x90] sm:$0xff]   ;;  %v5462_v46 = vld [vmem:[%s6340_s0 + $0xc8] sm:$0xff]  }
  0x22   : > { %5102 = vmatprep.subr.bf16.mxu0 %v5424_v15  ;;  %5393 = vmatprep.subr.bf16.mxu1 %v5424_v15  ;;  %v5447_v15 = vld [vmem:[%s6340_s0 + $0xe0] sm:$0xff]   ;;  %4924 = vst [vmem:[#allocation7 + $0x240] sm:$0xff] %v4923_v19   ;;  %v5463_v47 = vld [vmem:[%s6340_s0 + $0x88] sm:$0xff]   ;;  %v4342_v0 = vld [vmem:[%s5602_s14 + $0xd8] sm:$0xff]  }
  0x23   : > { %v5431_v44 = vld [vmem:[#allocation7] ss:$20 sps:$4 sm:$0xff]   ;;  %v728_v32 = vsel %vm253_vm0, %v722_v27, %v6347_v1  ;;  %v5464_v49 = vld [vmem:[%s6340_s0 + $0xc0] sm:$0xff]   ;;  %v4742_v4 = vunpack.c.h.bf16 %v4342_v0  ;;  %v5777_v8 = vld [vmem:[%s5602_s14 + $0x30] sm:$0xff]  }
  0x24   : > { %v2785_v51 = vld [vmem:[#allocation7 + $0x1f4] sm:$0xff]  ;;  %v5465_v48 = vld [vmem:[%s6340_s0 + $0x128] sm:$0xff]  }
  0x25   : > { %5103 = vmatpush3.bf16.msra.mxu0 %v5425_v18  ;;  %5401 = vmatpush3.bf16.msra.mxu1 %v5425_v18  ;;  %v4509_v53 = vcombine.low %v5618_v22, %v2785_v51  ;;  %v4510_v54 = vcombine.high %v5618_v22, %v2785_v51  ;;  %v5453_v22 = vld [vmem:[%s6340_s0 + $0xd8] sm:$0xff]   ;;  %v5753_v50 = vld [vmem:[%s5602_s14 + $0xa0] sm:$0xff]   ;;  %v4332_v51 = vld [vmem:[%s5602_s14 + $0xb0] sm:$0xff]  }
  0x26   : > { %5104 = vmatprep.subr.bf16.mxu0 %v5426_v28  ;;  %5394 = vmatprep.subr.bf16.mxu1 %v5426_v28  ;;  %v2719_v5 = vld [vmem:[#allocation7 + $0x3c] sm:$0xff]  ;;  %v4702_v28 = vunpack.c.h.bf16 %v4322_v25 }
  0x27   : > { %3677 = vmatprep.mubr.bf16.mxu1 %v4510_v54  ;;  %v4455_v9 = vcombine.high %v5644_v36, %v2719_v5  ;;  %v4454_v10 = vcombine.low %v5644_v36, %v2719_v5  ;;  %v2791_v14 = vld [vmem:[#allocation7 + $0x21c] sm:$0xff]  ;;  %v4722_v54 = vunpack.c.h.bf16 %v4332_v51 }
  0x28   : > { %v4515_v17 = vcombine.high %v5652_v42, %v2791_v14  ;;  %v4514_v18 = vcombine.low %v5652_v42, %v2791_v14  ;;  %v4703_v36 = vpack.c.bf16 %v4702_v28, %v728_v32  ;;  %v5466_v52 = vld [vmem:[%s6340_s0 + $0x80] sm:$0xff]   ;;  %v5770_v62 = vld [vmem:[%s5602_s14 + $0xc8] sm:$0xff]   ;;  %v5787_v14 = vld [vmem:[%s5602_s14 + $0xf0] sm:$0xff]  }
  0x29   : > { %5105 = vmatpush3.bf16.msra.mxu0 %v5427_v31  ;;  %5402 = vmatpush3.bf16.msra.mxu1 %v5427_v31  ;;  %v2725_v31 = vld [vmem:[#allocation7 + $0x64] sm:$0xff]  ;;  %v5471_v5 = vld [vmem:[%s5602_s14 + $0xe0] sm:$0xff]  }
  0x2a   : > { %5106 = vmatprep.subr.bf16.mxu0 %v5428_v33  ;;  %5395 = vmatprep.subr.bf16.mxu1 %v5428_v33  ;;  %v4442_v33 = vld [vmem:[%s5602_s14 + $0x268] sm:$0xff]   ;;  %4704 = vst [vmem:[#allocation7 + $0x88] sm:$0xff] %v4703_v36   ;;  %4749 = vst [vmem:[#allocation7 + $0xe0] sm:$0xff] %v5471_v5   ;;  %v5473_v11 = vld [vmem:[%s6340_s0 + $0x120] sm:$0xff]  }
  0x2b   : > { %v2618_v37 = vunpack.c.l.bf16 %v4442_v33  ;;  %v2797_v39 = vld [vmem:[#allocation7 + $0x244] sm:$0xff]  ;;  %v4942_v40 = vunpack.c.h.bf16 %v4442_v33 }
  0x2c   : > { %v4520_v41 = vcombine.high %v5685_v3, %v2797_v39  ;;  %v4519_v42 = vcombine.low %v5685_v3, %v2797_v39  ;;  %v1038_v3 = vunpack.c.l.bf16 %v4342_v0  ;;  %v5475_v19 = vld [vmem:[%s5602_s14 + $0x108] sm:$0xff]   ;;  %v5479_v36 = vld [vmem:[%s5602_s14 + $0x130] sm:$0xff]   ;;  %v5486_v0 = vld [vmem:[%s5602_s14 + $0x180] sm:$0xff]  }
  0x2d   : > { %5107 = vmatpush3.bf16.msra.mxu0 %v5429_v34  ;;  %5403 = vmatpush3.bf16.msra.mxu1 %v5429_v34  ;;  %v4460_v34 = vcombine.high %v5677_v60, %v2725_v31  ;;  %4769 = vst [vmem:[#allocation7 + $0x108] sm:$0xff] %v5475_v19   ;;  %v4362_v32 = vld [vmem:[%s5602_s14 + $0x128] sm:$0xff]   ;;  %4789 = vst [vmem:[#allocation7 + $0x130] sm:$0xff] %v5479_v36   ;;  %v5869_v19 = vld [vmem:[%s5602_s14 + $0xf8] sm:$0xff]  }
  0x2e   : > { %5204 = vmatprep.subr.bf16.mxu1 %v5436_v35  ;;  %5340 = vmatprep.subr.bf16.mxu0 %v5439_v38  ;;  %v4459_v35 = vcombine.low %v5677_v60, %v2725_v31  ;;  %v5806_v31 = vld [vmem:[%s5602_s14 + $0x118] sm:$0xff]   ;;  %4829 = vst [vmem:[#allocation7 + $0x180] sm:$0xff] %v5486_v0   ;;  %v5495_v36 = vld [vmem:[%s6340_s0 + $0x100] sm:$0xff]  }
  0x2f   : > { %v4337_v0 = vld [vmem:[%s5602_s14 + $0xc4] ss:$40 sps:$4 sm:$0xff]  }
  0x30   : > { %3582 = vmatmul.mubr.bf16.vlgmr.msra.gmra.mxu0 %v5431_v44  ;;  %3678 = vmatmul.mubr.bf16.vlgmr.msra.gmra.mxu1 %v4509_v53  ;;  %v2624_v44 = vsel %vm253_vm0, %v2618_v37, %v6347_v1  ;;  %v880_v53 = vunpack.c.l.bf16 %v4332_v51  ;;  %v5812_v37 = vld [vmem:[%s5602_s14 + $0x80] sm:$0xff]  }
  0x31   : > { %5341 = vmatpush3.bf16.msra.mxu0 %v5439_v38  ;;  %5205 = vmatpush3.bf16.msra.mxu1 %v5437_v55  ;;  %v5461_v38 = vld [vmem:[%s5602_s14 + $0x270] sm:$0xff]   ;;  %v4943_v45 = vpack.c.bf16 %v4942_v40, %v2624_v44  ;;  %v5468_v55 = vld [vmem:[%s5602_s14 + $0xb8] sm:$0xff]  }
  0x32   : > { %5206 = vmatprep.subr.bf16.mxu1 %v5438_v57  ;;  %3589 = vmatprep.mubr.bf16.mxu0 %v4455_v9  ;;  %4949 = vst [vmem:[#allocation7 + $0x270] sm:$0xff] %v5461_v38   ;;  %v2731_v56 = vld [vmem:[#allocation7 + $0x8c] sm:$0xff]  ;;  %v5761_v57 = vld [vmem:[%s5602_s14 + $0x8] sm:$0xff]   ;;  %v886_v61 = vsel %vm253_vm0, %v880_v53, %v6347_v1  ;;  %4729 = vst [vmem:[#allocation7 + $0xb8] sm:$0xff] %v5468_v55  }
  0x33   : > { %3685 = vmatprep.mubr.bf16.mxu1 %v4515_v17  ;;  %5342 = vmatprep.subr.bf16.mxu0 %v5454_v20  ;;  %4944 = vst [vmem:[#allocation7 + $0x268] sm:$0xff] %v4943_v45   ;;  %v4464_v60 = vcombine.low %v5715_v24, %v2731_v56  ;;  %v4723_v63 = vpack.c.bf16 %v4722_v54, %v886_v61  ;;  %v4306_v9 = vld [vmem:[%s5602_s14 + $0x48] sm:$0xf]  ;;  %v4326_v40 = vld [vmem:[%s5602_s14 + $0x98] sm:$0xf]  ;;  %v4372_v44 = vld [vmem:[%s5602_s14 + $0x150] sm:$0xff]  }
  0x34   : > { %473 = vst [vmem:[#allocation7 + $0x48] sm:$0xf] %v4306_v9  ;;  %789 = vst [vmem:[#allocation7 + $0x98] sm:$0xf] %v4326_v40  ;;  %v4336_v53 = vld [vmem:[%s5602_s14 + $0xc0] sm:$0xf] }
  0x35   : > { %5207 = vmatpush3.bf16.msra.mxu1 %v5440_v58  ;;  %5343 = vmatpush3.bf16.msra.mxu0 %v5454_v20  ;;  %v4296_v58 = vld [vmem:[%s5602_s14 + $0x20] sm:$0xf]  ;;  %4724 = vst [vmem:[#allocation7 + $0xb0] sm:$0xff] %v4723_v63   ;;  %947 = vst [vmem:[#allocation7 + $0xc0] sm:$0xf] %v4336_v53  ;;  %v5899_v40 = vld [vmem:[%s5602_s14 + $0x148] sm:$0xff]  }
  0x36   : > { %5208 = vmatprep.subr.bf16.mxu1 %v5445_v59  ;;  %5344 = vmatprep.subr.bf16.mxu0 %v5465_v48  ;;  %v4465_v59 = vcombine.high %v5715_v24, %v2731_v56  ;;  %315 = vst [vmem:[#allocation7 + $0x20] sm:$0xf] %v4296_v58  ;;  %v5477_v24 = vld [vmem:[%s6340_s0 + $0x118] sm:$0xff]  }
  0x38   : > { %3590 = vmatmul.mubr.bf16.gmra.mxu0 %v4454_v10  ;;  %3686 = vmatmul.mubr.bf16.gmra.mxu1 %v4514_v18  ;;  %v1044_v10 = vsel %vm253_vm0, %v1038_v3, %v6347_v1  ;;  %v4346_v3 = vld [vmem:[%s5602_s14 + $0xe8] sm:$0xf] }
  0x39   : > { %5209 = vmatpush3.bf16.msra.mxu1 %v5446_v2  ;;  %3597 = vmatprep.mubr.bf16.mxu0 %v4460_v34  ;;  %v4743_v12 = vpack.c.bf16 %v4742_v4, %v1044_v10  ;;  %v1354_v34 = vunpack.c.l.bf16 %v4362_v32  ;;  %1105 = vst [vmem:[#allocation7 + $0xe8] sm:$0xf] %v4346_v3  ;;  %v5858_v10 = vld [vmem:[%s5602_s14 + $0x190] sm:$0xff]  }
  0x3a   : > { %5210 = vmatprep.subr.bf16.mxu1 %v5447_v15  ;;  %3693 = vmatprep.mubr.bf16.mxu1 %v4520_v41  ;;  %v2803_v2 = vld [vmem:[#allocation7 + $0x26c] sm:$0xff]  ;;  %v4352_v15 = vld [vmem:[%s5602_s14 + $0x100] sm:$0xff]  }
  0x3b   : > { %5345 = vmatpush3.bf16.msra.mxu0 %v5465_v48  ;;  %v4525_v6 = vcombine.high %v5723_v30, %v2803_v2  ;;  %v4524_v7 = vcombine.low %v5723_v30, %v2803_v2  ;;  %4744 = vst [vmem:[#allocation7 + $0xd8] sm:$0xff] %v4743_v12   ;;  %v1196_v17 = vunpack.c.l.bf16 %v4352_v15  ;;  %v4762_v18 = vunpack.c.h.bf16 %v4352_v15  ;;  %v2720_v30 = vld [vmem:[#allocation7 + $0x44] sm:$0xff]  ;;  %v5482_v48 = vld [vmem:[%s5602_s14 + $0x158] sm:$0xff]  }
  0x3c   : > { %5346 = vmatprep.subr.bf16.mxu0 %v5473_v11  ;;  %v2737_v25 = vld [vmem:[#allocation7 + $0xb4] sm:$0xff]  ;;  %v4457_v33 = vcombine.high %v5777_v8, %v2720_v30  ;;  %v1360_v39 = vsel %vm253_vm0, %v1354_v34, %v6347_v1  ;;  %4809 = vst [vmem:[#allocation7 + $0x158] sm:$0xff] %v5482_v48   ;;  %v5846_v2 = vld [vmem:[%s5602_s14 + $0xd0] sm:$0xff]  }
  0x3d   : > { %5211 = vmatpush3.bf16.msra.mxu1 %v5448_v21  ;;  %v2714_v16 = vld [vmem:[#allocation7 + $0x1c] sm:$0xff]  ;;  %v5793_v21 = vld [vmem:[%s5602_s14 + $0x58] sm:$0xff]   ;;  %v4470_v28 = vcombine.high %v5753_v50, %v2737_v25  ;;  %v4469_v29 = vcombine.low %v5753_v50, %v2737_v25  ;;  %v4456_v50 = vcombine.low %v5777_v8, %v2720_v30 }
  0x3e   : > { %5212 = vmatprep.subr.bf16.mxu1 %v5453_v22  ;;  %v4452_v20 = vcombine.high %v5761_v57, %v2714_v16  ;;  %v4316_v22 = vld [vmem:[%s5602_s14 + $0x70] sm:$0xf]  ;;  %v5842_v61 = vld [vmem:[#allocation7 + $0x94] sm:$0xff] }
  0x3f   : > { %5347 = vmatpush3.bf16.msra.mxu0 %v5473_v11  ;;  %631 = vst [vmem:[#allocation7 + $0x70] sm:$0xf] %v4316_v22  ;;  %v4392_v11 = vld [vmem:[%s5602_s14 + $0x1a0] sm:$0xff]   ;;  %v4467_v15 = vcombine.high %v5812_v37, %v5842_v61  ;;  %v4466_v34 = vcombine.low %v5812_v37, %v5842_v61 }
  0x40   : > { %3598 = vmatmul.mubr.bf16.gmra.mxu0 %v4459_v35  ;;  %3694 = vmatmul.mubr.bf16.gmra.mxu1 %v4519_v42  ;;  %v4782_v35 = vunpack.c.h.bf16 %v4362_v32  ;;  %v5885_v30 = vld [vmem:[%s5602_s14 + $0x120] sm:$0xff]   ;;  %v4366_v32 = vld [vmem:[%s5602_s14 + $0x138] sm:$0xf] }
  0x41   : > { %5213 = vmatpush3.bf16.msra.mxu1 %v5455_v23  ;;  %3605 = vmatprep.mubr.bf16.mxu0 %v4465_v59  ;;  %v1202_v23 = vsel %vm253_vm0, %v1196_v17, %v6347_v1  ;;  %v5839_v59 = vld [vmem:[%s5602_s14 + $0x168] sm:$0xff]   ;;  %v4842_v17 = vunpack.c.h.bf16 %v4392_v11  ;;  %1421 = vst [vmem:[#allocation7 + $0x138] sm:$0xf] %v4366_v32 }
  0x42   : > { %5214 = vmatprep.subr.bf16.mxu1 %v5456_v26  ;;  %3701 = vmatprep.mubr.bf16.mxu1 %v4525_v6  ;;  %v4451_v26 = vcombine.low %v5761_v57, %v2714_v16  ;;  %v4763_v27 = vpack.c.bf16 %v4762_v18, %v1202_v23  ;;  %v2743_v38 = vld [vmem:[#allocation7 + $0xdc] sm:$0xff]  ;;  %v4783_v42 = vpack.c.bf16 %v4782_v35, %v1360_v39  ;;  %v5484_v57 = vld [vmem:[%s6340_s0 + $0x110] sm:$0xff]   ;;  %v1828_v16 = vunpack.c.l.bf16 %v4392_v11  ;;  %v5875_v23 = vld [vmem:[%s5602_s14 + $0x1b8] sm:$0xff]  }
  0x43   : > { %5348 = vmatprep.subr.bf16.mxu0 %v5477_v24  ;;  %v4475_v41 = vcombine.high %v5770_v62, %v2743_v38  ;;  %v5490_v18 = vld [vmem:[%s5602_s14 + $0x1a8] sm:$0xff]  }
  0x44   : > { %4764 = vst [vmem:[#allocation7 + $0x100] sm:$0xff] %v4763_v27   ;;  %5349 = vmatpush3.bf16.msra.mxu0 %v5477_v24  ;;  %4784 = vst [vmem:[#allocation7 + $0x128] sm:$0xff] %v4783_v42   ;;  %v4402_v24 = vld [vmem:[%s5602_s14 + $0x1c8] sm:$0xff]  }
  0x45   : > { %5215 = vmatpush3.bf16.msra.mxu1 %v5457_v43  ;;  %v5820_v43 = vld [vmem:[%s5602_s14 + $0x140] sm:$0xff]   ;;  %5350 = vmatprep.subr.bf16.mxu0 %v5484_v57  ;;  %4849 = vst [vmem:[#allocation7 + $0x1a8] sm:$0xff] %v5490_v18   ;;  %v4862_v27 = vunpack.c.h.bf16 %v4402_v24 }
  0x46   : > { %5216 = vmatprep.subr.bf16.mxu1 %v5462_v46  ;;  %v2726_v45 = vld [vmem:[#allocation7 + $0x6c] sm:$0xff]  ;;  %v1512_v46 = vunpack.c.l.bf16 %v4372_v44  ;;  %v4297_v37 = vld [vmem:[%s5602_s14 + $0x24] ss:$40 sps:$4 sm:$0xff]  }
  0x47   : > { %v4462_v55 = vcombine.high %v5793_v21, %v2726_v45  ;;  %v4461_v9 = vcombine.low %v5793_v21, %v2726_v45  ;;  %v5872_v21 = vld [vmem:[#allocation7 + $0xbc] sm:$0xff]  ;;  %v327_v42 = vunpack.c.l.bf16 %v4297_v37  ;;  %v5906_v45 = vld [vmem:[%s5602_s14 + $0x170] sm:$0xff]  }
  0x48   : > { %3606 = vmatmul.mubr.bf16.gmra.mxu0 %v4464_v60  ;;  %3702 = vmatmul.mubr.bf16.gmra.mxu1 %v4524_v7  ;;  %v1518_v51 = vsel %vm253_vm0, %v1512_v46, %v6347_v1  ;;  %v4382_v60 = vld [vmem:[%s5602_s14 + $0x178] sm:$0xff]   ;;  %v5488_v7 = vld [vmem:[%s6340_s0 + $0x108] sm:$0xff]  }
  0x49   : > { %5217 = vmatpush3.bf16.msra.mxu1 %v5463_v47  ;;  %3742 = vmatprep.mubr.bf16.mxu1 %v4452_v20  ;;  %v4802_v47 = vunpack.c.h.bf16 %v4372_v44  ;;  %v4822_v63 = vunpack.c.h.bf16 %v4382_v60  ;;  %v4356_v20 = vld [vmem:[%s5602_s14 + $0x110] sm:$0xf]  ;;  %v485_v44 = vunpack.c.h.bf16 %v4297_v37  ;;  %v4386_v46 = vld [vmem:[%s5602_s14 + $0x188] sm:$0xf]  ;;  %v333_v48 = vsel %vm253_vm0, %v327_v42, %v6347_v1 }
  0x4a   : > { %5218 = vmatprep.subr.bf16.mxu1 %v5464_v49  ;;  %3613 = vmatprep.mubr.bf16.mxu0 %v4470_v28  ;;  %v4474_v49 = vcombine.low %v5770_v62, %v2743_v38  ;;  %v1670_v62 = vunpack.c.l.bf16 %v4382_v60  ;;  %1263 = vst [vmem:[#allocation7 + $0x110] sm:$0xf] %v4356_v20  ;;  %v5493_v28 = vld [vmem:[%s5602_s14 + $0x1d0] sm:$0xff]   ;;  %1737 = vst [vmem:[#allocation7 + $0x188] sm:$0xf] %v4386_v46 }
  0x4b   : > { %v2749_v54 = vld [vmem:[#allocation7 + $0x104] sm:$0xff]  ;;  %v4803_v56 = vpack.c.bf16 %v4802_v47, %v1518_v51  ;;  %v2755_v4 = vld [vmem:[#allocation7 + $0x12c] sm:$0xff]  ;;  %5351 = vmatpush3.bf16.msra.mxu0 %v5484_v57  ;;  %4869 = vst [vmem:[#allocation7 + $0x1d0] sm:$0xff] %v5493_v28   ;;  %v5528_v51 = vmov 0.0   ;;  %v4426_v37 = vld [vmem:[%s5602_s14 + $0x228] sm:$0xf] }
  0x4c   : > { %v4480_v58 = vcombine.high %v5787_v14, %v2749_v54  ;;  %v1676_v5 = vsel %vm253_vm0, %v1670_v62, %v6347_v1  ;;  %v4479_v8 = vcombine.low %v5787_v14, %v2749_v54  ;;  %v4485_v12 = vcombine.high %v5806_v31, %v2755_v4  ;;  %5352 = vmatprep.subr.bf16.mxu0 %v5488_v7  ;;  %v5921_v57 = vld [vmem:[%s5602_s14 + $0x198] sm:$0xff]  }
  0x4d   : > { %5219 = vmatpush3.bf16.msra.mxu1 %v5466_v52  ;;  %v5830_v52 = vld [vmem:[%s5602_s14 + $0xa8] sm:$0xff]   ;;  %4804 = vst [vmem:[#allocation7 + $0x150] sm:$0xff] %v4803_v56   ;;  %v4823_v6 = vpack.c.bf16 %v4822_v63, %v1676_v5  ;;  %v1834_v14 = vsel %vm253_vm0, %v1828_v16, %v6347_v1  ;;  %v335_v53 = vpack.c.bf16 %v5528_v51, %v333_v48  ;;  %2369 = vst [vmem:[#allocation7 + $0x228] sm:$0xf] %v4426_v37 }
  0x4e   : > { %v4843_v22 = vpack.c.bf16 %v4842_v17, %v1834_v14  ;;  %v4472_v39 = vcombine.high %v5830_v52, %v5872_v21  ;;  %v4471_v61 = vcombine.low %v5830_v52, %v5872_v21  ;;  %v959_v52 = vunpack.c.l.bf16 %v4337_v0  ;;  %v5959_v21 = vld [vmem:[%s5602_s14 + $0x1e8] sm:$0xff]  }
  0x4f   : > { %4824 = vst [vmem:[#allocation7 + $0x178] sm:$0xff] %v4823_v6   ;;  %5353 = vmatpush3.bf16.msra.mxu0 %v5488_v7  ;;  %338 = vst [vmem:[#allocation7 + $0x24] sm:$0xf] %v335_v53  ;;  %v5942_v7 = vld [vmem:[%s5602_s14 + $0x1c0] sm:$0xff]  }
  0x50   : > { %3614 = vmatmul.mubr.bf16.gmra.mxu0 %v4469_v29  ;;  %3743 = vmatmul.mubr.bf16.vlgmr.msra.gmra.mxu1 %v4451_v26  ;;  %v1986_v26 = vunpack.c.l.bf16 %v4402_v24  ;;  %4844 = vst [vmem:[#allocation7 + $0x1a0] sm:$0xff] %v4843_v22   ;;  %v4416_v22 = vld [vmem:[%s5602_s14 + $0x200] sm:$0xf]  ;;  %v4377_v24 = vld [vmem:[%s5602_s14 + $0x164] ss:$40 sps:$4 sm:$0xff]  }
  0x51   : > { %3750 = vmatprep.mubr.bf16.mxu1 %v4457_v33  ;;  %3621 = vmatprep.mubr.bf16.mxu0 %v4475_v41  ;;  %v4484_v33 = vcombine.low %v5806_v31, %v2755_v4  ;;  %v4376_v31 = vld [vmem:[%s5602_s14 + $0x160] sm:$0xf]  ;;  %v5903_v41 = vld [vmem:[#allocation7 + $0xe4] sm:$0xff]  ;;  %v1117_v4 = vunpack.c.h.bf16 %v4337_v0  ;;  %v5954_v16 = vld [vmem:[#allocation7 + $0x10c] sm:$0xff]  ;;  %2211 = vst [vmem:[#allocation7 + $0x200] sm:$0xf] %v4416_v22  ;;  %v1749_v28 = vunpack.c.h.bf16 %v4377_v24 }
  0x52   : > { %v1992_v29 = vsel %vm253_vm0, %v1986_v26, %v6347_v1  ;;  %5354 = vmatprep.subr.bf16.mxu0 %v5495_v36  ;;  %1579 = vst [vmem:[#allocation7 + $0x160] sm:$0xf] %v4376_v31  ;;  %v4477_v63 = vcombine.high %v5846_v2, %v5903_v41  ;;  %v5988_v31 = vld [vmem:[%s5602_s14 + $0x210] sm:$0xff]   ;;  %v2756_v53 = vld [vmem:[#allocation7 + $0x134] sm:$0xff] }
  0x53   : > { %v4863_v35 = vpack.c.bf16 %v4862_v27, %v1992_v29  ;;  %5355 = vmatpush3.bf16.msra.mxu0 %v5495_v36  ;;  %v1123_v11 = vsel %vm253_vm0, %v1117_v4, %v6347_v1  ;;  %v1591_v27 = vunpack.c.l.bf16 %v4377_v24  ;;  %v1755_v36 = vsel %vm253_vm0, %v1749_v28, %v6347_v1  ;;  %v4446_v4 = vld [vmem:[%s5602_s14 + $0x278] sm:$0xf]  ;;  %v2768_v22 = vld [vmem:[#allocation7 + $0x184] sm:$0xff] }
  0x54   : > { %v5878_v25 = vld [vmem:[#allocation7 + $0x154] sm:$0xff]  ;;  %v1125_v18 = vpack.c.bf16 %v5528_v51, %v1123_v11  ;;  %v4487_v0 = vcombine.high %v5885_v30, %v2756_v53  ;;  %2685 = vst [vmem:[#allocation7 + $0x278] sm:$0xf] %v4446_v4 }
  0x55   : > { %v4490_v38 = vcombine.high %v5820_v43, %v5878_v25  ;;  %4864 = vst [vmem:[#allocation7 + $0x1c8] sm:$0xff] %v4863_v35   ;;  %v4489_v60 = vcombine.low %v5820_v43, %v5878_v25  ;;  %v1597_v35 = vsel %vm253_vm0, %v1591_v27, %v6347_v1 }
  0x56   : > { %v5909_v47 = vld [vmem:[#allocation7 + $0x17c] sm:$0xff]  ;;  %1128 = vst [vmem:[#allocation7 + $0xec] sm:$0xf] %v1125_v18 }
  0x57   : > { %v4495_v62 = vcombine.high %v5839_v59, %v5909_v47 }
  0x58   : > { %3622 = vmatmul.mubr.bf16.gmra.mxu0 %v4474_v49  ;;  %3751 = vmatmul.mubr.bf16.gmra.mxu1 %v4456_v50  ;;  %v491_v49 = vsel %vm253_vm0, %v485_v44, %v6347_v1  ;;  %v4317_v50 = vld [vmem:[%s5602_s14 + $0x74] ss:$40 sps:$4 sm:$0xff]  }
  0x59   : > { %3629 = vmatprep.mubr.bf16.mxu0 %v4480_v58  ;;  %3758 = vmatprep.mubr.bf16.mxu1 %v4462_v55  ;;  %v493_v54 = vpack.c.bf16 %v5528_v51, %v491_v49  ;;  %v643_v55 = vunpack.c.l.bf16 %v4317_v50  ;;  %v801_v56 = vunpack.c.h.bf16 %v4317_v50  ;;  %v4396_v58 = vld [vmem:[%s5602_s14 + $0x1b0] sm:$0xf] }
  0x5a   : > { %1895 = vst [vmem:[#allocation7 + $0x1b0] sm:$0xf] %v4396_v58 }
  0x5b   : > { %496 = vst [vmem:[#allocation7 + $0x4c] sm:$0xf] %v493_v54  ;;  %v649_v3 = vsel %vm253_vm0, %v643_v55, %v6347_v1  ;;  %v807_v43 = vsel %vm253_vm0, %v801_v56, %v6347_v1  ;;  %v6001_v54 = vld [vmem:[%s5602_s14 + $0x238] sm:$0xff]   ;;  %v4436_v55 = vld [vmem:[%s5602_s14 + $0x250] sm:$0xf] }
  0x5c   : > { %v651_v5 = vpack.c.bf16 %v5528_v51, %v649_v3  ;;  %v809_v6 = vpack.c.bf16 %v5528_v51, %v807_v43  ;;  %v2779_v50 = vld [vmem:[#allocation7 + $0x1cc] sm:$0xff]  ;;  %v4417_v56 = vld [vmem:[%s5602_s14 + $0x204] ss:$40 sps:$4 sm:$0xff]   ;;  %2527 = vst [vmem:[#allocation7 + $0x250] sm:$0xf] %v4436_v55 }
  0x5e   : > { %654 = vst [vmem:[#allocation7 + $0x74] sm:$0xf] %v651_v5  ;;  %812 = vst [vmem:[#allocation7 + $0x9c] sm:$0xf] %v809_v6  ;;  %v4437_v5 = vld [vmem:[%s5602_s14 + $0x254] ss:$40 sps:$4 sm:$0xff]  }
  0x5f   : > { %v2539_v6 = vunpack.c.l.bf16 %v4437_v5 }
  0x60   : > { %3630 = vmatmul.mubr.bf16.gmra.mxu0 %v4479_v8  ;;  %3759 = vmatmul.mubr.bf16.gmra.mxu1 %v4461_v9  ;;  %v4406_v8 = vld [vmem:[%s5602_s14 + $0x1d8] sm:$0xf]  ;;  %v965_v9 = vsel %vm253_vm0, %v959_v52, %v6347_v1 }
  0x61   : > { %3637 = vmatprep.mubr.bf16.mxu0 %v4485_v12  ;;  %3766 = vmatprep.mubr.bf16.mxu1 %v4467_v15  ;;  %2053 = vst [vmem:[#allocation7 + $0x1d8] sm:$0xf] %v4406_v8  ;;  %v4357_v12 = vld [vmem:[%s5602_s14 + $0x114] ss:$40 sps:$4 sm:$0xff]   ;;  %v5952_v15 = vld [vmem:[#allocation7 + $0x1a4] sm:$0xff]  ;;  %v967_v17 = vpack.c.bf16 %v5528_v51, %v965_v9  ;;  %v2697_v8 = vunpack.c.h.bf16 %v4437_v5  ;;  %v2762_v9 = vld [vmem:[#allocation7 + $0x15c] sm:$0xff]  ;;  %v2545_v11 = vsel %vm253_vm0, %v2539_v6, %v6347_v1 }
  0x62   : > { %v1275_v14 = vunpack.c.l.bf16 %v4357_v12  ;;  %v1433_v20 = vunpack.c.h.bf16 %v4357_v12  ;;  %v4499_v58 = vcombine.low %v5858_v10, %v5952_v15  ;;  %v4491_v13 = vcombine.low %v5899_v40, %v2762_v9  ;;  %v5498_v24 = vld [vmem:[#allocation7 + $0x38] ss:$20 sps:$4 sm:$0xff]  }
  0x63   : > { %970 = vst [vmem:[#allocation7 + $0xc4] sm:$0xf] %v967_v17  ;;  %v2703_v12 = vsel %vm253_vm0, %v2697_v8, %v6347_v1  ;;  %v2547_v17 = vpack.c.bf16 %v5528_v51, %v2545_v11 }
  0x64   : > { %v1281_v25 = vsel %vm253_vm0, %v1275_v14, %v6347_v1  ;;  %v1439_v26 = vsel %vm253_vm0, %v1433_v20, %v6347_v1  ;;  %v2705_v18 = vpack.c.bf16 %v5528_v51, %v2703_v12  ;;  %v4492_v14 = vcombine.high %v5899_v40, %v2762_v9  ;;  %v5497_v20 = vld [vmem:[#allocation7 + $0x10] ss:$20 sps:$4 sm:$0xff]  }
  0x65   : > { %v1283_v29 = vpack.c.bf16 %v5528_v51, %v1281_v25  ;;  %v1441_v32 = vpack.c.bf16 %v5528_v51, %v1439_v26  ;;  %2550 = vst [vmem:[#allocation7 + $0x254] sm:$0xf] %v2547_v17  ;;  %v4496_v25 = vcombine.low %v5906_v45, %v2768_v22  ;;  %v5501_v26 = vld [vmem:[#allocation7 + $0x88] ss:$20 sps:$4 sm:$0xff]  }
  0x66   : > { %2708 = vst [vmem:[#allocation7 + $0x27c] sm:$0xf] %v2705_v18 }
  0x67   : > { %1286 = vst [vmem:[#allocation7 + $0x114] sm:$0xf] %v1283_v29  ;;  %1444 = vst [vmem:[#allocation7 + $0x13c] sm:$0xf] %v1441_v32  ;;  %v5504_v32 = vld [vmem:[#allocation7 + $0xd8] ss:$20 sps:$4 sm:$0xff]  }
  0x68   : > { %3638 = vmatmul.mubr.bf16.gmra.mxu0 %v4484_v33  ;;  %3767 = vmatmul.mubr.bf16.gmra.mxu1 %v4466_v34  ;;  %v4494_v33 = vcombine.low %v5839_v59, %v5909_v47  ;;  %v4476_v34 = vcombine.low %v5846_v2, %v5903_v41  ;;  %v1599_v59 = vpack.c.bf16 %v5528_v51, %v1597_v35  ;;  %v4397_v41 = vld [vmem:[%s5602_s14 + $0x1b4] ss:$40 sps:$4 sm:$0xff]  }
  0x69   : > { %3645 = vmatprep.mubr.bf16.mxu0 %v4490_v38  ;;  %3774 = vmatprep.mubr.bf16.mxu1 %v4472_v39  ;;  %v4500_v38 = vcombine.high %v5858_v10, %v5952_v15  ;;  %v4482_v39 = vcombine.high %v5869_v19, %v5954_v16  ;;  %v1757_v2 = vpack.c.bf16 %v5528_v51, %v1755_v36  ;;  %v1907_v42 = vunpack.c.l.bf16 %v4397_v41  ;;  %v2780_v40 = vld [vmem:[#allocation7 + $0x1d4] sm:$0xff] }
  0x6a   : > { %v2065_v44 = vunpack.c.h.bf16 %v4397_v41  ;;  %1602 = vst [vmem:[#allocation7 + $0x164] sm:$0xf] %v1599_v59  ;;  %v4504_v15 = vcombine.low %v5875_v23, %v2779_v50  ;;  %v5503_v28 = vld [vmem:[#allocation7 + $0xb0] ss:$20 sps:$4 sm:$0xff]   ;;  %v4506_v35 = vcombine.low %v5942_v7, %v2780_v40 }
  0x6b   : > { %1760 = vst [vmem:[#allocation7 + $0x18c] sm:$0xf] %v1757_v2  ;;  %v1913_v46 = vsel %vm253_vm0, %v1907_v42, %v6347_v1 }
  0x6c   : > { %v2071_v47 = vsel %vm253_vm0, %v2065_v44, %v6347_v1  ;;  %v1915_v48 = vpack.c.bf16 %v5528_v51, %v1913_v46 }
  0x6d   : > { %v2073_v49 = vpack.c.bf16 %v5528_v51, %v2071_v47  ;;  %v5519_v55 = vld [vmem:[#allocation7 + $0x268] ss:$20 sps:$4 sm:$0xff]  }
  0x6e   : > { %1918 = vst [vmem:[#allocation7 + $0x1b4] sm:$0xf] %v1915_v48  ;;  %v5507_v36 = vld [vmem:[#allocation7 + $0x128] ss:$20 sps:$4 sm:$0xff]  }
  0x6f   : > { %2076 = vst [vmem:[#allocation7 + $0x1dc] sm:$0xf] %v2073_v49 }
  0x70   : > { %3646 = vmatmul.mubr.bf16.gmra.mxu0 %v4489_v60  ;;  %3775 = vmatmul.mubr.bf16.gmra.mxu1 %v4471_v61  ;;  %v4481_v60 = vcombine.low %v5869_v19, %v5954_v16  ;;  %v2223_v61 = vunpack.c.l.bf16 %v4417_v56  ;;  %v6020_v19 = vld [vmem:[%s5602_s14 + $0x260] sm:$0xff]   ;;  %v4486_v16 = vcombine.low %v5885_v30, %v2756_v53  ;;  %v5500_v30 = vld [vmem:[#allocation7 + $0x60] ss:$20 sps:$4 sm:$0xff]  }
  0x71   : > { %3653 = vmatprep.mubr.bf16.mxu0 %v4495_v62  ;;  %3782 = vmatprep.mubr.bf16.mxu1 %v4477_v63  ;;  %v2381_v62 = vunpack.c.h.bf16 %v4417_v56  ;;  %v4505_v63 = vcombine.high %v5875_v23, %v2779_v50  ;;  %v4497_v23 = vcombine.high %v5906_v45, %v2768_v22  ;;  %v2786_v45 = vld [vmem:[#allocation7 + $0x1fc] sm:$0xff] }
  0x72   : > { %v2229_v3 = vsel %vm253_vm0, %v2223_v61, %v6347_v1  ;;  %v4511_v59 = vcombine.low %v5959_v21, %v2786_v45  ;;  %v5510_v2 = vld [vmem:[#allocation7 + $0x178] ss:$20 sps:$4 sm:$0xff]   ;;  %v5518_v53 = vld [vmem:[#allocation7 + $0x240] ss:$20 sps:$4 sm:$0xff]  }
  0x73   : > { %v2387_v43 = vsel %vm253_vm0, %v2381_v62, %v6347_v1  ;;  %v2231_v10 = vpack.c.bf16 %v5528_v51, %v2229_v3 }
  0x74   : > { %v2389_v52 = vpack.c.bf16 %v5528_v51, %v2387_v43  ;;  %v2774_v51 = vld [vmem:[#allocation7 + $0x1ac] sm:$0xff] }
  0x75   : > { %2234 = vst [vmem:[#allocation7 + $0x204] sm:$0xf] %v2231_v10  ;;  %v4502_v27 = vcombine.high %v5921_v57, %v2774_v51  ;;  %v4501_v29 = vcombine.low %v5921_v57, %v2774_v51  ;;  %v2792_v57 = vld [vmem:[#allocation7 + $0x224] sm:$0xff]  ;;  %v5512_v41 = vld [vmem:[#allocation7 + $0x1a0] ss:$20 sps:$4 sm:$0xff]  }
  0x76   : > { %2392 = vst [vmem:[#allocation7 + $0x22c] sm:$0xf] %v2389_v52  ;;  %v4517_v37 = vcombine.high %v5988_v31, %v2792_v57  ;;  %v4516_v42 = vcombine.low %v5988_v31, %v2792_v57  ;;  %v5513_v44 = vld [vmem:[#allocation7 + $0x1c8] ss:$20 sps:$4 sm:$0xff]  }
  0x78   : > { %3654 = vmatmul.mubr.bf16.gmra.mxu0 %v4494_v33  ;;  %3783 = vmatmul.mubr.bf16.gmra.mxu1 %v4476_v34  ;;  %v4507_v33 = vcombine.high %v5942_v7, %v2780_v40  ;;  %v5506_v34 = vld [vmem:[#allocation7 + $0x100] ss:$20 sps:$4 sm:$0xff]   ;;  %v2798_v7 = vld [vmem:[#allocation7 + $0x24c] sm:$0xff] }
  0x79   : > { %3661 = vmatprep.mubr.bf16.mxu0 %v4500_v38  ;;  %3790 = vmatprep.mubr.bf16.mxu1 %v4482_v39  ;;  %v4512_v38 = vcombine.high %v5959_v21, %v2786_v45  ;;  %v5509_v39 = vld [vmem:[#allocation7 + $0x150] ss:$20 sps:$4 sm:$0xff]   ;;  %v4522_v46 = vcombine.high %v6001_v54, %v2798_v7  ;;  %v2804_v21 = vld [vmem:[#allocation7 + $0x274] sm:$0xff]  ;;  %v4521_v48 = vcombine.low %v6001_v54, %v2798_v7 }
  0x7a   : > { %v4527_v50 = vcombine.high %v6020_v19, %v2804_v21  ;;  %v4526_v31 = vcombine.low %v6020_v19, %v2804_v21 }
  0x7c   : > { %v5515_v47 = vld [vmem:[#allocation7 + $0x1f0] ss:$20 sps:$4 sm:$0xff]  }
  0x7d   : > { %v5516_v49 = vld [vmem:[#allocation7 + $0x218] ss:$20 sps:$4 sm:$0xff]  }
  0x80   : > { %3662 = vmatmul.mubr.bf16.gmra.mxu0 %v4499_v58  ;;  %3791 = vmatmul.mubr.bf16.gmra.mxu1 %v4481_v60 }
  0x81   : > { %3669 = vmatprep.mubr.bf16.mxu0 %v4505_v63  ;;  %3798 = vmatprep.mubr.bf16.mxu1 %v4487_v0 }
  0x88   : > { %3670 = vmatmul.mubr.bf16.gmra.mxu0 %v4504_v15  ;;  %3799 = vmatmul.mubr.bf16.gmra.mxu1 %v4486_v16 }
  0x89   : > { %3806 = vmatprep.mubr.bf16.mxu1 %v4492_v14  ;;  %5356 = vmatprep.mubr.bf16.mxu0 %v5497_v20 }
  0x90   : > { %3807 = vmatmul.mubr.bf16.gmra.mxu1 %v4491_v13  ;;  %5357 = vmatmul.mubr.bf16.vlgmr.msra.gmra.mxu0 %v5498_v24 }
  0x91   : > { %3814 = vmatprep.mubr.bf16.mxu1 %v4497_v23  ;;  %5360 = vmatprep.mubr.bf16.mxu0 %v5500_v30 }
  0x98   : > { %3815 = vmatmul.mubr.bf16.gmra.mxu1 %v4496_v25  ;;  %5361 = vmatmul.mubr.bf16.gmra.mxu0 %v5501_v26 }
  0x99   : > { %3822 = vmatprep.mubr.bf16.mxu1 %v4502_v27  ;;  %5364 = vmatprep.mubr.bf16.mxu0 %v5503_v28 }
  0xa0   : > { %3823 = vmatmul.mubr.bf16.gmra.mxu1 %v4501_v29  ;;  %5365 = vmatmul.mubr.bf16.gmra.mxu0 %v5504_v32 }
  0xa1   : > { %3830 = vmatprep.mubr.bf16.mxu1 %v4507_v33  ;;  %5368 = vmatprep.mubr.bf16.mxu0 %v5506_v34 }
  0xa8   : > { %3831 = vmatmul.mubr.bf16.gmra.mxu1 %v4506_v35  ;;  %5369 = vmatmul.mubr.bf16.gmra.mxu0 %v5507_v36 }
  0xa9   : > { %3838 = vmatprep.mubr.bf16.mxu1 %v4512_v38  ;;  %5372 = vmatprep.mubr.bf16.mxu0 %v5509_v39 }
  0xb0   : > { %3839 = vmatmul.mubr.bf16.gmra.mxu1 %v4511_v59  ;;  %5373 = vmatmul.mubr.bf16.gmra.mxu0 %v5510_v2 }
  0xb1   : > { %3846 = vmatprep.mubr.bf16.mxu1 %v4517_v37  ;;  %5376 = vmatprep.mubr.bf16.mxu0 %v5512_v41  ;;  %v6083_v41 = vld [vmem:[%s6341_s1] ss:$0 sm:$0xff] }
  0xb8   : > { %3847 = vmatmul.mubr.bf16.gmra.mxu1 %v4516_v42  ;;  %5377 = vmatmul.mubr.bf16.gmra.mxu0 %v5513_v44 }
  0xb9   : > { %3854 = vmatprep.mubr.bf16.mxu1 %v4522_v46  ;;  %5380 = vmatprep.mubr.bf16.mxu0 %v5515_v47 }
  0xc0   : > { %3855 = vmatmul.mubr.bf16.gmra.mxu1 %v4521_v48  ;;  %5381 = vmatmul.mubr.bf16.gmra.mxu0 %v5516_v49 }
  0xc1   : > { %3862 = vmatprep.mubr.bf16.mxu1 %v4527_v50  ;;  %5384 = vmatprep.mubr.bf16.mxu0 %v5518_v53 }
  0xc8   : > { %3863 = vmatmul.mubr.bf16.gmra.mxu1 %v4526_v31  ;;  %5385 = vmatmul.mubr.bf16.gmra.mxu0 %v5519_v55 }
  0xf0   : > { %v5108_v56 = vpop.f32.mrf.mxu0  ;;  %v5180_v58 = vpop.f32.mrf.mxu1 }
  0xf2   : > { %v5109_v60 = vpop.f32.mrf.mxu0  ;;  %v5181_v62 = vpop.f32.mrf.mxu1 }
  0xf3   : > { %v5110_v61 = vadd.f32 %v5109_v60, %v5108_v56  ;;  %v6050_v63 = vadd.f32 %v5181_v62, %v5180_v58 }
  0xf4   : > { %v5111_v54 = vpop.f32.mrf.mxu0  ;;  %v5183_v0 = vpop.f32.mrf.mxu1 }
  0xf5   : > { %6348 = vst [vmem:[#allocation9_spill] sm:$0xff] %v6050_v63  ;;  %v3584_v44 = vadd.f32 %v5110_v61, %v6083_v41 }
  0xf6   : > { %v5112_v3 = vpop.f32.mrf.mxu0  ;;  %v5184_v10 = vpop.f32.mrf.mxu1 }
  0xf7   : > { %v6052_v43 = vadd.f32 %v5112_v3, %v5111_v54  ;;  %v6054_v52 = vadd.f32 %v5184_v10, %v5183_v0 }
  0xf8   : > { %v5114_v4 = vpop.f32.mrf.mxu0  ;;  %v5186_v19 = vpop.f32.mrf.mxu1 }
  0xf9   : > { %6349 = vst [vmem:[#allocation10_spill] sm:$0xff] %v6054_v52 }
  0xfa   : > { %v5115_v5 = vpop.f32.mrf.mxu0  ;;  %v5187_v8 = vpop.f32.mrf.mxu1 }
  0xfb   : > { %v6056_v6 = vadd.f32 %v5115_v5, %v5114_v4  ;;  %v6058_v11 = vadd.f32 %v5187_v8, %v5186_v19 }
  0xfc   : > { %v5117_v9 = vpop.f32.mrf.mxu0  ;;  %v5189_v12 = vpop.f32.mrf.mxu1 }
  0xfd   : > { %6350 = vst [vmem:[#allocation11_spill] sm:$0xff] %v6058_v11 }
  0xfe   : > { %v5118_v15 = vpop.f32.mrf.mxu0  ;;  %v5190_v17 = vpop.f32.mrf.mxu1 }
  0xff   : > { %v6060_v16 = vadd.f32 %v5118_v15, %v5117_v9  ;;  %v6062_v18 = vadd.f32 %v5190_v17, %v5189_v12 }
 0x100   : > { %v5120_v14 = vpop.f32.mrf.mxu0  ;;  %v5192_v20 = vpop.f32.mrf.mxu1 }
 0x101   : > { %6351 = vst [vmem:[#allocation12_spill] sm:$0xff] %v6062_v18 }
 0x102   : > { %v5121_v22 = vpop.f32.mrf.mxu0  ;;  %v5193_v24 = vpop.f32.mrf.mxu1 }
 0x103   : > { %v6064_v13 = vadd.f32 %v5121_v22, %v5120_v14  ;;  %v6066_v30 = vadd.f32 %v5193_v24, %v5192_v20 }
 0x104   : > { %v5123_v23 = vpop.f32.mrf.mxu0  ;;  %v5195_v51 = vpop.f32.mrf.mxu1 }
 0x105   : > { %6352 = vst [vmem:[#allocation13_spill] sm:$0xff] %v6066_v30 }
 0x106   : > { %v5124_v25 = vpop.f32.mrf.mxu0  ;;  %v5196_v27 = vpop.f32.mrf.mxu1 }
 0x107   : > { %v6068_v26 = vadd.f32 %v5124_v25, %v5123_v23  ;;  %v6070_v28 = vadd.f32 %v5196_v27, %v5195_v51 }
 0x108   : > { %v5126_v40 = vpop.f32.mrf.mxu0  ;;  %v5198_v32 = vpop.f32.mrf.mxu1 }
 0x109   : > { %6353 = vst [vmem:[#allocation14_spill] sm:$0xff] %v6070_v28 }
 0x10a   : > { %v5127_v29 = vpop.f32.mrf.mxu0  ;;  %v5199_v45 = vpop.f32.mrf.mxu1 }
 0x10b   : > { %v6072_v33 = vadd.f32 %v5127_v29, %v5126_v40  ;;  %v6074_v35 = vadd.f32 %v5199_v45, %v5198_v32 }
 0x10c   : > { %v5129_v34 = vpop.f32.mrf.mxu0  ;;  %v5201_v38 = vpop.f32.mrf.mxu1 }
 0x10d   : > { %6354 = vst [vmem:[#allocation15_spill] sm:$0xff] %v6074_v35 }
 0x10e   : > { %v5130_v36 = vpop.f32.mrf.mxu0  ;;  %v5202_v57 = vpop.f32.mrf.mxu1 }
 0x10f   : > { %v6076_v39 = vadd.f32 %v5130_v36, %v5129_v34  ;;  %v6078_v59 = vadd.f32 %v5202_v57, %v5201_v38 }
 0x110   : > { %v5132_v2 = vpop.f32.mrf.mxu0  ;;  %v5220_v37 = vpop.f32.mrf.mxu1 }
 0x111   : > { %6355 = vst [vmem:[#allocation16_spill] sm:$0xff] %v6078_v59 }
 0x112   : > { %v5133_v7 = vpop.f32.mrf.mxu0  ;;  %v5221_v42 = vpop.f32.mrf.mxu1 }
 0x113   : > { %v6086_v46 = vadd.f32 %v5133_v7, %v5132_v2  ;;  %v5222_v47 = vadd.f32 %v5221_v42, %v5220_v37 }
 0x114   : > { %v5135_v21 = vpop.f32.mrf.mxu0  ;;  %v6088_v48 = vpop.f32.mrf.mxu1 }
 0x115   : > { %v6090_v49 = vadd.f32 %v5222_v47, %v3584_v44 }
 0x116   : > { %v5136_v50 = vpop.f32.mrf.mxu0  ;;  %v6092_v53 = vpop.f32.mrf.mxu1 }
 0x117   : > { %v6094_v31 = vadd.f32 %v5136_v50, %v5135_v21 }
 0x118   : > { %v5138_v55 = vpop.f32.mrf.mxu0  ;;  %v5226_v56 = vpop.f32.mrf.mxu1 }
 0x11a   : > { %v5139_v58 = vpop.f32.mrf.mxu0  ;;  %v5227_v60 = vpop.f32.mrf.mxu1 }
 0x11b   : > { %v6096_v62 = vadd.f32 %v5139_v58, %v5138_v55  ;;  %v5228_v11 = vadd.f32 %v5227_v60, %v5226_v56 }
 0x11c   : > { %v5141_v61 = vpop.f32.mrf.mxu0  ;;  %v5229_v54 = vpop.f32.mrf.mxu1 }
 0x11e   : > { %v5142_v0 = vpop.f32.mrf.mxu0  ;;  %v5230_v3 = vpop.f32.mrf.mxu1 }
 0x11f   : > { %v6098_v10 = vadd.f32 %v5142_v0, %v5141_v61 }
 0x120   : > { %v5144_v4 = vpop.f32.mrf.mxu0  ;;  %v6100_v19 = vpop.f32.mrf.mxu1 }
 0x122   : > { %v5145_v5 = vpop.f32.mrf.mxu0  ;;  %v6102_v8 = vpop.f32.mrf.mxu1 }
 0x123   : > { %v6104_v9 = vadd.f32 %v5145_v5, %v5144_v4 }
 0x124   : > { %v5147_v12 = vpop.f32.mrf.mxu0  ;;  %v6106_v15 = vpop.f32.mrf.mxu1 }
 0x126   : > { %v5148_v17 = vpop.f32.mrf.mxu0  ;;  %v6108_v14 = vpop.f32.mrf.mxu1 }
 0x127   : > { %v6110_v20 = vadd.f32 %v5148_v17, %v5147_v12 }
 0x128   : > { %v6112_v22 = vpop.f32.mrf.mxu0  ;;  %v5238_v24 = vpop.f32.mrf.mxu1 }
 0x12a   : > { %v6114_v23 = vpop.f32.mrf.mxu0  ;;  %v5239_v51 = vpop.f32.mrf.mxu1 }
 0x12c   : > { %v6116_v25 = vpop.f32.mrf.mxu0  ;;  %v5241_v27 = vpop.f32.mrf.mxu1 }
 0x12e   : > { %v6118_v40 = vpop.f32.mrf.mxu0  ;;  %v5242_v29 = vpop.f32.mrf.mxu1 }
 0x130   : > { %v6120_v32 = vpop.f32.mrf.mxu0  ;;  %v6122_v34 = vpop.f32.mrf.mxu1 }
 0x132   : > { %v6124_v45 = vpop.f32.mrf.mxu0  ;;  %v6126_v36 = vpop.f32.mrf.mxu1 }
 0x133   : > { %6356 = vst [vmem:[#allocation17_spill] sm:$0xff] %v6124_v45 }
 0x134   : > { %v6128_v38 = vpop.f32.mrf.mxu0  ;;  %v6130_v57 = vpop.f32.mrf.mxu1 }
 0x135   : > { %6357 = vst [vmem:[#allocation18_spill] sm:$0xff] %v6128_v38 }
 0x136   : > { %v6132_v2 = vpop.f32.mrf.mxu0  ;;  %v6134_v37 = vpop.f32.mrf.mxu1 }
 0x137   : > { %6358 = vst [vmem:[#allocation19_spill] sm:$0xff] %v6132_v2 }
 0x138   : > { %v6136_v7 = vpop.f32.mrf.mxu0  ;;  %v6138_v42 = vpop.f32.mrf.mxu1 }
 0x13a   : > { %v6140_v44 = vpop.f32.mrf.mxu0  ;;  %v6142_v47 = vpop.f32.mrf.mxu1 }
 0x13c   : > { %v6144_v21 = vpop.f32.mrf.mxu0  ;;  %v6146_v50 = vpop.f32.mrf.mxu1 }
 0x13d   : > { %6359 = vst [vmem:[#allocation20_spill] sm:$0xff] %v6144_v21 }
 0x13e   : > { %v6148_v55 = vpop.f32.mrf.mxu0  ;;  %v6150_v58 = vpop.f32.mrf.mxu1 }
 0x13f   : > { %6360 = vst [vmem:[#allocation21_spill] sm:$0xff] %v6148_v55 }
 0x140   : > { %v6152_v61 = vpop.f32.mrf.mxu0  ;;  %v6154_v0 = vpop.f32.mrf.mxu1 }
 0x141   : > { %6361 = vst [vmem:[#allocation22_spill] sm:$0xff] %v6152_v61  ;;  %v5231_v61 = vadd.f32 %v5230_v3, %v5229_v54  ;;  %v5240_v3 = vadd.f32 %v5239_v51, %v5238_v24  ;;  %v3600_v24 = vadd.f32 %v6064_v13, %v6083_v41 }
 0x142   : > { %v6156_v4 = vpop.f32.mrf.mxu0  ;;  %v6158_v5 = vpop.f32.mrf.mxu1 }
 0x143   : > { %6362 = vst [vmem:[#allocation23_spill] sm:$0xff] %v6156_v4 }
 0x144   : > { %v6160_v12 = vpop.f32.mrf.mxu0  ;;  %v6162_v17 = vpop.f32.mrf.mxu1 }
 0x145   : > { %6363 = vst [vmem:[#allocation24_spill] sm:$0xff] %v6160_v12 }
 0x146   : > { %v6164_v1 = vpop.f32.mrf.mxu0  ;;  %v6166_v59 = vpop.f32.mrf.mxu1 }
 0x147   : > { %6364 = vst [vmem:[#allocation25_spill] sm:$0xff] %v6164_v1  ;;  %v3592_v1 = vadd.f32 %v6056_v6, %v6083_v41 }
 0x148   : > { %v6168_v35 = vpop.f32.mrf.mxu0  ;;  %v6170_v28 = vpop.f32.mrf.mxu1 }
 0x149   : > { %6365 = vst [vmem:[#allocation26_spill] sm:$0xff] %v6168_v35  ;;  %v3753_v38 = vadd.f32 %v5228_v11, %v3592_v1  ;;  %v3608_v1 = vadd.f32 %v6072_v33, %v6083_v41  ;;  %v5234_v11 = vadd.f32 %v6102_v8, %v6100_v19 }
 0x14a   : > { %v6172_v30 = vpop.f32.mrf.mxu0  ;;  %v6174_v52 = vpop.f32.mrf.mxu1 }
 0x14b   : > { %6366 = vst [vmem:[#allocation27_spill] sm:$0xff] %v6172_v30  ;;  %v3595_v30 = vadd.f32 %v6060_v16, %v6083_v41  ;;  %v3769_v13 = vadd.f32 %v5240_v3, %v3608_v1 }
 0x14c   : > { %v6176_v18 = vpop.f32.mrf.mxu0  ;;  %v6178_v63 = vpop.f32.mrf.mxu1 }
 0x14d   : > { %6367 = vst [vmem:[#allocation28_spill] sm:$0xff] %v6176_v18  ;;  %v5225_v18 = vadd.f32 %v6092_v53, %v6088_v48  ;;  %v3756_v6 = vadd.f32 %v5231_v61, %v3595_v30  ;;  %v5243_v53 = vadd.f32 %v5242_v29, %v5241_v27 }
 0x14e   : > { %v6180_v12 = vpop.f32.mrf.mxu0  ;;  %v6182_v4 = vpop.f32.mrf.mxu1 }
 0x14f   : > { %6368 = vst [vmem:[#allocation29_spill] sm:$0xff] %v6180_v12  ;;  %v3587_v12 = vadd.f32 %v6052_v43, %v6083_v41 }
 0x150   : > { %v6186_v35 = vpop.f32.mrf.mxu1  ;;  %v5358_v2 = vpop.f32.mrf.mxu0 }
 0x151   : > { %6369 = vst [vmem:[#allocation30_spill] sm:$0xff] %v6186_v35  ;;  %v3914_v55 = vadd.f32 %v5358_v2, %v3753_v38  ;;  %v3748_v45 = vadd.f32 %v5225_v18, %v3587_v12  ;;  %v5237_v18 = vadd.f32 %v6108_v14, %v6106_v15 }
 0x152   : > { %v6192_v56 = vpop.f32.mrf.mxu1  ;;  %v3905_v60 = vpop.f32.mrf.mxu0 }
 0x153   : > { %v3906_v35 = vadd.f32 %v3905_v60, %v6090_v49  ;;  %v4034_v30 = vmax.f32 %v3914_v55, 0.0  ;;  %v3611_v49 = vadd.f32 %v6076_v39, %v6083_v41  ;;  %v3603_v39 = vadd.f32 %v6068_v26, %v6083_v41 }
 0x154   : > { %v6196_v21 = vpop.f32.mrf.mxu1  ;;  %v5359_v54 = vpop.f32.mrf.mxu0  ;;  %v3761_v55 = vadd.f32 %v5234_v11, %v3600_v24  ;;  %v3624_v26 = vadd.f32 %v6096_v62, %v6083_v41  ;;  %v5249_v62 = vadd.f32 %v6134_v37, %v6130_v57 }
 0x155   : > { %v3917_v16 = vadd.f32 %v5359_v54, %v3756_v6  ;;  %v4032_v8 = vmax.f32 %v3906_v35, 0.0  ;;  %v3772_v61 = vadd.f32 %v5243_v53, %v3611_v49  ;;  %v5252_v35 = vadd.f32 %v6142_v47, %v6138_v42 }
 0x156   : > { %v6204_v48 = vpop.f32.mrf.mxu1  ;;  %v3908_v43 = vpop.f32.mrf.mxu0  ;;  %v3764_v3 = vadd.f32 %v5237_v18, %v3603_v39  ;;  %v3616_v47 = vadd.f32 %v6086_v46, %v6083_v41  ;;  %v3619_v49 = vadd.f32 %v6094_v31, %v6083_v41  ;;  %v5152_v46 = vadd.f32 %v6114_v23, %v6112_v22 }
 0x157   : > { %v4035_v38 = vmax.f32 %v3917_v16, 0.0  ;;  %v3909_v2 = vadd.f32 %v3908_v43, %v3748_v45  ;;  %v5246_v16 = vadd.f32 %v6126_v36, %v6122_v34  ;;  %v5255_v43 = vadd.f32 %v6150_v58, %v6146_v50 }
 0x158   : > { %v6217_v33 = vpop.f32.mrf.mxu1  ;;  %v5362_v19 = vpop.f32.mrf.mxu0  ;;  %v3785_v58 = vadd.f32 %v5252_v35, %v3624_v26  ;;  %v5264_v31 = vadd.f32 %v6174_v52, %v6170_v28  ;;  %v3780_v23 = vadd.f32 %v5249_v62, %v3619_v49  ;;  %v3632_v52 = vadd.f32 %v6104_v9, %v6083_v41 }
 0x159   : > { %v4958_v51 = vpack.c.bf16 %v4035_v38, %v4034_v30  ;;  %v4033_v27 = vmax.f32 %v3909_v2, 0.0  ;;  %v3930_v45 = vadd.f32 %v5362_v19, %v3769_v13  ;;  %v3627_v38 = vadd.f32 %v6098_v10, %v6083_v41 }
 0x15a   : > { %v6221_v29 = vpop.f32.mrf.mxu1  ;;  %v3921_v15 = vpop.f32.mrf.mxu0  ;;  %v3777_v37 = vadd.f32 %v5246_v16, %v3616_v47  ;;  %v5261_v35 = vadd.f32 %v6166_v59, %v6162_v17  ;;  %v6370_v17 = vld [vmem:[#allocation17_spill] sm:$0xff] }
 0x15b   : > { %5077 = vst [vmem:[%s6215_s7 + $0x8] sm:$0xff] %v4958_v51   ;;  %v4953_v14 = vpack.c.bf16 %v4033_v27, %v4032_v8  ;;  %v3922_v6 = vadd.f32 %v3921_v15, %v3761_v55  ;;  %v4038_v53 = vmax.f32 %v3930_v45, 0.0  ;;  %v3788_v8 = vadd.f32 %v5255_v43, %v3627_v38  ;;  %v6372_v47 = vld [vmem:[#allocation21_spill] sm:$0xff] }
 0x15c   : > { %v6224_v12 = vpop.f32.mrf.mxu1  ;;  %v5363_v60 = vpop.f32.mrf.mxu0  ;;  %v5155_v51 = vadd.f32 %v6118_v40, %v6116_v25  ;;  %v3640_v15 = vadd.f32 %v5152_v46, %v6083_v41  ;;  %v5267_v25 = vadd.f32 %v6182_v4, %v6178_v63  ;;  %v3635_v63 = vadd.f32 %v6110_v20, %v6083_v41  ;;  %v6375_v46 = vld [vmem:[#allocation30_spill] sm:$0xff] }
 0x15d   : > { %4954 = vst [vmem:[%s6215_s7] sm:$0xff] %v4953_v14   ;;  %v3933_v54 = vadd.f32 %v5363_v60, %v3772_v61  ;;  %v4036_v2 = vmax.f32 %v3922_v6, 0.0  ;;  %v5258_v14 = vadd.f32 %v6158_v5, %v6154_v0  ;;  %v5164_v4 = vadd.f32 %v6140_v44, %v6136_v7 }
 0x15e   : > { %v6233_v1 = vpop.f32.mrf.mxu1  ;;  %v3924_v11 = vpop.f32.mrf.mxu0  ;;  %v3643_v28 = vadd.f32 %v5155_v51, %v6083_v41  ;;  %v3801_v26 = vadd.f32 %v5264_v31, %v3640_v15  ;;  %v5276_v20 = vadd.f32 %v6221_v29, %v6217_v33 }
 0x15f   : > { %v4039_v30 = vmax.f32 %v3933_v54, 0.0  ;;  %v3925_v42 = vadd.f32 %v3924_v11, %v3764_v3  ;;  %v3656_v49 = vadd.f32 %v5164_v4, %v6083_v41 }
 0x160   : > { %v6243_v34 = vpop.f32.mrf.mxu1  ;;  %v5366_v36 = vpop.f32.mrf.mxu0  ;;  %v3804_v59 = vadd.f32 %v5267_v25, %v3643_v28 }
 0x161   : > { %v4968_v24 = vpack.c.bf16 %v4039_v30, %v4038_v53  ;;  %v4037_v50 = vmax.f32 %v3925_v42, 0.0  ;;  %v3946_v57 = vadd.f32 %v5366_v36, %v3785_v58  ;;  %v3793_v53 = vadd.f32 %v5258_v14, %v3632_v52  ;;  %v6371_v42 = vld [vmem:[#allocation20_spill] sm:$0xff]  ;;  %v6377_v14 = vld [vmem:[#allocation27_spill] sm:$0xff] }
 0x162   : > { %v6249_v18 = vpop.f32.mrf.mxu1  ;;  %v3937_v10 = vpop.f32.mrf.mxu0  ;;  %v5158_v30 = vadd.f32 %v6370_v17, %v6120_v32  ;;  %v5167_v38 = vadd.f32 %v6372_v47, %v6371_v42  ;;  %v5270_v32 = vadd.f32 %v6192_v56, %v6375_v46  ;;  %v3817_v15 = vadd.f32 %v5276_v20, %v3656_v49 }
 0x163   : > { %5079 = vst [vmem:[%s6215_s7 + $0x18] sm:$0xff] %v4968_v24   ;;  %v4963_v19 = vpack.c.bf16 %v4037_v50, %v4036_v2  ;;  %v3938_v39 = vadd.f32 %v3937_v10, %v3777_v37  ;;  %v4042_v40 = vmax.f32 %v3946_v57, 0.0  ;;  %v3796_v2 = vadd.f32 %v5261_v35, %v3635_v63  ;;  %v6373_v24 = vld [vmem:[#allocation18_spill] sm:$0xff]  ;;  %v6374_v50 = vld [vmem:[#allocation19_spill] sm:$0xff] }
 0x164   : > { %v6254_v27 = vpop.f32.mrf.mxu1  ;;  %v5367_v13 = vpop.f32.mrf.mxu0  ;;  %v5161_v58 = vadd.f32 %v6374_v50, %v6373_v24  ;;  %v5279_v57 = vadd.f32 %v6233_v1, %v6224_v12  ;;  %v3659_v51 = vadd.f32 %v5167_v38, %v6083_v41  ;;  %v6376_v1 = vld [vmem:[#allocation26_spill] sm:$0xff] }
 0x165   : > { %5078 = vst [vmem:[%s6215_s7 + $0x10] sm:$0xff] %v4963_v19   ;;  %v3949_v22 = vadd.f32 %v5367_v13, %v3788_v8  ;;  %v4040_v5 = vmax.f32 %v3938_v39, 0.0  ;;  %v3648_v8 = vadd.f32 %v5158_v30, %v6083_v41  ;;  %v5273_v13 = vadd.f32 %v6204_v48, %v6196_v21  ;;  %v6378_v21 = vld [vmem:[#allocation22_spill] sm:$0xff]  ;;  %v6379_v48 = vld [vmem:[#allocation23_spill] sm:$0xff] }
 0x166   : > { %v6262_v45 = vpop.f32.mrf.mxu1  ;;  %v3940_v55 = vpop.f32.mrf.mxu0  ;;  %v3651_v12 = vadd.f32 %v5161_v58, %v6083_v41  ;;  %v3820_v28 = vadd.f32 %v5279_v57, %v3659_v51  ;;  %v5170_v35 = vadd.f32 %v6379_v48, %v6378_v21  ;;  %v5282_v30 = vadd.f32 %v6249_v18, %v6243_v34  ;;  %v6384_v51 = vld [vmem:[#allocation11_spill] sm:$0xff] }
 0x167   : > { %v4043_v61 = vmax.f32 %v3949_v22, 0.0  ;;  %v3941_v60 = vadd.f32 %v3940_v55, %v3780_v23  ;;  %v5176_v55 = vadd.f32 %v6377_v14, %v6376_v1  ;;  %v3809_v52 = vadd.f32 %v5270_v32, %v3648_v8  ;;  %v6385_v14 = vld [vmem:[#allocation9_spill] sm:$0xff] }
 0x168   : > { %v5286_v6 = vpop.f32.mrf.mxu1  ;;  %v5370_v0 = vpop.f32.mrf.mxu0 }
 0x169   : > { %v4978_v54 = vpack.c.bf16 %v4043_v61, %v4042_v40  ;;  %v4041_v3 = vmax.f32 %v3941_v60, 0.0  ;;  %v3962_v43 = vadd.f32 %v5370_v0, %v3801_v26  ;;  %v6380_v0 = vld [vmem:[#allocation28_spill] sm:$0xff]  ;;  %v3672_v17 = vadd.f32 %v5176_v55, %v6083_v41 }
 0x16a   : > { %v5287_v16 = vpop.f32.mrf.mxu1  ;;  %v3953_v9 = vpop.f32.mrf.mxu0  ;;  %v3680_v55 = vadd.f32 %v6385_v14, %v6083_v41 }
 0x16b   : > { %5081 = vst [vmem:[%s6215_s7 + $0x28] sm:$0xff] %v4978_v54   ;;  %v4973_v11 = vpack.c.bf16 %v4041_v3, %v4040_v5  ;;  %v3954_v7 = vadd.f32 %v3953_v9, %v3793_v53  ;;  %v4046_v37 = vmax.f32 %v3962_v43, 0.0  ;;  %v6381_v5 = vld [vmem:[#allocation29_spill] sm:$0xff]  ;;  %v5288_v63 = vadd.f32 %v5287_v16, %v5286_v6  ;;  %v6382_v43 = vld [vmem:[#allocation24_spill] sm:$0xff] }
 0x16c   : > { %v5289_v62 = vpop.f32.mrf.mxu1  ;;  %v5371_v36 = vpop.f32.mrf.mxu0  ;;  %v5179_v54 = vadd.f32 %v6381_v5, %v6380_v0  ;;  %v6383_v53 = vld [vmem:[#allocation25_spill] sm:$0xff]  ;;  %v3664_v6 = vadd.f32 %v5170_v35, %v6083_v41  ;;  %v6387_v35 = vld [vmem:[#allocation10_spill] sm:$0xff] }
 0x16d   : > { %5080 = vst [vmem:[%s6215_s7 + $0x20] sm:$0xff] %v4973_v11   ;;  %v3965_v44 = vadd.f32 %v5371_v36, %v3804_v59  ;;  %v4044_v22 = vmax.f32 %v3954_v7, 0.0  ;;  %v3812_v11 = vadd.f32 %v5273_v13, %v3651_v12  ;;  %v5173_v59 = vadd.f32 %v6383_v53, %v6382_v43 }
 0x16e   : > { %v5290_v10 = vpop.f32.mrf.mxu1  ;;  %v3956_v19 = vpop.f32.mrf.mxu0  ;;  %v3675_v16 = vadd.f32 %v5179_v54, %v6083_v41  ;;  %v3833_v18 = vadd.f32 %v5288_v63, %v3672_v17  ;;  %v3688_v13 = vadd.f32 %v6384_v51, %v6083_v41  ;;  %v3683_v0 = vadd.f32 %v6387_v35, %v6083_v41  ;;  %v6391_v51 = vld [vmem:[#allocation16_spill] sm:$0xff] }
 0x16f   : > { %v4047_v33 = vmax.f32 %v3965_v44, 0.0  ;;  %v3957_v29 = vadd.f32 %v3956_v19, %v3796_v2  ;;  %v5291_v38 = vadd.f32 %v5290_v10, %v5289_v62  ;;  %v5285_v44 = vadd.f32 %v6262_v45, %v6254_v27 }
 0x170   : > { %v5292_v31 = vpop.f32.mrf.mxu1  ;;  %v5374_v39 = vpop.f32.mrf.mxu0  ;;  %v3667_v62 = vadd.f32 %v5173_v59, %v6083_v41  ;;  %v3825_v19 = vadd.f32 %v5282_v30, %v3664_v6 }
 0x171   : > { %v4988_v56 = vpack.c.bf16 %v4047_v33, %v4046_v37  ;;  %v4045_v23 = vmax.f32 %v3957_v29, 0.0  ;;  %v3978_v60 = vadd.f32 %v5374_v39, %v3817_v15  ;;  %v3836_v57 = vadd.f32 %v5291_v38, %v3675_v16 }
 0x172   : > { %v5293_v25 = vpop.f32.mrf.mxu1  ;;  %v3969_v40 = vpop.f32.mrf.mxu0  ;;  %v3828_v8 = vadd.f32 %v5285_v44, %v3667_v62 }
 0x173   : > { %5083 = vst [vmem:[%s6215_s7 + $0x38] sm:$0xff] %v4988_v56   ;;  %v4983_v61 = vpack.c.bf16 %v4045_v23, %v4044_v22  ;;  %v3970_v4 = vadd.f32 %v3969_v40, %v3809_v52  ;;  %v4050_v36 = vmax.f32 %v3978_v60, 0.0  ;;  %v5294_v39 = vadd.f32 %v5293_v25, %v5292_v31  ;;  %v6386_v40 = vld [vmem:[#allocation12_spill] sm:$0xff] }
 0x174   : > { %v5295_v3 = vpop.f32.mrf.mxu1  ;;  %v5375_v26 = vpop.f32.mrf.mxu0 }
 0x175   : > { %5082 = vst [vmem:[%s6215_s7 + $0x30] sm:$0xff] %v4983_v61   ;;  %v3981_v9 = vadd.f32 %v5375_v26, %v3820_v28  ;;  %v4048_v50 = vmax.f32 %v3970_v4, 0.0  ;;  %v3691_v61 = vadd.f32 %v6386_v40, %v6083_v41  ;;  %v3841_v4 = vadd.f32 %v5294_v39, %v3680_v55 }
 0x176   : > { %v5296_v42 = vpop.f32.mrf.mxu1  ;;  %v3972_v47 = vpop.f32.mrf.mxu0 }
 0x177   : > { %v4051_v20 = vmax.f32 %v3981_v9, 0.0  ;;  %v3973_v7 = vadd.f32 %v3972_v47, %v3812_v11  ;;  %v5297_v60 = vadd.f32 %v5296_v42, %v5295_v3 }
 0x178   : > { %v5298_v2 = vpop.f32.mrf.mxu1  ;;  %v5378_v24 = vpop.f32.mrf.mxu0 }
 0x179   : > { %v4998_v58 = vpack.c.bf16 %v4051_v20, %v4050_v36  ;;  %v4049_v34 = vmax.f32 %v3973_v7, 0.0  ;;  %v3994_v10 = vadd.f32 %v5378_v24, %v3833_v18  ;;  %v3844_v59 = vadd.f32 %v5297_v60, %v3683_v0  ;;  %v6388_v20 = vld [vmem:[#allocation13_spill] sm:$0xff] }
 0x17a   : > { %v5299_v49 = vpop.f32.mrf.mxu1  ;;  %v3985_v46 = vpop.f32.mrf.mxu0  ;;  %v3696_v7 = vadd.f32 %v6388_v20, %v6083_v41 }
 0x17b   : > { %5085 = vst [vmem:[%s6215_s7 + $0x48] sm:$0xff] %v4998_v58   ;;  %v4993_v32 = vpack.c.bf16 %v4049_v34, %v4048_v50  ;;  %v5300_v27 = vadd.f32 %v5299_v49, %v5298_v2  ;;  %v3986_v45 = vadd.f32 %v3985_v46, %v3825_v19  ;;  %v4054_v23 = vmax.f32 %v3994_v10, 0.0  ;;  %v6389_v58 = vld [vmem:[#allocation14_spill] sm:$0xff]  ;;  %v6390_v49 = vld [vmem:[#allocation15_spill] sm:$0xff] }
 0x17c   : > { %v5301_v37 = vpop.f32.mrf.mxu1  ;;  %v5379_v33 = vpop.f32.mrf.mxu0  ;;  %v3699_v34 = vadd.f32 %v6389_v58, %v6083_v41  ;;  %v3704_v46 = vadd.f32 %v6390_v49, %v6083_v41 }
 0x17d   : > { %5084 = vst [vmem:[%s6215_s7 + $0x40] sm:$0xff] %v4993_v32   ;;  %v3997_v29 = vadd.f32 %v5379_v33, %v3836_v57  ;;  %v4052_v21 = vmax.f32 %v3986_v45, 0.0  ;;  %v3849_v25 = vadd.f32 %v5300_v27, %v3688_v13  ;;  %v3707_v13 = vadd.f32 %v6391_v51, %v6083_v41 }
 0x17e   : > { %v5302_v22 = vpop.f32.mrf.mxu1  ;;  %v3988_v56 = vpop.f32.mrf.mxu0 }
 0x17f   : > { %v4055_v15 = vmax.f32 %v3997_v29, 0.0  ;;  %v5303_v12 = vadd.f32 %v5302_v22, %v5301_v37  ;;  %v3989_v1 = vadd.f32 %v3988_v56, %v3828_v8 }
 0x180   : > { %v5304_v52 = vpop.f32.mrf.mxu1  ;;  %v5382_v28 = vpop.f32.mrf.mxu0 }
 0x181   : > { %v5008_v48 = vpack.c.bf16 %v4055_v15, %v4054_v23  ;;  %v4053_v31 = vmax.f32 %v3989_v1, 0.0  ;;  %v4010_v63 = vadd.f32 %v5382_v28, %v3849_v25  ;;  %v3852_v9 = vadd.f32 %v5303_v12, %v3691_v61 }
 0x182   : > { %v5305_v5 = vpop.f32.mrf.mxu1  ;;  %v4001_v54 = vpop.f32.mrf.mxu0 }
 0x183   : > { %5087 = vst [vmem:[%s6215_s7 + $0x58] sm:$0xff] %v5008_v48   ;;  %v5003_v26 = vpack.c.bf16 %v4053_v31, %v4052_v21  ;;  %v4002_v3 = vadd.f32 %v4001_v54, %v3841_v4  ;;  %v4058_v42 = vmax.f32 %v4010_v63, 0.0  ;;  %v5306_v47 = vadd.f32 %v5305_v5, %v5304_v52 }
 0x184   : > { %v5307_v11 = vpop.f32.mrf.mxu1  ;;  %v5383_v43 = vpop.f32.mrf.mxu0 }
 0x185   : > { %5086 = vst [vmem:[%s6215_s7 + $0x50] sm:$0xff] %v5003_v26   ;;  %v4013_v53 = vadd.f32 %v5383_v43, %v3852_v9  ;;  %v4056_v44 = vmax.f32 %v4002_v3, 0.0  ;;  %v3857_v19 = vadd.f32 %v5306_v47, %v3696_v7 }
 0x186   : > { %v5308_v17 = vpop.f32.mrf.mxu1  ;;  %v4004_v30 = vpop.f32.mrf.mxu0 }
 0x187   : > { %v4059_v38 = vmax.f32 %v4013_v53, 0.0  ;;  %v4005_v36 = vadd.f32 %v4004_v30, %v3844_v59  ;;  %v5309_v24 = vadd.f32 %v5308_v17, %v5307_v11 }
 0x188   : > { %v5310_v6 = vpop.f32.mrf.mxu1  ;;  %v5386_v16 = vpop.f32.mrf.mxu0 }
 0x189   : > { %v5018_v2 = vpack.c.bf16 %v4059_v38, %v4058_v42  ;;  %v4057_v50 = vmax.f32 %v4005_v36, 0.0  ;;  %v3860_v45 = vadd.f32 %v5309_v24, %v3699_v34 }
 0x18a   : > { %v5311_v18 = vpop.f32.mrf.mxu1  ;;  %v4017_v62 = vpop.f32.mrf.mxu0 }
 0x18b   : > { %5089 = vst [vmem:[%s6215_s7 + $0x68] sm:$0xff] %v5018_v2   ;;  %v5013_v32 = vpack.c.bf16 %v4057_v50, %v4056_v44  ;;  %v5312_v10 = vadd.f32 %v5311_v18, %v5310_v6  ;;  %v4018_v27 = vadd.f32 %v4017_v62, %v3857_v19 }
 0x18c   : > { %v5313_v57 = vpop.f32.mrf.mxu1  ;;  %v5387_v37 = vpop.f32.mrf.mxu0 }
 0x18d   : > { %5088 = vst [vmem:[%s6215_s7 + $0x60] sm:$0xff] %v5013_v32   ;;  %v3865_v33 = vadd.f32 %v5312_v10, %v3704_v46  ;;  %v4060_v23 = vmax.f32 %v4018_v27, 0.0 }
 0x18e   : > { %v5314_v29 = vpop.f32.mrf.mxu1  ;;  %v4020_v8 = vpop.f32.mrf.mxu0 }
 0x18f   : > { %v5315_v39 = vadd.f32 %v5314_v29, %v5313_v57  ;;  %v4021_v22 = vadd.f32 %v4020_v8, %v3860_v45  ;;  %v4026_v56 = vadd.f32 %v5386_v16, %v3865_v33 }
 0x191   : > { %v3868_v15 = vadd.f32 %v5315_v39, %v3707_v13  ;;  %v4061_v12 = vmax.f32 %v4021_v22, 0.0  ;;  %v4062_v55 = vmax.f32 %v4026_v56, 0.0 }
 0x193   : > { %v4029_v1 = vadd.f32 %v5387_v37, %v3868_v15  ;;  %v5023_v14 = vpack.c.bf16 %v4061_v12, %v4060_v23 }
 0x195   : > { %v4063_v40 = vmax.f32 %v4029_v1, 0.0  ;;  %5090 = vst [vmem:[%s6215_s7 + $0x70] sm:$0xff] %v5023_v14  }
 0x197   : > { %v5028_v61 = vpack.c.bf16 %v4063_v40, %v4062_v55 }
 0x199   : > { %5091 = vst [vmem:[%s6215_s7 + $0x78] sm:$0xff] %v5028_v61  }
 0x19a PF: > { %s19_s17 = sadd.s32 1, %s5526_s17  }
 0x19b   : > { %p16_p4 = scmp.ge.s32.totalorder %s19_s17, 10  }
 0x19d   :  { %18 = sbr.rel (!%p16_p4) target bundleno = 5 (0x5), region = 380 }

// kernel: mdenet_forward.24
= control target key start
LH: loop header
LB: loop body
LE: loop exit
PB: predicated region body
PF: predicated region fallthrough
CT: control target
= control target key end

     0   :  { %s3950_s12 = smov 0   ;;  %s4799_s0 = inlined_call_operand.vmem [shape: bf16[2048,1152], index: 0, kind: input, shape index: {}]   ;;  %s4800_s1 = inlined_call_operand.vmem [shape: bf16[1152,128], index: 1, kind: input, shape index: {}]   ;;  %s4801_s2 = inlined_call_operand.vmem [shape: f32[1,128], index: 2, kind: input, shape index: {}]   ;;  %s4802_s3 = inlined_call_operand.vmem [shape: bf16[2048,128], index: 3, kind: output, shape index: {}]  }
   0x1 LB: > { %s2710_s13 = sadd.s32 4294967295, %s3928_s12   ;;  %p2714_p0 = scmp.ge.s32.totalorder %s3928_s12, 1  ;;  %s3928_s12 = sphi %s3950_s12, %s13_s12  }
   0x2   : > { %p139_p1 = scmp.lt.s32.totalorder %s3928_s12, 9 }
   0x4   : > { %p140_p2 = pnand %p2714_p0, %p139_p1 }
   0x6   : > { %143 = sbr.rel (%p140_p2) target bundleno = 534 (0x216), region = 32 }
   0xb   : > { %v3642_v0 = vld [vmem:[%s4800_s1 + $0x78] sm:$0xff]   ;;  %s2715_s16 = sshll.u32 %s2710_s13, 5  ;;  %v3644_v2 = vld [vmem:[%s4800_s1 + $0x70] sm:$0xff]   ;;  %v3646_v4 = vld [vmem:[%s4800_s1 + $0x68] sm:$0xff]  }
   0xc   : > { %v3643_v1 = vld [vmem:[%s4800_s1 + $0x38] sm:$0xff]   ;;  %3097 = vmatprep.subr.bf16.mxu0 %v3642_v0  ;;  %3617 = vmatprep.subr.bf16.mxu1 %v3642_v0  ;;  %p165_p3 = scmp.lt.s32.totalorder %s2715_s16, 255  ;;  %v3645_v3 = vld [vmem:[%s4800_s1 + $0x30] sm:$0xff]   ;;  %v3647_v5 = vld [vmem:[%s4800_s1 + $0x28] sm:$0xff]  }
   0xd   : > { %3098 = vmatpush3.bf16.msra.mxu0 %v3643_v1  ;;  %3625 = vmatpush3.bf16.msra.mxu1 %v3643_v1  ;;  %v3648_v6 = vld [vmem:[%s4800_s1 + $0x60] sm:$0xff]   ;;  %v3650_v8 = vld [vmem:[%s4800_s1 + $0x58] sm:$0xff]   ;;  %v3652_v10 = vld [vmem:[%s4800_s1 + $0x50] sm:$0xff]  }
   0xe   : > { %3099 = vmatprep.subr.bf16.mxu0 %v3644_v2  ;;  %3618 = vmatprep.subr.bf16.mxu1 %v3644_v2  ;;  %s4826_s16 = smov (!%p165_p3, %s2715_s16), 255  ;;  %v3649_v7 = vld [vmem:[%s4800_s1 + $0x20] sm:$0xff]   ;;  %v3651_v9 = vld [vmem:[%s4800_s1 + $0x18] sm:$0xff]   ;;  %v3653_v13 = vld [vmem:[%s4800_s1 + $0x10] sm:$0xff]  }
   0xf   : > { %s3633_s29 = smul.u32 36, %s4826_s16  ;;  %v3654_v14 = vld [vmem:[%s4800_s1 + $0x48] sm:$0xff]   ;;  %v3656_v16 = vld [vmem:[%s4800_s1 + $0x40] sm:$0xff]   ;;  %v3664_v18 = vld [vmem:[%s4800_s1 + $0xf8] sm:$0xff]  }
  0x10   : > { %v3655_v15 = vld [vmem:[%s4800_s1 + $0x8] sm:$0xff]   ;;  %v3657_v17 = vld [vmem:[%s4800_s1] sm:$0xff]   ;;  %v3667_v21 = vld [vmem:[%s4800_s1 + $0x178] sm:$0xff]  }
  0x11   : > { %3100 = vmatpush3.bf16.msra.mxu0 %v3645_v3  ;;  %3626 = vmatpush3.bf16.msra.mxu1 %v3645_v3  ;;  %s3991_s9 = scalar_lea.vmem %s4799_s0, %s3633_s29  ;;  %v3665_v22 = vld [vmem:[%s4800_s1 + $0xb8] sm:$0xff]   ;;  %v3666_v23 = vld [vmem:[%s4800_s1 + $0xf0] sm:$0xff]   ;;  %v3676_v31 = vld [vmem:[%s4800_s1 + $0xe8] sm:$0xff]  }
  0x12   : > { %3101 = vmatprep.subr.bf16.mxu0 %v3646_v4  ;;  %3619 = vmatprep.subr.bf16.mxu1 %v3646_v4  ;;  %v3660_v11 = vld [vmem:[%s3991_s9 + $0x4] ss:$36 sps:$4 sm:$0xff]   ;;  %v3669_v24 = vld [vmem:[%s4800_s1 + $0x138] sm:$0xff]   ;;  %v3670_v25 = vld [vmem:[%s3991_s9 + $0x4c] ss:$36 sps:$4 sm:$0xff]  }
  0x13   : > { %v3663_v12 = vld [vmem:[%s3991_s9 + $0x364] ss:$36 sps:$4 sm:$0xff]   ;;  %1689 = vmatprep.mubr.bf16.mxu0 %v3660_v11  ;;  %v3672_v26 = vld [vmem:[%s3991_s9 + $0x3ac] ss:$36 sps:$4 sm:$0xff]   ;;  %v3680_v35 = vld [vmem:[%s3991_s9 + $0x94] ss:$36 sps:$4 sm:$0xff]  }
  0x14   : > { %1785 = vmatprep.mubr.bf16.mxu1 %v3663_v12  ;;  %v3658_v19 = vld [vmem:[%s3991_s9] ss:$36 sps:$4 sm:$0xff]   ;;  %v3668_v27 = vld [vmem:[%s4800_s1 + $0xb0] sm:$0xff]   ;;  %v3674_v29 = vld [vmem:[%s3991_s9 + $0x48] ss:$36 sps:$4 sm:$0xff]  }
  0x15   : > { %3102 = vmatpush3.bf16.msra.mxu0 %v3647_v5  ;;  %3627 = vmatpush3.bf16.msra.mxu1 %v3647_v5  ;;  %v3661_v20 = vld [vmem:[%s3991_s9 + $0x360] ss:$36 sps:$4 sm:$0xff]   ;;  %v3687_v28 = vld [vmem:[%s4800_s1 + $0x170] sm:$0xff]   ;;  %v3675_v30 = vld [vmem:[%s3991_s9 + $0x3a8] ss:$36 sps:$4 sm:$0xff]  }
  0x16   : > { %3103 = vmatprep.subr.bf16.mxu0 %v3648_v6  ;;  %3620 = vmatprep.subr.bf16.mxu1 %v3648_v6  ;;  %v3677_v32 = vld [vmem:[%s4800_s1 + $0xa8] sm:$0xff]   ;;  %v3689_v33 = vld [vmem:[%s4800_s1 + $0x130] sm:$0xff]   ;;  %v3678_v34 = vld [vmem:[%s4800_s1 + $0xe0] sm:$0xff]  }
  0x17   : > { %v3682_v36 = vld [vmem:[%s3991_s9 + $0x3f4] ss:$36 sps:$4 sm:$0xff]   ;;  %v3679_v37 = vld [vmem:[%s4800_s1 + $0xa0] sm:$0xff]   ;;  %v3701_v43 = vld [vmem:[%s4800_s1 + $0x168] sm:$0xff]  }
  0x18   : > { %v3684_v38 = vld [vmem:[%s3991_s9 + $0x90] ss:$36 sps:$4 sm:$0xff]   ;;  %v3686_v40 = vld [vmem:[%s4800_s1 + $0xd8] sm:$0xff]   ;;  %v3703_v46 = vld [vmem:[%s4800_s1 + $0x128] sm:$0xff]  }
  0x19   : > { %3104 = vmatpush3.bf16.msra.mxu0 %v3649_v7  ;;  %3628 = vmatpush3.bf16.msra.mxu1 %v3649_v7  ;;  %v3685_v39 = vld [vmem:[%s3991_s9 + $0x3f0] ss:$36 sps:$4 sm:$0xff]   ;;  %v3688_v41 = vld [vmem:[%s4800_s1 + $0x98] sm:$0xff]   ;;  %v3698_v48 = vld [vmem:[%s4800_s1 + $0xc8] sm:$0xff]  }
  0x1a   : > { %3105 = vmatprep.subr.bf16.mxu0 %v3650_v8  ;;  %3621 = vmatprep.subr.bf16.mxu1 %v3650_v8  ;;  %v3690_v42 = vld [vmem:[%s4800_s1 + $0xd0] sm:$0xff]   ;;  %v3692_v44 = vld [vmem:[%s3991_s9 + $0xdc] ss:$36 sps:$4 sm:$0xff]   ;;  %v3699_v51 = vld [vmem:[%s4800_s1 + $0x88] sm:$0xff]  }
  0x1b   : > { %v3694_v45 = vld [vmem:[%s3991_s9 + $0x43c] ss:$36 sps:$4 sm:$0xff]   ;;  %v3691_v47 = vld [vmem:[%s4800_s1 + $0x90] sm:$0xff]   ;;  %v3704_v53 = vld [vmem:[%s3991_s9 + $0x124] ss:$36 sps:$4 sm:$0xff]  }
  0x1c   : > { %v3696_v49 = vld [vmem:[%s3991_s9 + $0xd8] ss:$36 sps:$4 sm:$0xff]   ;;  %v3700_v52 = vld [vmem:[%s4800_s1 + $0xc0] sm:$0xff]   ;;  %v3708_v54 = vld [vmem:[%s3991_s9 + $0xc] ss:$36 sps:$4 sm:$0xff]  }
  0x1d   : > { %3106 = vmatpush3.bf16.msra.mxu0 %v3651_v9  ;;  %3629 = vmatpush3.bf16.msra.mxu1 %v3651_v9  ;;  %v3697_v50 = vld [vmem:[%s3991_s9 + $0x438] ss:$36 sps:$4 sm:$0xff]   ;;  %v3718_v55 = vld [vmem:[%s4800_s1 + $0x160] sm:$0xff]   ;;  %v3706_v58 = vld [vmem:[%s3991_s9 + $0x8] ss:$36 sps:$4 sm:$0xff]  }
  0x1e   : > { %3107 = vmatprep.subr.bf16.mxu0 %v3652_v10  ;;  %3622 = vmatprep.subr.bf16.mxu1 %v3652_v10  ;;  %v3719_v56 = vld [vmem:[%s4800_s1 + $0x120] sm:$0xff]   ;;  %v3710_v60 = vld [vmem:[%s4800_s1 + $0x1f8] sm:$0xff]   ;;  %v3712_v62 = vld [vmem:[%s3991_s9 + $0x16c] ss:$36 sps:$4 sm:$0xff]  }
  0x1f   : > { %v3702_v57 = vld [vmem:[%s4800_s1 + $0x80] sm:$0xff]   ;;  %v3711_v61 = vld [vmem:[%s4800_s1 + $0x1b8] sm:$0xff]   ;;  %v3726_v1 = vld [vmem:[%s4800_s1 + $0x1f0] sm:$0xff]  }
  0x20   : > { %v3709_v59 = vld [vmem:[%s3991_s9 + $0x120] ss:$36 sps:$4 sm:$0xff]   ;;  %v3714_v63 = vld [vmem:[%s3991_s9 + $0x54] ss:$36 sps:$4 sm:$0xff]   ;;  %v3716_v4 = vld [vmem:[%s3991_s9 + $0x168] ss:$36 sps:$4 sm:$0xff]  }
  0x21   : > { %3108 = vmatpush3.bf16.msra.mxu0 %v3653_v13  ;;  %3630 = vmatpush3.bf16.msra.mxu1 %v3653_v13  ;;  %v3728_v0 = vld [vmem:[%s4800_s1 + $0x158] sm:$0xff]   ;;  %v3727_v3 = vld [vmem:[%s4800_s1 + $0x1b0] sm:$0xff]   ;;  %v3743_v9 = vld [vmem:[%s4800_s1 + $0x1e8] sm:$0xff]  }
  0x22   : > { %3109 = vmatprep.subr.bf16.mxu0 %v3654_v14  ;;  %3623 = vmatprep.subr.bf16.mxu1 %v3654_v14  ;;  %v3729_v2 = vld [vmem:[%s4800_s1 + $0x118] sm:$0xff]   ;;  %v3717_v5 = vld [vmem:[%s3991_s9 + $0x50] ss:$36 sps:$4 sm:$0xff]   ;;  %v3745_v11 = vld [vmem:[%s4800_s1 + $0x1a8] sm:$0xff]  }
  0x23   : > { %v3720_v6 = vld [vmem:[%s3991_s9 + $0x1b4] ss:$36 sps:$4 sm:$0xff]   ;;  %v3722_v7 = vld [vmem:[%s3991_s9 + $0x9c] ss:$36 sps:$4 sm:$0xff]  }
  0x24   : > { %v3742_v8 = vld [vmem:[%s4800_s1 + $0x150] sm:$0xff]   ;;  %v3725_v13 = vld [vmem:[%s3991_s9 + $0x98] ss:$36 sps:$4 sm:$0xff]  }
  0x25   : > { %3110 = vmatpush3.bf16.msra.mxu0 %v3655_v15  ;;  %3631 = vmatpush3.bf16.msra.mxu1 %v3655_v15  ;;  %v3744_v10 = vld [vmem:[%s4800_s1 + $0x110] sm:$0xff]   ;;  %v3730_v14 = vld [vmem:[%s3991_s9 + $0x1fc] ss:$36 sps:$4 sm:$0xff]   ;;  %v3752_v15 = vld [vmem:[%s4800_s1 + $0x148] sm:$0xff]  }
  0x26   : > { %3111 = vmatprep.subr.bf16.mxu0 %v3656_v16  ;;  %3624 = vmatprep.subr.bf16.mxu1 %v3656_v16  ;;  %v3724_v12 = vld [vmem:[%s3991_s9 + $0x1b0] ss:$36 sps:$4 sm:$0xff]   ;;  %v3753_v16 = vld [vmem:[%s4800_s1 + $0x108] sm:$0xff]  }
  0x29   : > { %3112 = vmatpush3.bf16.msra.mxu0 %v3657_v17  ;;  %3632 = vmatpush3.bf16.msra.mxu1 %v3657_v17  ;;  %v3732_v17 = vld [vmem:[%s3991_s9 + $0xe4] ss:$36 sps:$4 sm:$0xff]  }
  0x2a   : > { %3209 = vmatprep.subr.bf16.mxu1 %v3664_v18  ;;  %3321 = vmatprep.subr.bf16.mxu0 %v3667_v21  ;;  %v3760_v18 = vld [vmem:[%s4800_s1 + $0x1e0] sm:$0xff]  }
  0x2b   : > { %v3735_v21 = vld [vmem:[%s3991_s9 + $0xe0] ss:$36 sps:$4 sm:$0xff]  }
  0x2c   : > { %1690 = vmatmul.mubr.bf16.vlgmr.msra.gmra.mxu0 %v3658_v19  ;;  %1786 = vmatmul.mubr.bf16.vlgmr.msra.gmra.mxu1 %v3661_v20  ;;  %v3761_v19 = vld [vmem:[%s4800_s1 + $0x1a0] sm:$0xff]   ;;  %v3734_v20 = vld [vmem:[%s3991_s9 + $0x1f8] ss:$36 sps:$4 sm:$0xff]  }
  0x2d   : > { %3210 = vmatpush3.bf16.msra.mxu1 %v3665_v22  ;;  %3322 = vmatpush3.bf16.msra.mxu0 %v3669_v24  ;;  %v3736_v22 = vld [vmem:[%s3991_s9 + $0x244] ss:$36 sps:$4 sm:$0xff]  }
  0x2e   : > { %3211 = vmatprep.subr.bf16.mxu1 %v3666_v23  ;;  %1697 = vmatprep.mubr.bf16.mxu0 %v3670_v25  ;;  %v3738_v23 = vld [vmem:[%s3991_s9 + $0x12c] ss:$36 sps:$4 sm:$0xff]   ;;  %v3768_v24 = vld [vmem:[%s4800_s1 + $0x140] sm:$0xff]  }
  0x2f   : > { %1793 = vmatprep.mubr.bf16.mxu1 %v3672_v26  ;;  %3323 = vmatprep.subr.bf16.mxu0 %v3687_v28  ;;  %v3769_v25 = vld [vmem:[%s4800_s1 + $0x100] sm:$0xff]   ;;  %v3776_v26 = vld [vmem:[%s4800_s1 + $0x1d8] sm:$0xff]  }
  0x30   : > { %v3777_v28 = vld [vmem:[%s4800_s1 + $0x198] sm:$0xff]  }
  0x31   : > { %3212 = vmatpush3.bf16.msra.mxu1 %v3668_v27  ;;  %3324 = vmatpush3.bf16.msra.mxu0 %v3689_v33  ;;  %v3740_v27 = vld [vmem:[%s3991_s9 + $0x240] ss:$36 sps:$4 sm:$0xff]   ;;  %v3791_v33 = vld [vmem:[%s4800_s1 + $0x1d0] sm:$0xff]  }
  0x32   : > { %3213 = vmatprep.subr.bf16.mxu1 %v3676_v31  ;;  %3325 = vmatprep.subr.bf16.mxu0 %v3701_v43  ;;  %v3746_v31 = vld [vmem:[%s3991_s9 + $0x28c] ss:$36 sps:$4 sm:$0xff]   ;;  %v3762_v43 = vld [vmem:[%s3991_s9 + $0x31c] ss:$36 sps:$4 sm:$0xff]  }
  0x34   : > { %1698 = vmatmul.mubr.bf16.gmra.mxu0 %v3674_v29  ;;  %1794 = vmatmul.mubr.bf16.gmra.mxu1 %v3675_v30  ;;  %v3778_v29 = vld [vmem:[%s4800_s1 + $0x238] sm:$0xff]   ;;  %v3741_v30 = vld [vmem:[%s3991_s9 + $0x128] ss:$36 sps:$4 sm:$0xff]  }
  0x35   : > { %3214 = vmatpush3.bf16.msra.mxu1 %v3677_v32  ;;  %1705 = vmatprep.mubr.bf16.mxu0 %v3680_v35  ;;  %v3748_v32 = vld [vmem:[%s3991_s9 + $0x174] ss:$36 sps:$4 sm:$0xff]  }
  0x36   : > { %3215 = vmatprep.subr.bf16.mxu1 %v3678_v34  ;;  %1801 = vmatprep.mubr.bf16.mxu1 %v3682_v36  ;;  %v3750_v34 = vld [vmem:[%s3991_s9 + $0x288] ss:$36 sps:$4 sm:$0xff]   ;;  %v3792_v35 = vld [vmem:[%s4800_s1 + $0x190] sm:$0xff]  }
  0x37   : > { %3326 = vmatpush3.bf16.msra.mxu0 %v3703_v46  ;;  %v3751_v36 = vld [vmem:[%s3991_s9 + $0x170] ss:$36 sps:$4 sm:$0xff]   ;;  %v3767_v46 = vld [vmem:[%s3991_s9 + $0x200] ss:$36 sps:$4 sm:$0xff]  }
  0x38   : > { %3327 = vmatprep.subr.bf16.mxu0 %v3718_v55  ;;  %v3793_v55 = vld [vmem:[%s4800_s1 + $0x230] sm:$0xff]  }
  0x39   : > { %3216 = vmatpush3.bf16.msra.mxu1 %v3679_v37  ;;  %v3754_v37 = vld [vmem:[%s3991_s9 + $0x2d4] ss:$36 sps:$4 sm:$0xff]  }
  0x3a   : > { %3217 = vmatprep.subr.bf16.mxu1 %v3686_v40  ;;  %v3759_v40 = vld [vmem:[%s3991_s9 + $0x1b8] ss:$36 sps:$4 sm:$0xff]  }
  0x3b   : > { %3328 = vmatpush3.bf16.msra.mxu0 %v3719_v56  ;;  %v3808_v56 = vld [vmem:[%s4800_s1 + $0x228] sm:$0xff]  }
  0x3c   : > { %1706 = vmatmul.mubr.bf16.gmra.mxu0 %v3684_v38  ;;  %1802 = vmatmul.mubr.bf16.gmra.mxu1 %v3685_v39  ;;  %v3756_v38 = vld [vmem:[%s3991_s9 + $0x1bc] ss:$36 sps:$4 sm:$0xff]   ;;  %v3758_v39 = vld [vmem:[%s3991_s9 + $0x2d0] ss:$36 sps:$4 sm:$0xff]  }
  0x3d   : > { %3218 = vmatpush3.bf16.msra.mxu1 %v3688_v41  ;;  %1713 = vmatprep.mubr.bf16.mxu0 %v3692_v44  ;;  %v3806_v41 = vld [vmem:[%s4800_s1 + $0x1c8] sm:$0xff]  }
  0x3e   : > { %3219 = vmatprep.subr.bf16.mxu1 %v3690_v42  ;;  %1809 = vmatprep.mubr.bf16.mxu1 %v3694_v45  ;;  %v3807_v42 = vld [vmem:[%s4800_s1 + $0x188] sm:$0xff]   ;;  %v3766_v45 = vld [vmem:[%s3991_s9 + $0x318] ss:$36 sps:$4 sm:$0xff]  }
  0x3f   : > { %3329 = vmatprep.subr.bf16.mxu0 %v3728_v0  ;;  %v3764_v44 = vld [vmem:[%s3991_s9 + $0x204] ss:$36 sps:$4 sm:$0xff]  }
  0x40   : > { %3330 = vmatpush3.bf16.msra.mxu0 %v3729_v2  ;;  %v3790_v0 = vld [vmem:[%s3991_s9 + $0xa0] ss:$36 sps:$4 sm:$0xff]   ;;  %v3796_v2 = vld [vmem:[%s3991_s9 + $0xec] ss:$36 sps:$4 sm:$0xff]  }
  0x41   : > { %3220 = vmatpush3.bf16.msra.mxu1 %v3691_v47  ;;  %3331 = vmatprep.subr.bf16.mxu0 %v3742_v8  ;;  %v3821_v47 = vld [vmem:[%s4800_s1 + $0x1c0] sm:$0xff]   ;;  %v3802_v8 = vld [vmem:[%s3991_s9 + $0x134] ss:$36 sps:$4 sm:$0xff]  }
  0x42   : > { %3221 = vmatprep.subr.bf16.mxu1 %v3698_v48  ;;  %v3822_v48 = vld [vmem:[%s4800_s1 + $0x180] sm:$0xff]  }
  0x44   : > { %1714 = vmatmul.mubr.bf16.gmra.mxu0 %v3696_v49  ;;  %1810 = vmatmul.mubr.bf16.gmra.mxu1 %v3697_v50  ;;  %v3770_v49 = vld [vmem:[%s3991_s9 + $0x24c] ss:$36 sps:$4 sm:$0xff]   ;;  %v3774_v50 = vld [vmem:[%s3991_s9 + $0x14] ss:$36 sps:$4 sm:$0xff]  }
  0x45   : > { %3222 = vmatpush3.bf16.msra.mxu1 %v3699_v51  ;;  %1721 = vmatprep.mubr.bf16.mxu0 %v3704_v53  ;;  %v3772_v51 = vld [vmem:[%s3991_s9 + $0x10] ss:$36 sps:$4 sm:$0xff]  }
  0x46   : > { %3223 = vmatprep.subr.bf16.mxu1 %v3700_v52  ;;  %1850 = vmatprep.mubr.bf16.mxu1 %v3708_v54  ;;  %v3775_v52 = vld [vmem:[%s3991_s9 + $0x248] ss:$36 sps:$4 sm:$0xff]   ;;  %v3779_v53 = vld [vmem:[%s3991_s9 + $0x294] ss:$36 sps:$4 sm:$0xff]   ;;  %v3781_v54 = vld [vmem:[%s3991_s9 + $0x5c] ss:$36 sps:$4 sm:$0xff]  }
  0x47   : > { %3332 = vmatpush3.bf16.msra.mxu0 %v3744_v10  ;;  %v3804_v10 = vld [vmem:[%s3991_s9 + $0x368] ss:$36 sps:$4 sm:$0xff]  }
  0x48   : > { %3333 = vmatprep.subr.bf16.mxu0 %v3752_v15  ;;  %v3814_v15 = vld [vmem:[%s3991_s9 + $0x178] ss:$36 sps:$4 sm:$0xff]  }
  0x49   : > { %3224 = vmatpush3.bf16.msra.mxu1 %v3702_v57  ;;  %v3783_v57 = vld [vmem:[%s3991_s9 + $0x290] ss:$36 sps:$4 sm:$0xff]  }
  0x4a   : > { %3433 = vmatprep.subr.bf16.mxu1 %v3710_v60  ;;  %v3787_v60 = vld [vmem:[%s3991_s9 + $0xa4] ss:$36 sps:$4 sm:$0xff]  }
  0x4b   : > { %3334 = vmatpush3.bf16.msra.mxu0 %v3753_v16  ;;  %v3815_v16 = vld [vmem:[%s3991_s9 + $0x3fc] ss:$36 sps:$4 sm:$0xff]  }
  0x4c   : > { %1722 = vmatmul.mubr.bf16.gmra.mxu0 %v3709_v59  ;;  %1851 = vmatmul.mubr.bf16.vlgmr.msra.gmra.mxu1 %v3706_v58  ;;  %v3784_v58 = vld [vmem:[%s3991_s9 + $0x58] ss:$36 sps:$4 sm:$0xff]  }
  0x4d   : > { %3434 = vmatpush3.bf16.msra.mxu1 %v3711_v61  ;;  %1729 = vmatprep.mubr.bf16.mxu0 %v3712_v62  ;;  %v3785_v59 = vld [vmem:[%s3991_s9 + $0x2dc] ss:$36 sps:$4 sm:$0xff]  }
  0x4e   : > { %1858 = vmatprep.mubr.bf16.mxu1 %v3714_v63  ;;  %3435 = vmatprep.subr.bf16.mxu1 %v3726_v1  ;;  %v3823_v61 = vld [vmem:[%s4800_s1 + $0x220] sm:$0xff]   ;;  %v3789_v62 = vld [vmem:[%s3991_s9 + $0x2d8] ss:$36 sps:$4 sm:$0xff]  }
  0x4f   : > { %3335 = vmatprep.subr.bf16.mxu0 %v3768_v24  ;;  %v3836_v63 = vld [vmem:[%s4800_s1 + $0x218] sm:$0xff]   ;;  %v3794_v1 = vld [vmem:[%s3991_s9 + $0x324] ss:$36 sps:$4 sm:$0xff]  }
  0x50   : > { %3336 = vmatpush3.bf16.msra.mxu0 %v3769_v25  ;;  %v3830_v24 = vld [vmem:[%s3991_s9 + $0x254] ss:$36 sps:$4 sm:$0xff]   ;;  %v3834_v25 = vld [vmem:[%s3991_s9 + $0x1c] ss:$36 sps:$4 sm:$0xff]  }
  0x51   : > { %3436 = vmatpush3.bf16.msra.mxu1 %v3727_v3  ;;  %3569 = vmatprep.subr.bf16.mxu0 %v3778_v29  ;;  %v3849_v3 = vld [vmem:[%s4800_s1 + $0x210] sm:$0xff]  }
  0x52   : > { %3437 = vmatprep.subr.bf16.mxu1 %v3743_v9  ;;  %v3875_v9 = vld [vmem:[%s4800_s1 + $0x200] sm:$0xff]  }
  0x54   : > { %1730 = vmatmul.mubr.bf16.gmra.mxu0 %v3716_v4  ;;  %1859 = vmatmul.mubr.bf16.gmra.mxu1 %v3717_v5  ;;  %v3798_v4 = vld [vmem:[%s3991_s9 + $0x320] ss:$36 sps:$4 sm:$0xff]   ;;  %v3862_v5 = vld [vmem:[%s4800_s1 + $0x208] sm:$0xff]  }
  0x55   : > { %1737 = vmatprep.mubr.bf16.mxu0 %v3720_v6  ;;  %1866 = vmatprep.mubr.bf16.mxu1 %v3722_v7  ;;  %v3799_v6 = vld [vmem:[%s3991_s9 + $0xe8] ss:$36 sps:$4 sm:$0xff]  }
  0x56   : > { %3438 = vmatpush3.bf16.msra.mxu1 %v3745_v11  ;;  %v3800_v7 = vld [vmem:[%s3991_s9 + $0x36c] ss:$36 sps:$4 sm:$0xff]  }
  0x57   : > { %3439 = vmatprep.subr.bf16.mxu1 %v3760_v18  ;;  %v3805_v11 = vld [vmem:[%s3991_s9 + $0x130] ss:$36 sps:$4 sm:$0xff]   ;;  %v3819_v18 = vld [vmem:[%s3991_s9 + $0x3f8] ss:$36 sps:$4 sm:$0xff]  }
  0x5a   : > { %3440 = vmatpush3.bf16.msra.mxu1 %v3761_v19  ;;  %v3820_v19 = vld [vmem:[%s3991_s9 + $0x1c0] ss:$36 sps:$4 sm:$0xff]  }
  0x5b   : > { %3441 = vmatprep.subr.bf16.mxu1 %v3776_v26  ;;  %v3832_v26 = vld [vmem:[%s3991_s9 + $0x18] ss:$36 sps:$4 sm:$0xff]  }
  0x5c   : > { %1738 = vmatmul.mubr.bf16.gmra.mxu0 %v3724_v12  ;;  %1867 = vmatmul.mubr.bf16.gmra.mxu1 %v3725_v13  ;;  %v3809_v12 = vld [vmem:[%s3991_s9 + $0x3b4] ss:$36 sps:$4 sm:$0xff]   ;;  %v3811_v13 = vld [vmem:[%s3991_s9 + $0x17c] ss:$36 sps:$4 sm:$0xff]  }
  0x5d   : > { %1745 = vmatprep.mubr.bf16.mxu0 %v3730_v14  ;;  %1874 = vmatprep.mubr.bf16.mxu1 %v3732_v17  ;;  %v3813_v14 = vld [vmem:[%s3991_s9 + $0x3b0] ss:$36 sps:$4 sm:$0xff]   ;;  %v3817_v17 = vld [vmem:[%s3991_s9 + $0x1c4] ss:$36 sps:$4 sm:$0xff]  }
  0x5e   : > { %3442 = vmatpush3.bf16.msra.mxu1 %v3777_v28  ;;  %v3837_v28 = vld [vmem:[%s3991_s9 + $0x29c] ss:$36 sps:$4 sm:$0xff]  }
  0x5f   : > { %3443 = vmatprep.subr.bf16.mxu1 %v3791_v33  ;;  %v3845_v33 = vld [vmem:[%s3991_s9 + $0xac] ss:$36 sps:$4 sm:$0xff]  }
  0x62   : > { %3444 = vmatpush3.bf16.msra.mxu1 %v3792_v35  ;;  %v3848_v35 = vld [vmem:[%s3991_s9 + $0xa8] ss:$36 sps:$4 sm:$0xff]  }
  0x63   : > { %3445 = vmatprep.subr.bf16.mxu1 %v3806_v41  ;;  %v3858_v41 = vld [vmem:[%s3991_s9 + $0x13c] ss:$36 sps:$4 sm:$0xff]  }
  0x64   : > { %1746 = vmatmul.mubr.bf16.gmra.mxu0 %v3734_v20  ;;  %1875 = vmatmul.mubr.bf16.gmra.mxu1 %v3735_v21  ;;  %v3824_v20 = vld [vmem:[%s3991_s9 + $0x444] ss:$36 sps:$4 sm:$0xff]   ;;  %v3826_v21 = vld [vmem:[%s3991_s9 + $0x20c] ss:$36 sps:$4 sm:$0xff]  }
  0x65   : > { %1753 = vmatprep.mubr.bf16.mxu0 %v3736_v22  ;;  %1882 = vmatprep.mubr.bf16.mxu1 %v3738_v23  ;;  %v3828_v22 = vld [vmem:[%s3991_s9 + $0x440] ss:$36 sps:$4 sm:$0xff]   ;;  %v3829_v23 = vld [vmem:[%s3991_s9 + $0x208] ss:$36 sps:$4 sm:$0xff]  }
  0x66   : > { %3446 = vmatpush3.bf16.msra.mxu1 %v3807_v42  ;;  %v3860_v42 = vld [vmem:[%s3991_s9 + $0x370] ss:$36 sps:$4 sm:$0xff]  }
  0x67   : > { %3447 = vmatprep.subr.bf16.mxu1 %v3821_v47 }
  0x6a   : > { %3448 = vmatpush3.bf16.msra.mxu1 %v3822_v48 }
  0x6c   : > { %1754 = vmatmul.mubr.bf16.gmra.mxu0 %v3740_v27  ;;  %1883 = vmatmul.mubr.bf16.gmra.mxu1 %v3741_v30  ;;  %v3835_v27 = vld [vmem:[%s3991_s9 + $0x250] ss:$36 sps:$4 sm:$0xff]   ;;  %v3841_v30 = vld [vmem:[%s3991_s9 + $0x298] ss:$36 sps:$4 sm:$0xff]  }
  0x6d   : > { %1761 = vmatprep.mubr.bf16.mxu0 %v3746_v31  ;;  %1890 = vmatprep.mubr.bf16.mxu1 %v3748_v32  ;;  %v3842_v31 = vld [vmem:[%s3991_s9 + $0x60] ss:$36 sps:$4 sm:$0xff]  }
  0x6e   : > { %v3843_v32 = vld [vmem:[%s3991_s9 + $0x2e4] ss:$36 sps:$4 sm:$0xff]  }
  0x74   : > { %1762 = vmatmul.mubr.bf16.gmra.mxu0 %v3750_v34  ;;  %1891 = vmatmul.mubr.bf16.gmra.mxu1 %v3751_v36  ;;  %v3847_v34 = vld [vmem:[%s3991_s9 + $0x2e0] ss:$36 sps:$4 sm:$0xff]   ;;  %v3850_v36 = vld [vmem:[%s3991_s9 + $0x32c] ss:$36 sps:$4 sm:$0xff]  }
  0x75   : > { %1769 = vmatprep.mubr.bf16.mxu0 %v3754_v37  ;;  %1898 = vmatprep.mubr.bf16.mxu1 %v3756_v38  ;;  %v3852_v37 = vld [vmem:[%s3991_s9 + $0xf4] ss:$36 sps:$4 sm:$0xff]   ;;  %v3854_v38 = vld [vmem:[%s3991_s9 + $0x328] ss:$36 sps:$4 sm:$0xff]  }
  0x7c   : > { %1770 = vmatmul.mubr.bf16.gmra.mxu0 %v3758_v39  ;;  %1899 = vmatmul.mubr.bf16.gmra.mxu1 %v3759_v40  ;;  %v3855_v39 = vld [vmem:[%s3991_s9 + $0xf0] ss:$36 sps:$4 sm:$0xff]  }
  0x7d   : > { %1777 = vmatprep.mubr.bf16.mxu0 %v3762_v43  ;;  %1906 = vmatprep.mubr.bf16.mxu1 %v3764_v44  ;;  %v3856_v40 = vld [vmem:[%s3991_s9 + $0x374] ss:$36 sps:$4 sm:$0xff]   ;;  %v3863_v44 = vld [vmem:[%s3991_s9 + $0x3bc] ss:$36 sps:$4 sm:$0xff]  }
  0x7e   : > { %v3861_v43 = vld [vmem:[%s3991_s9 + $0x138] ss:$36 sps:$4 sm:$0xff]  }
  0x84   : > { %1778 = vmatmul.mubr.bf16.gmra.mxu0 %v3766_v45  ;;  %1907 = vmatmul.mubr.bf16.gmra.mxu1 %v3767_v46  ;;  %v3865_v45 = vld [vmem:[%s3991_s9 + $0x184] ss:$36 sps:$4 sm:$0xff]  }
  0x85   : > { %1914 = vmatprep.mubr.bf16.mxu1 %v3770_v49  ;;  %2011 = vmatprep.mubr.bf16.mxu0 %v3774_v50 }
  0x8c   : > { %1915 = vmatmul.mubr.bf16.gmra.mxu1 %v3775_v52  ;;  %2012 = vmatmul.mubr.bf16.vlgmr.msra.gmra.mxu0 %v3772_v51 }
  0x8d   : > { %3570 = vmatpush3.bf16.msra.mxu0 %v3778_v29  ;;  %1922 = vmatprep.mubr.bf16.mxu1 %v3779_v53  ;;  %v3839_v29 = vld [vmem:[%s3991_s9 + $0x64] ss:$36 sps:$4 sm:$0xff]  }
  0x8e   : > { %2019 = vmatprep.mubr.bf16.mxu0 %v3781_v54  ;;  %3571 = vmatprep.subr.bf16.mxu0 %v3793_v55  ;;  %v3867_v54 = vld [vmem:[%s3991_s9 + $0x3b8] ss:$36 sps:$4 sm:$0xff]  }
  0x91   : > { %3572 = vmatpush3.bf16.msra.mxu0 %v3793_v55  ;;  %v3868_v55 = vld [vmem:[%s3991_s9 + $0x180] ss:$36 sps:$4 sm:$0xff]  }
  0x92   : > { %3573 = vmatprep.subr.bf16.mxu0 %v3808_v56 }
  0x94   : > { %1923 = vmatmul.mubr.bf16.gmra.mxu1 %v3783_v57  ;;  %2020 = vmatmul.mubr.bf16.gmra.mxu0 %v3784_v58  ;;  %v3871_v57 = vld [vmem:[%s3991_s9 + $0x1cc] ss:$36 sps:$4 sm:$0xff]  }
  0x95   : > { %1930 = vmatprep.mubr.bf16.mxu1 %v3785_v59  ;;  %2027 = vmatprep.mubr.bf16.mxu0 %v3787_v60 }
  0x96   : > { %3574 = vmatpush3.bf16.msra.mxu0 %v3808_v56  ;;  %v3869_v56 = vld [vmem:[%s3991_s9 + $0x404] ss:$36 sps:$4 sm:$0xff]  }
  0x97   : > { %3575 = vmatprep.subr.bf16.mxu0 %v3823_v61 }
  0x9a   : > { %3576 = vmatpush3.bf16.msra.mxu0 %v3823_v61 }
  0x9b   : > { %3577 = vmatprep.subr.bf16.mxu0 %v3836_v63 }
  0x9c   : > { %1931 = vmatmul.mubr.bf16.gmra.mxu1 %v3789_v62  ;;  %2028 = vmatmul.mubr.bf16.gmra.mxu0 %v3790_v0 }
  0x9d   : > { %1938 = vmatprep.mubr.bf16.mxu1 %v3794_v1  ;;  %2035 = vmatprep.mubr.bf16.mxu0 %v3796_v2 }
  0x9e   : > { %3578 = vmatpush3.bf16.msra.mxu0 %v3836_v63 }
  0x9f   : > { %3579 = vmatprep.subr.bf16.mxu0 %v3849_v3 }
  0xa2   : > { %3580 = vmatpush3.bf16.msra.mxu0 %v3849_v3 }
  0xa3   : > { %3581 = vmatprep.subr.bf16.mxu0 %v3862_v5 }
  0xa4   : > { %1939 = vmatmul.mubr.bf16.gmra.mxu1 %v3798_v4  ;;  %2036 = vmatmul.mubr.bf16.gmra.mxu0 %v3799_v6  ;;  %v3873_v6 = vld [vmem:[%s3991_s9 + $0x400] ss:$36 sps:$4 sm:$0xff]  }
  0xa5   : > { %1946 = vmatprep.mubr.bf16.mxu1 %v3800_v7  ;;  %2043 = vmatprep.mubr.bf16.mxu0 %v3802_v8  ;;  %v3874_v7 = vld [vmem:[%s3991_s9 + $0x1c8] ss:$36 sps:$4 sm:$0xff]  }
  0xa6   : > { %3582 = vmatpush3.bf16.msra.mxu0 %v3862_v5  ;;  %v3876_v8 = vld [vmem:[%s3991_s9 + $0x44c] ss:$36 sps:$4 sm:$0xff]  }
  0xa7   : > { %3583 = vmatprep.subr.bf16.mxu0 %v3875_v9 }
  0xaa   : > { %3584 = vmatpush3.bf16.msra.mxu0 %v3875_v9  ;;  %v3878_v9 = vld [vmem:[%s3991_s9 + $0x214] ss:$36 sps:$4 sm:$0xff]  }
  0xac   : > { %1947 = vmatmul.mubr.bf16.gmra.mxu1 %v3804_v10  ;;  %2044 = vmatmul.mubr.bf16.gmra.mxu0 %v3805_v11 }
  0xad   : > { %1954 = vmatprep.mubr.bf16.mxu1 %v3809_v12  ;;  %2051 = vmatprep.mubr.bf16.mxu0 %v3811_v13 }
  0xb4   : > { %1955 = vmatmul.mubr.bf16.gmra.mxu1 %v3813_v14  ;;  %2052 = vmatmul.mubr.bf16.gmra.mxu0 %v3814_v15 }
  0xb5   : > { %1962 = vmatprep.mubr.bf16.mxu1 %v3815_v16  ;;  %2059 = vmatprep.mubr.bf16.mxu0 %v3817_v17 }
  0xbc   : > { %1963 = vmatmul.mubr.bf16.gmra.mxu1 %v3819_v18  ;;  %2060 = vmatmul.mubr.bf16.gmra.mxu0 %v3820_v19 }
  0xbd   : > { %1970 = vmatprep.mubr.bf16.mxu1 %v3824_v20  ;;  %2067 = vmatprep.mubr.bf16.mxu0 %v3826_v21 }
  0xc4   : > { %1971 = vmatmul.mubr.bf16.gmra.mxu1 %v3828_v22  ;;  %2068 = vmatmul.mubr.bf16.gmra.mxu0 %v3829_v23  ;;  %v3880_v22 = vld [vmem:[%s3991_s9 + $0x448] ss:$36 sps:$4 sm:$0xff]   ;;  %v3881_v23 = vld [vmem:[%s3991_s9 + $0x210] ss:$36 sps:$4 sm:$0xff]  }
  0xc5   : > { %2075 = vmatprep.mubr.bf16.mxu0 %v3830_v24  ;;  %2172 = vmatprep.mubr.bf16.mxu1 %v3834_v25  ;;  %v3884_v24 = vld [vmem:[%s3991_s9 + $0x25c] ss:$36 sps:$4 sm:$0xff]  }
  0xc6   : > { %v3885_v25 = vld [vmem:[%s3991_s9 + $0x20] ss:$36 sps:$4 sm:$0xff]  }
  0xcc   : > { %2076 = vmatmul.mubr.bf16.gmra.mxu0 %v3835_v27  ;;  %2173 = vmatmul.mubr.bf16.vlgmr.msra.gmra.mxu1 %v3832_v26 }
  0xcd   : > { %2083 = vmatprep.mubr.bf16.mxu0 %v3837_v28  ;;  %2180 = vmatprep.mubr.bf16.mxu1 %v3839_v29 }
  0xd4   : > { %2084 = vmatmul.mubr.bf16.gmra.mxu0 %v3841_v30  ;;  %2181 = vmatmul.mubr.bf16.gmra.mxu1 %v3842_v31 }
  0xd5   : > { %2091 = vmatprep.mubr.bf16.mxu0 %v3843_v32  ;;  %2188 = vmatprep.mubr.bf16.mxu1 %v3845_v33 }
  0xdc   : > { %2092 = vmatmul.mubr.bf16.gmra.mxu0 %v3847_v34  ;;  %2189 = vmatmul.mubr.bf16.gmra.mxu1 %v3848_v35 }
  0xdd   : > { %2099 = vmatprep.mubr.bf16.mxu0 %v3850_v36  ;;  %2196 = vmatprep.mubr.bf16.mxu1 %v3852_v37 }
  0xe4   : > { %2100 = vmatmul.mubr.bf16.gmra.mxu0 %v3854_v38  ;;  %2197 = vmatmul.mubr.bf16.gmra.mxu1 %v3855_v39  ;;  %v3882_v38 = vld [vmem:[%s3991_s9 + $0x258] ss:$36 sps:$4 sm:$0xff]   ;;  %v3886_v39 = vld [vmem:[%s3991_s9 + $0x68] ss:$36 sps:$4 sm:$0xff]  }
  0xe5   : > { %2107 = vmatprep.mubr.bf16.mxu0 %v3856_v40  ;;  %2204 = vmatprep.mubr.bf16.mxu1 %v3858_v41  ;;  %v3889_v40 = vld [vmem:[%s3991_s9 + $0x2a4] ss:$36 sps:$4 sm:$0xff]   ;;  %v3890_v41 = vld [vmem:[%s3991_s9 + $0xb0] ss:$36 sps:$4 sm:$0xff]  }
  0xec   : > { %v3113_v46 = vpop.f32.mrf.mxu0  ;;  %v3185_v47 = vpop.f32.mrf.mxu1  ;;  %2108 = vmatmul.mubr.bf16.gmra.mxu0 %v3860_v42  ;;  %2205 = vmatmul.mubr.bf16.gmra.mxu1 %v3861_v43 }
  0xed   : > { %2115 = vmatprep.mubr.bf16.mxu0 %v3863_v44  ;;  %2212 = vmatprep.mubr.bf16.mxu1 %v3865_v45 }
  0xee   : > { %v3114_v48 = vpop.f32.mrf.mxu0  ;;  %v3186_v49 = vpop.f32.mrf.mxu1 }
  0xef   : > { %v4284_v50 = vadd.f32 %v3114_v48, %v3113_v46  ;;  %v4286_v51 = vadd.f32 %v3186_v49, %v3185_v47  ;;  %v4335_v48 = vld [vmem:[%s4801_s2] ss:$0 sm:$0xff] }
  0xf0   : > { %v3116_v52 = vpop.f32.mrf.mxu0  ;;  %v3188_v53 = vpop.f32.mrf.mxu1 }
  0xf2   : > { %v3117_v58 = vpop.f32.mrf.mxu0  ;;  %v3189_v59 = vpop.f32.mrf.mxu1 }
  0xf3   : > { %v4292_v60 = vadd.f32 %v3117_v58, %v3116_v52  ;;  %v4294_v61 = vadd.f32 %v3189_v59, %v3188_v53  ;;  %v1692_v53 = vadd.f32 %v4284_v50, %v4335_v48  ;;  %v3887_v58 = vld [vmem:[%s3991_s9 + $0x2a0] ss:$36 sps:$4 sm:$0xff]   ;;  %v3891_v59 = vld [vmem:[%s3991_s9 + $0xf8] ss:$36 sps:$4 sm:$0xff]  }
  0xf4   : > { %v3119_v62 = vpop.f32.mrf.mxu0  ;;  %v3191_v63 = vpop.f32.mrf.mxu1  ;;  %2116 = vmatmul.mubr.bf16.gmra.mxu0 %v3867_v54  ;;  %2213 = vmatmul.mubr.bf16.gmra.mxu1 %v3868_v55 }
  0xf5   : > { %2123 = vmatprep.mubr.bf16.mxu0 %v3869_v56  ;;  %2220 = vmatprep.mubr.bf16.mxu1 %v3871_v57 }
  0xf6   : > { %v3120_v0 = vpop.f32.mrf.mxu0  ;;  %v3192_v1 = vpop.f32.mrf.mxu1 }
  0xf7   : > { %v4296_v2 = vadd.f32 %v3120_v0, %v3119_v62  ;;  %v4298_v3 = vadd.f32 %v3192_v1, %v3191_v63  ;;  %v3894_v63 = vld [vmem:[%s3991_s9 + $0x2ec] ss:$36 sps:$4 sm:$0xff]   ;;  %v3895_v0 = vld [vmem:[%s3991_s9 + $0x140] ss:$36 sps:$4 sm:$0xff]  }
  0xf8   : > { %v3122_v4 = vpop.f32.mrf.mxu0  ;;  %v3194_v5 = vpop.f32.mrf.mxu1 }
  0xfa   : > { %v3123_v10 = vpop.f32.mrf.mxu0  ;;  %v3195_v11 = vpop.f32.mrf.mxu1 }
  0xfb   : > { %v4304_v12 = vadd.f32 %v3123_v10, %v3122_v4  ;;  %v4306_v13 = vadd.f32 %v3195_v11, %v3194_v5  ;;  %v1695_v5 = vadd.f32 %v4292_v60, %v4335_v48  ;;  %v1700_v60 = vadd.f32 %v4296_v2, %v4335_v48 }
  0xfc   : > { %v3125_v14 = vpop.f32.mrf.mxu0  ;;  %v3197_v15 = vpop.f32.mrf.mxu1  ;;  %2124 = vmatmul.mubr.bf16.gmra.mxu0 %v3873_v6  ;;  %2221 = vmatmul.mubr.bf16.gmra.mxu1 %v3874_v7 }
  0xfd   : > { %2131 = vmatprep.mubr.bf16.mxu0 %v3876_v8  ;;  %2228 = vmatprep.mubr.bf16.mxu1 %v3878_v9 }
  0xfe   : > { %v3126_v16 = vpop.f32.mrf.mxu0  ;;  %v3198_v17 = vpop.f32.mrf.mxu1 }
  0xff   : > { %v4308_v18 = vadd.f32 %v3126_v16, %v3125_v14  ;;  %v4310_v19 = vadd.f32 %v3198_v17, %v3197_v15 }
 0x100   : > { %v3128_v20 = vpop.f32.mrf.mxu0  ;;  %v3200_v21 = vpop.f32.mrf.mxu1 }
 0x102   : > { %v3129_v26 = vpop.f32.mrf.mxu0  ;;  %v3201_v27 = vpop.f32.mrf.mxu1 }
 0x103   : > { %v4316_v28 = vadd.f32 %v3129_v26, %v3128_v20  ;;  %v4318_v29 = vadd.f32 %v3201_v27, %v3200_v21  ;;  %v3892_v20 = vld [vmem:[%s3991_s9 + $0x2e8] ss:$36 sps:$4 sm:$0xff]   ;;  %v1703_v27 = vadd.f32 %v4304_v12, %v4335_v48  ;;  %v1708_v12 = vadd.f32 %v4308_v18, %v4335_v48 }
 0x104   : > { %v3131_v30 = vpop.f32.mrf.mxu0  ;;  %v3203_v31 = vpop.f32.mrf.mxu1  ;;  %2132 = vmatmul.mubr.bf16.gmra.mxu0 %v3880_v22  ;;  %2229 = vmatmul.mubr.bf16.gmra.mxu1 %v3881_v23  ;;  %v3896_v21 = vld [vmem:[%s3991_s9 + $0x188] ss:$36 sps:$4 sm:$0xff]   ;;  %v3899_v23 = vld [vmem:[%s3991_s9 + $0x334] ss:$36 sps:$4 sm:$0xff]  }
 0x105   : > { %2236 = vmatprep.mubr.bf16.mxu1 %v3884_v24  ;;  %3585 = vmatprep.mubr.bf16.mxu0 %v3885_v25  ;;  %v3900_v24 = vld [vmem:[%s3991_s9 + $0x1d0] ss:$36 sps:$4 sm:$0xff]  }
 0x106   : > { %v3132_v32 = vpop.f32.mrf.mxu0  ;;  %v3204_v33 = vpop.f32.mrf.mxu1 }
 0x107   : > { %v4320_v34 = vadd.f32 %v3132_v32, %v3131_v30  ;;  %v4322_v35 = vadd.f32 %v3204_v33, %v3203_v31 }
 0x108   : > { %v3134_v36 = vpop.f32.mrf.mxu0  ;;  %v3206_v37 = vpop.f32.mrf.mxu1 }
 0x10a   : > { %v3135_v42 = vpop.f32.mrf.mxu0  ;;  %v3207_v43 = vpop.f32.mrf.mxu1 }
 0x10b   : > { %v4328_v44 = vadd.f32 %v3135_v42, %v3134_v36  ;;  %v4330_v45 = vadd.f32 %v3207_v43, %v3206_v37  ;;  %v3897_v42 = vld [vmem:[%s3991_s9 + $0x330] ss:$36 sps:$4 sm:$0xff]   ;;  %v3901_v43 = vld [vmem:[%s3991_s9 + $0x218] ss:$36 sps:$4 sm:$0xff]  }
 0x10c   : > { %v3137_v46 = vpop.f32.mrf.mxu0  ;;  %v3225_v47 = vpop.f32.mrf.mxu1  ;;  %2237 = vmatmul.mubr.bf16.gmra.mxu1 %v3882_v38  ;;  %3586 = vmatmul.mubr.bf16.vlgmr.msra.gmra.mxu0 %v3886_v39 }
 0x10d   : > { %2244 = vmatprep.mubr.bf16.mxu1 %v3889_v40  ;;  %3589 = vmatprep.mubr.bf16.mxu0 %v3890_v41 }
 0x10e   : > { %v3138_v49 = vpop.f32.mrf.mxu0  ;;  %v3226_v52 = vpop.f32.mrf.mxu1 }
 0x10f   : > { %v4339_v54 = vadd.f32 %v3138_v49, %v3137_v46  ;;  %v3227_v55 = vadd.f32 %v3226_v52, %v3225_v47  ;;  %v3904_v47 = vld [vmem:[%s3991_s9 + $0x37c] ss:$36 sps:$4 sm:$0xff]  }
 0x110   : > { %v3140_v56 = vpop.f32.mrf.mxu0  ;;  %v3228_v57 = vpop.f32.mrf.mxu1  ;;  %v3905_v49 = vld [vmem:[%s3991_s9 + $0x260] ss:$36 sps:$4 sm:$0xff]  }
 0x111   : > { %v4343_v62 = vadd.f32 %v3227_v55, %v1692_v53  ;;  %v1711_v55 = vadd.f32 %v4316_v28, %v4335_v48  ;;  %v1716_v28 = vadd.f32 %v4320_v34, %v4335_v48 }
 0x112   : > { %v3141_v1 = vpop.f32.mrf.mxu0  ;;  %v3229_v4 = vpop.f32.mrf.mxu1 }
 0x113   : > { %v4349_v6 = vadd.f32 %v3141_v1, %v3140_v56  ;;  %v3230_v50 = vadd.f32 %v3229_v4, %v3228_v57 }
 0x114   : > { %v3143_v7 = vpop.f32.mrf.mxu0  ;;  %v3231_v8 = vpop.f32.mrf.mxu1  ;;  %2245 = vmatmul.mubr.bf16.gmra.mxu1 %v3887_v58  ;;  %3590 = vmatmul.mubr.bf16.gmra.mxu0 %v3891_v59 }
 0x115   : > { %v4351_v9 = vadd.f32 %v3230_v50, %v1695_v5  ;;  %2252 = vmatprep.mubr.bf16.mxu1 %v3894_v63  ;;  %3593 = vmatprep.mubr.bf16.mxu0 %v3895_v0 }
 0x116   : > { %v3144_v10 = vpop.f32.mrf.mxu0  ;;  %v3232_v11 = vpop.f32.mrf.mxu1 }
 0x117   : > { %v4355_v14 = vadd.f32 %v3144_v10, %v3143_v7  ;;  %v3233_v15 = vadd.f32 %v3232_v11, %v3231_v8  ;;  %v3902_v7 = vld [vmem:[%s3991_s9 + $0x378] ss:$36 sps:$4 sm:$0xff]   ;;  %v3906_v8 = vld [vmem:[%s3991_s9 + $0x2a8] ss:$36 sps:$4 sm:$0xff]  }
 0x118   : > { %v3146_v16 = vpop.f32.mrf.mxu0  ;;  %v3234_v17 = vpop.f32.mrf.mxu1  ;;  %v3909_v11 = vld [vmem:[%s3991_s9 + $0x3c4] ss:$36 sps:$4 sm:$0xff]  }
 0x119   : > { %v4359_v22 = vadd.f32 %v3233_v15, %v1700_v60  ;;  %v3910_v60 = vld [vmem:[%s3991_s9 + $0x2f0] ss:$36 sps:$4 sm:$0xff]  }
 0x11a   : > { %v3147_v25 = vpop.f32.mrf.mxu0  ;;  %v3235_v26 = vpop.f32.mrf.mxu1 }
 0x11b   : > { %v4365_v30 = vadd.f32 %v3147_v25, %v3146_v16  ;;  %v3236_v2 = vadd.f32 %v3235_v26, %v3234_v17  ;;  %v1719_v17 = vadd.f32 %v4328_v44, %v4335_v48  ;;  %v1724_v44 = vadd.f32 %v4339_v54, %v4335_v48 }
 0x11c   : > { %v3149_v31 = vpop.f32.mrf.mxu0  ;;  %v3237_v32 = vpop.f32.mrf.mxu1  ;;  %2253 = vmatmul.mubr.bf16.gmra.mxu1 %v3892_v20  ;;  %3594 = vmatmul.mubr.bf16.gmra.mxu0 %v3896_v21 }
 0x11d   : > { %v4367_v33 = vadd.f32 %v3236_v2, %v1703_v27  ;;  %2260 = vmatprep.mubr.bf16.mxu1 %v3899_v23  ;;  %3597 = vmatprep.mubr.bf16.mxu0 %v3900_v24 }
 0x11e   : > { %v3150_v36 = vpop.f32.mrf.mxu0  ;;  %v3238_v37 = vpop.f32.mrf.mxu1 }
 0x11f   : > { %v4371_v38 = vadd.f32 %v3150_v36, %v3149_v31  ;;  %v3239_v39 = vadd.f32 %v3238_v37, %v3237_v32  ;;  %v3907_v36 = vld [vmem:[%s3991_s9 + $0x3c0] ss:$36 sps:$4 sm:$0xff]   ;;  %v3911_v37 = vld [vmem:[%s3991_s9 + $0x338] ss:$36 sps:$4 sm:$0xff]  }
 0x120   : > { %v3152_v40 = vpop.f32.mrf.mxu0  ;;  %v3240_v41 = vpop.f32.mrf.mxu1 }
 0x121   : > { %v4375_v46 = vadd.f32 %v3239_v39, %v1708_v12  ;;  %v3914_v39 = vld [vmem:[%s3991_s9 + $0x40c] ss:$36 sps:$4 sm:$0xff]  }
 0x122   : > { %v3153_v52 = vpop.f32.mrf.mxu0  ;;  %v3241_v53 = vpop.f32.mrf.mxu1 }
 0x123   : > { %v4381_v56 = vadd.f32 %v3153_v52, %v3152_v40  ;;  %v3242_v18 = vadd.f32 %v3241_v53, %v3240_v41  ;;  %v3915_v40 = vld [vmem:[%s3991_s9 + $0x380] ss:$36 sps:$4 sm:$0xff]  }
 0x124   : > { %v3155_v57 = vpop.f32.mrf.mxu0  ;;  %v3243_v58 = vpop.f32.mrf.mxu1  ;;  %2261 = vmatmul.mubr.bf16.gmra.mxu1 %v3897_v42  ;;  %3598 = vmatmul.mubr.bf16.gmra.mxu0 %v3901_v43  ;;  %v1727_v43 = vadd.f32 %v4349_v6, %v4335_v48  ;;  %v1732_v6 = vadd.f32 %v4355_v14, %v4335_v48 }
 0x125   : > { %v4383_v59 = vadd.f32 %v3242_v18, %v1711_v55  ;;  %2268 = vmatprep.mubr.bf16.mxu1 %v3904_v47  ;;  %3601 = vmatprep.mubr.bf16.mxu0 %v3905_v49 }
 0x126   : > { %v3156_v63 = vpop.f32.mrf.mxu0  ;;  %v3244_v0 = vpop.f32.mrf.mxu1 }
 0x127   : > { %v4387_v1 = vadd.f32 %v3156_v63, %v3155_v57  ;;  %v3245_v4 = vadd.f32 %v3244_v0, %v3243_v58 }
 0x128   : > { %v3158_v5 = vpop.f32.mrf.mxu0  ;;  %v3246_v50 = vpop.f32.mrf.mxu1 }
 0x129   : > { %v4391_v10 = vadd.f32 %v3245_v4, %v1716_v28  ;;  %v3912_v28 = vld [vmem:[%s3991_s9 + $0x408] ss:$36 sps:$4 sm:$0xff]  }
 0x12a   : > { %v3159_v15 = vpop.f32.mrf.mxu0  ;;  %v3247_v16 = vpop.f32.mrf.mxu1  ;;  %v3916_v4 = vld [vmem:[%s3991_s9 + $0x3c8] ss:$36 sps:$4 sm:$0xff]  }
 0x12b   : > { %v4397_v20 = vadd.f32 %v3159_v15, %v3158_v5  ;;  %v3248_v34 = vadd.f32 %v3247_v16, %v3246_v50  ;;  %v3919_v50 = vld [vmem:[%s3991_s9 + $0x454] ss:$36 sps:$4 sm:$0xff]  }
 0x12c   : > { %v3161_v21 = vpop.f32.mrf.mxu0  ;;  %v3249_v23 = vpop.f32.mrf.mxu1  ;;  %2269 = vmatmul.mubr.bf16.gmra.mxu1 %v3902_v7  ;;  %3602 = vmatmul.mubr.bf16.gmra.mxu0 %v3906_v8  ;;  %v3920_v7 = vld [vmem:[%s3991_s9 + $0x410] ss:$36 sps:$4 sm:$0xff]  }
 0x12d   : > { %v4399_v24 = vadd.f32 %v3248_v34, %v1719_v17  ;;  %2276 = vmatprep.mubr.bf16.mxu1 %v3909_v11  ;;  %3605 = vmatprep.mubr.bf16.mxu0 %v3910_v60  ;;  %v1735_v60 = vadd.f32 %v4365_v30, %v4335_v48 }
 0x12e   : > { %v3162_v25 = vpop.f32.mrf.mxu0  ;;  %v3250_v26 = vpop.f32.mrf.mxu1 }
 0x12f   : > { %v4403_v27 = vadd.f32 %v3162_v25, %v3161_v21  ;;  %v3251_v2 = vadd.f32 %v3250_v26, %v3249_v23  ;;  %v1740_v25 = vadd.f32 %v4371_v38, %v4335_v48 }
 0x130   : > { %v3164_v31 = vpop.f32.mrf.mxu0  ;;  %v3252_v32 = vpop.f32.mrf.mxu1 }
 0x131   : > { %v4407_v12 = vadd.f32 %v3251_v2, %v1724_v44 }
 0x132   : > { %v3165_v41 = vpop.f32.mrf.mxu0  ;;  %v3253_v42 = vpop.f32.mrf.mxu1 }
 0x133   : > { %v4413_v47 = vadd.f32 %v3165_v41, %v3164_v31  ;;  %v3254_v54 = vadd.f32 %v3253_v42, %v3252_v32  ;;  %v3917_v31 = vld [vmem:[%s3991_s9 + $0x450] ss:$36 sps:$4 sm:$0xff]   ;;  %v3921_v32 = vld [vmem:[%s3991_s9 + $0x458] ss:$36 sps:$4 sm:$0xff]   ;;  %s2718_s9 = sshll.u32 %s4826_s16, 2 }
 0x134   : > { %v3167_v49 = vpop.f32.mrf.mxu0  ;;  %v3255_v52 = vpop.f32.mrf.mxu1  ;;  %2277 = vmatmul.mubr.bf16.gmra.mxu1 %v3907_v36  ;;  %3606 = vmatmul.mubr.bf16.gmra.mxu0 %v3911_v37  ;;  %s4712_s21 = scalar_lea.vmem %s4802_s3, %s2718_s9 }
 0x135   : > { %v4415_v53 = vadd.f32 %v3254_v54, %v1727_v43  ;;  %2284 = vmatprep.mubr.bf16.mxu1 %v3914_v39  ;;  %3609 = vmatprep.mubr.bf16.mxu0 %v3915_v40  ;;  %v1743_v40 = vadd.f32 %v4381_v56, %v4335_v48 }
 0x136   : > { %v3168_v55 = vpop.f32.mrf.mxu0  ;;  %v3256_v18 = vpop.f32.mrf.mxu1 }
 0x137   : > { %v4419_v57 = vadd.f32 %v3168_v55, %v3167_v49  ;;  %v3257_v58 = vadd.f32 %v3256_v18, %v3255_v52  ;;  %v1748_v55 = vadd.f32 %v4387_v1, %v4335_v48 }
 0x138   : > { %v3170_v63 = vpop.f32.mrf.mxu0  ;;  %v3258_v0 = vpop.f32.mrf.mxu1 }
 0x139   : > { %v4423_v5 = vadd.f32 %v3257_v58, %v1732_v6 }
 0x13a   : > { %v3171_v8 = vpop.f32.mrf.mxu0  ;;  %v3259_v11 = vpop.f32.mrf.mxu1 }
 0x13b   : > { %v4429_v15 = vadd.f32 %v3171_v8, %v3170_v63  ;;  %v3260_v14 = vadd.f32 %v3259_v11, %v3258_v0 }
 0x13c   : > { %v3173_v16 = vpop.f32.mrf.mxu0  ;;  %v3261_v17 = vpop.f32.mrf.mxu1  ;;  %2285 = vmatmul.mubr.bf16.gmra.mxu1 %v3912_v28  ;;  %3610 = vmatmul.mubr.bf16.gmra.mxu0 %v3916_v4  ;;  %v1751_v4 = vadd.f32 %v4397_v20, %v4335_v48 }
 0x13d   : > { %v4431_v34 = vadd.f32 %v3260_v14, %v1735_v60  ;;  %2292 = vmatprep.mubr.bf16.mxu1 %v3919_v50  ;;  %3613 = vmatprep.mubr.bf16.mxu0 %v3920_v7 }
 0x13e   : > { %v3174_v21 = vpop.f32.mrf.mxu0  ;;  %v3262_v23 = vpop.f32.mrf.mxu1 }
 0x13f   : > { %v4435_v26 = vadd.f32 %v3174_v21, %v3173_v16  ;;  %v3263_v30 = vadd.f32 %v3262_v23, %v3261_v17  ;;  %v1756_v16 = vadd.f32 %v4403_v27, %v4335_v48 }
 0x140   : > { %v3176_v44 = vpop.f32.mrf.mxu0  ;;  %v3264_v2 = vpop.f32.mrf.mxu1 }
 0x141   : > { %v4439_v36 = vadd.f32 %v3263_v30, %v1740_v25 }
 0x142   : > { %v3177_v37 = vpop.f32.mrf.mxu0  ;;  %v3265_v39 = vpop.f32.mrf.mxu1 }
 0x143   : > { %v4443_v41 = vadd.f32 %v3177_v37, %v3176_v44  ;;  %v3266_v42 = vadd.f32 %v3265_v39, %v3264_v2 }
 0x144   : > { %v3179_v43 = vpop.f32.mrf.mxu0  ;;  %v3267_v54 = vpop.f32.mrf.mxu1  ;;  %2293 = vmatmul.mubr.bf16.gmra.mxu1 %v3917_v31  ;;  %3614 = vmatmul.mubr.bf16.gmra.mxu0 %v3921_v32  ;;  %v1759_v31 = vadd.f32 %v4413_v47, %v4335_v48 }
 0x145   : > { %v4445_v38 = vadd.f32 %v3266_v42, %v1743_v40 }
 0x146   : > { %v3180_v49 = vpop.f32.mrf.mxu0  ;;  %v3268_v52 = vpop.f32.mrf.mxu1 }
 0x147   : > { %v4449_v18 = vadd.f32 %v3180_v49, %v3179_v43  ;;  %v3269_v6 = vadd.f32 %v3268_v52, %v3267_v54 }
 0x148   : > { %v3182_v58 = vpop.f32.mrf.mxu0  ;;  %v3270_v63 = vpop.f32.mrf.mxu1 }
 0x149   : > { %v4451_v56 = vadd.f32 %v3269_v6, %v1748_v55 }
 0x14a   : > { %v3183_v0 = vpop.f32.mrf.mxu0  ;;  %v3271_v28 = vpop.f32.mrf.mxu1 }
 0x14b   : > { %v4455_v50 = vadd.f32 %v3183_v0, %v3182_v58  ;;  %v3272_v7 = vadd.f32 %v3271_v28, %v3270_v63 }
 0x14c   : > { %v3273_v8 = vpop.f32.mrf.mxu1  ;;  %v3337_v11 = vpop.f32.mrf.mxu0 }
 0x14d   : > { %v4457_v60 = vadd.f32 %v3272_v7, %v1751_v4 }
 0x14e   : > { %v3274_v1 = vpop.f32.mrf.mxu1  ;;  %v3338_v14 = vpop.f32.mrf.mxu0 }
 0x14f   : > { %v3275_v17 = vadd.f32 %v3274_v1, %v3273_v8  ;;  %v3339_v21 = vadd.f32 %v3338_v14, %v3337_v11 }
 0x150   : > { %v3276_v23 = vpop.f32.mrf.mxu1  ;;  %v3340_v25 = vpop.f32.mrf.mxu0 }
 0x151   : > { %v4461_v30 = vadd.f32 %v3275_v17, %v1756_v16  ;;  %v4464_v20 = vadd.f32 %v3339_v21, %v4343_v62  ;;  %v1764_v62 = vadd.f32 %v4419_v57, %v4335_v48 }
 0x152   : > { %v3277_v44 = vpop.f32.mrf.mxu1  ;;  %v3341_v2 = vpop.f32.mrf.mxu0 }
 0x153   : > { %v3278_v32 = vadd.f32 %v3277_v44, %v3276_v23  ;;  %v3342_v37 = vadd.f32 %v3341_v2, %v3340_v25 }
 0x154   : > { %v3279_v39 = vpop.f32.mrf.mxu1  ;;  %v3343_v40 = vpop.f32.mrf.mxu0 }
 0x155   : > { %v4468_v42 = vadd.f32 %v3278_v32, %v1759_v31  ;;  %v4471_v27 = vadd.f32 %v3342_v37, %v4351_v9  ;;  %v1767_v9 = vadd.f32 %v4429_v15, %v4335_v48 }
 0x156   : > { %v3280_v43 = vpop.f32.mrf.mxu1  ;;  %v3344_v54 = vpop.f32.mrf.mxu0 }
 0x157   : > { %v3281_v49 = vadd.f32 %v3280_v43, %v3279_v39  ;;  %v3345_v52 = vadd.f32 %v3344_v54, %v3343_v40 }
 0x158   : > { %v3282_v55 = vpop.f32.mrf.mxu1  ;;  %v3346_v6 = vpop.f32.mrf.mxu0 }
 0x159   : > { %v4475_v58 = vadd.f32 %v3281_v49, %v1764_v62  ;;  %v4478_v47 = vadd.f32 %v3345_v52, %v4359_v22  ;;  %v1772_v22 = vadd.f32 %v4435_v26, %v4335_v48 }
 0x15a   : > { %v3283_v63 = vpop.f32.mrf.mxu1  ;;  %v3347_v0 = vpop.f32.mrf.mxu0 }
 0x15b   : > { %v3284_v28 = vadd.f32 %v3283_v63, %v3282_v55  ;;  %v3348_v4 = vadd.f32 %v3347_v0, %v3346_v6 }
 0x15c   : > { %v3285_v7 = vpop.f32.mrf.mxu1  ;;  %v3349_v8 = vpop.f32.mrf.mxu0 }
 0x15d   : > { %v4482_v11 = vadd.f32 %v3284_v28, %v1767_v9  ;;  %v4485_v57 = vadd.f32 %v3348_v4, %v4367_v33  ;;  %v1775_v33 = vadd.f32 %v4443_v41, %v4335_v48 }
 0x15e   : > { %v3286_v1 = vpop.f32.mrf.mxu1  ;;  %v3350_v14 = vpop.f32.mrf.mxu0 }
 0x15f   : > { %v3287_v16 = vadd.f32 %v3286_v1, %v3285_v7  ;;  %v3351_v17 = vadd.f32 %v3350_v14, %v3349_v8 }
 0x160   : > { %v3288_v21 = vpop.f32.mrf.mxu1  ;;  %v3352_v23 = vpop.f32.mrf.mxu0 }
 0x161   : > { %v4489_v25 = vadd.f32 %v3287_v16, %v1772_v22  ;;  %v4492_v15 = vadd.f32 %v3351_v17, %v4375_v46  ;;  %v1780_v46 = vadd.f32 %v4449_v18, %v4335_v48 }
 0x162   : > { %v3289_v44 = vpop.f32.mrf.mxu1  ;;  %v3353_v2 = vpop.f32.mrf.mxu0 }
 0x163   : > { %v3290_v31 = vadd.f32 %v3289_v44, %v3288_v21  ;;  %v3354_v32 = vadd.f32 %v3353_v2, %v3352_v23 }
 0x164   : > { %v3291_v37 = vpop.f32.mrf.mxu1  ;;  %v3355_v39 = vpop.f32.mrf.mxu0 }
 0x165   : > { %v4496_v40 = vadd.f32 %v3290_v31, %v1775_v33  ;;  %v4499_v26 = vadd.f32 %v3354_v32, %v4383_v59  ;;  %v1783_v59 = vadd.f32 %v4455_v50, %v4335_v48 }
 0x166   : > { %v3292_v43 = vpop.f32.mrf.mxu1  ;;  %v3356_v54 = vpop.f32.mrf.mxu0 }
 0x167   : > { %v3293_v62 = vadd.f32 %v3292_v43, %v3291_v37  ;;  %v3357_v49 = vadd.f32 %v3356_v54, %v3355_v39 }
 0x168   : > { %v3294_v52 = vpop.f32.mrf.mxu1  ;;  %v3358_v55 = vpop.f32.mrf.mxu0 }
 0x169   : > { %v4503_v6 = vadd.f32 %v3293_v62, %v1780_v46  ;;  %v4506_v41 = vadd.f32 %v3357_v49, %v4391_v10  ;;  %v1788_v10 = vadd.f32 %v4286_v51, %v4335_v48 }
 0x16a   : > { %v3295_v63 = vpop.f32.mrf.mxu1  ;;  %v3359_v0 = vpop.f32.mrf.mxu0 }
 0x16b   : > { %v3296_v9 = vadd.f32 %v3295_v63, %v3294_v52  ;;  %v3360_v28 = vadd.f32 %v3359_v0, %v3358_v55 }
 0x16c   : > { %v3297_v4 = vpop.f32.mrf.mxu1  ;;  %v3361_v7 = vpop.f32.mrf.mxu0 }
 0x16d   : > { %v4510_v8 = vadd.f32 %v3296_v9, %v1783_v59  ;;  %v4513_v18 = vadd.f32 %v3360_v28, %v4399_v24  ;;  %v1791_v24 = vadd.f32 %v4294_v61, %v4335_v48 }
 0x16e   : > { %v3298_v1 = vpop.f32.mrf.mxu1  ;;  %v3362_v14 = vpop.f32.mrf.mxu0 }
 0x16f   : > { %v3299_v22 = vadd.f32 %v3298_v1, %v3297_v4  ;;  %v3363_v16 = vadd.f32 %v3362_v14, %v3361_v7 }
 0x170   : > { %v3300_v17 = vpop.f32.mrf.mxu1  ;;  %v3364_v21 = vpop.f32.mrf.mxu0 }
 0x171   : > { %v4517_v23 = vadd.f32 %v3299_v22, %v1788_v10  ;;  %v4520_v50 = vadd.f32 %v3363_v16, %v4407_v12  ;;  %v1796_v12 = vadd.f32 %v4298_v3, %v4335_v48 }
 0x172   : > { %v3301_v44 = vpop.f32.mrf.mxu1  ;;  %v3365_v2 = vpop.f32.mrf.mxu0 }
 0x173   : > { %v3302_v33 = vadd.f32 %v3301_v44, %v3300_v17  ;;  %v3366_v31 = vadd.f32 %v3365_v2, %v3364_v21 }
 0x174   : > { %v3303_v32 = vpop.f32.mrf.mxu1  ;;  %v3367_v37 = vpop.f32.mrf.mxu0 }
 0x175   : > { %v4524_v39 = vadd.f32 %v3302_v33, %v1791_v24  ;;  %v4527_v51 = vadd.f32 %v3366_v31, %v4415_v53  ;;  %v1799_v53 = vadd.f32 %v4306_v13, %v4335_v48 }
 0x176   : > { %v3304_v43 = vpop.f32.mrf.mxu1  ;;  %v3368_v54 = vpop.f32.mrf.mxu0 }
 0x177   : > { %v3305_v46 = vadd.f32 %v3304_v43, %v3303_v32  ;;  %v3369_v62 = vadd.f32 %v3368_v54, %v3367_v37 }
 0x178   : > { %v3306_v49 = vpop.f32.mrf.mxu1  ;;  %v3370_v52 = vpop.f32.mrf.mxu0 }
 0x179   : > { %v4531_v55 = vadd.f32 %v3305_v46, %v1796_v12  ;;  %v4534_v61 = vadd.f32 %v3369_v62, %v4423_v5  ;;  %v1804_v5 = vadd.f32 %v4310_v19, %v4335_v48 }
 0x17a   : > { %v3307_v63 = vpop.f32.mrf.mxu1  ;;  %v3371_v0 = vpop.f32.mrf.mxu0 }
 0x17b   : > { %v3308_v59 = vadd.f32 %v3307_v63, %v3306_v49  ;;  %v3372_v9 = vadd.f32 %v3371_v0, %v3370_v52 }
 0x17c   : > { %v3309_v28 = vpop.f32.mrf.mxu1  ;;  %v3373_v4 = vpop.f32.mrf.mxu0 }
 0x17d   : > { %v4538_v7 = vadd.f32 %v3308_v59, %v1799_v53  ;;  %v4541_v3 = vadd.f32 %v3372_v9, %v4431_v34  ;;  %v1807_v34 = vadd.f32 %v4318_v29, %v4335_v48 }
 0x17e   : > { %v3310_v1 = vpop.f32.mrf.mxu1  ;;  %v3374_v14 = vpop.f32.mrf.mxu0 }
 0x17f   : > { %v3311_v10 = vadd.f32 %v3310_v1, %v3309_v28  ;;  %v3375_v22 = vadd.f32 %v3374_v14, %v3373_v4 }
 0x180   : > { %v3312_v16 = vpop.f32.mrf.mxu1  ;;  %v3376_v17 = vpop.f32.mrf.mxu0 }
 0x181   : > { %v4545_v21 = vadd.f32 %v3311_v10, %v1804_v5  ;;  %v4548_v13 = vadd.f32 %v3375_v22, %v4439_v36  ;;  %v1812_v36 = vadd.f32 %v4322_v35, %v4335_v48 }
 0x182   : > { %v3313_v44 = vpop.f32.mrf.mxu1  ;;  %v3377_v2 = vpop.f32.mrf.mxu0 }
 0x183   : > { %v3314_v24 = vadd.f32 %v3313_v44, %v3312_v16  ;;  %v3378_v33 = vadd.f32 %v3377_v2, %v3376_v17 }
 0x184   : > { %v3315_v31 = vpop.f32.mrf.mxu1  ;;  %v3379_v32 = vpop.f32.mrf.mxu0 }
 0x185   : > { %v4552_v37 = vadd.f32 %v3314_v24, %v1807_v34  ;;  %v4555_v19 = vadd.f32 %v3378_v33, %v4445_v38  ;;  %v1815_v38 = vadd.f32 %v4330_v45, %v4335_v48 }
 0x186   : > { %v3316_v43 = vpop.f32.mrf.mxu1  ;;  %v3380_v54 = vpop.f32.mrf.mxu0 }
 0x187   : > { %v3317_v12 = vadd.f32 %v3316_v43, %v3315_v31  ;;  %v3381_v46 = vadd.f32 %v3380_v54, %v3379_v32 }
 0x188   : > { %v3318_v62 = vpop.f32.mrf.mxu1  ;;  %v3382_v49 = vpop.f32.mrf.mxu0 }
 0x189   : > { %v4559_v52 = vadd.f32 %v3317_v12, %v1812_v36  ;;  %v4562_v29 = vadd.f32 %v3381_v46, %v4451_v56 }
 0x18a   : > { %v3319_v63 = vpop.f32.mrf.mxu1  ;;  %v3383_v0 = vpop.f32.mrf.mxu0 }
 0x18b   : > { %v3320_v53 = vadd.f32 %v3319_v63, %v3318_v62  ;;  %v3384_v59 = vadd.f32 %v3383_v0, %v3382_v49 }
 0x18c   : > { %v3385_v9 = vpop.f32.mrf.mxu0  ;;  %v3449_v28 = vpop.f32.mrf.mxu1 }
 0x18d   : > { %v4566_v4 = vadd.f32 %v3320_v53, %v1815_v38  ;;  %v4569_v35 = vadd.f32 %v3384_v59, %v4457_v60 }
 0x18e   : > { %v3386_v1 = vpop.f32.mrf.mxu0  ;;  %v3450_v14 = vpop.f32.mrf.mxu1 }
 0x18f   : > { %v3387_v5 = vadd.f32 %v3386_v1, %v3385_v9  ;;  %v3451_v10 = vadd.f32 %v3450_v14, %v3449_v28 }
 0x190   : > { %v3388_v56 = vpop.f32.mrf.mxu0  ;;  %v4571_v22 = vpop.f32.mrf.mxu1 }
 0x191   : > { %v4574_v16 = vadd.f32 %v3387_v5, %v4461_v30  ;;  %v4577_v45 = vadd.f32 %v3451_v10, %v4464_v20 }
 0x192   : > { %v3389_v48 = vpop.f32.mrf.mxu0  ;;  %v4579_v17 = vpop.f32.mrf.mxu1 }
 0x193   : > { %v3390_v44 = vadd.f32 %v3389_v48, %v3388_v56 }
 0x194   : > { %v3391_v2 = vpop.f32.mrf.mxu0  ;;  %v4581_v60 = vpop.f32.mrf.mxu1 }
 0x195   : > { %v4584_v34 = vadd.f32 %v3390_v44, %v4468_v42 }
 0x196   : > { %v3392_v24 = vpop.f32.mrf.mxu0  ;;  %v4586_v33 = vpop.f32.mrf.mxu1 }
 0x197   : > { %v3393_v31 = vadd.f32 %v3392_v24, %v3391_v2 }
 0x198   : > { %v3394_v32 = vpop.f32.mrf.mxu0  ;;  %v4588_v30 = vpop.f32.mrf.mxu1 }
 0x199   : > { %v4591_v20 = vadd.f32 %v3393_v31, %v4475_v58 }
 0x19a   : > { %v3395_v43 = vpop.f32.mrf.mxu0  ;;  %v4593_v54 = vpop.f32.mrf.mxu1 }
 0x19b   : > { %v3396_v36 = vadd.f32 %v3395_v43, %v3394_v32 }
 0x19c   : > { %v3397_v12 = vpop.f32.mrf.mxu0  ;;  %v4595_v46 = vpop.f32.mrf.mxu1 }
 0x19d   : > { %v4598_v42 = vadd.f32 %v3396_v36, %v4482_v11 }
 0x19e   : > { %v3398_v62 = vpop.f32.mrf.mxu0  ;;  %v4600_v49 = vpop.f32.mrf.mxu1 }
 0x19f   : > { %v3399_v63 = vadd.f32 %v3398_v62, %v3397_v12 }
 0x1a0   : > { %v3400_v0 = vpop.f32.mrf.mxu0  ;;  %v4602_v38 = vpop.f32.mrf.mxu1 }
 0x1a1   : > { %v4605_v58 = vadd.f32 %v3399_v63, %v4489_v25 }
 0x1a2   : > { %v3401_v53 = vpop.f32.mrf.mxu0  ;;  %v4607_v59 = vpop.f32.mrf.mxu1 }
 0x1a3   : > { %4803 = vst [vmem:[#allocation2_spill] sm:$0xff] %v4605_v58  ;;  %v3402_v9 = vadd.f32 %v3401_v53, %v3400_v0 }
 0x1a4   : > { %v3403_v28 = vpop.f32.mrf.mxu0  ;;  %v4609_v1 = vpop.f32.mrf.mxu1 }
 0x1a5   : > { %v4612_v11 = vadd.f32 %v3402_v9, %v4496_v40 }
 0x1a6   : > { %v3404_v14 = vpop.f32.mrf.mxu0  ;;  %v4614_v5 = vpop.f32.mrf.mxu1 }
 0x1a7   : > { %4804 = vst [vmem:[#allocation3_spill] sm:$0xff] %v4612_v11  ;;  %v3405_v10 = vadd.f32 %v3404_v14, %v3403_v28 }
 0x1a8   : > { %v3406_v56 = vpop.f32.mrf.mxu0  ;;  %v4616_v48 = vpop.f32.mrf.mxu1 }
 0x1a9   : > { %v4619_v25 = vadd.f32 %v3405_v10, %v4503_v6 }
 0x1aa   : > { %v3407_v44 = vpop.f32.mrf.mxu0  ;;  %v4621_v2 = vpop.f32.mrf.mxu1 }
 0x1ab   : > { %4805 = vst [vmem:[#allocation4_spill] sm:$0xff] %v4619_v25  ;;  %v3408_v24 = vadd.f32 %v3407_v44, %v3406_v56 }
 0x1ac   : > { %v3409_v31 = vpop.f32.mrf.mxu0  ;;  %v4623_v32 = vpop.f32.mrf.mxu1 }
 0x1ad   : > { %v4626_v40 = vadd.f32 %v3408_v24, %v4510_v8 }
 0x1ae   : > { %v3410_v43 = vpop.f32.mrf.mxu0  ;;  %v4628_v36 = vpop.f32.mrf.mxu1 }
 0x1af   : > { %4806 = vst [vmem:[#allocation5_spill] sm:$0xff] %v4626_v40  ;;  %v3411_v12 = vadd.f32 %v3410_v43, %v3409_v31 }
 0x1b0   : > { %v3412_v62 = vpop.f32.mrf.mxu0  ;;  %v4630_v63 = vpop.f32.mrf.mxu1 }
 0x1b1   : > { %v4633_v6 = vadd.f32 %v3411_v12, %v4517_v23 }
 0x1b2   : > { %v3413_v0 = vpop.f32.mrf.mxu0  ;;  %v4635_v53 = vpop.f32.mrf.mxu1 }
 0x1b3   : > { %4807 = vst [vmem:[#allocation6_spill] sm:$0xff] %v4633_v6  ;;  %v3414_v9 = vadd.f32 %v3413_v0, %v3412_v62 }
 0x1b4   : > { %v3415_v28 = vpop.f32.mrf.mxu0  ;;  %v4637_v14 = vpop.f32.mrf.mxu1 }
 0x1b5   : > { %v4640_v8 = vadd.f32 %v3414_v9, %v4524_v39 }
 0x1b6   : > { %v3416_v10 = vpop.f32.mrf.mxu0  ;;  %v4642_v56 = vpop.f32.mrf.mxu1 }
 0x1b7   : > { %4808 = vst [vmem:[#allocation7_spill] sm:$0xff] %v4640_v8  ;;  %v3417_v44 = vadd.f32 %v3416_v10, %v3415_v28 }
 0x1b8   : > { %v3418_v24 = vpop.f32.mrf.mxu0  ;;  %v4644_v31 = vpop.f32.mrf.mxu1 }
 0x1b9   : > { %v4647_v23 = vadd.f32 %v3417_v44, %v4531_v55 }
 0x1ba   : > { %v3419_v43 = vpop.f32.mrf.mxu0  ;;  %v4649_v12 = vpop.f32.mrf.mxu1 }
 0x1bb   : > { %4809 = vst [vmem:[#allocation8_spill] sm:$0xff] %v4647_v23  ;;  %v3420_v62 = vadd.f32 %v3419_v43, %v3418_v24 }
 0x1bc   : > { %v3421_v0 = vpop.f32.mrf.mxu0  ;;  %v4651_v6 = vpop.f32.mrf.mxu1 }
 0x1bd   : > { %v4654_v39 = vadd.f32 %v3420_v62, %v4538_v7 }
 0x1be   : > { %v3422_v9 = vpop.f32.mrf.mxu0  ;;  %v4656_v8 = vpop.f32.mrf.mxu1 }
 0x1bf   : > { %4810 = vst [vmem:[#allocation9_spill] sm:$0xff] %v4654_v39  ;;  %v3423_v28 = vadd.f32 %v3422_v9, %v3421_v0 }
 0x1c0   : > { %v3424_v10 = vpop.f32.mrf.mxu0  ;;  %v4658_v11 = vpop.f32.mrf.mxu1 }
 0x1c1   : > { %v4661_v55 = vadd.f32 %v3423_v28, %v4545_v21  ;;  %v3457_v21 = vadd.f32 %v4586_v33, %v4581_v60 }
 0x1c2   : > { %v3425_v44 = vpop.f32.mrf.mxu0  ;;  %v4663_v23 = vpop.f32.mrf.mxu1 }
 0x1c3   : > { %4811 = vst [vmem:[#allocation10_spill] sm:$0xff] %v4661_v55  ;;  %v3426_v24 = vadd.f32 %v3425_v44, %v3424_v10 }
 0x1c4   : > { %v3427_v43 = vpop.f32.mrf.mxu0  ;;  %v4665_v40 = vpop.f32.mrf.mxu1 }
 0x1c5   : > { %v4668_v7 = vadd.f32 %v3426_v24, %v4552_v37  ;;  %v3460_v37 = vadd.f32 %v4593_v54, %v4588_v30  ;;  %v3469_v54 = vadd.f32 %v4614_v5, %v4609_v1  ;;  %v3466_v1 = vadd.f32 %v4607_v59, %v4602_v38 }
 0x1c6   : > { %v3428_v62 = vpop.f32.mrf.mxu0  ;;  %v4670_v39 = vpop.f32.mrf.mxu1 }
 0x1c7   : > { %4812 = vst [vmem:[#allocation11_spill] sm:$0xff] %v4668_v7  ;;  %v3429_v0 = vadd.f32 %v3428_v62, %v3427_v43  ;;  %v3454_v62 = vadd.f32 %v4579_v17, %v4571_v22 }
 0x1c8   : > { %v3430_v9 = vpop.f32.mrf.mxu0  ;;  %v4672_v58 = vpop.f32.mrf.mxu1 }
 0x1c9   : > { %v4677_v28 = vadd.f32 %v3429_v0, %v4559_v52  ;;  %v2183_v52 = vadd.f32 %v3457_v21, %v4478_v47  ;;  %v3463_v47 = vadd.f32 %v4600_v49, %v4595_v46 }
 0x1ca   : > { %v3431_v10 = vpop.f32.mrf.mxu0  ;;  %v4679_v44 = vpop.f32.mrf.mxu1 }
 0x1cb   : > { %4813 = vst [vmem:[#allocation12_spill] sm:$0xff] %v4677_v28  ;;  %v3432_v24 = vadd.f32 %v3431_v10, %v3430_v9  ;;  %v2186_v28 = vadd.f32 %v3460_v37, %v4485_v57  ;;  %v3472_v57 = vadd.f32 %v4621_v2, %v4616_v48  ;;  %v2199_v48 = vadd.f32 %v3469_v54, %v4506_v41 }
 0x1cc   : > { %v4683_v7 = vpop.f32.mrf.mxu1  ;;  %v3587_v43 = vpop.f32.mrf.mxu0  ;;  %v2194_v41 = vadd.f32 %v3466_v1, %v4499_v26  ;;  %v3475_v54 = vadd.f32 %v4628_v36, %v4623_v32 }
 0x1cd   : > { %v4688_v55 = vadd.f32 %v3432_v24, %v4566_v4  ;;  %v2344_v0 = vadd.f32 %v3587_v43, %v2183_v52  ;;  %v2178_v4 = vadd.f32 %v3454_v62, %v4471_v27  ;;  %v2191_v43 = vadd.f32 %v3463_v47, %v4492_v15 }
 0x1ce   : > { %v4691_v60 = vpop.f32.mrf.mxu1  ;;  %v2335_v33 = vpop.f32.mrf.mxu0  ;;  %v2202_v62 = vadd.f32 %v3472_v57, %v4513_v18  ;;  %v3484_v15 = vadd.f32 %v4649_v12, %v4644_v31  ;;  %v2207_v1 = vadd.f32 %v3475_v54, %v4520_v50  ;;  %v3496_v50 = vadd.f32 %v4679_v44, %v4672_v58 }
 0x1cf   : > { %v2336_v9 = vadd.f32 %v2335_v33, %v4577_v45  ;;  %v2464_v10 = vmax.f32 %v2344_v0, 0.0  ;;  %v3481_v0 = vadd.f32 %v4642_v56, %v4637_v14  ;;  %v3478_v14 = vadd.f32 %v4635_v53, %v4630_v63 }
 0x1d0   : > { %v4694_v25 = vpop.f32.mrf.mxu1  ;;  %v3588_v30 = vpop.f32.mrf.mxu0  ;;  %v2234_v44 = vadd.f32 %v3496_v50, %v4569_v35 }
 0x1d1   : > { %v2347_v22 = vadd.f32 %v3588_v30, %v2186_v28  ;;  %v2462_v46 = vmax.f32 %v2336_v9, 0.0  ;;  %v2215_v32 = vadd.f32 %v3481_v0, %v4534_v61  ;;  %v2210_v61 = vadd.f32 %v3478_v14, %v4527_v51 }
 0x1d2   : > { %v4703_v17 = vpop.f32.mrf.mxu1  ;;  %v2338_v21 = vpop.f32.mrf.mxu0 }
 0x1d3   : > { %v2465_v37 = vmax.f32 %v2347_v22, 0.0  ;;  %v2339_v24 = vadd.f32 %v2338_v21, %v2178_v4 }
 0x1d4   : > { %v4714_v27 = vpop.f32.mrf.mxu1  ;;  %v3591_v45 = vpop.f32.mrf.mxu0 }
 0x1d5   : > { %v3010_v49 = vpack.c.bf16 %v2465_v37, %v2464_v10  ;;  %v2463_v5 = vmax.f32 %v2339_v24, 0.0  ;;  %v2360_v59 = vadd.f32 %v3591_v45, %v2199_v48  ;;  %v2218_v45 = vadd.f32 %v3484_v15, %v4541_v3 }
 0x1d6   : > { %v4717_v2 = vpop.f32.mrf.mxu1  ;;  %v2351_v28 = vpop.f32.mrf.mxu0  ;;  %v3487_v48 = vadd.f32 %v4656_v8, %v4651_v6 }
 0x1d7   : > { %3082 = vst [vmem:[%s4712_s21 + $0x8] sm:$0xff] %v3010_v49   ;;  %v3005_v38 = vpack.c.bf16 %v2463_v5, %v2462_v46  ;;  %v2352_v30 = vadd.f32 %v2351_v28, %v2191_v43  ;;  %v2468_v18 = vmax.f32 %v2360_v59, 0.0  ;;  %v3493_v46 = vadd.f32 %v4670_v39, %v4665_v40 }
 0x1d8   : > { %v4722_v52 = vpop.f32.mrf.mxu1  ;;  %v3592_v33 = vpop.f32.mrf.mxu0  ;;  %v3490_v40 = vadd.f32 %v4663_v23, %v4658_v11  ;;  %v2223_v58 = vadd.f32 %v3487_v48, %v4548_v13  ;;  %v3505_v11 = vadd.f32 %v4717_v2, %v4714_v27 }
 0x1d9   : > { %3006 = vst [vmem:[%s4712_s21] sm:$0xff] %v3005_v38   ;;  %v2363_v9 = vadd.f32 %v3592_v33, %v2202_v62  ;;  %v2466_v26 = vmax.f32 %v2352_v30, 0.0  ;;  %v2231_v6 = vadd.f32 %v3493_v46, %v4562_v29  ;;  %v3499_v29 = vadd.f32 %v4691_v60, %v4683_v7 }
 0x1da   : > { %v3507_v22 = vpop.f32.mrf.mxu1  ;;  %v2354_v4 = vpop.f32.mrf.mxu0 }
 0x1db   : > { %v2469_v47 = vmax.f32 %v2363_v9, 0.0  ;;  %v2355_v21 = vadd.f32 %v2354_v4, %v2194_v41  ;;  %v3508_v13 = vadd.f32 %v3507_v22, %v4722_v52  ;;  %v2239_v52 = vadd.f32 %v3499_v29, %v4574_v16 }
 0x1dc   : > { %v4734_v56 = vpop.f32.mrf.mxu1  ;;  %v3595_v57 = vpop.f32.mrf.mxu0 }
 0x1dd   : > { %v3020_v10 = vpack.c.bf16 %v2469_v47, %v2468_v18  ;;  %v2467_v37 = vmax.f32 %v2355_v21, 0.0  ;;  %v2376_v12 = vadd.f32 %v3595_v57, %v2215_v32  ;;  %v2226_v18 = vadd.f32 %v3490_v40, %v4555_v19  ;;  %v4814_v40 = vld [vmem:[#allocation4_spill] sm:$0xff] }
 0x1de   : > { %v4737_v36 = vpop.f32.mrf.mxu1  ;;  %v2367_v24 = vpop.f32.mrf.mxu0  ;;  %v2247_v32 = vadd.f32 %v3505_v11, %v4591_v20  ;;  %v2250_v22 = vadd.f32 %v3508_v13, %v4598_v42 }
 0x1df   : > { %3084 = vst [vmem:[%s4712_s21 + $0x18] sm:$0xff] %v3020_v10   ;;  %v3015_v31 = vpack.c.bf16 %v2467_v37, %v2466_v26  ;;  %v2368_v49 = vadd.f32 %v2367_v24, %v2207_v1  ;;  %v2472_v3 = vmax.f32 %v2376_v12, 0.0  ;;  %v3502_v26 = vadd.f32 %v4703_v17, %v4694_v25 }
 0x1e0   : > { %v4742_v63 = vpop.f32.mrf.mxu1  ;;  %v3596_v53 = vpop.f32.mrf.mxu0  ;;  %v3511_v20 = vadd.f32 %v4737_v36, %v4734_v56 }
 0x1e1   : > { %3083 = vst [vmem:[%s4712_s21 + $0x10] sm:$0xff] %v3015_v31   ;;  %v2379_v5 = vadd.f32 %v3596_v53, %v2218_v45  ;;  %v2470_v33 = vmax.f32 %v2368_v49, 0.0  ;;  %v2242_v53 = vadd.f32 %v3502_v26, %v4584_v34 }
 0x1e2   : > { %v3513_v28 = vpop.f32.mrf.mxu1  ;;  %v2370_v38 = vpop.f32.mrf.mxu0 }
 0x1e3   : > { %v2473_v59 = vmax.f32 %v2379_v5, 0.0  ;;  %v2371_v43 = vadd.f32 %v2370_v38, %v2210_v61  ;;  %v3514_v42 = vadd.f32 %v3513_v28, %v4742_v63 }
 0x1e4   : > { %v3515_v39 = vpop.f32.mrf.mxu1  ;;  %v3599_v62 = vpop.f32.mrf.mxu0 }
 0x1e5   : > { %v3030_v51 = vpack.c.bf16 %v2473_v59, %v2472_v3  ;;  %v2471_v0 = vmax.f32 %v2371_v43, 0.0  ;;  %v2392_v41 = vadd.f32 %v3599_v62, %v2231_v6 }
 0x1e6   : > { %v3516_v8 = vpop.f32.mrf.mxu1  ;;  %v2383_v30 = vpop.f32.mrf.mxu0 }
 0x1e7   : > { %3086 = vst [vmem:[%s4712_s21 + $0x28] sm:$0xff] %v3030_v51   ;;  %v3025_v9 = vpack.c.bf16 %v2471_v0, %v2470_v33  ;;  %v2384_v23 = vadd.f32 %v2383_v30, %v2223_v58  ;;  %v2476_v14 = vmax.f32 %v2392_v41, 0.0  ;;  %v3517_v25 = vadd.f32 %v3516_v8, %v3515_v39  ;;  %v4815_v33 = vld [vmem:[#allocation2_spill] sm:$0xff]  ;;  %v4816_v0 = vld [vmem:[#allocation5_spill] sm:$0xff]  ;;  %v4817_v41 = vld [vmem:[#allocation3_spill] sm:$0xff] }
 0x1e8   : > { %v3518_v54 = vpop.f32.mrf.mxu1  ;;  %v3600_v4 = vpop.f32.mrf.mxu0  ;;  %v2255_v51 = vadd.f32 %v3511_v20, %v4815_v33  ;;  %v2258_v58 = vadd.f32 %v3514_v42, %v4817_v41  ;;  %v4824_v33 = vld [vmem:[#allocation11_spill] sm:$0xff] }
 0x1e9   : > { %3085 = vst [vmem:[%s4712_s21 + $0x20] sm:$0xff] %v3025_v9   ;;  %v2395_v15 = vadd.f32 %v3600_v4, %v2234_v44  ;;  %v2474_v10 = vmax.f32 %v2384_v23, 0.0  ;;  %v2263_v34 = vadd.f32 %v3517_v25, %v4814_v40 }
 0x1ea   : > { %v3519_v47 = vpop.f32.mrf.mxu1  ;;  %v2386_v21 = vpop.f32.mrf.mxu0 }
 0x1eb   : > { %v2477_v35 = vmax.f32 %v2395_v15, 0.0  ;;  %v2387_v57 = vadd.f32 %v2386_v21, %v2226_v18  ;;  %v3520_v5 = vadd.f32 %v3519_v47, %v3518_v54 }
 0x1ec   : > { %v3521_v27 = vpop.f32.mrf.mxu1  ;;  %v3603_v2 = vpop.f32.mrf.mxu0 }
 0x1ed   : > { %v3040_v37 = vpack.c.bf16 %v2477_v35, %v2476_v14  ;;  %v2475_v19 = vmax.f32 %v2387_v57, 0.0  ;;  %v2408_v31 = vadd.f32 %v3603_v2, %v2247_v32  ;;  %v2266_v6 = vadd.f32 %v3520_v5, %v4816_v0  ;;  %v4818_v57 = vld [vmem:[#allocation8_spill] sm:$0xff] }
 0x1ee   : > { %v3522_v7 = vpop.f32.mrf.mxu1  ;;  %v2399_v60 = vpop.f32.mrf.mxu0 }
 0x1ef   : > { %3088 = vst [vmem:[%s4712_s21 + $0x38] sm:$0xff] %v3040_v37   ;;  %v3035_v24 = vpack.c.bf16 %v2475_v19, %v2474_v10  ;;  %v2400_v17 = vadd.f32 %v2399_v60, %v2239_v52  ;;  %v2480_v61 = vmax.f32 %v2408_v31, 0.0  ;;  %v3523_v44 = vadd.f32 %v3522_v7, %v3521_v27  ;;  %v4819_v19 = vld [vmem:[#allocation6_spill] sm:$0xff]  ;;  %v4820_v7 = vld [vmem:[#allocation9_spill] sm:$0xff] }
 0x1f0   : > { %v3524_v12 = vpop.f32.mrf.mxu1  ;;  %v3604_v1 = vpop.f32.mrf.mxu0 }
 0x1f1   : > { %3087 = vst [vmem:[%s4712_s21 + $0x30] sm:$0xff] %v3035_v24   ;;  %v2411_v45 = vadd.f32 %v3604_v1, %v2250_v22  ;;  %v2478_v3 = vmax.f32 %v2400_v17, 0.0  ;;  %v2271_v32 = vadd.f32 %v3523_v44, %v4819_v19 }
 0x1f2   : > { %v3525_v46 = vpop.f32.mrf.mxu1  ;;  %v2402_v49 = vpop.f32.mrf.mxu0 }
 0x1f3   : > { %v2481_v48 = vmax.f32 %v2411_v45, 0.0  ;;  %v2403_v16 = vadd.f32 %v2402_v49, %v2242_v53  ;;  %v3526_v29 = vadd.f32 %v3525_v46, %v3524_v12  ;;  %v4821_v12 = vld [vmem:[#allocation7_spill] sm:$0xff] }
 0x1f4   : > { %v3527_v38 = vpop.f32.mrf.mxu1  ;;  %v3607_v50 = vpop.f32.mrf.mxu0 }
 0x1f5   : > { %v3050_v59 = vpack.c.bf16 %v2481_v48, %v2480_v61  ;;  %v2479_v43 = vmax.f32 %v2403_v16, 0.0  ;;  %v2424_v36 = vadd.f32 %v3607_v50, %v2263_v34  ;;  %v2274_v1 = vadd.f32 %v3526_v29, %v4821_v12 }
 0x1f6   : > { %v3528_v39 = vpop.f32.mrf.mxu1  ;;  %v2415_v62 = vpop.f32.mrf.mxu0 }
 0x1f7   : > { %3090 = vst [vmem:[%s4712_s21 + $0x48] sm:$0xff] %v3050_v59   ;;  %v3045_v56 = vpack.c.bf16 %v2479_v43, %v2478_v3  ;;  %v3529_v63 = vadd.f32 %v3528_v39, %v3527_v38  ;;  %v2416_v28 = vadd.f32 %v2415_v62, %v2255_v51  ;;  %v2484_v11 = vmax.f32 %v2424_v36, 0.0  ;;  %v4822_v43 = vld [vmem:[#allocation10_spill] sm:$0xff]  ;;  %v4823_v62 = vld [vmem:[#allocation12_spill] sm:$0xff] }
 0x1f8   : > { %v3530_v8 = vpop.f32.mrf.mxu1  ;;  %v3608_v30 = vpop.f32.mrf.mxu0 }
 0x1f9   : > { %3089 = vst [vmem:[%s4712_s21 + $0x40] sm:$0xff] %v3045_v56   ;;  %v2427_v9 = vadd.f32 %v3608_v30, %v2266_v6  ;;  %v2482_v13 = vmax.f32 %v2416_v28, 0.0  ;;  %v2279_v26 = vadd.f32 %v3529_v63, %v4818_v57 }
 0x1fa   : > { %v3531_v54 = vpop.f32.mrf.mxu1  ;;  %v2418_v4 = vpop.f32.mrf.mxu0 }
 0x1fb   : > { %v2485_v23 = vmax.f32 %v2427_v9, 0.0  ;;  %v3532_v15 = vadd.f32 %v3531_v54, %v3530_v8  ;;  %v2419_v18 = vadd.f32 %v2418_v4, %v2258_v58 }
 0x1fc   : > { %v3533_v47 = vpop.f32.mrf.mxu1  ;;  %v3611_v21 = vpop.f32.mrf.mxu0 }
 0x1fd   : > { %v3060_v14 = vpack.c.bf16 %v2485_v23, %v2484_v11  ;;  %v2483_v35 = vmax.f32 %v2419_v18, 0.0  ;;  %v2440_v37 = vadd.f32 %v3611_v21, %v2279_v26  ;;  %v2282_v60 = vadd.f32 %v3532_v15, %v4820_v7 }
 0x1fe   : > { %v3534_v2 = vpop.f32.mrf.mxu1  ;;  %v2431_v10 = vpop.f32.mrf.mxu0 }
 0x1ff   : > { %3092 = vst [vmem:[%s4712_s21 + $0x58] sm:$0xff] %v3060_v14   ;;  %v3055_v27 = vpack.c.bf16 %v2483_v35, %v2482_v13  ;;  %v2432_v52 = vadd.f32 %v2431_v10, %v2271_v32  ;;  %v2488_v45 = vmax.f32 %v2440_v37, 0.0  ;;  %v3535_v53 = vadd.f32 %v3534_v2, %v3533_v47 }
 0x200   : > { %v3536_v24 = vpop.f32.mrf.mxu1  ;;  %v3612_v31 = vpop.f32.mrf.mxu0 }
 0x201   : > { %3091 = vst [vmem:[%s4712_s21 + $0x50] sm:$0xff] %v3055_v27   ;;  %v2443_v22 = vadd.f32 %v3612_v31, %v2282_v60  ;;  %v2486_v61 = vmax.f32 %v2432_v52, 0.0  ;;  %v2287_v40 = vadd.f32 %v3535_v53, %v4822_v43 }
 0x202   : > { %v3537_v25 = vpop.f32.mrf.mxu1  ;;  %v2434_v17 = vpop.f32.mrf.mxu0 }
 0x203   : > { %v2489_v20 = vmax.f32 %v2443_v22, 0.0  ;;  %v2435_v46 = vadd.f32 %v2434_v17, %v2274_v1  ;;  %v3538_v16 = vadd.f32 %v3537_v25, %v3536_v24 }
 0x204   : > { %v3539_v49 = vpop.f32.mrf.mxu1  ;;  %v3615_v5 = vpop.f32.mrf.mxu0 }
 0x205   : > { %v3070_v48 = vpack.c.bf16 %v2489_v20, %v2488_v45  ;;  %v2487_v42 = vmax.f32 %v2435_v46, 0.0  ;;  %v2290_v51 = vadd.f32 %v3538_v16, %v4824_v33 }
 0x206   : > { %v3540_v38 = vpop.f32.mrf.mxu1  ;;  %v2447_v50 = vpop.f32.mrf.mxu0 }
 0x207   : > { %3094 = vst [vmem:[%s4712_s21 + $0x68] sm:$0xff] %v3070_v48   ;;  %v3065_v3 = vpack.c.bf16 %v2487_v42, %v2486_v61  ;;  %v3541_v59 = vadd.f32 %v3540_v38, %v3539_v49  ;;  %v2448_v36 = vadd.f32 %v2447_v50, %v2287_v40 }
 0x208   : > { %v3542_v34 = vpop.f32.mrf.mxu1  ;;  %v3616_v39 = vpop.f32.mrf.mxu0 }
 0x209   : > { %3093 = vst [vmem:[%s4712_s21 + $0x60] sm:$0xff] %v3065_v3   ;;  %v2295_v56 = vadd.f32 %v3541_v59, %v4823_v62  ;;  %v2490_v28 = vmax.f32 %v2448_v36, 0.0 }
 0x20a   : > { %v3543_v0 = vpop.f32.mrf.mxu1  ;;  %v2450_v6 = vpop.f32.mrf.mxu0 }
 0x20b   : > { %v3544_v8 = vadd.f32 %v3543_v0, %v3542_v34  ;;  %v2451_v30 = vadd.f32 %v2450_v6, %v2290_v51  ;;  %v2456_v63 = vadd.f32 %v3615_v5, %v2295_v56 }
 0x20d   : > { %v2298_v9 = vadd.f32 %v3544_v8, %v4688_v55  ;;  %v2491_v41 = vmax.f32 %v2451_v30, 0.0  ;;  %v2492_v54 = vmax.f32 %v2456_v63, 0.0 }
 0x20f   : > { %v2459_v58 = vadd.f32 %v3616_v39, %v2298_v9  ;;  %v3075_v44 = vpack.c.bf16 %v2491_v41, %v2490_v28 }
 0x211   : > { %v2493_v4 = vmax.f32 %v2459_v58, 0.0  ;;  %3095 = vst [vmem:[%s4712_s21 + $0x70] sm:$0xff] %v3075_v44  }
 0x213   : > { %v3080_v11 = vpack.c.bf16 %v2493_v4, %v2492_v54 }
 0x215   : > { %3096 = vst [vmem:[%s4712_s21 + $0x78] sm:$0xff] %v3080_v11  }
 0x216 PF: > { %s13_s12 = sadd.s32 1, %s3928_s12  }
 0x217   : > { %p10_p4 = scmp.ge.s32.totalorder %s13_s12, 10  }
 0x219   :  { %12 = sbr.rel (!%p10_p4) target bundleno = 1 (0x1), region = 62 }

// kernel: mdenet_forward.35
= control target key start
LH: loop header
LB: loop body
LE: loop exit
PB: predicated region body
PF: predicated region fallthrough
CT: control target
= control target key end

     0   :  { %s5809_s12 = smov 0   ;;  %s7266_s0 = inlined_call_operand.vmem [shape: bf16[8192,1152], index: 0, kind: input, shape index: {}]   ;;  %s7267_s1 = inlined_call_operand.vmem [shape: bf16[1152,128], index: 1, kind: input, shape index: {}]   ;;  %s7268_s2 = inlined_call_operand.vmem [shape: f32[1,128], index: 2, kind: input, shape index: {}]   ;;  %s7269_s3 = inlined_call_operand.vmem [shape: bf16[8192,128], index: 3, kind: output, shape index: {}]  }
   0x1 LB: > { %s4438_s13 = sadd.s32 4294967295, %s5786_s12   ;;  %p4442_p0 = scmp.ge.s32.totalorder %s5786_s12, 1  ;;  %s5786_s12 = sphi %s5809_s12, %s13_s12  }
   0x2   : > { %p139_p1 = scmp.lt.s32.totalorder %s5786_s12, 17 }
   0x4   : > { %p140_p2 = pnand %p4442_p0, %p139_p1 }
   0x6   : > { %143 = sbr.rel (%p140_p2) target bundleno = 850 (0x352), region = 32 }
   0xb   : > { %v5291_v0 = vld [vmem:[%s7267_s1 + $0x38] sm:$0xff]   ;;  %v5788_v1 = vmov 0   ;;  %s4443_s16 = sshll.u32 %s4438_s13, 6  ;;  %v5292_v2 = vld [vmem:[%s7267_s1 + $0x30] sm:$0xff]   ;;  %v5293_v3 = vld [vmem:[%s7267_s1 + $0x28] sm:$0xff]  }
   0xc   : > { %2553 = vmatprep.subr.bf16.mxu0 %v5788_v1  ;;  %5249 = vmatprep.subr.bf16.mxu1 %v5788_v1  ;;  %p165_p3 = scmp.lt.s32.totalorder %s4443_s16, 1023  ;;  %v5294_v4 = vld [vmem:[%s7267_s1 + $0x20] sm:$0xff]   ;;  %v5295_v5 = vld [vmem:[%s7267_s1 + $0x18] sm:$0xff]   ;;  %v5296_v7 = vld [vmem:[%s7267_s1 + $0x10] sm:$0xff]  }
   0xd   : > { %2554 = vmatpush1.bf16.msra.mxu0 %v5291_v0  ;;  %5265 = vmatpush1.bf16.msra.mxu1 %v5291_v0  ;;  %v5297_v9 = vld [vmem:[%s7267_s1 + $0x8] sm:$0xff]   ;;  %v5298_v10 = vld [vmem:[%s7267_s1] sm:$0xff]   ;;  %v5299_v11 = vld [vmem:[%s7267_s1 + $0x78] sm:$0xff]  }
   0xe   : > { %2555 = vmatprep.subr.bf16.mxu0 %v5788_v1  ;;  %5250 = vmatprep.subr.bf16.mxu1 %v5788_v1  ;;  %s7369_s16 = smov (!%p165_p3, %s4443_s16), 1023  ;;  %v5300_v12 = vld [vmem:[%s7267_s1 + $0x70] sm:$0xff]   ;;  %v5301_v13 = vld [vmem:[%s7267_s1 + $0x68] sm:$0xff]   ;;  %v5302_v14 = vld [vmem:[%s7267_s1 + $0x60] sm:$0xff]  }
   0xf   : > { %s5281_s23 = smul.u32 36, %s7369_s16  ;;  %v5303_v15 = vld [vmem:[%s7267_s1 + $0x58] sm:$0xff]   ;;  %v5304_v16 = vld [vmem:[%s7267_s1 + $0x50] sm:$0xff]   ;;  %v5305_v17 = vld [vmem:[%s7267_s1 + $0x48] sm:$0xff]  }
  0x10   : > { %v5306_v18 = vld [vmem:[%s7267_s1 + $0x40] sm:$0xff]   ;;  %v5313_v21 = vld [vmem:[%s7267_s1 + $0xb8] sm:$0xff]   ;;  %v5315_v25 = vld [vmem:[%s7267_s1 + $0xb0] sm:$0xff]  }
  0x11   : > { %2556 = vmatpush1.bf16.msra.mxu0 %v5292_v2  ;;  %5266 = vmatpush1.bf16.msra.mxu1 %v5292_v2  ;;  %s5846_s28 = scalar_lea.vmem %s7266_s0, %s5281_s23  ;;  %v5314_v22 = vld [vmem:[%s7267_s1 + $0x138] sm:$0xff]   ;;  %v5324_v26 = vld [vmem:[%s7267_s1 + $0x130] sm:$0xff]   ;;  %v5322_v29 = vld [vmem:[%s7267_s1 + $0xa8] sm:$0xff]  }
  0x12   : > { %2557 = vmatprep.subr.bf16.mxu0 %v5788_v1  ;;  %5251 = vmatprep.subr.bf16.mxu1 %v5788_v1  ;;  %v5309_v6 = vld [vmem:[%s5846_s28 + $0x4] ss:$36 sps:$4 sm:$0xff]   ;;  %v5316_v23 = vld [vmem:[%s5846_s28 + $0x4c] ss:$36 sps:$4 sm:$0xff]   ;;  %v5325_v30 = vld [vmem:[%s5846_s28 + $0x94] ss:$36 sps:$4 sm:$0xff]  }
  0x13   : > { %v5312_v8 = vld [vmem:[%s5846_s28 + $0x6c4] ss:$36 sps:$4 sm:$0xff]   ;;  %2585 = vmatprep.mubr.bf16.mxu0 %v5309_v6  ;;  %v5318_v24 = vld [vmem:[%s5846_s28 + $0x70c] ss:$36 sps:$4 sm:$0xff]   ;;  %v5327_v31 = vld [vmem:[%s5846_s28 + $0x754] ss:$36 sps:$4 sm:$0xff]  }
  0x14   : > { %2777 = vmatprep.mubr.bf16.mxu1 %v5312_v8  ;;  %v5307_v19 = vld [vmem:[%s5846_s28] ss:$36 sps:$4 sm:$0xff]   ;;  %v5320_v27 = vld [vmem:[%s5846_s28 + $0x48] ss:$36 sps:$4 sm:$0xff]   ;;  %v5329_v34 = vld [vmem:[%s5846_s28 + $0x90] ss:$36 sps:$4 sm:$0xff]  }
  0x15   : > { %2558 = vmatpush1.bf16.msra.mxu0 %v5293_v3  ;;  %5267 = vmatpush1.bf16.msra.mxu1 %v5293_v3  ;;  %v5310_v20 = vld [vmem:[%s5846_s28 + $0x6c0] ss:$36 sps:$4 sm:$0xff]   ;;  %v5321_v28 = vld [vmem:[%s5846_s28 + $0x708] ss:$36 sps:$4 sm:$0xff]   ;;  %v5330_v35 = vld [vmem:[%s5846_s28 + $0x750] ss:$36 sps:$4 sm:$0xff]  }
  0x16   : > { %2559 = vmatprep.subr.bf16.mxu0 %v5788_v1  ;;  %5252 = vmatprep.subr.bf16.mxu1 %v5788_v1  ;;  %v5340_v32 = vld [vmem:[%s7267_s1 + $0x128] sm:$0xff]   ;;  %v5323_v33 = vld [vmem:[%s7267_s1 + $0xa0] sm:$0xff]   ;;  %v5331_v37 = vld [vmem:[%s7267_s1 + $0x98] sm:$0xff]  }
  0x17   : > { %v5350_v36 = vld [vmem:[%s7267_s1 + $0x120] sm:$0xff]   ;;  %v5366_v40 = vld [vmem:[%s7267_s1 + $0x118] sm:$0xff]   ;;  %v5332_v41 = vld [vmem:[%s7267_s1 + $0x90] sm:$0xff]  }
  0x18   : > { %v5333_v38 = vld [vmem:[%s5846_s28 + $0xdc] ss:$36 sps:$4 sm:$0xff]   ;;  %v5339_v44 = vld [vmem:[%s7267_s1 + $0x88] sm:$0xff]   ;;  %v5376_v47 = vld [vmem:[%s7267_s1 + $0x110] sm:$0xff]  }
  0x19   : > { %2560 = vmatpush1.bf16.msra.mxu0 %v5294_v4  ;;  %5268 = vmatpush1.bf16.msra.mxu1 %v5294_v4  ;;  %v5335_v39 = vld [vmem:[%s5846_s28 + $0x79c] ss:$36 sps:$4 sm:$0xff]   ;;  %v5342_v45 = vld [vmem:[%s5846_s28 + $0x124] ss:$36 sps:$4 sm:$0xff]   ;;  %v5351_v53 = vld [vmem:[%s5846_s28 + $0x16c] ss:$36 sps:$4 sm:$0xff]  }
  0x1a   : > { %2561 = vmatprep.subr.bf16.mxu0 %v5788_v1  ;;  %5253 = vmatprep.subr.bf16.mxu1 %v5788_v1  ;;  %v5337_v42 = vld [vmem:[%s5846_s28 + $0xd8] ss:$36 sps:$4 sm:$0xff]   ;;  %v5344_v46 = vld [vmem:[%s5846_s28 + $0x7e4] ss:$36 sps:$4 sm:$0xff]   ;;  %v5353_v54 = vld [vmem:[%s5846_s28 + $0x82c] ss:$36 sps:$4 sm:$0xff]  }
  0x1b   : > { %v5338_v43 = vld [vmem:[%s5846_s28 + $0x798] ss:$36 sps:$4 sm:$0xff]   ;;  %v5341_v48 = vld [vmem:[%s7267_s1 + $0x80] sm:$0xff]   ;;  %v5390_v51 = vld [vmem:[%s7267_s1 + $0x108] sm:$0xff]  }
  0x1c   : > { %v5346_v49 = vld [vmem:[%s5846_s28 + $0x120] ss:$36 sps:$4 sm:$0xff]   ;;  %v5348_v52 = vld [vmem:[%s7267_s1 + $0xf8] sm:$0xff]   ;;  %v5349_v56 = vld [vmem:[%s7267_s1 + $0xf0] sm:$0xff]  }
  0x1d   : > { %2562 = vmatpush1.bf16.msra.mxu0 %v5295_v5  ;;  %5269 = vmatpush1.bf16.msra.mxu1 %v5295_v5  ;;  %v5347_v50 = vld [vmem:[%s5846_s28 + $0x7e0] ss:$36 sps:$4 sm:$0xff]   ;;  %v5355_v57 = vld [vmem:[%s5846_s28 + $0x168] ss:$36 sps:$4 sm:$0xff]   ;;  %v5359_v60 = vld [vmem:[%s5846_s28 + $0x1b4] ss:$36 sps:$4 sm:$0xff]  }
  0x1e   : > { %2563 = vmatprep.subr.bf16.mxu0 %v5788_v1  ;;  %5254 = vmatprep.subr.bf16.mxu1 %v5788_v1  ;;  %v5398_v55 = vld [vmem:[%s7267_s1 + $0x100] sm:$0xff]   ;;  %v5356_v58 = vld [vmem:[%s5846_s28 + $0x828] ss:$36 sps:$4 sm:$0xff]   ;;  %v5361_v61 = vld [vmem:[%s5846_s28 + $0x874] ss:$36 sps:$4 sm:$0xff]  }
  0x1f   : > { %v5357_v59 = vld [vmem:[%s7267_s1 + $0xe8] sm:$0xff]   ;;  %v5411_v62 = vld [vmem:[%s7267_s1 + $0x178] sm:$0xff]   ;;  %v5358_v63 = vld [vmem:[%s7267_s1 + $0xe0] sm:$0xff]  }
  0x20   : > { %v5363_v0 = vld [vmem:[%s5846_s28 + $0x1b0] ss:$36 sps:$4 sm:$0xff]   ;;  %v5365_v4 = vld [vmem:[%s7267_s1 + $0xd8] sm:$0xff]  }
  0x21   : > { %2564 = vmatpush1.bf16.msra.mxu0 %v5296_v7  ;;  %5270 = vmatpush1.bf16.msra.mxu1 %v5296_v7  ;;  %v5364_v2 = vld [vmem:[%s5846_s28 + $0x870] ss:$36 sps:$4 sm:$0xff]   ;;  %v5368_v5 = vld [vmem:[%s5846_s28 + $0x1fc] ss:$36 sps:$4 sm:$0xff]   ;;  %v5433_v7 = vld [vmem:[%s7267_s1 + $0x168] sm:$0xff]  }
  0x22   : > { %2565 = vmatprep.subr.bf16.mxu0 %v5788_v1  ;;  %5255 = vmatprep.subr.bf16.mxu1 %v5788_v1  ;;  %v5419_v3 = vld [vmem:[%s7267_s1 + $0x170] sm:$0xff]   ;;  %v5370_v6 = vld [vmem:[%s5846_s28 + $0x8bc] ss:$36 sps:$4 sm:$0xff]  }
  0x23   : > { %v5367_v8 = vld [vmem:[%s7267_s1 + $0xd0] sm:$0xff]  }
  0x25   : > { %2566 = vmatpush1.bf16.msra.mxu0 %v5297_v9  ;;  %5271 = vmatpush1.bf16.msra.mxu1 %v5297_v9  ;;  %v5372_v9 = vld [vmem:[%s5846_s28 + $0x1f8] ss:$36 sps:$4 sm:$0xff]  }
  0x26   : > { %2567 = vmatprep.subr.bf16.mxu0 %v5788_v1  ;;  %5256 = vmatprep.subr.bf16.mxu1 %v5788_v1 }
  0x29   : > { %2568 = vmatpush1.bf16.msra.mxu0 %v5298_v10  ;;  %5272 = vmatpush1.bf16.msra.mxu1 %v5298_v10  ;;  %v5373_v10 = vld [vmem:[%s5846_s28 + $0x8b8] ss:$36 sps:$4 sm:$0xff]  }
  0x2a   : > { %2569 = vmatprep.subr.bf16.mxu0 %v5788_v1  ;;  %5257 = vmatprep.subr.bf16.mxu1 %v5788_v1 }
  0x2d   : > { %2570 = vmatpush2.bf16.msra.mxu0 %v5299_v11  ;;  %5273 = vmatpush2.bf16.msra.mxu1 %v5299_v11  ;;  %v5374_v11 = vld [vmem:[%s7267_s1 + $0xc8] sm:$0xff]  }
  0x2e   : > { %2571 = vmatprep.subr.bf16.mxu0 %v5788_v1  ;;  %5258 = vmatprep.subr.bf16.mxu1 %v5788_v1 }
  0x31   : > { %2572 = vmatpush2.bf16.msra.mxu0 %v5300_v12  ;;  %5274 = vmatpush2.bf16.msra.mxu1 %v5300_v12  ;;  %v5377_v12 = vld [vmem:[%s5846_s28 + $0x244] ss:$36 sps:$4 sm:$0xff]  }
  0x32   : > { %2573 = vmatprep.subr.bf16.mxu0 %v5788_v1  ;;  %5259 = vmatprep.subr.bf16.mxu1 %v5788_v1 }
  0x35   : > { %2574 = vmatpush2.bf16.msra.mxu0 %v5301_v13  ;;  %5275 = vmatpush2.bf16.msra.mxu1 %v5301_v13  ;;  %v5381_v13 = vld [vmem:[%s5846_s28 + $0xc] ss:$36 sps:$4 sm:$0xff]  }
  0x36   : > { %2575 = vmatprep.subr.bf16.mxu0 %v5788_v1  ;;  %5260 = vmatprep.subr.bf16.mxu1 %v5788_v1 }
  0x39   : > { %2576 = vmatpush2.bf16.msra.mxu0 %v5302_v14  ;;  %5276 = vmatpush2.bf16.msra.mxu1 %v5302_v14  ;;  %v5441_v14 = vld [vmem:[%s7267_s1 + $0x160] sm:$0xff]  }
  0x3a   : > { %2577 = vmatprep.subr.bf16.mxu0 %v5788_v1  ;;  %5261 = vmatprep.subr.bf16.mxu1 %v5788_v1 }
  0x3d   : > { %2578 = vmatpush2.bf16.msra.mxu0 %v5303_v15  ;;  %5277 = vmatpush2.bf16.msra.mxu1 %v5303_v15  ;;  %v5375_v15 = vld [vmem:[%s7267_s1 + $0xc0] sm:$0xff]  }
  0x3e   : > { %2579 = vmatprep.subr.bf16.mxu0 %v5788_v1  ;;  %5262 = vmatprep.subr.bf16.mxu1 %v5788_v1 }
  0x41   : > { %2580 = vmatpush2.bf16.msra.mxu0 %v5304_v16  ;;  %5278 = vmatpush2.bf16.msra.mxu1 %v5304_v16  ;;  %v5454_v16 = vld [vmem:[%s7267_s1 + $0x158] sm:$0xff]  }
  0x42   : > { %2581 = vmatprep.subr.bf16.mxu0 %v5788_v1  ;;  %5263 = vmatprep.subr.bf16.mxu1 %v5788_v1 }
  0x45   : > { %2582 = vmatpush2.bf16.msra.mxu0 %v5305_v17  ;;  %5279 = vmatpush2.bf16.msra.mxu1 %v5305_v17  ;;  %v5379_v17 = vld [vmem:[%s5846_s28 + $0x8] ss:$36 sps:$4 sm:$0xff]  }
  0x46   : > { %2583 = vmatprep.subr.bf16.mxu0 %v5788_v1  ;;  %5264 = vmatprep.subr.bf16.mxu1 %v5788_v1 }
  0x49   : > { %2584 = vmatpush2.bf16.msra.mxu0 %v5306_v18  ;;  %5280 = vmatpush2.bf16.msra.mxu1 %v5306_v18  ;;  %v5382_v18 = vld [vmem:[%s5846_s28 + $0x240] ss:$36 sps:$4 sm:$0xff]  }
  0x4a   : > { %2842 = vmatprep.subr.bf16.mxu1 %v5788_v1  ;;  %3131 = vmatprep.subr.bf16.mxu0 %v5788_v1 }
  0x4c   : > { %2586 = vmatmul.mubr.bf16.vlgmr.msra.gmra.mxu0 %v5307_v19  ;;  %2778 = vmatmul.mubr.bf16.vlgmr.msra.gmra.mxu1 %v5310_v20  ;;  %v5383_v19 = vld [vmem:[%s7267_s1 + $0x1b8] sm:$0xff]   ;;  %v5384_v20 = vld [vmem:[%s5846_s28 + $0x28c] ss:$36 sps:$4 sm:$0xff]  }
  0x4d   : > { %2843 = vmatpush1.bf16.msra.mxu1 %v5313_v21  ;;  %3132 = vmatpush1.bf16.msra.mxu0 %v5314_v22  ;;  %v5386_v21 = vld [vmem:[%s5846_s28 + $0x54] ss:$36 sps:$4 sm:$0xff]  }
  0x4e   : > { %2844 = vmatprep.subr.bf16.mxu1 %v5788_v1  ;;  %2593 = vmatprep.mubr.bf16.mxu0 %v5316_v23  ;;  %v5462_v22 = vld [vmem:[%s7267_s1 + $0x150] sm:$0xff]  }
  0x4f   : > { %2785 = vmatprep.mubr.bf16.mxu1 %v5318_v24  ;;  %3133 = vmatprep.subr.bf16.mxu0 %v5788_v1  ;;  %v5397_v23 = vld [vmem:[%s7267_s1 + $0x1b0] sm:$0xff]   ;;  %v5388_v24 = vld [vmem:[%s5846_s28 + $0x288] ss:$36 sps:$4 sm:$0xff]  }
  0x51   : > { %2845 = vmatpush1.bf16.msra.mxu1 %v5315_v25  ;;  %3134 = vmatpush1.bf16.msra.mxu0 %v5324_v26  ;;  %v5389_v25 = vld [vmem:[%s5846_s28 + $0x50] ss:$36 sps:$4 sm:$0xff]  }
  0x52   : > { %2846 = vmatprep.subr.bf16.mxu1 %v5788_v1  ;;  %3135 = vmatprep.subr.bf16.mxu0 %v5788_v1  ;;  %v5391_v26 = vld [vmem:[%s5846_s28 + $0x2d4] ss:$36 sps:$4 sm:$0xff]  }
  0x54   : > { %2594 = vmatmul.mubr.bf16.gmra.mxu0 %v5320_v27  ;;  %2786 = vmatmul.mubr.bf16.gmra.mxu1 %v5321_v28  ;;  %v5393_v27 = vld [vmem:[%s5846_s28 + $0x9c] ss:$36 sps:$4 sm:$0xff]   ;;  %v5412_v28 = vld [vmem:[%s7267_s1 + $0x1a8] sm:$0xff]  }
  0x55   : > { %2847 = vmatpush1.bf16.msra.mxu1 %v5322_v29  ;;  %2601 = vmatprep.mubr.bf16.mxu0 %v5325_v30  ;;  %v5476_v29 = vld [vmem:[%s7267_s1 + $0x148] sm:$0xff]   ;;  %v5426_v30 = vld [vmem:[%s7267_s1 + $0x1a0] sm:$0xff]  }
  0x56   : > { %2848 = vmatprep.subr.bf16.mxu1 %v5788_v1  ;;  %2793 = vmatprep.mubr.bf16.mxu1 %v5327_v31  ;;  %v5484_v31 = vld [vmem:[%s7267_s1 + $0x140] sm:$0xff]  }
  0x57   : > { %3136 = vmatpush1.bf16.msra.mxu0 %v5340_v32  ;;  %v6092_v32 = vld [vmem:[%s7267_s1 + $0x238] sm:$0xff]  }
  0x58   : > { %3137 = vmatprep.subr.bf16.mxu0 %v5788_v1 }
  0x59   : > { %2849 = vmatpush1.bf16.msra.mxu1 %v5323_v33  ;;  %v5395_v33 = vld [vmem:[%s5846_s28 + $0x2d0] ss:$36 sps:$4 sm:$0xff]  }
  0x5a   : > { %2850 = vmatprep.subr.bf16.mxu1 %v5788_v1 }
  0x5b   : > { %3138 = vmatpush1.bf16.msra.mxu0 %v5350_v36  ;;  %v5401_v36 = vld [vmem:[%s5846_s28 + $0xe4] ss:$36 sps:$4 sm:$0xff]  }
  0x5c   : > { %2602 = vmatmul.mubr.bf16.gmra.mxu0 %v5329_v34  ;;  %2794 = vmatmul.mubr.bf16.gmra.mxu1 %v5330_v35  ;;  %v5396_v34 = vld [vmem:[%s5846_s28 + $0x98] ss:$36 sps:$4 sm:$0xff]  }
  0x5d   : > { %2851 = vmatpush1.bf16.msra.mxu1 %v5331_v37  ;;  %2609 = vmatprep.mubr.bf16.mxu0 %v5333_v38  ;;  %v5399_v35 = vld [vmem:[%s5846_s28 + $0x31c] ss:$36 sps:$4 sm:$0xff]   ;;  %v5455_v38 = vld [vmem:[%s7267_s1 + $0x190] sm:$0xff]  }
  0x5e   : > { %2852 = vmatprep.subr.bf16.mxu1 %v5788_v1  ;;  %2801 = vmatprep.mubr.bf16.mxu1 %v5335_v39  ;;  %v5440_v37 = vld [vmem:[%s7267_s1 + $0x198] sm:$0xff]  }
  0x5f   : > { %3139 = vmatprep.subr.bf16.mxu0 %v5788_v1  ;;  %v5403_v39 = vld [vmem:[%s5846_s28 + $0x318] ss:$36 sps:$4 sm:$0xff]  }
  0x60   : > { %3140 = vmatpush1.bf16.msra.mxu0 %v5366_v40  ;;  %v5404_v40 = vld [vmem:[%s5846_s28 + $0xe0] ss:$36 sps:$4 sm:$0xff]  }
  0x61   : > { %2853 = vmatpush1.bf16.msra.mxu1 %v5332_v41  ;;  %3141 = vmatprep.subr.bf16.mxu0 %v5788_v1  ;;  %v5405_v41 = vld [vmem:[%s5846_s28 + $0x364] ss:$36 sps:$4 sm:$0xff]  }
  0x62   : > { %2854 = vmatprep.subr.bf16.mxu1 %v5788_v1 }
  0x64   : > { %2610 = vmatmul.mubr.bf16.gmra.mxu0 %v5337_v42  ;;  %2802 = vmatmul.mubr.bf16.gmra.mxu1 %v5338_v43  ;;  %v5407_v42 = vld [vmem:[%s5846_s28 + $0x12c] ss:$36 sps:$4 sm:$0xff]  }
  0x65   : > { %2855 = vmatpush1.bf16.msra.mxu1 %v5339_v44  ;;  %2617 = vmatprep.mubr.bf16.mxu0 %v5342_v45  ;;  %v5469_v43 = vld [vmem:[%s7267_s1 + $0x188] sm:$0xff]   ;;  %v5483_v44 = vld [vmem:[%s7267_s1 + $0x180] sm:$0xff]  }
  0x66   : > { %2856 = vmatprep.subr.bf16.mxu1 %v5788_v1  ;;  %2809 = vmatprep.mubr.bf16.mxu1 %v5344_v46  ;;  %v5409_v45 = vld [vmem:[%s5846_s28 + $0x360] ss:$36 sps:$4 sm:$0xff]   ;;  %v5410_v46 = vld [vmem:[%s5846_s28 + $0x128] ss:$36 sps:$4 sm:$0xff]  }
  0x67   : > { %3142 = vmatpush1.bf16.msra.mxu0 %v5376_v47  ;;  %v5413_v47 = vld [vmem:[%s5846_s28 + $0x3ac] ss:$36 sps:$4 sm:$0xff]  }
  0x68   : > { %3143 = vmatprep.subr.bf16.mxu0 %v5788_v1 }
  0x69   : > { %2857 = vmatpush1.bf16.msra.mxu1 %v5341_v48  ;;  %v5415_v48 = vld [vmem:[%s5846_s28 + $0x174] ss:$36 sps:$4 sm:$0xff]  }
  0x6a   : > { %2858 = vmatprep.subr.bf16.mxu1 %v5788_v1 }
  0x6b   : > { %3144 = vmatpush1.bf16.msra.mxu0 %v5390_v51  ;;  %v5417_v51 = vld [vmem:[%s5846_s28 + $0x3a8] ss:$36 sps:$4 sm:$0xff]  }
  0x6c   : > { %2618 = vmatmul.mubr.bf16.gmra.mxu0 %v5346_v49  ;;  %2810 = vmatmul.mubr.bf16.gmra.mxu1 %v5347_v50  ;;  %v5498_v49 = vld [vmem:[%s7267_s1 + $0x1f8] sm:$0xff]   ;;  %v5511_v50 = vld [vmem:[%s7267_s1 + $0x1f0] sm:$0xff]  }
  0x6d   : > { %2859 = vmatpush2.bf16.msra.mxu1 %v5348_v52  ;;  %2625 = vmatprep.mubr.bf16.mxu0 %v5351_v53  ;;  %v5418_v52 = vld [vmem:[%s5846_s28 + $0x170] ss:$36 sps:$4 sm:$0xff]  }
  0x6e   : > { %2860 = vmatprep.subr.bf16.mxu1 %v5788_v1  ;;  %2817 = vmatprep.mubr.bf16.mxu1 %v5353_v54  ;;  %v5420_v53 = vld [vmem:[%s5846_s28 + $0x3f4] ss:$36 sps:$4 sm:$0xff]   ;;  %v5422_v54 = vld [vmem:[%s5846_s28 + $0x1bc] ss:$36 sps:$4 sm:$0xff]  }
  0x6f   : > { %3145 = vmatprep.subr.bf16.mxu0 %v5788_v1 }
  0x70   : > { %3146 = vmatpush1.bf16.msra.mxu0 %v5398_v55  ;;  %v5525_v55 = vld [vmem:[%s7267_s1 + $0x1e8] sm:$0xff]  }
  0x71   : > { %2861 = vmatpush2.bf16.msra.mxu1 %v5349_v56  ;;  %3147 = vmatprep.subr.bf16.mxu0 %v5788_v1  ;;  %v5424_v56 = vld [vmem:[%s5846_s28 + $0x3f0] ss:$36 sps:$4 sm:$0xff]  }
  0x72   : > { %2862 = vmatprep.subr.bf16.mxu1 %v5788_v1 }
  0x74   : > { %2626 = vmatmul.mubr.bf16.gmra.mxu0 %v5355_v57  ;;  %2818 = vmatmul.mubr.bf16.gmra.mxu1 %v5356_v58  ;;  %v5425_v57 = vld [vmem:[%s5846_s28 + $0x1b8] ss:$36 sps:$4 sm:$0xff]  }
  0x75   : > { %2863 = vmatpush2.bf16.msra.mxu1 %v5357_v59  ;;  %2633 = vmatprep.mubr.bf16.mxu0 %v5359_v60  ;;  %v5427_v58 = vld [vmem:[%s5846_s28 + $0x43c] ss:$36 sps:$4 sm:$0xff]   ;;  %v5429_v59 = vld [vmem:[%s5846_s28 + $0x204] ss:$36 sps:$4 sm:$0xff]  }
  0x76   : > { %2864 = vmatprep.subr.bf16.mxu1 %v5788_v1  ;;  %2825 = vmatprep.mubr.bf16.mxu1 %v5361_v61  ;;  %v5538_v60 = vld [vmem:[%s7267_s1 + $0x1e0] sm:$0xff]   ;;  %v5431_v61 = vld [vmem:[%s5846_s28 + $0x438] ss:$36 sps:$4 sm:$0xff]  }
  0x77   : > { %3148 = vmatpush2.bf16.msra.mxu0 %v5411_v62  ;;  %v5432_v62 = vld [vmem:[%s5846_s28 + $0x200] ss:$36 sps:$4 sm:$0xff]  }
  0x78   : > { %3149 = vmatprep.subr.bf16.mxu0 %v5788_v1 }
  0x79   : > { %2865 = vmatpush2.bf16.msra.mxu1 %v5358_v63  ;;  %v5434_v63 = vld [vmem:[%s5846_s28 + $0x484] ss:$36 sps:$4 sm:$0xff]  }
  0x7a   : > { %2866 = vmatprep.subr.bf16.mxu1 %v5788_v1 }
  0x7b   : > { %3150 = vmatpush2.bf16.msra.mxu0 %v5419_v3  ;;  %v5439_v3 = vld [vmem:[%s5846_s28 + $0x248] ss:$36 sps:$4 sm:$0xff]  }
  0x7c   : > { %2634 = vmatmul.mubr.bf16.gmra.mxu0 %v5363_v0  ;;  %2826 = vmatmul.mubr.bf16.gmra.mxu1 %v5364_v2  ;;  %v5436_v0 = vld [vmem:[%s5846_s28 + $0x24c] ss:$36 sps:$4 sm:$0xff]   ;;  %v5438_v2 = vld [vmem:[%s5846_s28 + $0x480] ss:$36 sps:$4 sm:$0xff]  }
  0x7d   : > { %2867 = vmatpush2.bf16.msra.mxu1 %v5365_v4  ;;  %2641 = vmatprep.mubr.bf16.mxu0 %v5368_v5  ;;  %v5442_v4 = vld [vmem:[%s5846_s28 + $0x4cc] ss:$36 sps:$4 sm:$0xff]   ;;  %v5444_v5 = vld [vmem:[%s5846_s28 + $0x294] ss:$36 sps:$4 sm:$0xff]  }
  0x7e   : > { %2868 = vmatprep.subr.bf16.mxu1 %v5788_v1  ;;  %2833 = vmatprep.mubr.bf16.mxu1 %v5370_v6  ;;  %v5552_v6 = vld [vmem:[%s7267_s1 + $0x1d8] sm:$0xff]  }
  0x7f   : > { %3151 = vmatprep.subr.bf16.mxu0 %v5788_v1 }
  0x80   : > { %3152 = vmatpush2.bf16.msra.mxu0 %v5433_v7  ;;  %v5446_v7 = vld [vmem:[%s5846_s28 + $0x4c8] ss:$36 sps:$4 sm:$0xff]  }
  0x81   : > { %2869 = vmatpush2.bf16.msra.mxu1 %v5367_v8  ;;  %3153 = vmatprep.subr.bf16.mxu0 %v5788_v1  ;;  %v5447_v8 = vld [vmem:[%s5846_s28 + $0x290] ss:$36 sps:$4 sm:$0xff]  }
  0x82   : > { %2870 = vmatprep.subr.bf16.mxu1 %v5788_v1 }
  0x84   : > { %2642 = vmatmul.mubr.bf16.gmra.mxu0 %v5372_v9  ;;  %2834 = vmatmul.mubr.bf16.gmra.mxu1 %v5373_v10  ;;  %v5448_v9 = vld [vmem:[%s5846_s28 + $0x514] ss:$36 sps:$4 sm:$0xff]   ;;  %v5450_v10 = vld [vmem:[%s5846_s28 + $0x2dc] ss:$36 sps:$4 sm:$0xff]  }
  0x85   : > { %2871 = vmatpush2.bf16.msra.mxu1 %v5374_v11  ;;  %2649 = vmatprep.mubr.bf16.mxu0 %v5377_v12  ;;  %v5452_v11 = vld [vmem:[%s5846_s28 + $0x510] ss:$36 sps:$4 sm:$0xff]   ;;  %v5453_v12 = vld [vmem:[%s5846_s28 + $0x2d8] ss:$36 sps:$4 sm:$0xff]  }
  0x86   : > { %2872 = vmatprep.subr.bf16.mxu1 %v5788_v1  ;;  %2874 = vmatprep.mubr.bf16.mxu1 %v5381_v13  ;;  %v5456_v13 = vld [vmem:[%s5846_s28 + $0x55c] ss:$36 sps:$4 sm:$0xff]  }
  0x87   : > { %3154 = vmatpush2.bf16.msra.mxu0 %v5441_v14  ;;  %v5458_v14 = vld [vmem:[%s5846_s28 + $0x324] ss:$36 sps:$4 sm:$0xff]  }
  0x88   : > { %3155 = vmatprep.subr.bf16.mxu0 %v5788_v1 }
  0x89   : > { %2873 = vmatpush2.bf16.msra.mxu1 %v5375_v15  ;;  %v5565_v15 = vld [vmem:[%s7267_s1 + $0x1d0] sm:$0xff]  }
  0x8a   : > { %3420 = vmatprep.subr.bf16.mxu1 %v5788_v1 }
  0x8b   : > { %3156 = vmatpush2.bf16.msra.mxu0 %v5454_v16  ;;  %v5460_v16 = vld [vmem:[%s5846_s28 + $0x558] ss:$36 sps:$4 sm:$0xff]  }
  0x8c   : > { %2650 = vmatmul.mubr.bf16.gmra.mxu0 %v5382_v18  ;;  %2875 = vmatmul.mubr.bf16.vlgmr.msra.gmra.mxu1 %v5379_v17  ;;  %v5461_v17 = vld [vmem:[%s5846_s28 + $0x320] ss:$36 sps:$4 sm:$0xff]  }
  0x8d   : > { %3421 = vmatpush1.bf16.msra.mxu1 %v5383_v19  ;;  %2657 = vmatprep.mubr.bf16.mxu0 %v5384_v20  ;;  %v5463_v18 = vld [vmem:[%s5846_s28 + $0x5a4] ss:$36 sps:$4 sm:$0xff]   ;;  %v5465_v19 = vld [vmem:[%s5846_s28 + $0x36c] ss:$36 sps:$4 sm:$0xff]  }
  0x8e   : > { %2882 = vmatprep.mubr.bf16.mxu1 %v5386_v21  ;;  %3422 = vmatprep.subr.bf16.mxu1 %v5788_v1  ;;  %v5467_v20 = vld [vmem:[%s5846_s28 + $0x5a0] ss:$36 sps:$4 sm:$0xff]   ;;  %v5468_v21 = vld [vmem:[%s5846_s28 + $0x368] ss:$36 sps:$4 sm:$0xff]  }
  0x8f   : > { %3157 = vmatprep.subr.bf16.mxu0 %v5788_v1 }
  0x90   : > { %3158 = vmatpush2.bf16.msra.mxu0 %v5462_v22  ;;  %v5470_v22 = vld [vmem:[%s5846_s28 + $0x5ec] ss:$36 sps:$4 sm:$0xff]  }
  0x91   : > { %3423 = vmatpush1.bf16.msra.mxu1 %v5397_v23  ;;  %3159 = vmatprep.subr.bf16.mxu0 %v5788_v1  ;;  %v5472_v23 = vld [vmem:[%s5846_s28 + $0x3b4] ss:$36 sps:$4 sm:$0xff]  }
  0x92   : > { %3424 = vmatprep.subr.bf16.mxu1 %v5788_v1 }
  0x94   : > { %2658 = vmatmul.mubr.bf16.gmra.mxu0 %v5388_v24  ;;  %2883 = vmatmul.mubr.bf16.gmra.mxu1 %v5389_v25  ;;  %v5579_v24 = vld [vmem:[%s7267_s1 + $0x1c8] sm:$0xff]  }
  0x95   : > { %2665 = vmatprep.mubr.bf16.mxu0 %v5391_v26  ;;  %2890 = vmatprep.mubr.bf16.mxu1 %v5393_v27  ;;  %v5474_v25 = vld [vmem:[%s5846_s28 + $0x5e8] ss:$36 sps:$4 sm:$0xff]   ;;  %v5475_v26 = vld [vmem:[%s5846_s28 + $0x3b0] ss:$36 sps:$4 sm:$0xff]  }
  0x96   : > { %3425 = vmatpush1.bf16.msra.mxu1 %v5412_v28  ;;  %3160 = vmatpush2.bf16.msra.mxu0 %v5476_v29  ;;  %v5477_v27 = vld [vmem:[%s5846_s28 + $0x634] ss:$36 sps:$4 sm:$0xff]   ;;  %v5479_v28 = vld [vmem:[%s5846_s28 + $0x3fc] ss:$36 sps:$4 sm:$0xff]  }
  0x97   : > { %3426 = vmatprep.subr.bf16.mxu1 %v5788_v1  ;;  %3161 = vmatprep.subr.bf16.mxu0 %v5788_v1  ;;  %v5481_v29 = vld [vmem:[%s5846_s28 + $0x630] ss:$36 sps:$4 sm:$0xff]  }
  0x9a   : > { %3427 = vmatpush1.bf16.msra.mxu1 %v5426_v30  ;;  %3162 = vmatpush2.bf16.msra.mxu0 %v5484_v31  ;;  %v5482_v30 = vld [vmem:[%s5846_s28 + $0x3f8] ss:$36 sps:$4 sm:$0xff]  }
  0x9b   : > { %3428 = vmatprep.subr.bf16.mxu1 %v5788_v1  ;;  %5169 = vmatprep.subr.bf16.mxu0 %v6092_v32  ;;  %v5485_v31 = vld [vmem:[%s5846_s28 + $0x67c] ss:$36 sps:$4 sm:$0xff]  }
  0x9c   : > { %2666 = vmatmul.mubr.bf16.gmra.mxu0 %v5395_v33  ;;  %2891 = vmatmul.mubr.bf16.gmra.mxu1 %v5396_v34  ;;  %v5487_v33 = vld [vmem:[%s5846_s28 + $0x444] ss:$36 sps:$4 sm:$0xff]   ;;  %v5489_v34 = vld [vmem:[%s5846_s28 + $0x678] ss:$36 sps:$4 sm:$0xff]  }
  0x9d   : > { %2673 = vmatprep.mubr.bf16.mxu0 %v5399_v35  ;;  %2898 = vmatprep.mubr.bf16.mxu1 %v5401_v36  ;;  %v5490_v35 = vld [vmem:[%s5846_s28 + $0x440] ss:$36 sps:$4 sm:$0xff]   ;;  %v5491_v36 = vld [vmem:[%s5846_s28 + $0x48c] ss:$36 sps:$4 sm:$0xff]  }
  0x9e   : > { %3429 = vmatpush1.bf16.msra.mxu1 %v5440_v37  ;;  %v5495_v37 = vld [vmem:[%s5846_s28 + $0x14] ss:$36 sps:$4 sm:$0xff]  }
  0x9f   : > { %3430 = vmatprep.subr.bf16.mxu1 %v5788_v1 }
  0xa2   : > { %3431 = vmatpush1.bf16.msra.mxu1 %v5455_v38  ;;  %v5493_v38 = vld [vmem:[%s5846_s28 + $0x10] ss:$36 sps:$4 sm:$0xff]  }
  0xa3   : > { %3432 = vmatprep.subr.bf16.mxu1 %v5788_v1 }
  0xa4   : > { %2674 = vmatmul.mubr.bf16.gmra.mxu0 %v5403_v39  ;;  %2899 = vmatmul.mubr.bf16.gmra.mxu1 %v5404_v40  ;;  %v5496_v39 = vld [vmem:[%s5846_s28 + $0x488] ss:$36 sps:$4 sm:$0xff]   ;;  %v5499_v40 = vld [vmem:[%s5846_s28 + $0x4d4] ss:$36 sps:$4 sm:$0xff]  }
  0xa5   : > { %2681 = vmatprep.mubr.bf16.mxu0 %v5405_v41  ;;  %2906 = vmatprep.mubr.bf16.mxu1 %v5407_v42  ;;  %v5501_v41 = vld [vmem:[%s5846_s28 + $0x5c] ss:$36 sps:$4 sm:$0xff]   ;;  %v5524_v42 = vld [vmem:[%s7267_s1 + $0x230] sm:$0xff]  }
  0xa6   : > { %3433 = vmatpush1.bf16.msra.mxu1 %v5469_v43 }
  0xa7   : > { %3434 = vmatprep.subr.bf16.mxu1 %v5788_v1 }
  0xaa   : > { %3435 = vmatpush1.bf16.msra.mxu1 %v5483_v44 }
  0xab   : > { %3436 = vmatprep.subr.bf16.mxu1 %v5788_v1 }
  0xac   : > { %2682 = vmatmul.mubr.bf16.gmra.mxu0 %v5409_v45  ;;  %2907 = vmatmul.mubr.bf16.gmra.mxu1 %v5410_v46 }
  0xad   : > { %2689 = vmatprep.mubr.bf16.mxu0 %v5413_v47  ;;  %2914 = vmatprep.mubr.bf16.mxu1 %v5415_v48  ;;  %v5551_v47 = vld [vmem:[%s7267_s1 + $0x228] sm:$0xff]  }
  0xae   : > { %3437 = vmatpush2.bf16.msra.mxu1 %v5498_v49 }
  0xaf   : > { %3438 = vmatprep.subr.bf16.mxu1 %v5788_v1 }
  0xb2   : > { %3439 = vmatpush2.bf16.msra.mxu1 %v5511_v50  ;;  %v5503_v50 = vld [vmem:[%s5846_s28 + $0x4d0] ss:$36 sps:$4 sm:$0xff]  }
  0xb3   : > { %3440 = vmatprep.subr.bf16.mxu1 %v5788_v1 }
  0xb4   : > { %2690 = vmatmul.mubr.bf16.gmra.mxu0 %v5417_v51  ;;  %2915 = vmatmul.mubr.bf16.gmra.mxu1 %v5418_v52  ;;  %v5504_v51 = vld [vmem:[%s5846_s28 + $0x58] ss:$36 sps:$4 sm:$0xff]  }
  0xb5   : > { %2697 = vmatprep.mubr.bf16.mxu0 %v5420_v53  ;;  %2922 = vmatprep.mubr.bf16.mxu1 %v5422_v54  ;;  %v5505_v52 = vld [vmem:[%s5846_s28 + $0x51c] ss:$36 sps:$4 sm:$0xff]   ;;  %v5507_v53 = vld [vmem:[%s5846_s28 + $0xa4] ss:$36 sps:$4 sm:$0xff]  }
  0xb6   : > { %3441 = vmatpush2.bf16.msra.mxu1 %v5525_v55  ;;  %v5578_v55 = vld [vmem:[%s7267_s1 + $0x220] sm:$0xff]  }
  0xb7   : > { %3442 = vmatprep.subr.bf16.mxu1 %v5788_v1 }
  0xba   : > { %3443 = vmatpush2.bf16.msra.mxu1 %v5538_v60  ;;  %v5605_v60 = vld [vmem:[%s7267_s1 + $0x218] sm:$0xff]  }
  0xbb   : > { %3444 = vmatprep.subr.bf16.mxu1 %v5788_v1 }
  0xbc   : > { %2698 = vmatmul.mubr.bf16.gmra.mxu0 %v5424_v56  ;;  %2923 = vmatmul.mubr.bf16.gmra.mxu1 %v5425_v57 }
  0xbd   : > { %2705 = vmatprep.mubr.bf16.mxu0 %v5427_v58  ;;  %2930 = vmatprep.mubr.bf16.mxu1 %v5429_v59 }
  0xbe   : > { %3445 = vmatpush2.bf16.msra.mxu1 %v5552_v6 }
  0xbf   : > { %3446 = vmatprep.subr.bf16.mxu1 %v5788_v1 }
  0xc2   : > { %3447 = vmatpush2.bf16.msra.mxu1 %v5565_v15  ;;  %v5523_v15 = vld [vmem:[%s5846_s28 + $0x134] ss:$36 sps:$4 sm:$0xff]  }
  0xc3   : > { %3448 = vmatprep.subr.bf16.mxu1 %v5788_v1 }
  0xc4   : > { %2706 = vmatmul.mubr.bf16.gmra.mxu0 %v5431_v61  ;;  %2931 = vmatmul.mubr.bf16.gmra.mxu1 %v5432_v62 }
  0xc5   : > { %2713 = vmatprep.mubr.bf16.mxu0 %v5434_v63  ;;  %2938 = vmatprep.mubr.bf16.mxu1 %v5436_v0  ;;  %v5509_v63 = vld [vmem:[%s5846_s28 + $0x518] ss:$36 sps:$4 sm:$0xff]   ;;  %v5510_v0 = vld [vmem:[%s5846_s28 + $0xa0] ss:$36 sps:$4 sm:$0xff]  }
  0xc6   : > { %3449 = vmatpush2.bf16.msra.mxu1 %v5579_v24  ;;  %v5518_v24 = vld [vmem:[%s5846_s28 + $0x5a8] ss:$36 sps:$4 sm:$0xff]  }
  0xc7   : > { %3450 = vmatprep.subr.bf16.mxu1 %v5788_v1  ;;  %v5592_v1 = vld [vmem:[%s7267_s1 + $0x1c0] sm:$0xff]  }
  0xca   : > { %3451 = vmatpush2.bf16.msra.mxu1 %v5592_v1 }
  0xcc   : > { %2714 = vmatmul.mubr.bf16.gmra.mxu0 %v5438_v2  ;;  %2939 = vmatmul.mubr.bf16.gmra.mxu1 %v5439_v3  ;;  %v5512_v2 = vld [vmem:[%s5846_s28 + $0x564] ss:$36 sps:$4 sm:$0xff]   ;;  %v5514_v3 = vld [vmem:[%s5846_s28 + $0xec] ss:$36 sps:$4 sm:$0xff]  }
  0xcd   : > { %2721 = vmatprep.mubr.bf16.mxu0 %v5442_v4  ;;  %2946 = vmatprep.mubr.bf16.mxu1 %v5444_v5 }
  0xd4   : > { %2722 = vmatmul.mubr.bf16.gmra.mxu0 %v5446_v7  ;;  %2947 = vmatmul.mubr.bf16.gmra.mxu1 %v5447_v8 }
  0xd5   : > { %2729 = vmatprep.mubr.bf16.mxu0 %v5448_v9  ;;  %2954 = vmatprep.mubr.bf16.mxu1 %v5450_v10 }
  0xdc   : > { %2730 = vmatmul.mubr.bf16.gmra.mxu0 %v5452_v11  ;;  %2955 = vmatmul.mubr.bf16.gmra.mxu1 %v5453_v12  ;;  %v5516_v12 = vld [vmem:[%s5846_s28 + $0x560] ss:$36 sps:$4 sm:$0xff]  }
  0xdd   : > { %2737 = vmatprep.mubr.bf16.mxu0 %v5456_v13  ;;  %2962 = vmatprep.mubr.bf16.mxu1 %v5458_v14  ;;  %v5517_v13 = vld [vmem:[%s5846_s28 + $0xe8] ss:$36 sps:$4 sm:$0xff]  }
  0xde   : > { %v5520_v14 = vld [vmem:[%s5846_s28 + $0x5ac] ss:$36 sps:$4 sm:$0xff]  }
  0xe4   : > { %2738 = vmatmul.mubr.bf16.gmra.mxu0 %v5460_v16  ;;  %2963 = vmatmul.mubr.bf16.gmra.mxu1 %v5461_v17 }
  0xe5   : > { %2745 = vmatprep.mubr.bf16.mxu0 %v5463_v18  ;;  %2970 = vmatprep.mubr.bf16.mxu1 %v5465_v19 }
  0xec   : > { %2746 = vmatmul.mubr.bf16.gmra.mxu0 %v5467_v20  ;;  %2971 = vmatmul.mubr.bf16.gmra.mxu1 %v5468_v21 }
  0xed   : > { %2753 = vmatprep.mubr.bf16.mxu0 %v5470_v22  ;;  %2978 = vmatprep.mubr.bf16.mxu1 %v5472_v23 }
  0xf4   : > { %2754 = vmatmul.mubr.bf16.gmra.mxu0 %v5474_v25  ;;  %2979 = vmatmul.mubr.bf16.gmra.mxu1 %v5475_v26  ;;  %v5521_v25 = vld [vmem:[%s5846_s28 + $0x130] ss:$36 sps:$4 sm:$0xff]  }
  0xf5   : > { %2761 = vmatprep.mubr.bf16.mxu0 %v5477_v27  ;;  %2986 = vmatprep.mubr.bf16.mxu1 %v5479_v28  ;;  %v5528_v26 = vld [vmem:[%s5846_s28 + $0x5f4] ss:$36 sps:$4 sm:$0xff]   ;;  %v5531_v27 = vld [vmem:[%s5846_s28 + $0x17c] ss:$36 sps:$4 sm:$0xff]  }
  0xfc   : > { %2762 = vmatmul.mubr.bf16.gmra.mxu0 %v5481_v29  ;;  %2987 = vmatmul.mubr.bf16.gmra.mxu1 %v5482_v30 }
  0xfd   : > { %2769 = vmatprep.mubr.bf16.mxu0 %v5485_v31  ;;  %2994 = vmatprep.mubr.bf16.mxu1 %v5487_v33  ;;  %v5630_v33 = vld [vmem:[%s7267_s1 + $0x210] sm:$0xff]  }
 0x104   : > { %2770 = vmatmul.mubr.bf16.gmra.mxu0 %v5489_v34  ;;  %2995 = vmatmul.mubr.bf16.gmra.mxu1 %v5490_v35 }
 0x105   : > { %3002 = vmatprep.mubr.bf16.mxu1 %v5491_v36  ;;  %3163 = vmatprep.mubr.bf16.mxu0 %v5495_v37  ;;  %v5526_v37 = vld [vmem:[%s5846_s28 + $0x5f0] ss:$36 sps:$4 sm:$0xff]  }
 0x10c   : > { %v6208_v43 = vpop.f32.mrf.mxu0  ;;  %v6210_v44 = vpop.f32.mrf.mxu1  ;;  %3003 = vmatmul.mubr.bf16.gmra.mxu1 %v5496_v39  ;;  %3164 = vmatmul.mubr.bf16.vlgmr.msra.gmra.mxu0 %v5493_v38  ;;  %v5529_v38 = vld [vmem:[%s5846_s28 + $0x178] ss:$36 sps:$4 sm:$0xff]  }
 0x10d   : > { %5170 = vmatpush3.bf16.msra.mxu0 %v6092_v32  ;;  %3010 = vmatprep.mubr.bf16.mxu1 %v5499_v40  ;;  %v5534_v39 = vld [vmem:[%s5846_s28 + $0x63c] ss:$36 sps:$4 sm:$0xff]   ;;  %v5537_v40 = vld [vmem:[%s5846_s28 + $0x1c4] ss:$36 sps:$4 sm:$0xff]  }
 0x10e   : > { %v2589_v45 = vpop.f32.mrf.mxu0  ;;  %v2781_v46 = vpop.f32.mrf.mxu1  ;;  %3171 = vmatprep.mubr.bf16.mxu0 %v5501_v41  ;;  %5171 = vmatprep.subr.bf16.mxu0 %v5524_v42 }
 0x110   : > { %v6216_v48 = vpop.f32.mrf.mxu0  ;;  %v6218_v49 = vpop.f32.mrf.mxu1 }
 0x111   : > { %5172 = vmatpush3.bf16.msra.mxu0 %v5524_v42 }
 0x112   : > { %v2592_v54 = vpop.f32.mrf.mxu0  ;;  %v2784_v32 = vpop.f32.mrf.mxu1  ;;  %5173 = vmatprep.subr.bf16.mxu0 %v5551_v47 }
 0x113   : > { %v5535_v54 = vld [vmem:[%s5846_s28 + $0x1c0] ss:$36 sps:$4 sm:$0xff]  }
 0x114   : > { %v6227_v56 = vpop.f32.mrf.mxu0  ;;  %v6229_v57 = vpop.f32.mrf.mxu1  ;;  %3011 = vmatmul.mubr.bf16.gmra.mxu1 %v5503_v50  ;;  %3172 = vmatmul.mubr.bf16.gmra.mxu0 %v5504_v51  ;;  %v5541_v32 = vld [vmem:[%s5846_s28 + $0x684] ss:$36 sps:$4 sm:$0xff]  }
 0x115   : > { %3018 = vmatprep.mubr.bf16.mxu1 %v5505_v52  ;;  %3179 = vmatprep.mubr.bf16.mxu0 %v5507_v53  ;;  %v5532_v53 = vld [vmem:[%s5846_s28 + $0x638] ss:$36 sps:$4 sm:$0xff]  }
 0x116   : > { %v2597_v58 = vpop.f32.mrf.mxu0  ;;  %v2789_v59 = vpop.f32.mrf.mxu1  ;;  %5174 = vmatpush3.bf16.msra.mxu0 %v5551_v47 }
 0x117   : > { %5175 = vmatprep.subr.bf16.mxu0 %v5578_v55 }
 0x118   : > { %v6234_v61 = vpop.f32.mrf.mxu0  ;;  %v6236_v62 = vpop.f32.mrf.mxu1 }
 0x11a   : > { %v2600_v4 = vpop.f32.mrf.mxu0  ;;  %v2792_v5 = vpop.f32.mrf.mxu1  ;;  %5176 = vmatpush3.bf16.msra.mxu0 %v5578_v55  ;;  %v5544_v55 = vld [vmem:[%s5846_s28 + $0x20c] ss:$36 sps:$4 sm:$0xff]  }
 0x11b   : > { %5177 = vmatprep.subr.bf16.mxu0 %v5605_v60  ;;  %v5539_v5 = vld [vmem:[%s5846_s28 + $0x680] ss:$36 sps:$4 sm:$0xff]  }
 0x11c   : > { %v6242_v6 = vpop.f32.mrf.mxu0  ;;  %v6244_v7 = vpop.f32.mrf.mxu1  ;;  %3019 = vmatmul.mubr.bf16.gmra.mxu1 %v5509_v63  ;;  %3180 = vmatmul.mubr.bf16.gmra.mxu0 %v5510_v0 }
 0x11d   : > { %3026 = vmatprep.mubr.bf16.mxu1 %v5512_v2  ;;  %3187 = vmatprep.mubr.bf16.mxu0 %v5514_v3 }
 0x11e   : > { %v2605_v8 = vpop.f32.mrf.mxu0  ;;  %v2797_v9 = vpop.f32.mrf.mxu1  ;;  %5178 = vmatpush3.bf16.msra.mxu0 %v5605_v60 }
 0x11f   : > { %5179 = vmatprep.subr.bf16.mxu0 %v5630_v33  ;;  %v5542_v8 = vld [vmem:[%s5846_s28 + $0x208] ss:$36 sps:$4 sm:$0xff]  }
 0x120   : > { %v6246_v10 = vpop.f32.mrf.mxu0  ;;  %v6248_v11 = vpop.f32.mrf.mxu1  ;;  %v5547_v9 = vld [vmem:[%s5846_s28 + $0x6cc] ss:$36 sps:$4 sm:$0xff]  }
 0x122   : > { %v2608_v16 = vpop.f32.mrf.mxu0  ;;  %v2800_v17 = vpop.f32.mrf.mxu1  ;;  %5180 = vmatpush3.bf16.msra.mxu0 %v5630_v33 }
 0x124   : > { %v6254_v18 = vpop.f32.mrf.mxu0  ;;  %v6256_v19 = vpop.f32.mrf.mxu1  ;;  %3027 = vmatmul.mubr.bf16.gmra.mxu1 %v5516_v12  ;;  %3188 = vmatmul.mubr.bf16.gmra.mxu0 %v5517_v13  ;;  %v5550_v12 = vld [vmem:[%s5846_s28 + $0x254] ss:$36 sps:$4 sm:$0xff]  }
 0x125   : > { %3034 = vmatprep.mubr.bf16.mxu1 %v5520_v14  ;;  %3195 = vmatprep.mubr.bf16.mxu0 %v5523_v15 }
 0x126   : > { %v2613_v20 = vpop.f32.mrf.mxu0  ;;  %v2805_v21 = vpop.f32.mrf.mxu1 }
 0x127   : > { %v6312_v21 = vld [vmem:[%s7268_s2] ss:$0 sm:$0xff] }
 0x128   : > { %v6258_v22 = vpop.f32.mrf.mxu0  ;;  %v6260_v23 = vpop.f32.mrf.mxu1 }
 0x129   : > { %7270 = vst [vmem:[#allocation2_spill] sm:$0xff] %v6260_v23  ;;  %v5642_v23 = vld [vmem:[%s5846_s28 + $0x1cc] ss:$36 sps:$4 sm:$0xff]  }
 0x12a   : > { %v2616_v28 = vpop.f32.mrf.mxu0  ;;  %v2808_v29 = vpop.f32.mrf.mxu1 }
 0x12b   : > { %v5555_v28 = vld [vmem:[%s5846_s28 + $0x714] ss:$36 sps:$4 sm:$0xff]   ;;  %v5558_v29 = vld [vmem:[%s5846_s28 + $0x29c] ss:$36 sps:$4 sm:$0xff]  }
 0x12c   : > { %v6266_v30 = vpop.f32.mrf.mxu0  ;;  %v6268_v31 = vpop.f32.mrf.mxu1  ;;  %3035 = vmatmul.mubr.bf16.gmra.mxu1 %v5518_v24  ;;  %3196 = vmatmul.mubr.bf16.gmra.mxu0 %v5521_v25 }
 0x12d   : > { %7271 = vst [vmem:[#allocation3_spill] sm:$0xff] %v6268_v31  ;;  %3042 = vmatprep.mubr.bf16.mxu1 %v5528_v26  ;;  %3203 = vmatprep.mubr.bf16.mxu0 %v5531_v27  ;;  %v5545_v26 = vld [vmem:[%s5846_s28 + $0x6c8] ss:$36 sps:$4 sm:$0xff]   ;;  %v5548_v27 = vld [vmem:[%s5846_s28 + $0x250] ss:$36 sps:$4 sm:$0xff]  }
 0x12e   : > { %v2621_v1 = vpop.f32.mrf.mxu0  ;;  %v2813_v34 = vpop.f32.mrf.mxu1  ;;  %v5636_v31 = vld [vmem:[%s5846_s28 + $0x184] ss:$36 sps:$4 sm:$0xff]  }
 0x12f   : > { %v2588_v34 = vadd.f32 %v6312_v21, %v6208_v43  ;;  %v2591_v43 = vadd.f32 %v6312_v21, %v6216_v48 }
 0x130   : > { %v6273_v35 = vpop.f32.mrf.mxu0  ;;  %v6275_v36 = vpop.f32.mrf.mxu1 }
 0x131   : > { %7272 = vst [vmem:[#allocation4_spill] sm:$0xff] %v6275_v36  ;;  %v5633_v36 = vld [vmem:[%s5846_s28 + $0x5fc] ss:$36 sps:$4 sm:$0xff]  }
 0x132   : > { %v2624_v41 = vpop.f32.mrf.mxu0  ;;  %v2816_v42 = vpop.f32.mrf.mxu1 }
 0x134   : > { %v6281_v45 = vpop.f32.mrf.mxu0  ;;  %v6283_v46 = vpop.f32.mrf.mxu1  ;;  %3043 = vmatmul.mubr.bf16.gmra.mxu1 %v5526_v37  ;;  %3204 = vmatmul.mubr.bf16.gmra.mxu0 %v5529_v38 }
 0x135   : > { %7273 = vst [vmem:[#allocation5_spill] sm:$0xff] %v6283_v46  ;;  %3050 = vmatprep.mubr.bf16.mxu1 %v5534_v39  ;;  %3211 = vmatprep.mubr.bf16.mxu0 %v5537_v40  ;;  %v5655_v40 = vld [vmem:[%s7267_s1 + $0x208] sm:$0xff]   ;;  %v5629_v46 = vld [vmem:[%s5846_s28 + $0x13c] ss:$36 sps:$4 sm:$0xff]  }
 0x136   : > { %v2629_v47 = vpop.f32.mrf.mxu0  ;;  %v2821_v50 = vpop.f32.mrf.mxu1  ;;  %5181 = vmatprep.subr.bf16.mxu0 %v5655_v40 }
 0x137   : > { %5182 = vmatpush3.bf16.msra.mxu0 %v5655_v40 }
 0x138   : > { %v6285_v51 = vpop.f32.mrf.mxu0  ;;  %v6287_v52 = vpop.f32.mrf.mxu1 }
 0x139   : > { %7274 = vst [vmem:[#allocation6_spill] sm:$0xff] %v6287_v52  ;;  %v5626_v52 = vld [vmem:[%s5846_s28 + $0x5b4] ss:$36 sps:$4 sm:$0xff]  }
 0x13a   : > { %v2632_v58 = vpop.f32.mrf.mxu0  ;;  %v2824_v59 = vpop.f32.mrf.mxu1 }
 0x13b   : > { %v5564_v58 = vld [vmem:[%s5846_s28 + $0x2e4] ss:$36 sps:$4 sm:$0xff]  }
 0x13c   : > { %v6293_v60 = vpop.f32.mrf.mxu0  ;;  %v6295_v63 = vpop.f32.mrf.mxu1  ;;  %3051 = vmatmul.mubr.bf16.gmra.mxu1 %v5532_v53  ;;  %3212 = vmatmul.mubr.bf16.gmra.mxu0 %v5535_v54  ;;  %v5553_v53 = vld [vmem:[%s5846_s28 + $0x710] ss:$36 sps:$4 sm:$0xff]   ;;  %v5556_v54 = vld [vmem:[%s5846_s28 + $0x298] ss:$36 sps:$4 sm:$0xff]  }
 0x13d   : > { %7275 = vst [vmem:[#allocation7_spill] sm:$0xff] %v6295_v63  ;;  %3058 = vmatprep.mubr.bf16.mxu1 %v5541_v32  ;;  %3219 = vmatprep.mubr.bf16.mxu0 %v5544_v55  ;;  %v5561_v55 = vld [vmem:[%s5846_s28 + $0x75c] ss:$36 sps:$4 sm:$0xff]   ;;  %v5623_v63 = vld [vmem:[%s5846_s28 + $0xf4] ss:$36 sps:$4 sm:$0xff]  }
 0x13e   : > { %v2637_v0 = vpop.f32.mrf.mxu0  ;;  %v2829_v2 = vpop.f32.mrf.mxu1 }
 0x13f   : > { %v2596_v2 = vadd.f32 %v6312_v21, %v6227_v56  ;;  %v5559_v56 = vld [vmem:[%s5846_s28 + $0x758] ss:$36 sps:$4 sm:$0xff]  }
 0x140   : > { %v6297_v3 = vpop.f32.mrf.mxu0  ;;  %v6299_v4 = vpop.f32.mrf.mxu1 }
 0x141   : > { %7276 = vst [vmem:[#allocation8_spill] sm:$0xff] %v6299_v4  ;;  %v5620_v4 = vld [vmem:[%s5846_s28 + $0x56c] ss:$36 sps:$4 sm:$0xff]  }
 0x142   : > { %v2640_v13 = vpop.f32.mrf.mxu0  ;;  %v2832_v14 = vpop.f32.mrf.mxu1 }
 0x143   : > { %v2599_v13 = vadd.f32 %v6312_v21, %v6234_v61 }
 0x144   : > { %v6305_v15 = vpop.f32.mrf.mxu0  ;;  %v6307_v16 = vpop.f32.mrf.mxu1  ;;  %3059 = vmatmul.mubr.bf16.gmra.mxu1 %v5539_v5  ;;  %3220 = vmatmul.mubr.bf16.gmra.mxu0 %v5542_v8 }
 0x145   : > { %7277 = vst [vmem:[#allocation9_spill] sm:$0xff] %v6307_v16  ;;  %3066 = vmatprep.mubr.bf16.mxu1 %v5547_v9  ;;  %3227 = vmatprep.mubr.bf16.mxu0 %v5550_v12  ;;  %v5617_v16 = vld [vmem:[%s5846_s28 + $0xac] ss:$36 sps:$4 sm:$0xff]  }
 0x146   : > { %v2645_v17 = vpop.f32.mrf.mxu0  ;;  %v2837_v20 = vpop.f32.mrf.mxu1 }
 0x147   : > { %v5562_v20 = vld [vmem:[%s5846_s28 + $0x2e0] ss:$36 sps:$4 sm:$0xff]  }
 0x148   : > { %v6314_v24 = vpop.f32.mrf.mxu0  ;;  %v6316_v25 = vpop.f32.mrf.mxu1 }
 0x149   : > { %7278 = vst [vmem:[#allocation10_spill] sm:$0xff] %v6316_v25  ;;  %v5614_v25 = vld [vmem:[%s5846_s28 + $0x524] ss:$36 sps:$4 sm:$0xff]  }
 0x14a   : > { %v2648_v33 = vpop.f32.mrf.mxu0  ;;  %v2840_v1 = vpop.f32.mrf.mxu1 }
 0x14b   : > { %v2604_v1 = vadd.f32 %v6312_v21, %v6242_v6  ;;  %v5566_v6 = vld [vmem:[%s5846_s28 + $0x7a0] ss:$36 sps:$4 sm:$0xff]  }
 0x14c   : > { %v6324_v37 = vpop.f32.mrf.mxu0  ;;  %v2876_v38 = vpop.f32.mrf.mxu1  ;;  %3067 = vmatmul.mubr.bf16.gmra.mxu1 %v5545_v26  ;;  %3228 = vmatmul.mubr.bf16.gmra.mxu0 %v5548_v27  ;;  %v5568_v27 = vld [vmem:[%s5846_s28 + $0x7a4] ss:$36 sps:$4 sm:$0xff]  }
 0x14d   : > { %v6326_v39 = vadd.f32 %v2876_v38, %v2588_v34  ;;  %3074 = vmatprep.mubr.bf16.mxu1 %v5555_v28  ;;  %3235 = vmatprep.mubr.bf16.mxu0 %v5558_v29  ;;  %v5571_v28 = vld [vmem:[%s5846_s28 + $0x32c] ss:$36 sps:$4 sm:$0xff]  }
 0x14e   : > { %v2653_v41 = vpop.f32.mrf.mxu0  ;;  %v2878_v42 = vpop.f32.mrf.mxu1 }
 0x14f   : > { %v2607_v42 = vadd.f32 %v6312_v21, %v6246_v10 }
 0x150   : > { %v6333_v47 = vpop.f32.mrf.mxu0  ;;  %v2879_v50 = vpop.f32.mrf.mxu1 }
 0x151   : > { %v6337_v32 = vadd.f32 %v2879_v50, %v2591_v43 }
 0x152   : > { %v2656_v59 = vpop.f32.mrf.mxu0  ;;  %v2881_v0 = vpop.f32.mrf.mxu1 }
 0x154   : > { %v6343_v48 = vpop.f32.mrf.mxu0  ;;  %v2884_v5 = vpop.f32.mrf.mxu1  ;;  %3075 = vmatmul.mubr.bf16.gmra.mxu1 %v5553_v53  ;;  %3236 = vmatmul.mubr.bf16.gmra.mxu0 %v5556_v54  ;;  %v5569_v53 = vld [vmem:[%s5846_s28 + $0x328] ss:$36 sps:$4 sm:$0xff]  }
 0x155   : > { %v6345_v8 = vadd.f32 %v2884_v5, %v2596_v2  ;;  %3082 = vmatprep.mubr.bf16.mxu1 %v5561_v55  ;;  %3243 = vmatprep.mubr.bf16.mxu0 %v5564_v58  ;;  %v5574_v55 = vld [vmem:[%s5846_s28 + $0x7ec] ss:$36 sps:$4 sm:$0xff]   ;;  %v5577_v58 = vld [vmem:[%s5846_s28 + $0x374] ss:$36 sps:$4 sm:$0xff]   ;;  %v2612_v2 = vadd.f32 %v6312_v21, %v6254_v18 }
 0x156   : > { %v2661_v9 = vpop.f32.mrf.mxu0  ;;  %v2886_v12 = vpop.f32.mrf.mxu1  ;;  %v5572_v18 = vld [vmem:[%s5846_s28 + $0x7e8] ss:$36 sps:$4 sm:$0xff]  }
 0x158   : > { %v6349_v14 = vpop.f32.mrf.mxu0  ;;  %v2887_v17 = vpop.f32.mrf.mxu1 }
 0x159   : > { %v6353_v26 = vadd.f32 %v2887_v17, %v2599_v13  ;;  %v2615_v17 = vadd.f32 %v6312_v21, %v6258_v22 }
 0x15a   : > { %v2664_v29 = vpop.f32.mrf.mxu0  ;;  %v2889_v33 = vpop.f32.mrf.mxu1 }
 0x15b   : > { %v5582_v29 = vld [vmem:[%s5846_s28 + $0x834] ss:$36 sps:$4 sm:$0xff]   ;;  %v5585_v33 = vld [vmem:[%s5846_s28 + $0x3bc] ss:$36 sps:$4 sm:$0xff]  }
 0x15c   : > { %v6359_v34 = vpop.f32.mrf.mxu0  ;;  %v2892_v61 = vpop.f32.mrf.mxu1  ;;  %3083 = vmatmul.mubr.bf16.gmra.mxu1 %v5559_v56  ;;  %3244 = vmatmul.mubr.bf16.gmra.mxu0 %v5562_v20 }
 0x15d   : > { %v6361_v38 = vadd.f32 %v2892_v61, %v2604_v1  ;;  %3090 = vmatprep.mubr.bf16.mxu1 %v5568_v27  ;;  %3251 = vmatprep.mubr.bf16.mxu0 %v5571_v28  ;;  %v5575_v27 = vld [vmem:[%s5846_s28 + $0x370] ss:$36 sps:$4 sm:$0xff]  }
 0x15e   : > { %v2669_v40 = vpop.f32.mrf.mxu0  ;;  %v2894_v41 = vpop.f32.mrf.mxu1 }
 0x15f   : > { %v2620_v40 = vadd.f32 %v6312_v21, %v6266_v30  ;;  %v2623_v30 = vadd.f32 %v6312_v21, %v6273_v35 }
 0x160   : > { %v6365_v43 = vpop.f32.mrf.mxu0  ;;  %v2895_v50 = vpop.f32.mrf.mxu1 }
 0x161   : > { %v6369_v54 = vadd.f32 %v2895_v50, %v2607_v42  ;;  %v5680_v50 = vld [vmem:[%s7267_s1 + $0x200] sm:$0xff]  }
 0x162   : > { %v2672_v59 = vpop.f32.mrf.mxu0  ;;  %v2897_v0 = vpop.f32.mrf.mxu1  ;;  %5183 = vmatprep.subr.bf16.mxu0 %v5680_v50 }
 0x163   : > { %v5580_v59 = vld [vmem:[%s5846_s28 + $0x830] ss:$36 sps:$4 sm:$0xff]   ;;  %v5583_v0 = vld [vmem:[%s5846_s28 + $0x3b8] ss:$36 sps:$4 sm:$0xff]   ;;  %5184 = vmatpush3.bf16.msra.mxu0 %v5680_v50 }
 0x164   : > { %v6375_v5 = vpop.f32.mrf.mxu0  ;;  %v2900_v10 = vpop.f32.mrf.mxu1  ;;  %3091 = vmatmul.mubr.bf16.gmra.mxu1 %v5566_v6  ;;  %3252 = vmatmul.mubr.bf16.gmra.mxu0 %v5569_v53 }
 0x165   : > { %v6377_v9 = vadd.f32 %v2900_v10, %v2612_v2  ;;  %3098 = vmatprep.mubr.bf16.mxu1 %v5574_v55  ;;  %3259 = vmatprep.mubr.bf16.mxu0 %v5577_v58  ;;  %v5588_v10 = vld [vmem:[%s5846_s28 + $0x87c] ss:$36 sps:$4 sm:$0xff]  }
 0x166   : > { %v2677_v12 = vpop.f32.mrf.mxu0  ;;  %v2902_v13 = vpop.f32.mrf.mxu1 }
 0x167   : > { %v5591_v12 = vld [vmem:[%s5846_s28 + $0x404] ss:$36 sps:$4 sm:$0xff]  }
 0x168   : > { %v6381_v56 = vpop.f32.mrf.mxu0  ;;  %v2903_v20 = vpop.f32.mrf.mxu1 }
 0x169   : > { %v6385_v28 = vadd.f32 %v2903_v20, %v2615_v17  ;;  %v2628_v20 = vadd.f32 %v6312_v21, %v6281_v45  ;;  %v5586_v45 = vld [vmem:[%s5846_s28 + $0x878] ss:$36 sps:$4 sm:$0xff]  }
 0x16a   : > { %v2680_v1 = vpop.f32.mrf.mxu0  ;;  %v2905_v61 = vpop.f32.mrf.mxu1 }
 0x16b   : > { %v2631_v1 = vadd.f32 %v6312_v21, %v6285_v51 }
 0x16c   : > { %v6391_v41 = vpop.f32.mrf.mxu0  ;;  %v2908_v42 = vpop.f32.mrf.mxu1  ;;  %3099 = vmatmul.mubr.bf16.gmra.mxu1 %v5572_v18  ;;  %3260 = vmatmul.mubr.bf16.gmra.mxu0 %v5575_v27 }
 0x16d   : > { %v6393_v22 = vadd.f32 %v2908_v42, %v2620_v40  ;;  %3106 = vmatprep.mubr.bf16.mxu1 %v5582_v29  ;;  %3267 = vmatprep.mubr.bf16.mxu0 %v5585_v33  ;;  %v5589_v42 = vld [vmem:[%s5846_s28 + $0x400] ss:$36 sps:$4 sm:$0xff]  }
 0x16e   : > { %v2685_v6 = vpop.f32.mrf.mxu0  ;;  %v2910_v53 = vpop.f32.mrf.mxu1 }
 0x16f   : > { %v5595_v6 = vld [vmem:[%s5846_s28 + $0x8c4] ss:$36 sps:$4 sm:$0xff]   ;;  %v5598_v53 = vld [vmem:[%s5846_s28 + $0x44c] ss:$36 sps:$4 sm:$0xff]  }
 0x170   : > { %v6400_v55 = vpop.f32.mrf.mxu0  ;;  %v2911_v58 = vpop.f32.mrf.mxu1 }
 0x171   : > { %v6404_v2 = vadd.f32 %v2911_v58, %v2623_v30 }
 0x172   : > { %v2688_v13 = vpop.f32.mrf.mxu0  ;;  %v2913_v17 = vpop.f32.mrf.mxu1 }
 0x173   : > { %v2639_v17 = vadd.f32 %v6312_v21, %v6297_v3 }
 0x174   : > { %v6410_v35 = vpop.f32.mrf.mxu0  ;;  %v2916_v18 = vpop.f32.mrf.mxu1  ;;  %3107 = vmatmul.mubr.bf16.gmra.mxu1 %v5580_v59  ;;  %3268 = vmatmul.mubr.bf16.gmra.mxu0 %v5583_v0  ;;  %v2636_v59 = vadd.f32 %v6312_v21, %v6293_v60  ;;  %v5593_v60 = vld [vmem:[%s5846_s28 + $0x8c0] ss:$36 sps:$4 sm:$0xff]  }
 0x175   : > { %v6412_v27 = vadd.f32 %v2916_v18, %v2628_v20  ;;  %3114 = vmatprep.mubr.bf16.mxu1 %v5588_v10  ;;  %3275 = vmatprep.mubr.bf16.mxu0 %v5591_v12 }
 0x176   : > { %v2693_v29 = vpop.f32.mrf.mxu0  ;;  %v2918_v33 = vpop.f32.mrf.mxu1 }
 0x177   : > { %v5596_v29 = vld [vmem:[%s5846_s28 + $0x448] ss:$36 sps:$4 sm:$0xff]  }
 0x178   : > { %v6416_v61 = vpop.f32.mrf.mxu0  ;;  %v2919_v40 = vpop.f32.mrf.mxu1 }
 0x179   : > { %v6420_v50 = vadd.f32 %v2919_v40, %v2631_v1  ;;  %v5601_v1 = vld [vmem:[%s5846_s28 + $0x494] ss:$36 sps:$4 sm:$0xff]   ;;  %v5604_v40 = vld [vmem:[%s5846_s28 + $0x1c] ss:$36 sps:$4 sm:$0xff]  }
 0x17a   : > { %v2696_v30 = vpop.f32.mrf.mxu0  ;;  %v2921_v58 = vpop.f32.mrf.mxu1 }
 0x17c   : > { %v6426_v0 = vpop.f32.mrf.mxu0  ;;  %v2924_v51 = vpop.f32.mrf.mxu1  ;;  %3115 = vmatmul.mubr.bf16.gmra.mxu1 %v5586_v45  ;;  %3276 = vmatmul.mubr.bf16.gmra.mxu0 %v5589_v42 }
 0x17d   : > { %v6428_v10 = vadd.f32 %v2924_v51, %v2636_v59  ;;  %3122 = vmatprep.mubr.bf16.mxu1 %v5595_v6  ;;  %3283 = vmatprep.mubr.bf16.mxu0 %v5598_v53  ;;  %v2644_v6 = vadd.f32 %v6312_v21, %v6305_v15  ;;  %v2647_v51 = vadd.f32 %v6312_v21, %v6314_v24  ;;  %v5599_v15 = vld [vmem:[%s5846_s28 + $0x490] ss:$36 sps:$4 sm:$0xff]  }
 0x17e   : > { %v2701_v12 = vpop.f32.mrf.mxu0  ;;  %v2926_v13 = vpop.f32.mrf.mxu1 }
 0x180   : > { %v6432_v20 = vpop.f32.mrf.mxu0  ;;  %v2927_v18 = vpop.f32.mrf.mxu1 }
 0x181   : > { %v6436_v33 = vadd.f32 %v2927_v18, %v2639_v17  ;;  %v5602_v17 = vld [vmem:[%s5846_s28 + $0x18] ss:$36 sps:$4 sm:$0xff]  }
 0x182   : > { %v2704_v45 = vpop.f32.mrf.mxu0  ;;  %v2929_v42 = vpop.f32.mrf.mxu1 }
 0x183   : > { %v5608_v45 = vld [vmem:[%s5846_s28 + $0x4dc] ss:$36 sps:$4 sm:$0xff]   ;;  %v5611_v42 = vld [vmem:[%s5846_s28 + $0x64] ss:$36 sps:$4 sm:$0xff]  }
 0x184   : > { %v6442_v53 = vpop.f32.mrf.mxu0  ;;  %v2932_v3 = vpop.f32.mrf.mxu1  ;;  %3123 = vmatmul.mubr.bf16.gmra.mxu1 %v5593_v60  ;;  %3284 = vmatmul.mubr.bf16.gmra.mxu0 %v5596_v29 }
 0x185   : > { %v6444_v30 = vadd.f32 %v2932_v3, %v2644_v6  ;;  %3291 = vmatprep.mubr.bf16.mxu0 %v5601_v1  ;;  %3452 = vmatprep.mubr.bf16.mxu1 %v5604_v40  ;;  %v2652_v1 = vadd.f32 %v6312_v21, %v6324_v37  ;;  %v5606_v37 = vld [vmem:[%s5846_s28 + $0x4d8] ss:$36 sps:$4 sm:$0xff]  }
 0x186   : > { %v2709_v58 = vpop.f32.mrf.mxu0  ;;  %v2934_v59 = vpop.f32.mrf.mxu1 }
 0x187   : > { %v2655_v59 = vadd.f32 %v6312_v21, %v6333_v47 }
 0x188   : > { %v6448_v12 = vpop.f32.mrf.mxu0  ;;  %v2935_v13 = vpop.f32.mrf.mxu1 }
 0x189   : > { %v6452_v18 = vadd.f32 %v2935_v13, %v2647_v51 }
 0x18a   : > { %v2712_v60 = vpop.f32.mrf.mxu0  ;;  %v2937_v29 = vpop.f32.mrf.mxu1 }
 0x18b   : > { %v5609_v60 = vld [vmem:[%s5846_s28 + $0x60] ss:$36 sps:$4 sm:$0xff]  }
 0x18c   : > { %v6458_v40 = vpop.f32.mrf.mxu0  ;;  %v2940_v24 = vpop.f32.mrf.mxu1  ;;  %3292 = vmatmul.mubr.bf16.gmra.mxu0 %v5599_v15  ;;  %3453 = vmatmul.mubr.bf16.vlgmr.msra.gmra.mxu1 %v5602_v17 }
 0x18d   : > { %v6460_v6 = vadd.f32 %v2940_v24, %v2652_v1  ;;  %3299 = vmatprep.mubr.bf16.mxu0 %v5608_v45  ;;  %3460 = vmatprep.mubr.bf16.mxu1 %v5611_v42  ;;  %v2660_v45 = vadd.f32 %v6312_v21, %v6343_v48  ;;  %v5612_v48 = vld [vmem:[%s5846_s28 + $0x520] ss:$36 sps:$4 sm:$0xff]  }
 0x18e   : > { %v2717_v3 = vpop.f32.mrf.mxu0  ;;  %v2942_v58 = vpop.f32.mrf.mxu1 }
 0x18f   : > { %v2663_v58 = vadd.f32 %v6312_v21, %v6349_v14 }
 0x190   : > { %v6464_v51 = vpop.f32.mrf.mxu0  ;;  %v2943_v13 = vpop.f32.mrf.mxu1 }
 0x191   : > { %v6468_v29 = vadd.f32 %v2943_v13, %v2655_v59 }
 0x192   : > { %v2720_v15 = vpop.f32.mrf.mxu0  ;;  %v2945_v17 = vpop.f32.mrf.mxu1 }
 0x193   : > { %v5615_v15 = vld [vmem:[%s5846_s28 + $0xa8] ss:$36 sps:$4 sm:$0xff]  }
 0x194   : > { %v6474_v42 = vpop.f32.mrf.mxu0  ;;  %v2948_v47 = vpop.f32.mrf.mxu1  ;;  %3300 = vmatmul.mubr.bf16.gmra.mxu0 %v5606_v37  ;;  %3461 = vmatmul.mubr.bf16.gmra.mxu1 %v5609_v60 }
 0x195   : > { %v6476_v1 = vadd.f32 %v2948_v47, %v2660_v45  ;;  %3307 = vmatprep.mubr.bf16.mxu0 %v5614_v25  ;;  %3468 = vmatprep.mubr.bf16.mxu1 %v5617_v16  ;;  %v2668_v16 = vadd.f32 %v6312_v21, %v6359_v34  ;;  %v5618_v34 = vld [vmem:[%s5846_s28 + $0x568] ss:$36 sps:$4 sm:$0xff]  }
 0x196   : > { %v2725_v24 = vpop.f32.mrf.mxu0  ;;  %v2950_v3 = vpop.f32.mrf.mxu1 }
 0x197   : > { %v2671_v3 = vadd.f32 %v6312_v21, %v6365_v43 }
 0x198   : > { %v6480_v59 = vpop.f32.mrf.mxu0  ;;  %v2951_v13 = vpop.f32.mrf.mxu1 }
 0x199   : > { %v6484_v17 = vadd.f32 %v2951_v13, %v2663_v58 }
 0x19a   : > { %v2728_v37 = vpop.f32.mrf.mxu0  ;;  %v2953_v60 = vpop.f32.mrf.mxu1 }
 0x19b   : > { %v5621_v37 = vld [vmem:[%s5846_s28 + $0xf0] ss:$36 sps:$4 sm:$0xff]  }
 0x19c   : > { %v6490_v25 = vpop.f32.mrf.mxu0  ;;  %v2956_v14 = vpop.f32.mrf.mxu1  ;;  %3308 = vmatmul.mubr.bf16.gmra.mxu0 %v5612_v48  ;;  %3469 = vmatmul.mubr.bf16.gmra.mxu1 %v5615_v15 }
 0x19d   : > { %v6492_v45 = vadd.f32 %v2956_v14, %v2668_v16  ;;  %3315 = vmatprep.mubr.bf16.mxu0 %v5620_v4  ;;  %3476 = vmatprep.mubr.bf16.mxu1 %v5623_v63  ;;  %v2676_v63 = vadd.f32 %v6312_v21, %v6375_v5  ;;  %v5624_v5 = vld [vmem:[%s5846_s28 + $0x5b0] ss:$36 sps:$4 sm:$0xff]  }
 0x19e   : > { %v2733_v47 = vpop.f32.mrf.mxu0  ;;  %v2958_v24 = vpop.f32.mrf.mxu1 }
 0x19f   : > { %v2679_v24 = vadd.f32 %v6312_v21, %v6381_v56 }
 0x1a0   : > { %v6496_v58 = vpop.f32.mrf.mxu0  ;;  %v2959_v13 = vpop.f32.mrf.mxu1 }
 0x1a1   : > { %v6500_v60 = vadd.f32 %v2959_v13, %v2671_v3 }
 0x1a2   : > { %v2736_v48 = vpop.f32.mrf.mxu0  ;;  %v2961_v15 = vpop.f32.mrf.mxu1 }
 0x1a3   : > { %v5627_v48 = vld [vmem:[%s5846_s28 + $0x138] ss:$36 sps:$4 sm:$0xff]  }
 0x1a4   : > { %v6506_v4 = vpop.f32.mrf.mxu0  ;;  %v2964_v43 = vpop.f32.mrf.mxu1  ;;  %3316 = vmatmul.mubr.bf16.gmra.mxu0 %v5618_v34  ;;  %3477 = vmatmul.mubr.bf16.gmra.mxu1 %v5621_v37 }
 0x1a5   : > { %v6508_v16 = vadd.f32 %v2964_v43, %v2676_v63  ;;  %3323 = vmatprep.mubr.bf16.mxu0 %v5626_v52  ;;  %3484 = vmatprep.mubr.bf16.mxu1 %v5629_v46  ;;  %v2684_v46 = vadd.f32 %v6312_v21, %v6391_v41  ;;  %v5631_v41 = vld [vmem:[%s5846_s28 + $0x5f8] ss:$36 sps:$4 sm:$0xff]  }
 0x1a6   : > { %v2741_v14 = vpop.f32.mrf.mxu0  ;;  %v2966_v47 = vpop.f32.mrf.mxu1 }
 0x1a7   : > { %v2687_v47 = vadd.f32 %v6312_v21, %v6400_v55 }
 0x1a8   : > { %v6512_v3 = vpop.f32.mrf.mxu0  ;;  %v2967_v13 = vpop.f32.mrf.mxu1 }
 0x1a9   : > { %v6516_v15 = vadd.f32 %v2967_v13, %v2679_v24 }
 0x1aa   : > { %v2744_v34 = vpop.f32.mrf.mxu0  ;;  %v2969_v37 = vpop.f32.mrf.mxu1 }
 0x1ab   : > { %7279 = vst [vmem:[#allocation11_spill] sm:$0xff] %v6516_v15  ;;  %v5634_v34 = vld [vmem:[%s5846_s28 + $0x180] ss:$36 sps:$4 sm:$0xff]  }
 0x1ac   : > { %v6522_v52 = vpop.f32.mrf.mxu0  ;;  %v2972_v56 = vpop.f32.mrf.mxu1  ;;  %3324 = vmatmul.mubr.bf16.gmra.mxu0 %v5624_v5  ;;  %3485 = vmatmul.mubr.bf16.gmra.mxu1 %v5627_v48  ;;  %v5639_v15 = vld [vmem:[%s5846_s28 + $0x644] ss:$36 sps:$4 sm:$0xff]  }
 0x1ad   : > { %v6524_v63 = vadd.f32 %v2972_v56, %v2684_v46  ;;  %3331 = vmatprep.mubr.bf16.mxu0 %v5633_v36  ;;  %3492 = vmatprep.mubr.bf16.mxu1 %v5636_v31  ;;  %v2692_v31 = vadd.f32 %v6312_v21, %v6410_v35  ;;  %v5637_v35 = vld [vmem:[%s5846_s28 + $0x640] ss:$36 sps:$4 sm:$0xff]  }
 0x1ae   : > { %v2749_v43 = vpop.f32.mrf.mxu0  ;;  %v2974_v14 = vpop.f32.mrf.mxu1 }
 0x1af   : > { %7280 = vst [vmem:[#allocation12_spill] sm:$0xff] %v6524_v63  ;;  %v2695_v14 = vadd.f32 %v6312_v21, %v6416_v61  ;;  %v5648_v63 = vld [vmem:[%s5846_s28 + $0x214] ss:$36 sps:$4 sm:$0xff]  }
 0x1b0   : > { %v6528_v24 = vpop.f32.mrf.mxu0  ;;  %v2975_v13 = vpop.f32.mrf.mxu1 }
 0x1b1   : > { %v6532_v37 = vadd.f32 %v2975_v13, %v2687_v47 }
 0x1b2   : > { %v2752_v5 = vpop.f32.mrf.mxu0  ;;  %v2977_v48 = vpop.f32.mrf.mxu1 }
 0x1b3   : > { %7281 = vst [vmem:[#allocation13_spill] sm:$0xff] %v6532_v37  ;;  %v5640_v5 = vld [vmem:[%s5846_s28 + $0x1c8] ss:$36 sps:$4 sm:$0xff]  }
 0x1b4   : > { %v6538_v36 = vpop.f32.mrf.mxu0  ;;  %v2980_v55 = vpop.f32.mrf.mxu1  ;;  %3332 = vmatmul.mubr.bf16.gmra.mxu0 %v5631_v41  ;;  %3493 = vmatmul.mubr.bf16.gmra.mxu1 %v5634_v34  ;;  %v5645_v37 = vld [vmem:[%s5846_s28 + $0x68c] ss:$36 sps:$4 sm:$0xff]  }
 0x1b5   : > { %v6540_v46 = vadd.f32 %v2980_v55, %v2692_v31  ;;  %3339 = vmatprep.mubr.bf16.mxu0 %v5639_v15  ;;  %3500 = vmatprep.mubr.bf16.mxu1 %v5642_v23  ;;  %v2700_v23 = vadd.f32 %v6312_v21, %v6426_v0  ;;  %v5643_v0 = vld [vmem:[%s5846_s28 + $0x688] ss:$36 sps:$4 sm:$0xff]  }
 0x1b6   : > { %v2757_v56 = vpop.f32.mrf.mxu0  ;;  %v2982_v43 = vpop.f32.mrf.mxu1 }
 0x1b7   : > { %7282 = vst [vmem:[#allocation14_spill] sm:$0xff] %v6540_v46  ;;  %v2703_v43 = vadd.f32 %v6312_v21, %v6432_v20  ;;  %v5654_v46 = vld [vmem:[%s5846_s28 + $0x25c] ss:$36 sps:$4 sm:$0xff]  }
 0x1b8   : > { %v6544_v47 = vpop.f32.mrf.mxu0  ;;  %v2983_v13 = vpop.f32.mrf.mxu1 }
 0x1b9   : > { %v6548_v48 = vadd.f32 %v2983_v13, %v2695_v14 }
 0x1ba   : > { %v2760_v41 = vpop.f32.mrf.mxu0  ;;  %v2985_v34 = vpop.f32.mrf.mxu1 }
 0x1bb   : > { %7283 = vst [vmem:[#allocation15_spill] sm:$0xff] %v6548_v48  ;;  %v5646_v41 = vld [vmem:[%s5846_s28 + $0x210] ss:$36 sps:$4 sm:$0xff]  }
 0x1bc   : > { %v6554_v15 = vpop.f32.mrf.mxu0  ;;  %v2988_v61 = vpop.f32.mrf.mxu1  ;;  %3340 = vmatmul.mubr.bf16.gmra.mxu0 %v5637_v35  ;;  %3501 = vmatmul.mubr.bf16.gmra.mxu1 %v5640_v5  ;;  %v5651_v48 = vld [vmem:[%s5846_s28 + $0x6d4] ss:$36 sps:$4 sm:$0xff]  }
 0x1bd   : > { %v6556_v31 = vadd.f32 %v2988_v61, %v2700_v23  ;;  %3347 = vmatprep.mubr.bf16.mxu0 %v5645_v37  ;;  %3508 = vmatprep.mubr.bf16.mxu1 %v5648_v63  ;;  %v2708_v63 = vadd.f32 %v6312_v21, %v6442_v53  ;;  %v5649_v53 = vld [vmem:[%s5846_s28 + $0x6d0] ss:$36 sps:$4 sm:$0xff]  }
 0x1be   : > { %v2765_v55 = vpop.f32.mrf.mxu0  ;;  %v2990_v56 = vpop.f32.mrf.mxu1 }
 0x1bf   : > { %7284 = vst [vmem:[#allocation16_spill] sm:$0xff] %v6556_v31  ;;  %v2711_v56 = vadd.f32 %v6312_v21, %v6448_v12  ;;  %v5661_v31 = vld [vmem:[%s5846_s28 + $0x2a4] ss:$36 sps:$4 sm:$0xff]  }
 0x1c0   : > { %v6560_v14 = vpop.f32.mrf.mxu0  ;;  %v2991_v13 = vpop.f32.mrf.mxu1 }
 0x1c1   : > { %v6564_v34 = vadd.f32 %v2991_v13, %v2703_v43 }
 0x1c2   : > { %v2768_v35 = vpop.f32.mrf.mxu0  ;;  %v2993_v5 = vpop.f32.mrf.mxu1 }
 0x1c3   : > { %7285 = vst [vmem:[#allocation17_spill] sm:$0xff] %v6564_v34  ;;  %v5652_v35 = vld [vmem:[%s5846_s28 + $0x258] ss:$36 sps:$4 sm:$0xff]  }
 0x1c4   : > { %v6570_v37 = vpop.f32.mrf.mxu0  ;;  %v2996_v20 = vpop.f32.mrf.mxu1  ;;  %3348 = vmatmul.mubr.bf16.gmra.mxu0 %v5643_v0  ;;  %3509 = vmatmul.mubr.bf16.gmra.mxu1 %v5646_v41  ;;  %v5658_v34 = vld [vmem:[%s5846_s28 + $0x71c] ss:$36 sps:$4 sm:$0xff]  }
 0x1c5   : > { %v6572_v23 = vadd.f32 %v2996_v20, %v2708_v63  ;;  %3355 = vmatprep.mubr.bf16.mxu0 %v5651_v48  ;;  %3516 = vmatprep.mubr.bf16.mxu1 %v5654_v46  ;;  %v2716_v46 = vadd.f32 %v6312_v21, %v6458_v40 }
 0x1c6   : > { %v2773_v61 = vpop.f32.mrf.mxu0  ;;  %v2998_v55 = vpop.f32.mrf.mxu1 }
 0x1c8   : > { %v6576_v43 = vpop.f32.mrf.mxu0  ;;  %v2999_v13 = vpop.f32.mrf.mxu1 }
 0x1c9   : > { %v6580_v5 = vadd.f32 %v2999_v13, %v2711_v56  ;;  %v2719_v56 = vadd.f32 %v6312_v21, %v6464_v51 }
 0x1ca   : > { %v2776_v0 = vpop.f32.mrf.mxu0  ;;  %v3001_v41 = vpop.f32.mrf.mxu1 }
 0x1cb   : > { %7286 = vst [vmem:[#allocation18_spill] sm:$0xff] %v6580_v5  ;;  %v5656_v0 = vld [vmem:[%s5846_s28 + $0x718] ss:$36 sps:$4 sm:$0xff]   ;;  %v5659_v41 = vld [vmem:[%s5846_s28 + $0x2a0] ss:$36 sps:$4 sm:$0xff]  }
 0x1cc   : > { %v3004_v48 = vpop.f32.mrf.mxu1  ;;  %v3165_v63 = vpop.f32.mrf.mxu0  ;;  %3356 = vmatmul.mubr.bf16.gmra.mxu0 %v5649_v53  ;;  %3517 = vmatmul.mubr.bf16.gmra.mxu1 %v5652_v35  ;;  %v5664_v35 = vld [vmem:[%s5846_s28 + $0x764] ss:$36 sps:$4 sm:$0xff]  }
 0x1cd   : > { %v6586_v12 = vadd.f32 %v3004_v48, %v2716_v46  ;;  %v6589_v20 = vadd.f32 %v3165_v63, %v6326_v39  ;;  %3363 = vmatprep.mubr.bf16.mxu0 %v5658_v34  ;;  %3524 = vmatprep.mubr.bf16.mxu1 %v5661_v31  ;;  %v5667_v46 = vld [vmem:[%s5846_s28 + $0x2ec] ss:$36 sps:$4 sm:$0xff]   ;;  %v2724_v31 = vadd.f32 %v6312_v21, %v6474_v42 }
 0x1ce   : > { %v3006_v61 = vpop.f32.mrf.mxu1  ;;  %v3167_v55 = vpop.f32.mrf.mxu0 }
 0x1d0   : > { %v3007_v13 = vpop.f32.mrf.mxu1  ;;  %v3168_v40 = vpop.f32.mrf.mxu0 }
 0x1d1   : > { %v6595_v5 = vadd.f32 %v3007_v13, %v2719_v56  ;;  %v6598_v53 = vadd.f32 %v3168_v40, %v6337_v32  ;;  %v2727_v56 = vadd.f32 %v6312_v21, %v6480_v59  ;;  %v5662_v40 = vld [vmem:[%s5846_s28 + $0x760] ss:$36 sps:$4 sm:$0xff]  }
 0x1d2   : > { %v3009_v39 = vpop.f32.mrf.mxu1  ;;  %v3170_v34 = vpop.f32.mrf.mxu0 }
 0x1d3   : > { %v5665_v39 = vld [vmem:[%s5846_s28 + $0x2e8] ss:$36 sps:$4 sm:$0xff]  }
 0x1d4   : > { %v3012_v48 = vpop.f32.mrf.mxu1  ;;  %v3173_v51 = vpop.f32.mrf.mxu0  ;;  %3364 = vmatmul.mubr.bf16.gmra.mxu0 %v5656_v0  ;;  %3525 = vmatmul.mubr.bf16.gmra.mxu1 %v5659_v41  ;;  %v5670_v41 = vld [vmem:[%s5846_s28 + $0x7ac] ss:$36 sps:$4 sm:$0xff]  }
 0x1d5   : > { %v6604_v63 = vadd.f32 %v3012_v48, %v2724_v31  ;;  %v6607_v32 = vadd.f32 %v3173_v51, %v6345_v8  ;;  %3371 = vmatprep.mubr.bf16.mxu0 %v5664_v35  ;;  %3532 = vmatprep.mubr.bf16.mxu1 %v5667_v46  ;;  %v5673_v31 = vld [vmem:[%s5846_s28 + $0x334] ss:$36 sps:$4 sm:$0xff]   ;;  %v2732_v46 = vadd.f32 %v6312_v21, %v6490_v25 }
 0x1d6   : > { %v3014_v61 = vpop.f32.mrf.mxu1  ;;  %v3175_v55 = vpop.f32.mrf.mxu0 }
 0x1d8   : > { %v3015_v13 = vpop.f32.mrf.mxu1  ;;  %v3176_v42 = vpop.f32.mrf.mxu0 }
 0x1d9   : > { %v6613_v34 = vadd.f32 %v3015_v13, %v2727_v56  ;;  %v6616_v0 = vadd.f32 %v3176_v42, %v6353_v26  ;;  %v2735_v56 = vadd.f32 %v6312_v21, %v6496_v58  ;;  %v5668_v42 = vld [vmem:[%s5846_s28 + $0x7a8] ss:$36 sps:$4 sm:$0xff]  }
 0x1da   : > { %v3017_v8 = vpop.f32.mrf.mxu1  ;;  %v3178_v35 = vpop.f32.mrf.mxu0 }
 0x1db   : > { %v5671_v8 = vld [vmem:[%s5846_s28 + $0x330] ss:$36 sps:$4 sm:$0xff]  }
 0x1dc   : > { %v3020_v48 = vpop.f32.mrf.mxu1  ;;  %v3181_v59 = vpop.f32.mrf.mxu0  ;;  %3372 = vmatmul.mubr.bf16.gmra.mxu0 %v5662_v40  ;;  %3533 = vmatmul.mubr.bf16.gmra.mxu1 %v5665_v39  ;;  %v5676_v39 = vld [vmem:[%s5846_s28 + $0x7f4] ss:$36 sps:$4 sm:$0xff]  }
 0x1dd   : > { %v6622_v51 = vadd.f32 %v3020_v48, %v2732_v46  ;;  %v6625_v26 = vadd.f32 %v3181_v59, %v6361_v38  ;;  %3379 = vmatprep.mubr.bf16.mxu0 %v5670_v41  ;;  %3540 = vmatprep.mubr.bf16.mxu1 %v5673_v31  ;;  %v5679_v46 = vld [vmem:[%s5846_s28 + $0x37c] ss:$36 sps:$4 sm:$0xff]   ;;  %v2740_v31 = vadd.f32 %v6312_v21, %v6506_v4 }
 0x1de   : > { %v3022_v61 = vpop.f32.mrf.mxu1  ;;  %v3183_v55 = vpop.f32.mrf.mxu0 }
 0x1e0   : > { %v3023_v13 = vpop.f32.mrf.mxu1  ;;  %v3184_v25 = vpop.f32.mrf.mxu0 }
 0x1e1   : > { %v6631_v35 = vadd.f32 %v3023_v13, %v2735_v56  ;;  %v6634_v40 = vadd.f32 %v3184_v25, %v6369_v54  ;;  %v2743_v56 = vadd.f32 %v6312_v21, %v6512_v3  ;;  %v5674_v25 = vld [vmem:[%s5846_s28 + $0x7f0] ss:$36 sps:$4 sm:$0xff]  }
 0x1e2   : > { %v3025_v38 = vpop.f32.mrf.mxu1  ;;  %v3186_v41 = vpop.f32.mrf.mxu0 }
 0x1e3   : > { %v5677_v38 = vld [vmem:[%s5846_s28 + $0x378] ss:$36 sps:$4 sm:$0xff]  }
 0x1e4   : > { %v3028_v48 = vpop.f32.mrf.mxu1  ;;  %v3189_v58 = vpop.f32.mrf.mxu0  ;;  %3380 = vmatmul.mubr.bf16.gmra.mxu0 %v5668_v42  ;;  %3541 = vmatmul.mubr.bf16.gmra.mxu1 %v5671_v8  ;;  %v5683_v8 = vld [vmem:[%s5846_s28 + $0x83c] ss:$36 sps:$4 sm:$0xff]  }
 0x1e5   : > { %v6640_v59 = vadd.f32 %v3028_v48, %v2740_v31  ;;  %v6643_v54 = vadd.f32 %v3189_v58, %v6377_v9  ;;  %3387 = vmatprep.mubr.bf16.mxu0 %v5676_v39  ;;  %3548 = vmatprep.mubr.bf16.mxu1 %v5679_v46  ;;  %v5686_v31 = vld [vmem:[%s5846_s28 + $0x3c4] ss:$36 sps:$4 sm:$0xff]   ;;  %v2748_v46 = vadd.f32 %v6312_v21, %v6522_v52 }
 0x1e6   : > { %v3030_v61 = vpop.f32.mrf.mxu1  ;;  %v3191_v55 = vpop.f32.mrf.mxu0 }
 0x1e8   : > { %v3031_v13 = vpop.f32.mrf.mxu1  ;;  %v3192_v4 = vpop.f32.mrf.mxu0 }
 0x1e9   : > { %v6649_v41 = vadd.f32 %v3031_v13, %v2743_v56  ;;  %v6652_v42 = vadd.f32 %v3192_v4, %v6385_v28  ;;  %v2751_v56 = vadd.f32 %v6312_v21, %v6528_v24  ;;  %v5681_v4 = vld [vmem:[%s5846_s28 + $0x838] ss:$36 sps:$4 sm:$0xff]  }
 0x1ea   : > { %v3033_v9 = vpop.f32.mrf.mxu1  ;;  %v3194_v39 = vpop.f32.mrf.mxu0 }
 0x1eb   : > { %v5684_v9 = vld [vmem:[%s5846_s28 + $0x3c0] ss:$36 sps:$4 sm:$0xff]  }
 0x1ec   : > { %v3036_v48 = vpop.f32.mrf.mxu1  ;;  %v3197_v3 = vpop.f32.mrf.mxu0  ;;  %3388 = vmatmul.mubr.bf16.gmra.mxu0 %v5674_v25  ;;  %3549 = vmatmul.mubr.bf16.gmra.mxu1 %v5677_v38  ;;  %v5689_v38 = vld [vmem:[%s5846_s28 + $0x884] ss:$36 sps:$4 sm:$0xff]  }
 0x1ed   : > { %v6658_v58 = vadd.f32 %v3036_v48, %v2748_v46  ;;  %v6661_v28 = vadd.f32 %v3197_v3, %v6393_v22  ;;  %3395 = vmatprep.mubr.bf16.mxu0 %v5683_v8  ;;  %3556 = vmatprep.mubr.bf16.mxu1 %v5686_v31  ;;  %v5692_v46 = vld [vmem:[%s5846_s28 + $0x40c] ss:$36 sps:$4 sm:$0xff]   ;;  %v2756_v31 = vadd.f32 %v6312_v21, %v6538_v36 }
 0x1ee   : > { %v3038_v61 = vpop.f32.mrf.mxu1  ;;  %v3199_v55 = vpop.f32.mrf.mxu0 }
 0x1f0   : > { %v3039_v13 = vpop.f32.mrf.mxu1  ;;  %v3200_v52 = vpop.f32.mrf.mxu0 }
 0x1f1   : > { %v6667_v39 = vadd.f32 %v3039_v13, %v2751_v56  ;;  %v6670_v25 = vadd.f32 %v3200_v52, %v6404_v2  ;;  %v2759_v56 = vadd.f32 %v6312_v21, %v6544_v47  ;;  %v5687_v52 = vld [vmem:[%s5846_s28 + $0x880] ss:$36 sps:$4 sm:$0xff]  }
 0x1f2   : > { %v3041_v22 = vpop.f32.mrf.mxu1  ;;  %v3202_v8 = vpop.f32.mrf.mxu0 }
 0x1f3   : > { %v5690_v22 = vld [vmem:[%s5846_s28 + $0x408] ss:$36 sps:$4 sm:$0xff]  }
 0x1f4   : > { %v3044_v48 = vpop.f32.mrf.mxu1  ;;  %v3205_v24 = vpop.f32.mrf.mxu0  ;;  %3396 = vmatmul.mubr.bf16.gmra.mxu0 %v5681_v4  ;;  %3557 = vmatmul.mubr.bf16.gmra.mxu1 %v5684_v9  ;;  %v5695_v9 = vld [vmem:[%s5846_s28 + $0x8cc] ss:$36 sps:$4 sm:$0xff]  }
 0x1f5   : > { %v6676_v3 = vadd.f32 %v3044_v48, %v2756_v31  ;;  %v6679_v2 = vadd.f32 %v3205_v24, %v6412_v27  ;;  %3403 = vmatprep.mubr.bf16.mxu0 %v5689_v38  ;;  %3564 = vmatprep.mubr.bf16.mxu1 %v5692_v46  ;;  %v5698_v31 = vld [vmem:[%s5846_s28 + $0x454] ss:$36 sps:$4 sm:$0xff]   ;;  %v2764_v46 = vadd.f32 %v6312_v21, %v6554_v15 }
 0x1f6   : > { %v3046_v61 = vpop.f32.mrf.mxu1  ;;  %v3207_v55 = vpop.f32.mrf.mxu0 }
 0x1f8   : > { %v3047_v13 = vpop.f32.mrf.mxu1  ;;  %v3208_v36 = vpop.f32.mrf.mxu0 }
 0x1f9   : > { %v6685_v8 = vadd.f32 %v3047_v13, %v2759_v56  ;;  %v6688_v4 = vadd.f32 %v3208_v36, %v6420_v50  ;;  %v2767_v56 = vadd.f32 %v6312_v21, %v6560_v14  ;;  %v5693_v36 = vld [vmem:[%s5846_s28 + $0x8c8] ss:$36 sps:$4 sm:$0xff]  }
 0x1fa   : > { %v3049_v27 = vpop.f32.mrf.mxu1  ;;  %v3210_v38 = vpop.f32.mrf.mxu0 }
 0x1fb   : > { %v5696_v27 = vld [vmem:[%s5846_s28 + $0x450] ss:$36 sps:$4 sm:$0xff]  }
 0x1fc   : > { %v3052_v48 = vpop.f32.mrf.mxu1  ;;  %v3213_v47 = vpop.f32.mrf.mxu0  ;;  %3404 = vmatmul.mubr.bf16.gmra.mxu0 %v5687_v52  ;;  %3565 = vmatmul.mubr.bf16.gmra.mxu1 %v5690_v22  ;;  %v5701_v22 = vld [vmem:[%s5846_s28 + $0x49c] ss:$36 sps:$4 sm:$0xff]  }
 0x1fd   : > { %v6694_v24 = vadd.f32 %v3052_v48, %v2764_v46  ;;  %v6697_v50 = vadd.f32 %v3213_v47, %v6428_v10  ;;  %3411 = vmatprep.mubr.bf16.mxu0 %v5695_v9  ;;  %3572 = vmatprep.mubr.bf16.mxu1 %v5698_v31  ;;  %v5702_v46 = vld [vmem:[%s5846_s28 + $0x20] ss:$36 sps:$4 sm:$0xff]   ;;  %v2772_v31 = vadd.f32 %v6312_v21, %v6570_v37 }
 0x1fe   : > { %v3054_v61 = vpop.f32.mrf.mxu1  ;;  %v3215_v55 = vpop.f32.mrf.mxu0 }
 0x200   : > { %v3055_v13 = vpop.f32.mrf.mxu1  ;;  %v3216_v15 = vpop.f32.mrf.mxu0 }
 0x201   : > { %v6703_v38 = vadd.f32 %v3055_v13, %v2767_v56  ;;  %v6706_v52 = vadd.f32 %v3216_v15, %v6436_v33  ;;  %v2775_v56 = vadd.f32 %v6312_v21, %v6576_v43  ;;  %v5699_v15 = vld [vmem:[%s5846_s28 + $0x498] ss:$36 sps:$4 sm:$0xff]  }
 0x202   : > { %v3057_v10 = vpop.f32.mrf.mxu1  ;;  %v3218_v9 = vpop.f32.mrf.mxu0 }
 0x203   : > { %v5703_v10 = vld [vmem:[%s5846_s28 + $0x68] ss:$36 sps:$4 sm:$0xff]  }
 0x204   : > { %v3060_v48 = vpop.f32.mrf.mxu1  ;;  %v3221_v14 = vpop.f32.mrf.mxu0  ;;  %3412 = vmatmul.mubr.bf16.gmra.mxu0 %v5693_v36  ;;  %3573 = vmatmul.mubr.bf16.gmra.mxu1 %v5696_v27  ;;  %v5706_v27 = vld [vmem:[%s5846_s28 + $0x4e4] ss:$36 sps:$4 sm:$0xff]  }
 0x205   : > { %v6712_v47 = vadd.f32 %v3060_v48, %v2772_v31  ;;  %v6715_v33 = vadd.f32 %v3221_v14, %v6444_v30  ;;  %3580 = vmatprep.mubr.bf16.mxu1 %v5701_v22  ;;  %5185 = vmatprep.mubr.bf16.mxu0 %v5702_v46  ;;  %v5707_v31 = vld [vmem:[%s5846_s28 + $0xb0] ss:$36 sps:$4 sm:$0xff]   ;;  %v2780_v22 = vadd.f32 %v6312_v21, %v6210_v44  ;;  %v6738_v44 = vld [vmem:[%s7268_s2] ss:$0 sm:$0xff] }
 0x206   : > { %v3062_v61 = vpop.f32.mrf.mxu1  ;;  %v3223_v55 = vpop.f32.mrf.mxu0  ;;  %v2783_v21 = vadd.f32 %v6738_v44, %v6218_v49 }
 0x208   : > { %v3063_v13 = vpop.f32.mrf.mxu1  ;;  %v3224_v37 = vpop.f32.mrf.mxu0 }
 0x209   : > { %v6721_v9 = vadd.f32 %v3063_v13, %v2775_v56  ;;  %v6724_v36 = vadd.f32 %v3224_v37, %v6452_v18  ;;  %v5704_v37 = vld [vmem:[%s5846_s28 + $0x4e0] ss:$36 sps:$4 sm:$0xff]  }
 0x20a   : > { %v3065_v30 = vpop.f32.mrf.mxu1  ;;  %v3226_v48 = vpop.f32.mrf.mxu0 }
 0x20c   : > { %v3068_v46 = vpop.f32.mrf.mxu1  ;;  %v3229_v43 = vpop.f32.mrf.mxu0  ;;  %3581 = vmatmul.mubr.bf16.gmra.mxu1 %v5699_v15  ;;  %5186 = vmatmul.mubr.bf16.vlgmr.msra.gmra.mxu0 %v5703_v10  ;;  %v5708_v15 = vld [vmem:[%s5846_s28 + $0xf8] ss:$36 sps:$4 sm:$0xff]  }
 0x20d   : > { %v6730_v14 = vadd.f32 %v3068_v46, %v2780_v22  ;;  %v6733_v18 = vadd.f32 %v3229_v43, %v6460_v6  ;;  %3588 = vmatprep.mubr.bf16.mxu1 %v5706_v27  ;;  %5189 = vmatprep.mubr.bf16.mxu0 %v5707_v31  ;;  %v5711_v27 = vld [vmem:[%s5846_s28 + $0x52c] ss:$36 sps:$4 sm:$0xff]   ;;  %v5712_v31 = vld [vmem:[%s5846_s28 + $0x140] ss:$36 sps:$4 sm:$0xff]   ;;  %v2788_v22 = vadd.f32 %v6738_v44, %v6229_v57 }
 0x20e   : > { %v3070_v61 = vpop.f32.mrf.mxu1  ;;  %v3231_v55 = vpop.f32.mrf.mxu0 }
 0x210   : > { %v3071_v56 = vpop.f32.mrf.mxu1  ;;  %v3232_v13 = vpop.f32.mrf.mxu0 }
 0x211   : > { %v6744_v10 = vadd.f32 %v3071_v56, %v2783_v21  ;;  %v6747_v6 = vadd.f32 %v3232_v13, %v6468_v29  ;;  %v2791_v21 = vadd.f32 %v6738_v44, %v6236_v62  ;;  %v5709_v13 = vld [vmem:[%s5846_s28 + $0x528] ss:$36 sps:$4 sm:$0xff]  }
 0x212   : > { %v3073_v30 = vpop.f32.mrf.mxu1  ;;  %v3234_v48 = vpop.f32.mrf.mxu0 }
 0x213   : > { %v5713_v30 = vld [vmem:[%s5846_s28 + $0x188] ss:$36 sps:$4 sm:$0xff]  }
 0x214   : > { %v3076_v46 = vpop.f32.mrf.mxu1  ;;  %v3237_v49 = vpop.f32.mrf.mxu0  ;;  %3589 = vmatmul.mubr.bf16.gmra.mxu1 %v5704_v37  ;;  %5190 = vmatmul.mubr.bf16.gmra.mxu0 %v5708_v15  ;;  %v5716_v15 = vld [vmem:[%s5846_s28 + $0x574] ss:$36 sps:$4 sm:$0xff]  }
 0x215   : > { %v6753_v43 = vadd.f32 %v3076_v46, %v2788_v22  ;;  %v6756_v29 = vadd.f32 %v3237_v49, %v6476_v1  ;;  %3596 = vmatprep.mubr.bf16.mxu1 %v5711_v27  ;;  %5193 = vmatprep.mubr.bf16.mxu0 %v5712_v31  ;;  %v5717_v22 = vld [vmem:[%s5846_s28 + $0x1d0] ss:$36 sps:$4 sm:$0xff]   ;;  %v2796_v31 = vadd.f32 %v6738_v44, %v6244_v7 }
 0x216   : > { %v3078_v61 = vpop.f32.mrf.mxu1  ;;  %v3239_v55 = vpop.f32.mrf.mxu0 }
 0x218   : > { %v3079_v56 = vpop.f32.mrf.mxu1  ;;  %v3240_v57 = vpop.f32.mrf.mxu0 }
 0x219   : > { %v6762_v48 = vadd.f32 %v3079_v56, %v2791_v21  ;;  %v6765_v37 = vadd.f32 %v3240_v57, %v6484_v17  ;;  %v2799_v21 = vadd.f32 %v6738_v44, %v6248_v11  ;;  %v5714_v57 = vld [vmem:[%s5846_s28 + $0x570] ss:$36 sps:$4 sm:$0xff]  }
 0x21a   : > { %v3081_v1 = vpop.f32.mrf.mxu1  ;;  %v3242_v27 = vpop.f32.mrf.mxu0 }
 0x21b   : > { %v5718_v1 = vld [vmem:[%s5846_s28 + $0x218] ss:$36 sps:$4 sm:$0xff]  }
 0x21c   : > { %v3084_v46 = vpop.f32.mrf.mxu1  ;;  %v3245_v62 = vpop.f32.mrf.mxu0  ;;  %3597 = vmatmul.mubr.bf16.gmra.mxu1 %v5709_v13  ;;  %5194 = vmatmul.mubr.bf16.gmra.mxu0 %v5713_v30  ;;  %v5721_v30 = vld [vmem:[%s5846_s28 + $0x5bc] ss:$36 sps:$4 sm:$0xff]  }
 0x21d   : > { %v6771_v49 = vadd.f32 %v3084_v46, %v2796_v31  ;;  %v6774_v17 = vadd.f32 %v3245_v62, %v6492_v45  ;;  %3604 = vmatprep.mubr.bf16.mxu1 %v5716_v15  ;;  %5197 = vmatprep.mubr.bf16.mxu0 %v5717_v22  ;;  %v5722_v31 = vld [vmem:[%s5846_s28 + $0x260] ss:$36 sps:$4 sm:$0xff]   ;;  %v2804_v22 = vadd.f32 %v6738_v44, %v6256_v19 }
 0x21e   : > { %v3086_v61 = vpop.f32.mrf.mxu1  ;;  %v3247_v55 = vpop.f32.mrf.mxu0 }
 0x220   : > { %v3087_v56 = vpop.f32.mrf.mxu1  ;;  %v3248_v7 = vpop.f32.mrf.mxu0 }
 0x221   : > { %v6780_v27 = vadd.f32 %v3087_v56, %v2799_v21  ;;  %v6783_v13 = vadd.f32 %v3248_v7, %v6500_v60  ;;  %v7290_v21 = vld [vmem:[#allocation2_spill] sm:$0xff] }
 0x222   : > { %v3089_v45 = vpop.f32.mrf.mxu1  ;;  %v3250_v15 = vpop.f32.mrf.mxu0  ;;  %v2807_v56 = vadd.f32 %v6738_v44, %v7290_v21 }
 0x223   : > { %7287 = vst [vmem:[#allocation19_spill] sm:$0xff] %v6783_v13  ;;  %v5719_v45 = vld [vmem:[%s5846_s28 + $0x5b8] ss:$36 sps:$4 sm:$0xff]   ;;  %v5723_v15 = vld [vmem:[%s5846_s28 + $0x2a8] ss:$36 sps:$4 sm:$0xff]  }
 0x224   : > { %v3092_v46 = vpop.f32.mrf.mxu1  ;;  %v3253_v11 = vpop.f32.mrf.mxu0  ;;  %3605 = vmatmul.mubr.bf16.gmra.mxu1 %v5714_v57  ;;  %5198 = vmatmul.mubr.bf16.gmra.mxu0 %v5718_v1  ;;  %v7292_v57 = vld [vmem:[#allocation11_spill] sm:$0xff] }
 0x225   : > { %v6789_v62 = vadd.f32 %v3092_v46, %v2804_v22  ;;  %v6792_v60 = vadd.f32 %v3253_v11, %v6508_v16  ;;  %3612 = vmatprep.mubr.bf16.mxu1 %v5721_v30  ;;  %5201 = vmatprep.mubr.bf16.mxu0 %v5722_v31  ;;  %v5726_v22 = vld [vmem:[%s5846_s28 + $0x604] ss:$36 sps:$4 sm:$0xff]   ;;  %v5727_v46 = vld [vmem:[%s5846_s28 + $0x2f0] ss:$36 sps:$4 sm:$0xff]  }
 0x226   : > { %v3094_v61 = vpop.f32.mrf.mxu1  ;;  %v3255_v55 = vpop.f32.mrf.mxu0  ;;  %v7294_v31 = vld [vmem:[#allocation3_spill] sm:$0xff] }
 0x227   : > { %7288 = vst [vmem:[#allocation20_spill] sm:$0xff] %v6789_v62  ;;  %7289 = vst [vmem:[#allocation21_spill] sm:$0xff] %v6792_v60  ;;  %v2812_v11 = vadd.f32 %v6738_v44, %v7294_v31  ;;  %v5728_v60 = vld [vmem:[%s5846_s28 + $0x338] ss:$36 sps:$4 sm:$0xff]  }
 0x228   : > { %v3095_v7 = vpop.f32.mrf.mxu1  ;;  %v3256_v19 = vpop.f32.mrf.mxu0 }
 0x229   : > { %v6798_v13 = vadd.f32 %v3095_v7, %v2807_v56  ;;  %v6801_v1 = vadd.f32 %v3256_v19, %v7292_v57  ;;  %v7296_v56 = vld [vmem:[#allocation12_spill] sm:$0xff] }
 0x22a   : > { %v3097_v16 = vpop.f32.mrf.mxu1  ;;  %v3258_v30 = vpop.f32.mrf.mxu0 }
 0x22b   : > { %7291 = vst [vmem:[#allocation2_spill] sm:$0xff] %v6798_v13  ;;  %7293 = vst [vmem:[#allocation11_spill] sm:$0xff] %v6801_v1  ;;  %v7298_v16 = vld [vmem:[#allocation4_spill] sm:$0xff]  ;;  %v5724_v13 = vld [vmem:[%s5846_s28 + $0x600] ss:$36 sps:$4 sm:$0xff]  }
 0x22c   : > { %v3100_v61 = vpop.f32.mrf.mxu1  ;;  %v3261_v55 = vpop.f32.mrf.mxu0  ;;  %3613 = vmatmul.mubr.bf16.gmra.mxu1 %v5719_v45  ;;  %5202 = vmatmul.mubr.bf16.gmra.mxu0 %v5723_v15  ;;  %v2815_v30 = vadd.f32 %v6738_v44, %v7298_v16  ;;  %v7300_v45 = vld [vmem:[#allocation13_spill] sm:$0xff]  ;;  %v7304_v16 = vld [vmem:[#allocation14_spill] sm:$0xff] }
 0x22d   : > { %v6807_v21 = vadd.f32 %v3100_v61, %v2812_v11  ;;  %v6810_v7 = vadd.f32 %v3261_v55, %v7296_v56  ;;  %3620 = vmatprep.mubr.bf16.mxu1 %v5726_v22  ;;  %5205 = vmatprep.mubr.bf16.mxu0 %v5727_v46  ;;  %v5731_v11 = vld [vmem:[%s5846_s28 + $0x64c] ss:$36 sps:$4 sm:$0xff]   ;;  %v5732_v61 = vld [vmem:[%s5846_s28 + $0x380] ss:$36 sps:$4 sm:$0xff]   ;;  %v7302_v46 = vld [vmem:[#allocation5_spill] sm:$0xff] }
 0x22e   : > { %v3102_v19 = vpop.f32.mrf.mxu1  ;;  %v3263_v57 = vpop.f32.mrf.mxu0  ;;  %v2820_v56 = vadd.f32 %v6738_v44, %v7302_v46 }
 0x22f   : > { %7295 = vst [vmem:[#allocation3_spill] sm:$0xff] %v6807_v21  ;;  %7297 = vst [vmem:[#allocation12_spill] sm:$0xff] %v6810_v7  ;;  %v5733_v7 = vld [vmem:[%s5846_s28 + $0x3c8] ss:$36 sps:$4 sm:$0xff]  }
 0x230   : > { %v3103_v1 = vpop.f32.mrf.mxu1  ;;  %v3264_v31 = vpop.f32.mrf.mxu0 }
 0x231   : > { %v6816_v62 = vadd.f32 %v3103_v1, %v2815_v30  ;;  %v6819_v15 = vadd.f32 %v3264_v31, %v7300_v45 }
 0x232   : > { %v3105_v55 = vpop.f32.mrf.mxu1  ;;  %v3266_v22 = vpop.f32.mrf.mxu0 }
 0x233   : > { %7299 = vst [vmem:[#allocation4_spill] sm:$0xff] %v6816_v62  ;;  %7301 = vst [vmem:[#allocation13_spill] sm:$0xff] %v6819_v15  ;;  %v7306_v55 = vld [vmem:[#allocation6_spill] sm:$0xff]  ;;  %v5729_v62 = vld [vmem:[%s5846_s28 + $0x648] ss:$36 sps:$4 sm:$0xff]  }
 0x234   : > { %v3108_v19 = vpop.f32.mrf.mxu1  ;;  %v3269_v57 = vpop.f32.mrf.mxu0  ;;  %3621 = vmatmul.mubr.bf16.gmra.mxu1 %v5724_v13  ;;  %5206 = vmatmul.mubr.bf16.gmra.mxu0 %v5728_v60  ;;  %v2823_v22 = vadd.f32 %v6738_v44, %v7306_v55  ;;  %v7308_v13 = vld [vmem:[#allocation15_spill] sm:$0xff]  ;;  %v7311_v55 = vld [vmem:[#allocation16_spill] sm:$0xff] }
 0x235   : > { %v6825_v1 = vadd.f32 %v3108_v19, %v2820_v56  ;;  %v6828_v30 = vadd.f32 %v3269_v57, %v7304_v16  ;;  %3628 = vmatprep.mubr.bf16.mxu1 %v5731_v11  ;;  %5209 = vmatprep.mubr.bf16.mxu0 %v5732_v61  ;;  %v5736_v56 = vld [vmem:[%s5846_s28 + $0x694] ss:$36 sps:$4 sm:$0xff]   ;;  %v7310_v61 = vld [vmem:[#allocation7_spill] sm:$0xff] }
 0x236   : > { %v3110_v31 = vpop.f32.mrf.mxu1  ;;  %v3271_v45 = vpop.f32.mrf.mxu0  ;;  %v5737_v19 = vld [vmem:[%s5846_s28 + $0x410] ss:$36 sps:$4 sm:$0xff]   ;;  %v2828_v16 = vadd.f32 %v6738_v44, %v7310_v61 }
 0x237   : > { %7303 = vst [vmem:[#allocation5_spill] sm:$0xff] %v6825_v1  ;;  %7305 = vst [vmem:[#allocation14_spill] sm:$0xff] %v6828_v30  ;;  %v5738_v30 = vld [vmem:[%s5846_s28 + $0x458] ss:$36 sps:$4 sm:$0xff]  }
 0x238   : > { %v3111_v15 = vpop.f32.mrf.mxu1  ;;  %v3272_v46 = vpop.f32.mrf.mxu0 }
 0x239   : > { %v6834_v21 = vadd.f32 %v3111_v15, %v2823_v22  ;;  %v6837_v60 = vadd.f32 %v3272_v46, %v7308_v13 }
 0x23a   : > { %v3113_v57 = vpop.f32.mrf.mxu1  ;;  %v3274_v11 = vpop.f32.mrf.mxu0 }
 0x23b   : > { %7307 = vst [vmem:[#allocation6_spill] sm:$0xff] %v6834_v21  ;;  %7309 = vst [vmem:[#allocation15_spill] sm:$0xff] %v6837_v60  ;;  %v7313_v57 = vld [vmem:[#allocation8_spill] sm:$0xff] }
 0x23c   : > { %v3116_v31 = vpop.f32.mrf.mxu1  ;;  %v3277_v45 = vpop.f32.mrf.mxu0  ;;  %3629 = vmatmul.mubr.bf16.gmra.mxu1 %v5729_v62  ;;  %5210 = vmatmul.mubr.bf16.gmra.mxu0 %v5733_v7  ;;  %v2831_v11 = vadd.f32 %v6738_v44, %v7313_v57  ;;  %v5734_v21 = vld [vmem:[%s5846_s28 + $0x690] ss:$36 sps:$4 sm:$0xff]   ;;  %v7315_v62 = vld [vmem:[#allocation17_spill] sm:$0xff] }
 0x23d   : > { %v6843_v15 = vadd.f32 %v3116_v31, %v2828_v16  ;;  %v6846_v22 = vadd.f32 %v3277_v45, %v7311_v55  ;;  %3636 = vmatprep.mubr.bf16.mxu1 %v5736_v56  ;;  %5213 = vmatprep.mubr.bf16.mxu0 %v5737_v19  ;;  %v5741_v16 = vld [vmem:[%s5846_s28 + $0x6dc] ss:$36 sps:$4 sm:$0xff]  }
 0x23e   : > { %v3118_v46 = vpop.f32.mrf.mxu1  ;;  %v3279_v13 = vpop.f32.mrf.mxu0  ;;  %v5742_v31 = vld [vmem:[%s5846_s28 + $0x4a0] ss:$36 sps:$4 sm:$0xff]   ;;  %v7317_v19 = vld [vmem:[#allocation9_spill] sm:$0xff] }
 0x23f   : > { %7312 = vst [vmem:[#allocation7_spill] sm:$0xff] %v6846_v22  ;;  %v2836_v55 = vadd.f32 %v6738_v44, %v7317_v19 }
 0x240   : > { %v3119_v60 = vpop.f32.mrf.mxu1  ;;  %v3280_v61 = vpop.f32.mrf.mxu0 }
 0x241   : > { %v6852_v1 = vadd.f32 %v3119_v60, %v2831_v11  ;;  %v6855_v7 = vadd.f32 %v3280_v61, %v7315_v62  ;;  %v7318_v62 = vld [vmem:[#allocation10_spill] sm:$0xff] }
 0x242   : > { %v3121_v45 = vpop.f32.mrf.mxu1  ;;  %v3282_v56 = vpop.f32.mrf.mxu0 }
 0x243   : > { %7314 = vst [vmem:[#allocation16_spill] sm:$0xff] %v6852_v1  ;;  %7316 = vst [vmem:[#allocation8_spill] sm:$0xff] %v6855_v7  ;;  %v2839_v45 = vadd.f32 %v6738_v44, %v7318_v62  ;;  %v5739_v7 = vld [vmem:[%s5846_s28 + $0x6d8] ss:$36 sps:$4 sm:$0xff]   ;;  %v5743_v1 = vld [vmem:[%s5846_s28 + $0x4e8] ss:$36 sps:$4 sm:$0xff]  }
 0x244   : > { %v3124_v46 = vpop.f32.mrf.mxu1  ;;  %v3285_v13 = vpop.f32.mrf.mxu0  ;;  %3637 = vmatmul.mubr.bf16.gmra.mxu1 %v5734_v21  ;;  %5214 = vmatmul.mubr.bf16.gmra.mxu0 %v5738_v30  ;;  %v7319_v21 = vld [vmem:[#allocation18_spill] sm:$0xff] }
 0x245   : > { %v6861_v60 = vadd.f32 %v3124_v46, %v2836_v55  ;;  %v6864_v57 = vadd.f32 %v3285_v13, %v6572_v23  ;;  %3644 = vmatprep.mubr.bf16.mxu1 %v5741_v16  ;;  %5217 = vmatprep.mubr.bf16.mxu0 %v5742_v31  ;;  %v5746_v55 = vld [vmem:[%s5846_s28 + $0x724] ss:$36 sps:$4 sm:$0xff]   ;;  %v5747_v23 = vld [vmem:[%s5846_s28 + $0x530] ss:$36 sps:$4 sm:$0xff]  }
 0x246   : > { %v3126_v11 = vpop.f32.mrf.mxu1  ;;  %v3287_v61 = vpop.f32.mrf.mxu0 }
 0x248   : > { %v3127_v56 = vpop.f32.mrf.mxu1  ;;  %v3288_v19 = vpop.f32.mrf.mxu0 }
 0x249   : > { %v6870_v22 = vadd.f32 %v3127_v56, %v2839_v45  ;;  %v6873_v30 = vadd.f32 %v3288_v19, %v7319_v21  ;;  %v5744_v19 = vld [vmem:[%s5846_s28 + $0x720] ss:$36 sps:$4 sm:$0xff]   ;;  %v5748_v21 = vld [vmem:[%s5846_s28 + $0x578] ss:$36 sps:$4 sm:$0xff]  }
 0x24a   : > { %v3129_v16 = vpop.f32.mrf.mxu1  ;;  %v3290_v31 = vpop.f32.mrf.mxu0 }
 0x24c   : > { %v3293_v46 = vpop.f32.mrf.mxu0  ;;  %v3454_v13 = vpop.f32.mrf.mxu1  ;;  %3645 = vmatmul.mubr.bf16.gmra.mxu1 %v5739_v7  ;;  %5218 = vmatmul.mubr.bf16.gmra.mxu0 %v5743_v1  ;;  %v5751_v1 = vld [vmem:[%s5846_s28 + $0x76c] ss:$36 sps:$4 sm:$0xff]  }
 0x24d   : > { %v6878_v44 = vadd.f32 %v3293_v46, %v6586_v12  ;;  %v6881_v11 = vadd.f32 %v3454_v13, %v6589_v20  ;;  %3652 = vmatprep.mubr.bf16.mxu1 %v5746_v55  ;;  %5221 = vmatprep.mubr.bf16.mxu0 %v5747_v23  ;;  %v5752_v12 = vld [vmem:[%s5846_s28 + $0x5c0] ss:$36 sps:$4 sm:$0xff]  }
 0x24e   : > { %v3295_v61 = vpop.f32.mrf.mxu0  ;;  %v3456_v62 = vpop.f32.mrf.mxu1 }
 0x250   : > { %v3296_v45 = vpop.f32.mrf.mxu0  ;;  %v3457_v56 = vpop.f32.mrf.mxu1 }
 0x251   : > { %v6886_v16 = vadd.f32 %v3296_v45, %v6595_v5  ;;  %v6889_v7 = vadd.f32 %v3457_v56, %v6598_v53  ;;  %v5749_v45 = vld [vmem:[%s5846_s28 + $0x768] ss:$36 sps:$4 sm:$0xff]  }
 0x252   : > { %v3298_v20 = vpop.f32.mrf.mxu0  ;;  %v3459_v31 = vpop.f32.mrf.mxu1  ;;  %v5753_v56 = vld [vmem:[%s5846_s28 + $0x608] ss:$36 sps:$4 sm:$0xff]  }
 0x254   : > { %v3301_v55 = vpop.f32.mrf.mxu0  ;;  %v3462_v23 = vpop.f32.mrf.mxu1  ;;  %3653 = vmatmul.mubr.bf16.gmra.mxu1 %v5744_v19  ;;  %5222 = vmatmul.mubr.bf16.gmra.mxu0 %v5748_v21  ;;  %v5756_v21 = vld [vmem:[%s5846_s28 + $0x7b4] ss:$36 sps:$4 sm:$0xff]  }
 0x255   : > { %v6894_v46 = vadd.f32 %v3301_v55, %v6604_v63  ;;  %v6897_v5 = vadd.f32 %v3462_v23, %v6607_v32  ;;  %3660 = vmatprep.mubr.bf16.mxu1 %v5751_v1  ;;  %5225 = vmatprep.mubr.bf16.mxu0 %v5752_v12  ;;  %v5757_v63 = vld [vmem:[%s5846_s28 + $0x650] ss:$36 sps:$4 sm:$0xff]  }
 0x256   : > { %v3303_v53 = vpop.f32.mrf.mxu0  ;;  %v3464_v13 = vpop.f32.mrf.mxu1 }
 0x258   : > { %v3304_v61 = vpop.f32.mrf.mxu0  ;;  %v3465_v62 = vpop.f32.mrf.mxu1 }
 0x259   : > { %v6902_v20 = vadd.f32 %v3304_v61, %v6613_v34  ;;  %v6905_v19 = vadd.f32 %v3465_v62, %v6616_v0  ;;  %v5754_v61 = vld [vmem:[%s5846_s28 + $0x7b0] ss:$36 sps:$4 sm:$0xff]   ;;  %v5758_v62 = vld [vmem:[%s5846_s28 + $0x698] ss:$36 sps:$4 sm:$0xff]  }
 0x25a   : > { %v3306_v32 = vpop.f32.mrf.mxu0  ;;  %v3467_v31 = vpop.f32.mrf.mxu1 }
 0x25c   : > { %v3309_v1 = vpop.f32.mrf.mxu0  ;;  %v3470_v12 = vpop.f32.mrf.mxu1  ;;  %3661 = vmatmul.mubr.bf16.gmra.mxu1 %v5749_v45  ;;  %5226 = vmatmul.mubr.bf16.gmra.mxu0 %v5753_v56  ;;  %v5761_v56 = vld [vmem:[%s5846_s28 + $0x7fc] ss:$36 sps:$4 sm:$0xff]  }
 0x25d   : > { %v6910_v55 = vadd.f32 %v3309_v1, %v6622_v51  ;;  %v6913_v34 = vadd.f32 %v3470_v12, %v6625_v26  ;;  %3668 = vmatprep.mubr.bf16.mxu1 %v5756_v21  ;;  %5229 = vmatprep.mubr.bf16.mxu0 %v5757_v63  ;;  %v5762_v51 = vld [vmem:[%s5846_s28 + $0x6e0] ss:$36 sps:$4 sm:$0xff]  }
 0x25e   : > { %v3311_v0 = vpop.f32.mrf.mxu0  ;;  %v3472_v23 = vpop.f32.mrf.mxu1 }
 0x260   : > { %v3312_v53 = vpop.f32.mrf.mxu0  ;;  %v3473_v13 = vpop.f32.mrf.mxu1 }
 0x261   : > { %v6918_v32 = vadd.f32 %v3312_v53, %v6631_v35  ;;  %v6921_v45 = vadd.f32 %v3473_v13, %v6634_v40  ;;  %v5759_v53 = vld [vmem:[%s5846_s28 + $0x7f8] ss:$36 sps:$4 sm:$0xff]   ;;  %v5763_v13 = vld [vmem:[%s5846_s28 + $0x728] ss:$36 sps:$4 sm:$0xff]  }
 0x262   : > { %v3314_v26 = vpop.f32.mrf.mxu0  ;;  %v3475_v31 = vpop.f32.mrf.mxu1 }
 0x264   : > { %v3317_v21 = vpop.f32.mrf.mxu0  ;;  %v3478_v63 = vpop.f32.mrf.mxu1  ;;  %3669 = vmatmul.mubr.bf16.gmra.mxu1 %v5754_v61  ;;  %5230 = vmatmul.mubr.bf16.gmra.mxu0 %v5758_v62  ;;  %v5766_v62 = vld [vmem:[%s5846_s28 + $0x844] ss:$36 sps:$4 sm:$0xff]  }
 0x265   : > { %v6926_v1 = vadd.f32 %v3317_v21, %v6640_v59  ;;  %v6929_v35 = vadd.f32 %v3478_v63, %v6643_v54  ;;  %3676 = vmatprep.mubr.bf16.mxu1 %v5761_v56  ;;  %5233 = vmatprep.mubr.bf16.mxu0 %v5762_v51  ;;  %v5767_v59 = vld [vmem:[%s5846_s28 + $0x770] ss:$36 sps:$4 sm:$0xff]  }
 0x266   : > { %v3319_v40 = vpop.f32.mrf.mxu0  ;;  %v3480_v12 = vpop.f32.mrf.mxu1 }
 0x268   : > { %v3320_v0 = vpop.f32.mrf.mxu0  ;;  %v3481_v23 = vpop.f32.mrf.mxu1 }
 0x269   : > { %v6934_v26 = vadd.f32 %v3320_v0, %v6649_v41  ;;  %v6937_v61 = vadd.f32 %v3481_v23, %v6652_v42  ;;  %v5764_v0 = vld [vmem:[%s5846_s28 + $0x840] ss:$36 sps:$4 sm:$0xff]   ;;  %v5768_v23 = vld [vmem:[%s5846_s28 + $0x7b8] ss:$36 sps:$4 sm:$0xff]  }
 0x26a   : > { %v3322_v54 = vpop.f32.mrf.mxu0  ;;  %v3483_v31 = vpop.f32.mrf.mxu1 }
 0x26c   : > { %v3325_v56 = vpop.f32.mrf.mxu0  ;;  %v3486_v51 = vpop.f32.mrf.mxu1  ;;  %3677 = vmatmul.mubr.bf16.gmra.mxu1 %v5759_v53  ;;  %5234 = vmatmul.mubr.bf16.gmra.mxu0 %v5763_v13  ;;  %v5771_v13 = vld [vmem:[%s5846_s28 + $0x88c] ss:$36 sps:$4 sm:$0xff]  }
 0x26d   : > { %v6942_v21 = vadd.f32 %v3325_v56, %v6658_v58  ;;  %v6945_v41 = vadd.f32 %v3486_v51, %v6661_v28  ;;  %3684 = vmatprep.mubr.bf16.mxu1 %v5766_v62  ;;  %5237 = vmatprep.mubr.bf16.mxu0 %v5767_v59  ;;  %v5772_v58 = vld [vmem:[%s5846_s28 + $0x800] ss:$36 sps:$4 sm:$0xff]  }
 0x26e   : > { %v3327_v42 = vpop.f32.mrf.mxu0  ;;  %v3488_v63 = vpop.f32.mrf.mxu1 }
 0x270   : > { %v3328_v40 = vpop.f32.mrf.mxu0  ;;  %v3489_v12 = vpop.f32.mrf.mxu1 }
 0x271   : > { %v6950_v54 = vadd.f32 %v3328_v40, %v6667_v39  ;;  %v6953_v53 = vadd.f32 %v3489_v12, %v6670_v25  ;;  %v5769_v40 = vld [vmem:[%s5846_s28 + $0x888] ss:$36 sps:$4 sm:$0xff]  }
 0x272   : > { %v3330_v28 = vpop.f32.mrf.mxu0  ;;  %v3491_v31 = vpop.f32.mrf.mxu1  ;;  %v5773_v12 = vld [vmem:[%s5846_s28 + $0x848] ss:$36 sps:$4 sm:$0xff]  }
 0x274   : > { %v3333_v62 = vpop.f32.mrf.mxu0  ;;  %v3494_v59 = vpop.f32.mrf.mxu1  ;;  %3685 = vmatmul.mubr.bf16.gmra.mxu1 %v5764_v0  ;;  %5238 = vmatmul.mubr.bf16.gmra.mxu0 %v5768_v23  ;;  %v5776_v23 = vld [vmem:[%s5846_s28 + $0x8d4] ss:$36 sps:$4 sm:$0xff]  }
 0x275   : > { %v6958_v56 = vadd.f32 %v3333_v62, %v6676_v3  ;;  %v6961_v39 = vadd.f32 %v3494_v59, %v6679_v2  ;;  %3692 = vmatprep.mubr.bf16.mxu1 %v5771_v13  ;;  %5241 = vmatprep.mubr.bf16.mxu0 %v5772_v58  ;;  %v5777_v3 = vld [vmem:[%s5846_s28 + $0x890] ss:$36 sps:$4 sm:$0xff]  }
 0x276   : > { %v3335_v25 = vpop.f32.mrf.mxu0  ;;  %v3496_v51 = vpop.f32.mrf.mxu1 }
 0x278   : > { %v3336_v42 = vpop.f32.mrf.mxu0  ;;  %v3497_v63 = vpop.f32.mrf.mxu1 }
 0x279   : > { %v6966_v28 = vadd.f32 %v3336_v42, %v6685_v8  ;;  %v6969_v0 = vadd.f32 %v3497_v63, %v6688_v4  ;;  %v5774_v42 = vld [vmem:[%s5846_s28 + $0x8d0] ss:$36 sps:$4 sm:$0xff]   ;;  %v5778_v63 = vld [vmem:[%s5846_s28 + $0x8d8] ss:$36 sps:$4 sm:$0xff]   ;;  %s4446_s28 = sshll.u32 %s7369_s16, 2 }
 0x27a   : > { %v3338_v2 = vpop.f32.mrf.mxu0  ;;  %v3499_v31 = vpop.f32.mrf.mxu1  ;;  %s7108_s24 = scalar_lea.vmem %s7269_s3, %s4446_s28 }
 0x27c   : > { %v3341_v13 = vpop.f32.mrf.mxu0  ;;  %v3502_v58 = vpop.f32.mrf.mxu1  ;;  %3693 = vmatmul.mubr.bf16.gmra.mxu1 %v5769_v40  ;;  %5242 = vmatmul.mubr.bf16.gmra.mxu0 %v5773_v12 }
 0x27d   : > { %v6974_v62 = vadd.f32 %v3341_v13, %v6694_v24  ;;  %v6977_v59 = vadd.f32 %v3502_v58, %v6697_v50  ;;  %3700 = vmatprep.mubr.bf16.mxu1 %v5776_v23  ;;  %5245 = vmatprep.mubr.bf16.mxu0 %v5777_v3 }
 0x27e   : > { %v3343_v8 = vpop.f32.mrf.mxu0  ;;  %v3504_v4 = vpop.f32.mrf.mxu1 }
 0x280   : > { %v3344_v25 = vpop.f32.mrf.mxu0  ;;  %v3505_v51 = vpop.f32.mrf.mxu1 }
 0x281   : > { %v6982_v2 = vadd.f32 %v3344_v25, %v6703_v38  ;;  %v6985_v40 = vadd.f32 %v3505_v51, %v6706_v52 }
 0x282   : > { %v3346_v12 = vpop.f32.mrf.mxu0  ;;  %v3507_v24 = vpop.f32.mrf.mxu1 }
 0x283   : > { %7320 = vst [vmem:[#allocation17_spill] sm:$0xff] %v6982_v2  ;;  %v7344_v2 = vld [vmem:[#allocation6_spill] sm:$0xff] }
 0x284   : > { %v3349_v31 = vpop.f32.mrf.mxu0  ;;  %v3510_v13 = vpop.f32.mrf.mxu1  ;;  %3701 = vmatmul.mubr.bf16.gmra.mxu1 %v5774_v42  ;;  %5246 = vmatmul.mubr.bf16.gmra.mxu0 %v5778_v63 }
 0x285   : > { %v6988_v50 = vadd.f32 %v3349_v31, %v6712_v47  ;;  %v6991_v23 = vadd.f32 %v3510_v13, %v6715_v33 }
 0x286   : > { %v3351_v3 = vpop.f32.mrf.mxu0  ;;  %v3512_v58 = vpop.f32.mrf.mxu1 }
 0x288   : > { %v3352_v8 = vpop.f32.mrf.mxu0  ;;  %v3513_v38 = vpop.f32.mrf.mxu1 }
 0x289   : > { %v6994_v4 = vadd.f32 %v3352_v8, %v6721_v9  ;;  %v6997_v52 = vadd.f32 %v3513_v38, %v6724_v36 }
 0x28a   : > { %v3354_v25 = vpop.f32.mrf.mxu0  ;;  %v3515_v51 = vpop.f32.mrf.mxu1 }
 0x28b   : > { %7321 = vst [vmem:[#allocation9_spill] sm:$0xff] %v6994_v4  ;;  %v7348_v4 = vld [vmem:[#allocation16_spill] sm:$0xff] }
 0x28c   : > { %v3357_v42 = vpop.f32.mrf.mxu0  ;;  %v3518_v63 = vpop.f32.mrf.mxu1 }
 0x28d   : > { %v7000_v47 = vadd.f32 %v3357_v42, %v6730_v14  ;;  %v7003_v33 = vadd.f32 %v3518_v63, %v6733_v18 }
 0x28e   : > { %v3359_v12 = vpop.f32.mrf.mxu0  ;;  %v3520_v24 = vpop.f32.mrf.mxu1 }
 0x28f   : > { %7322 = vst [vmem:[#allocation10_spill] sm:$0xff] %v7000_v47  ;;  %v7338_v47 = vld [vmem:[#allocation4_spill] sm:$0xff] }
 0x290   : > { %v3360_v31 = vpop.f32.mrf.mxu0  ;;  %v3521_v13 = vpop.f32.mrf.mxu1 }
 0x291   : > { %v7006_v9 = vadd.f32 %v3360_v31, %v6744_v10  ;;  %v7009_v36 = vadd.f32 %v3521_v13, %v6747_v6 }
 0x292   : > { %v3362_v3 = vpop.f32.mrf.mxu0  ;;  %v3523_v58 = vpop.f32.mrf.mxu1 }
 0x293   : > { %7323 = vst [vmem:[#allocation18_spill] sm:$0xff] %v7006_v9  ;;  %v7332_v9 = vld [vmem:[#allocation2_spill] sm:$0xff] }
 0x294   : > { %v3365_v8 = vpop.f32.mrf.mxu0  ;;  %v3526_v38 = vpop.f32.mrf.mxu1 }
 0x295   : > { %v7012_v14 = vadd.f32 %v3365_v8, %v6753_v43  ;;  %v7015_v18 = vadd.f32 %v3526_v38, %v6756_v29 }
 0x296   : > { %v3367_v25 = vpop.f32.mrf.mxu0  ;;  %v3528_v51 = vpop.f32.mrf.mxu1 }
 0x297   : > { %7324 = vst [vmem:[#allocation22_spill] sm:$0xff] %v7012_v14  ;;  %v7328_v25 = vld [vmem:[#allocation19_spill] sm:$0xff]  ;;  %v7341_v14 = vld [vmem:[#allocation5_spill] sm:$0xff] }
 0x298   : > { %v3368_v42 = vpop.f32.mrf.mxu0  ;;  %v3529_v63 = vpop.f32.mrf.mxu1 }
 0x299   : > { %v7018_v10 = vadd.f32 %v3368_v42, %v6762_v48  ;;  %v7021_v6 = vadd.f32 %v3529_v63, %v6765_v37 }
 0x29a   : > { %v3370_v12 = vpop.f32.mrf.mxu0  ;;  %v3531_v24 = vpop.f32.mrf.mxu1 }
 0x29b   : > { %7325 = vst [vmem:[#allocation23_spill] sm:$0xff] %v7018_v10  ;;  %v7329_v24 = vld [vmem:[#allocation20_spill] sm:$0xff]  ;;  %v7335_v10 = vld [vmem:[#allocation3_spill] sm:$0xff] }
 0x29c   : > { %v3373_v31 = vpop.f32.mrf.mxu0  ;;  %v3534_v13 = vpop.f32.mrf.mxu1 }
 0x29d   : > { %v7024_v43 = vadd.f32 %v3373_v31, %v6771_v49  ;;  %v7027_v29 = vadd.f32 %v3534_v13, %v6774_v17  ;;  %v7331_v31 = vld [vmem:[#allocation21_spill] sm:$0xff] }
 0x29e   : > { %v3375_v3 = vpop.f32.mrf.mxu0  ;;  %v3536_v58 = vpop.f32.mrf.mxu1 }
 0x29f   : > { %7326 = vst [vmem:[#allocation24_spill] sm:$0xff] %v7024_v43 }
 0x2a0   : > { %v3376_v8 = vpop.f32.mrf.mxu0  ;;  %v3537_v38 = vpop.f32.mrf.mxu1 }
 0x2a1   : > { %v7030_v48 = vadd.f32 %v3376_v8, %v6780_v27  ;;  %v7033_v37 = vadd.f32 %v3537_v38, %v7328_v25  ;;  %v7334_v8 = vld [vmem:[#allocation11_spill] sm:$0xff] }
 0x2a2   : > { %v3378_v51 = vpop.f32.mrf.mxu0  ;;  %v3539_v42 = vpop.f32.mrf.mxu1 }
 0x2a3   : > { %7327 = vst [vmem:[#allocation25_spill] sm:$0xff] %v7030_v48 }
 0x2a4   : > { %v3381_v63 = vpop.f32.mrf.mxu0  ;;  %v3542_v12 = vpop.f32.mrf.mxu1 }
 0x2a5   : > { %v7036_v49 = vadd.f32 %v3381_v63, %v7329_v24  ;;  %v7039_v17 = vadd.f32 %v3542_v12, %v7331_v31  ;;  %v7337_v24 = vld [vmem:[#allocation12_spill] sm:$0xff] }
 0x2a6   : > { %v3383_v13 = vpop.f32.mrf.mxu0  ;;  %v3544_v3 = vpop.f32.mrf.mxu1 }
 0x2a7   : > { %7330 = vst [vmem:[#allocation19_spill] sm:$0xff] %v7036_v49 }
 0x2a8   : > { %v3384_v58 = vpop.f32.mrf.mxu0  ;;  %v3545_v43 = vpop.f32.mrf.mxu1 }
 0x2a9   : > { %v7042_v27 = vadd.f32 %v3384_v58, %v7332_v9  ;;  %v7045_v38 = vadd.f32 %v3545_v43, %v7334_v8  ;;  %v7340_v58 = vld [vmem:[#allocation13_spill] sm:$0xff] }
 0x2aa   : > { %v3386_v25 = vpop.f32.mrf.mxu0  ;;  %v3547_v51 = vpop.f32.mrf.mxu1 }
 0x2ab   : > { %7333 = vst [vmem:[#allocation20_spill] sm:$0xff] %v7042_v27 }
 0x2ac   : > { %v3389_v42 = vpop.f32.mrf.mxu0  ;;  %v3550_v48 = vpop.f32.mrf.mxu1 }
 0x2ad   : > { %v7048_v63 = vadd.f32 %v3389_v42, %v7335_v10  ;;  %v7051_v12 = vadd.f32 %v3550_v48, %v7337_v24  ;;  %v7343_v42 = vld [vmem:[#allocation14_spill] sm:$0xff] }
 0x2ae   : > { %v3391_v31 = vpop.f32.mrf.mxu0  ;;  %v3552_v13 = vpop.f32.mrf.mxu1 }
 0x2af   : > { %7336 = vst [vmem:[#allocation21_spill] sm:$0xff] %v7048_v63 }
 0x2b0   : > { %v3392_v3 = vpop.f32.mrf.mxu0  ;;  %v3553_v49 = vpop.f32.mrf.mxu1 }
 0x2b1   : > { %v7054_v9 = vadd.f32 %v3392_v3, %v7338_v47  ;;  %v7057_v43 = vadd.f32 %v3553_v49, %v7340_v58  ;;  %v7346_v3 = vld [vmem:[#allocation15_spill] sm:$0xff] }
 0x2b2   : > { %v3394_v8 = vpop.f32.mrf.mxu0  ;;  %v3555_v25 = vpop.f32.mrf.mxu1 }
 0x2b3   : > { %7339 = vst [vmem:[#allocation2_spill] sm:$0xff] %v7054_v9 }
 0x2b4   : > { %v3397_v51 = vpop.f32.mrf.mxu0  ;;  %v3558_v27 = vpop.f32.mrf.mxu1 }
 0x2b5   : > { %v7060_v10 = vadd.f32 %v3397_v51, %v7341_v14  ;;  %v7063_v48 = vadd.f32 %v3558_v27, %v7343_v42  ;;  %v7347_v51 = vld [vmem:[#allocation7_spill] sm:$0xff] }
 0x2b6   : > { %v3399_v24 = vpop.f32.mrf.mxu0  ;;  %v3560_v31 = vpop.f32.mrf.mxu1 }
 0x2b7   : > { %7342 = vst [vmem:[#allocation11_spill] sm:$0xff] %v7060_v10 }
 0x2b8   : > { %v3400_v13 = vpop.f32.mrf.mxu0  ;;  %v3561_v63 = vpop.f32.mrf.mxu1 }
 0x2b9   : > { %v7066_v47 = vadd.f32 %v3400_v13, %v7344_v2  ;;  %v7069_v49 = vadd.f32 %v3561_v63, %v7346_v3  ;;  %v7350_v13 = vld [vmem:[#allocation8_spill] sm:$0xff] }
 0x2ba   : > { %v3402_v58 = vpop.f32.mrf.mxu0  ;;  %v3563_v8 = vpop.f32.mrf.mxu1 }
 0x2bb   : > { %7345 = vst [vmem:[#allocation3_spill] sm:$0xff] %v7066_v47 }
 0x2bc   : > { %v3405_v25 = vpop.f32.mrf.mxu0  ;;  %v3566_v9 = vpop.f32.mrf.mxu1 }
 0x2bd   : > { %v7072_v14 = vadd.f32 %v3405_v25, %v6843_v15  ;;  %v7075_v27 = vadd.f32 %v3566_v9, %v7347_v51 }
 0x2be   : > { %v3407_v42 = vpop.f32.mrf.mxu0  ;;  %v3568_v24 = vpop.f32.mrf.mxu1 }
 0x2c0   : > { %v3408_v31 = vpop.f32.mrf.mxu0  ;;  %v3569_v10 = vpop.f32.mrf.mxu1 }
 0x2c1   : > { %v7078_v2 = vadd.f32 %v3408_v31, %v7348_v4  ;;  %v7081_v63 = vadd.f32 %v3569_v10, %v7350_v13 }
 0x2c2   : > { %v3410_v3 = vpop.f32.mrf.mxu0  ;;  %v3571_v58 = vpop.f32.mrf.mxu1 }
 0x2c3   : > { %7349 = vst [vmem:[#allocation12_spill] sm:$0xff] %v7078_v2 }
 0x2c4   : > { %v3413_v8 = vpop.f32.mrf.mxu0  ;;  %v3574_v47 = vpop.f32.mrf.mxu1 }
 0x2c5   : > { %v7084_v15 = vadd.f32 %v3413_v8, %v6861_v60  ;;  %v7087_v9 = vadd.f32 %v3574_v47, %v6864_v57 }
 0x2c6   : > { %v3415_v25 = vpop.f32.mrf.mxu0  ;;  %v3576_v51 = vpop.f32.mrf.mxu1 }
 0x2c8   : > { %v3416_v42 = vpop.f32.mrf.mxu0  ;;  %v7089_v24 = vpop.f32.mrf.mxu1 }
 0x2c9   : > { %v7092_v4 = vadd.f32 %v3416_v42, %v6870_v22 }
 0x2ca   : > { %v3418_v10 = vpop.f32.mrf.mxu0  ;;  %v3579_v31 = vpop.f32.mrf.mxu1 }
 0x2cb   : > { %7351 = vst [vmem:[#allocation4_spill] sm:$0xff] %v7092_v4 }
 0x2cc   : > { %v3582_v13 = vpop.f32.mrf.mxu1  ;;  %v5187_v3 = vpop.f32.mrf.mxu0 }
 0x2cd   : > { %v7095_v58 = vadd.f32 %v3582_v13, %v6878_v44  ;;  %v3752_v57 = vadd.f32 %v5187_v3, %v6897_v5 }
 0x2ce   : > { %v3584_v60 = vpop.f32.mrf.mxu1  ;;  %v3743_v8 = vpop.f32.mrf.mxu0 }
 0x2cf   : > { %v3744_v51 = vadd.f32 %v3743_v8, %v6881_v11  ;;  %v4000_v31 = vmax.f32 %v3752_v57, 0.0 }
 0x2d0   : > { %v3585_v47 = vpop.f32.mrf.mxu1  ;;  %v5188_v25 = vpop.f32.mrf.mxu0 }
 0x2d1   : > { %v7100_v2 = vadd.f32 %v3585_v47, %v6886_v16  ;;  %v3755_v22 = vadd.f32 %v5188_v25, %v6905_v19  ;;  %v3998_v5 = vmax.f32 %v3744_v51, 0.0 }
 0x2d2   : > { %v3587_v42 = vpop.f32.mrf.mxu1  ;;  %v3746_v10 = vpop.f32.mrf.mxu0 }
 0x2d3   : > { %v4001_v4 = vmax.f32 %v3755_v22, 0.0  ;;  %v3747_v44 = vadd.f32 %v3746_v10, %v6889_v7 }
 0x2d4   : > { %v7110_v11 = vpop.f32.mrf.mxu1  ;;  %v5191_v16 = vpop.f32.mrf.mxu0 }
 0x2d5   : > { %v4946_v13 = vpack.c.bf16 %v4001_v4, %v4000_v31  ;;  %v3999_v3 = vmax.f32 %v3747_v44, 0.0  ;;  %v3768_v57 = vadd.f32 %v5191_v16, %v6929_v35 }
 0x2d6   : > { %v3592_v19 = vpop.f32.mrf.mxu1  ;;  %v3759_v60 = vpop.f32.mrf.mxu0 }
 0x2d7   : > { %5098 = vst [vmem:[%s7108_s24 + $0x8] sm:$0xff] %v4946_v13   ;;  %v4941_v8 = vpack.c.bf16 %v3999_v3, %v3998_v5  ;;  %v3760_v25 = vadd.f32 %v3759_v60, %v6913_v34  ;;  %v4004_v4 = vmax.f32 %v3768_v57, 0.0 }
 0x2d8   : > { %v7114_v7 = vpop.f32.mrf.mxu1  ;;  %v5192_v47 = vpop.f32.mrf.mxu0 }
 0x2d9   : > { %4942 = vst [vmem:[%s7108_s24] sm:$0xff] %v4941_v8   ;;  %v3771_v22 = vadd.f32 %v5192_v47, %v6937_v61  ;;  %v4002_v35 = vmax.f32 %v3760_v25, 0.0 }
 0x2da   : > { %v3595_v42 = vpop.f32.mrf.mxu1  ;;  %v3762_v10 = vpop.f32.mrf.mxu0 }
 0x2db   : > { %v4005_v51 = vmax.f32 %v3771_v22, 0.0  ;;  %v3763_v31 = vadd.f32 %v3762_v10, %v6921_v45 }
 0x2dc   : > { %v7120_v44 = vpop.f32.mrf.mxu1  ;;  %v5195_v5 = vpop.f32.mrf.mxu0 }
 0x2dd   : > { %v4956_v16 = vpack.c.bf16 %v4005_v51, %v4004_v4  ;;  %v4003_v13 = vmax.f32 %v3763_v31, 0.0  ;;  %v3784_v34 = vadd.f32 %v5195_v5, %v6961_v39 }
 0x2de   : > { %v3600_v3 = vpop.f32.mrf.mxu1  ;;  %v3775_v19 = vpop.f32.mrf.mxu0 }
 0x2df   : > { %5100 = vst [vmem:[%s7108_s24 + $0x18] sm:$0xff] %v4956_v16   ;;  %v4951_v8 = vpack.c.bf16 %v4003_v13, %v4002_v35  ;;  %v3776_v57 = vadd.f32 %v3775_v19, %v6945_v41  ;;  %v4008_v25 = vmax.f32 %v3784_v34, 0.0 }
 0x2e0   : > { %v7124_v61 = vpop.f32.mrf.mxu1  ;;  %v5196_v60 = vpop.f32.mrf.mxu0 }
 0x2e1   : > { %5099 = vst [vmem:[%s7108_s24 + $0x10] sm:$0xff] %v4951_v8   ;;  %v3787_v45 = vadd.f32 %v5196_v60, %v6969_v0  ;;  %v4006_v39 = vmax.f32 %v3776_v57, 0.0 }
 0x2e2   : > { %v3603_v47 = vpop.f32.mrf.mxu1  ;;  %v3778_v22 = vpop.f32.mrf.mxu0 }
 0x2e3   : > { %v4009_v42 = vmax.f32 %v3787_v45, 0.0  ;;  %v3779_v10 = vadd.f32 %v3778_v22, %v6953_v53 }
 0x2e4   : > { %v7130_v4 = vpop.f32.mrf.mxu1  ;;  %v5199_v51 = vpop.f32.mrf.mxu0 }
 0x2e5   : > { %v4966_v31 = vpack.c.bf16 %v4009_v42, %v4008_v25  ;;  %v4007_v5 = vmax.f32 %v3779_v10, 0.0  ;;  %v3800_v41 = vadd.f32 %v5199_v51, %v6991_v23 }
 0x2e6   : > { %v3608_v35 = vpop.f32.mrf.mxu1  ;;  %v3791_v16 = vpop.f32.mrf.mxu0 }
 0x2e7   : > { %5102 = vst [vmem:[%s7108_s24 + $0x28] sm:$0xff] %v4966_v31   ;;  %v4961_v13 = vpack.c.bf16 %v4007_v5, %v4006_v39  ;;  %v3792_v19 = vadd.f32 %v3791_v16, %v6977_v59  ;;  %v4012_v60 = vmax.f32 %v3800_v41, 0.0 }
 0x2e8   : > { %v7134_v0 = vpop.f32.mrf.mxu1  ;;  %v5200_v3 = vpop.f32.mrf.mxu0 }
 0x2e9   : > { %5101 = vst [vmem:[%s7108_s24 + $0x20] sm:$0xff] %v4961_v13   ;;  %v3803_v53 = vadd.f32 %v5200_v3, %v6997_v52  ;;  %v4010_v23 = vmax.f32 %v3792_v19, 0.0 }
 0x2ea   : > { %v3611_v8 = vpop.f32.mrf.mxu1  ;;  %v3794_v34 = vpop.f32.mrf.mxu0 }
 0x2eb   : > { %v4013_v57 = vmax.f32 %v3803_v53, 0.0  ;;  %v3795_v45 = vadd.f32 %v3794_v34, %v6985_v40 }
 0x2ec   : > { %v7140_v47 = vpop.f32.mrf.mxu1  ;;  %v5203_v22 = vpop.f32.mrf.mxu0 }
 0x2ed   : > { %v4976_v25 = vpack.c.bf16 %v4013_v57, %v4012_v60  ;;  %v4011_v42 = vmax.f32 %v3795_v45, 0.0  ;;  %v3816_v59 = vadd.f32 %v5203_v22, %v7015_v18 }
 0x2ee   : > { %v3616_v10 = vpop.f32.mrf.mxu1  ;;  %v3807_v51 = vpop.f32.mrf.mxu0 }
 0x2ef   : > { %5104 = vst [vmem:[%s7108_s24 + $0x38] sm:$0xff] %v4976_v25   ;;  %v4971_v39 = vpack.c.bf16 %v4011_v42, %v4010_v23  ;;  %v3808_v5 = vadd.f32 %v3807_v51, %v7003_v33  ;;  %v4016_v13 = vmax.f32 %v3816_v59, 0.0 }
 0x2f0   : > { %v7144_v52 = vpop.f32.mrf.mxu1  ;;  %v5204_v31 = vpop.f32.mrf.mxu0 }
 0x2f1   : > { %5103 = vst [vmem:[%s7108_s24 + $0x30] sm:$0xff] %v4971_v39   ;;  %v3819_v40 = vadd.f32 %v5204_v31, %v7021_v6  ;;  %v4014_v18 = vmax.f32 %v3808_v5, 0.0 }
 0x2f2   : > { %v3619_v35 = vpop.f32.mrf.mxu1  ;;  %v3810_v16 = vpop.f32.mrf.mxu0 }
 0x2f3   : > { %v4017_v41 = vmax.f32 %v3819_v40, 0.0  ;;  %v3811_v3 = vadd.f32 %v3810_v16, %v7009_v36 }
 0x2f4   : > { %v7150_v19 = vpop.f32.mrf.mxu1  ;;  %v5207_v53 = vpop.f32.mrf.mxu0 }
 0x2f5   : > { %v4986_v8 = vpack.c.bf16 %v4017_v41, %v4016_v13  ;;  %v4015_v34 = vmax.f32 %v3811_v3, 0.0  ;;  %v3832_v33 = vadd.f32 %v5207_v53, %v7039_v17 }
 0x2f6   : > { %v3624_v60 = vpop.f32.mrf.mxu1  ;;  %v3823_v57 = vpop.f32.mrf.mxu0 }
 0x2f7   : > { %5106 = vst [vmem:[%s7108_s24 + $0x48] sm:$0xff] %v4986_v8   ;;  %v4981_v45 = vpack.c.bf16 %v4015_v34, %v4014_v18  ;;  %v3824_v23 = vadd.f32 %v3823_v57, %v7027_v29  ;;  %v4020_v10 = vmax.f32 %v3832_v33, 0.0 }
 0x2f8   : > { %v7154_v6 = vpop.f32.mrf.mxu1  ;;  %v5208_v22 = vpop.f32.mrf.mxu0 }
 0x2f9   : > { %5105 = vst [vmem:[%s7108_s24 + $0x40] sm:$0xff] %v4981_v45   ;;  %v3835_v36 = vadd.f32 %v5208_v22, %v7045_v38  ;;  %v4018_v17 = vmax.f32 %v3824_v23, 0.0 }
 0x2fa   : > { %v3627_v25 = vpop.f32.mrf.mxu1  ;;  %v3826_v42 = vpop.f32.mrf.mxu0 }
 0x2fb   : > { %v4021_v51 = vmax.f32 %v3835_v36, 0.0  ;;  %v3827_v39 = vadd.f32 %v3826_v42, %v7033_v37 }
 0x2fc   : > { %v7160_v59 = vpop.f32.mrf.mxu1  ;;  %v5211_v31 = vpop.f32.mrf.mxu0 }
 0x2fd   : > { %v4996_v5 = vpack.c.bf16 %v4021_v51, %v4020_v10  ;;  %v4019_v40 = vmax.f32 %v3827_v39, 0.0  ;;  %v3848_v29 = vadd.f32 %v5211_v31, %v7063_v48 }
 0x2fe   : > { %v3632_v35 = vpop.f32.mrf.mxu1  ;;  %v3839_v16 = vpop.f32.mrf.mxu0 }
 0x2ff   : > { %5108 = vst [vmem:[%s7108_s24 + $0x58] sm:$0xff] %v4996_v5   ;;  %v4991_v13 = vpack.c.bf16 %v4019_v40, %v4018_v17  ;;  %v3840_v3 = vadd.f32 %v3839_v16, %v7051_v12  ;;  %v4024_v8 = vmax.f32 %v3848_v29, 0.0  ;;  %v3578_v12 = vadd.f32 %v7089_v24, %v6873_v30 }
 0x300   : > { %v7164_v38 = vpop.f32.mrf.mxu1  ;;  %v5212_v41 = vpop.f32.mrf.mxu0 }
 0x301   : > { %5107 = vst [vmem:[%s7108_s24 + $0x50] sm:$0xff] %v4991_v13   ;;  %v3851_v37 = vadd.f32 %v5212_v41, %v7069_v49  ;;  %v4022_v48 = vmax.f32 %v3840_v3, 0.0  ;;  %v3594_v41 = vadd.f32 %v7114_v7, %v6902_v20  ;;  %v3607_v7 = vadd.f32 %v7130_v4, %v6926_v1 }
 0x302   : > { %v3635_v53 = vpop.f32.mrf.mxu1  ;;  %v3842_v18 = vpop.f32.mrf.mxu0  ;;  %v3602_v1 = vadd.f32 %v7124_v61, %v6918_v32 }
 0x303   : > { %v4025_v34 = vmax.f32 %v3851_v37, 0.0  ;;  %v3843_v60 = vadd.f32 %v3842_v18, %v7057_v43 }
 0x304   : > { %v7170_v57 = vpop.f32.mrf.mxu1  ;;  %v5215_v45 = vpop.f32.mrf.mxu0 }
 0x305   : > { %v5006_v33 = vpack.c.bf16 %v4025_v34, %v4024_v8  ;;  %v4023_v22 = vmax.f32 %v3843_v60, 0.0  ;;  %v3864_v25 = vadd.f32 %v5215_v45, %v7087_v9  ;;  %v3591_v9 = vadd.f32 %v7110_v11, %v6894_v46 }
 0x306   : > { %v3640_v23 = vpop.f32.mrf.mxu1  ;;  %v3855_v36 = vpop.f32.mrf.mxu0 }
 0x307   : > { %5110 = vst [vmem:[%s7108_s24 + $0x68] sm:$0xff] %v5006_v33   ;;  %v5001_v49 = vpack.c.bf16 %v4023_v22, %v4022_v48  ;;  %v3856_v43 = vadd.f32 %v3855_v36, %v7075_v27  ;;  %v4028_v17 = vmax.f32 %v3864_v25, 0.0 }
 0x308   : > { %v7176_v42 = vpop.f32.mrf.mxu1  ;;  %v5216_v10 = vpop.f32.mrf.mxu0 }
 0x309   : > { %5109 = vst [vmem:[%s7108_s24 + $0x60] sm:$0xff] %v5001_v49   ;;  %v3867_v51 = vadd.f32 %v5216_v10, %v3578_v12  ;;  %v4026_v35 = vmax.f32 %v3856_v43, 0.0  ;;  %v3599_v12 = vadd.f32 %v7120_v44, %v6910_v55  ;;  %v3610_v49 = vadd.f32 %v7134_v0, %v6934_v26 }
 0x30a   : > { %v3643_v39 = vpop.f32.mrf.mxu1  ;;  %v3858_v31 = vpop.f32.mrf.mxu0  ;;  %v3623_v0 = vadd.f32 %v7150_v19, %v6958_v56  ;;  %v3618_v56 = vadd.f32 %v7144_v52, %v6950_v54  ;;  %v3631_v52 = vadd.f32 %v7160_v59, %v6974_v62 }
 0x30b   : > { %v4029_v5 = vmax.f32 %v3867_v51, 0.0  ;;  %v3859_v40 = vadd.f32 %v3858_v31, %v7081_v63 }
 0x30c   : > { %v7181_v30 = vpop.f32.mrf.mxu1  ;;  %v5219_v24 = vpop.f32.mrf.mxu0 }
 0x30d   : > { %v5016_v16 = vpack.c.bf16 %v4029_v5, %v4028_v17  ;;  %v4027_v13 = vmax.f32 %v3859_v40, 0.0  ;;  %v3880_v37 = vadd.f32 %v5219_v24, %v3591_v9 }
 0x30e   : > { %v3648_v29 = vpop.f32.mrf.mxu1  ;;  %v3871_v27 = vpop.f32.mrf.mxu0 }
 0x30f   : > { %5112 = vst [vmem:[%s7108_s24 + $0x78] sm:$0xff] %v5016_v16   ;;  %v5011_v3 = vpack.c.bf16 %v4027_v13, %v4026_v35  ;;  %v3872_v18 = vadd.f32 %v3871_v27, %v7095_v58  ;;  %v4032_v34 = vmax.f32 %v3880_v37, 0.0  ;;  %v3615_v35 = vadd.f32 %v7140_v47, %v6942_v21 }
 0x310   : > { %v7188_v53 = vpop.f32.mrf.mxu1  ;;  %v5220_v63 = vpop.f32.mrf.mxu0  ;;  %v3626_v16 = vadd.f32 %v7154_v6, %v6966_v28  ;;  %v3639_v6 = vadd.f32 %v7170_v57, %v6988_v50 }
 0x311   : > { %5111 = vst [vmem:[%s7108_s24 + $0x70] sm:$0xff] %v5011_v3   ;;  %v3883_v8 = vadd.f32 %v5220_v63, %v3594_v41  ;;  %v4030_v33 = vmax.f32 %v3872_v18, 0.0 }
 0x312   : > { %v3651_v46 = vpop.f32.mrf.mxu1  ;;  %v3874_v11 = vpop.f32.mrf.mxu0 }
 0x313   : > { %v4033_v60 = vmax.f32 %v3883_v8, 0.0  ;;  %v3875_v45 = vadd.f32 %v3874_v11, %v7100_v2 }
 0x314   : > { %v7193_v48 = vpop.f32.mrf.mxu1  ;;  %v5223_v20 = vpop.f32.mrf.mxu0 }
 0x315   : > { %v5026_v22 = vpack.c.bf16 %v4033_v60, %v4032_v34  ;;  %v4031_v23 = vmax.f32 %v3875_v45, 0.0  ;;  %v3896_v25 = vadd.f32 %v5223_v20, %v3607_v7  ;;  %v7352_v45 = vld [vmem:[#allocation9_spill] sm:$0xff] }
 0x316   : > { %v3656_v36 = vpop.f32.mrf.mxu1  ;;  %v3887_v58 = vpop.f32.mrf.mxu0  ;;  %v3642_v20 = vadd.f32 %v7176_v42, %v7352_v45 }
 0x317   : > { %5114 = vst [vmem:[%s7108_s24 + $0x88] sm:$0xff] %v5026_v22   ;;  %v5021_v2 = vpack.c.bf16 %v4031_v23, %v4030_v33  ;;  %v3888_v4 = vadd.f32 %v3887_v58, %v3599_v12  ;;  %v4036_v17 = vmax.f32 %v3896_v25, 0.0  ;;  %v7353_v36 = vld [vmem:[#allocation17_spill] sm:$0xff] }
 0x318   : > { %v7202_v10 = vpop.f32.mrf.mxu1  ;;  %v5224_v43 = vpop.f32.mrf.mxu0  ;;  %v3634_v58 = vadd.f32 %v7164_v38, %v7353_v36 }
 0x319   : > { %5113 = vst [vmem:[%s7108_s24 + $0x80] sm:$0xff] %v5021_v2   ;;  %v3899_v51 = vadd.f32 %v5224_v43, %v3610_v49  ;;  %v4034_v40 = vmax.f32 %v3888_v4, 0.0  ;;  %v7354_v43 = vld [vmem:[#allocation22_spill] sm:$0xff] }
 0x31a   : > { %v3659_v39 = vpop.f32.mrf.mxu1  ;;  %v3890_v31 = vpop.f32.mrf.mxu0 }
 0x31b   : > { %v4037_v55 = vmax.f32 %v3899_v51, 0.0  ;;  %v3891_v44 = vadd.f32 %v3890_v31, %v3602_v1  ;;  %v3655_v1 = vadd.f32 %v7193_v48, %v7354_v43  ;;  %v7364_v43 = vld [vmem:[#allocation3_spill] sm:$0xff] }
 0x31c   : > { %v7207_v5 = vpop.f32.mrf.mxu1  ;;  %v5227_v26 = vpop.f32.mrf.mxu0 }
 0x31d   : > { %v5036_v24 = vpack.c.bf16 %v4037_v55, %v4036_v17  ;;  %v4035_v9 = vmax.f32 %v3891_v44, 0.0  ;;  %v3912_v29 = vadd.f32 %v5227_v26, %v3623_v0  ;;  %v7355_v17 = vld [vmem:[#allocation10_spill] sm:$0xff]  ;;  %v7356_v44 = vld [vmem:[#allocation23_spill] sm:$0xff] }
 0x31e   : > { %v3664_v32 = vpop.f32.mrf.mxu1  ;;  %v3903_v61 = vpop.f32.mrf.mxu0  ;;  %v3647_v55 = vadd.f32 %v7181_v30, %v7355_v17  ;;  %v3658_v26 = vadd.f32 %v7202_v10, %v7356_v44 }
 0x31f   : > { %5116 = vst [vmem:[%s7108_s24 + $0x98] sm:$0xff] %v5036_v24   ;;  %v5031_v13 = vpack.c.bf16 %v4035_v9, %v4034_v40  ;;  %v3904_v19 = vadd.f32 %v3903_v61, %v3615_v35  ;;  %v4040_v18 = vmax.f32 %v3912_v29, 0.0  ;;  %v7357_v32 = vld [vmem:[#allocation18_spill] sm:$0xff] }
 0x320   : > { %v7216_v27 = vpop.f32.mrf.mxu1  ;;  %v5228_v41 = vpop.f32.mrf.mxu0  ;;  %v3650_v61 = vadd.f32 %v7188_v53, %v7357_v32  ;;  %v7359_v53 = vld [vmem:[#allocation24_spill] sm:$0xff] }
 0x321   : > { %5115 = vst [vmem:[%s7108_s24 + $0x90] sm:$0xff] %v5031_v13   ;;  %v3915_v3 = vadd.f32 %v5228_v41, %v3626_v16  ;;  %v4038_v46 = vmax.f32 %v3904_v19, 0.0  ;;  %v7358_v19 = vld [vmem:[#allocation19_spill] sm:$0xff] }
 0x322   : > { %v3667_v37 = vpop.f32.mrf.mxu1  ;;  %v3906_v63 = vpop.f32.mrf.mxu0 }
 0x323   : > { %v4041_v21 = vmax.f32 %v3915_v3, 0.0  ;;  %v3907_v47 = vadd.f32 %v3906_v63, %v3618_v56 }
 0x324   : > { %v3670_v8 = vpop.f32.mrf.mxu1  ;;  %v5231_v28 = vpop.f32.mrf.mxu0 }
 0x325   : > { %v5046_v11 = vpack.c.bf16 %v4041_v21, %v4040_v18  ;;  %v4039_v34 = vmax.f32 %v3907_v47, 0.0  ;;  %v3928_v33 = vadd.f32 %v5231_v28, %v3639_v6  ;;  %v3671_v3 = vadd.f32 %v3670_v8, %v7358_v19  ;;  %v7360_v6 = vld [vmem:[#allocation20_spill] sm:$0xff] }
 0x326   : > { %v3672_v60 = vpop.f32.mrf.mxu1  ;;  %v3919_v54 = vpop.f32.mrf.mxu0  ;;  %v3663_v28 = vadd.f32 %v7207_v5, %v7359_v53  ;;  %v7366_v19 = vld [vmem:[#allocation12_spill] sm:$0xff] }
 0x327   : > { %5118 = vst [vmem:[%s7108_s24 + $0xa8] sm:$0xff] %v5046_v11   ;;  %v5041_v7 = vpack.c.bf16 %v4039_v34, %v4038_v46  ;;  %v3920_v50 = vadd.f32 %v3919_v54, %v3631_v52  ;;  %v4044_v2 = vmax.f32 %v3928_v33, 0.0  ;;  %v7361_v52 = vld [vmem:[#allocation25_spill] sm:$0xff] }
 0x328   : > { %v3673_v22 = vpop.f32.mrf.mxu1  ;;  %v5232_v23 = vpop.f32.mrf.mxu0  ;;  %v3666_v45 = vadd.f32 %v7216_v27, %v7361_v52  ;;  %v7363_v27 = vld [vmem:[#allocation21_spill] sm:$0xff] }
 0x329   : > { %5117 = vst [vmem:[%s7108_s24 + $0xa0] sm:$0xff] %v5041_v7   ;;  %v3931_v57 = vadd.f32 %v5232_v23, %v3642_v20  ;;  %v4042_v4 = vmax.f32 %v3920_v50, 0.0  ;;  %v3674_v46 = vadd.f32 %v3673_v22, %v7360_v6  ;;  %v7362_v50 = vld [vmem:[#allocation11_spill] sm:$0xff] }
 0x32a   : > { %v3675_v12 = vpop.f32.mrf.mxu1  ;;  %v3922_v49 = vpop.f32.mrf.mxu0 }
 0x32b   : > { %v4045_v25 = vmax.f32 %v3931_v57, 0.0  ;;  %v3923_v62 = vadd.f32 %v3922_v49, %v3634_v58 }
 0x32c   : > { %v3678_v59 = vpop.f32.mrf.mxu1  ;;  %v5235_v42 = vpop.f32.mrf.mxu0 }
 0x32d   : > { %v5056_v51 = vpack.c.bf16 %v4045_v25, %v4044_v2  ;;  %v4043_v39 = vmax.f32 %v3923_v62, 0.0  ;;  %v3944_v40 = vadd.f32 %v5235_v42, %v3655_v1  ;;  %v3679_v42 = vadd.f32 %v3678_v59, %v7363_v27 }
 0x32e   : > { %v3680_v31 = vpop.f32.mrf.mxu1  ;;  %v3935_v38 = vpop.f32.mrf.mxu0 }
 0x32f   : > { %5120 = vst [vmem:[%s7108_s24 + $0xb8] sm:$0xff] %v5056_v51   ;;  %v5051_v0 = vpack.c.bf16 %v4043_v39, %v4042_v4  ;;  %v3936_v48 = vadd.f32 %v3935_v38, %v3647_v55  ;;  %v4048_v29 = vmax.f32 %v3944_v40, 0.0  ;;  %v7365_v38 = vld [vmem:[#allocation2_spill] sm:$0xff] }
 0x330   : > { %v3681_v24 = vpop.f32.mrf.mxu1  ;;  %v5236_v9 = vpop.f32.mrf.mxu0 }
 0x331   : > { %5119 = vst [vmem:[%s7108_s24 + $0xb0] sm:$0xff] %v5051_v0   ;;  %v3947_v35 = vadd.f32 %v5236_v9, %v3658_v26  ;;  %v4046_v37 = vmax.f32 %v3936_v48, 0.0  ;;  %v3682_v17 = vadd.f32 %v3681_v24, %v7365_v38 }
 0x332   : > { %v3683_v16 = vpop.f32.mrf.mxu1  ;;  %v3938_v13 = vpop.f32.mrf.mxu0 }
 0x333   : > { %v4049_v41 = vmax.f32 %v3947_v35, 0.0  ;;  %v3939_v30 = vadd.f32 %v3938_v13, %v3650_v61 }
 0x334   : > { %v3686_v56 = vpop.f32.mrf.mxu1  ;;  %v5239_v10 = vpop.f32.mrf.mxu0 }
 0x335   : > { %v5066_v63 = vpack.c.bf16 %v4049_v41, %v4048_v29  ;;  %v4047_v18 = vmax.f32 %v3939_v30, 0.0  ;;  %v3960_v34 = vadd.f32 %v5239_v10, %v3671_v3  ;;  %v3687_v57 = vadd.f32 %v3686_v56, %v7362_v50 }
 0x336   : > { %v3688_v21 = vpop.f32.mrf.mxu1  ;;  %v3951_v47 = vpop.f32.mrf.mxu0 }
 0x337   : > { %5122 = vst [vmem:[%s7108_s24 + $0xc8] sm:$0xff] %v5066_v63   ;;  %v5061_v11 = vpack.c.bf16 %v4047_v18, %v4046_v37  ;;  %v3952_v8 = vadd.f32 %v3951_v47, %v3663_v28  ;;  %v4052_v23 = vmax.f32 %v3960_v34, 0.0  ;;  %v7367_v18 = vld [vmem:[#allocation4_spill] sm:$0xff] }
 0x338   : > { %v3689_v60 = vpop.f32.mrf.mxu1  ;;  %v5240_v54 = vpop.f32.mrf.mxu0 }
 0x339   : > { %5121 = vst [vmem:[%s7108_s24 + $0xc0] sm:$0xff] %v5061_v11   ;;  %v3963_v20 = vadd.f32 %v5240_v54, %v3674_v46  ;;  %v4050_v12 = vmax.f32 %v3952_v8, 0.0  ;;  %v3690_v1 = vadd.f32 %v3689_v60, %v7364_v43 }
 0x33a   : > { %v3691_v7 = vpop.f32.mrf.mxu1  ;;  %v3954_v33 = vpop.f32.mrf.mxu0 }
 0x33b   : > { %v4053_v36 = vmax.f32 %v3963_v20, 0.0  ;;  %v3955_v58 = vadd.f32 %v3954_v33, %v3666_v45 }
 0x33c   : > { %v3694_v5 = vpop.f32.mrf.mxu1  ;;  %v5243_v22 = vpop.f32.mrf.mxu0 }
 0x33d   : > { %v5076_v49 = vpack.c.bf16 %v4053_v36, %v4052_v23  ;;  %v4051_v2 = vmax.f32 %v3955_v58, 0.0  ;;  %v3976_v51 = vadd.f32 %v5243_v22, %v3687_v57  ;;  %v3695_v24 = vadd.f32 %v3694_v5, %v7072_v14 }
 0x33e   : > { %v3696_v25 = vpop.f32.mrf.mxu1  ;;  %v3967_v62 = vpop.f32.mrf.mxu0 }
 0x33f   : > { %5124 = vst [vmem:[%s7108_s24 + $0xd8] sm:$0xff] %v5076_v49   ;;  %v5071_v4 = vpack.c.bf16 %v4051_v2, %v4050_v12  ;;  %v3968_v55 = vadd.f32 %v3967_v62, %v3679_v42  ;;  %v4056_v40 = vmax.f32 %v3976_v51, 0.0 }
 0x340   : > { %v3697_v39 = vpop.f32.mrf.mxu1  ;;  %v5244_v31 = vpop.f32.mrf.mxu0 }
 0x341   : > { %5123 = vst [vmem:[%s7108_s24 + $0xd0] sm:$0xff] %v5071_v4   ;;  %v3979_v44 = vadd.f32 %v5244_v31, %v3690_v1  ;;  %v4054_v48 = vmax.f32 %v3968_v55, 0.0  ;;  %v3698_v3 = vadd.f32 %v3697_v39, %v7366_v19 }
 0x342   : > { %v3699_v26 = vpop.f32.mrf.mxu1  ;;  %v3970_v0 = vpop.f32.mrf.mxu0 }
 0x343   : > { %v4057_v9 = vmax.f32 %v3979_v44, 0.0  ;;  %v3971_v32 = vadd.f32 %v3970_v0, %v3682_v17 }
 0x344   : > { %v3702_v59 = vpop.f32.mrf.mxu1  ;;  %v5247_v61 = vpop.f32.mrf.mxu0 }
 0x345   : > { %v5086_v35 = vpack.c.bf16 %v4057_v9, %v4056_v40  ;;  %v4055_v16 = vmax.f32 %v3971_v32, 0.0  ;;  %v3703_v13 = vadd.f32 %v3702_v59, %v7084_v15 }
 0x346   : > { %v3704_v29 = vpop.f32.mrf.mxu1  ;;  %v3983_v41 = vpop.f32.mrf.mxu0 }
 0x347   : > { %5126 = vst [vmem:[%s7108_s24 + $0xe8] sm:$0xff] %v5086_v35   ;;  %v5081_v30 = vpack.c.bf16 %v4055_v16, %v4054_v48  ;;  %v3992_v37 = vadd.f32 %v5247_v61, %v3703_v13  ;;  %v3984_v63 = vadd.f32 %v3983_v41, %v3695_v24 }
 0x348   : > { %v3705_v56 = vpop.f32.mrf.mxu1  ;;  %v5248_v10 = vpop.f32.mrf.mxu0 }
 0x349   : > { %5125 = vst [vmem:[%s7108_s24 + $0xe0] sm:$0xff] %v5081_v30   ;;  %v3706_v21 = vadd.f32 %v3705_v56, %v7367_v18  ;;  %v4060_v6 = vmax.f32 %v3992_v37, 0.0  ;;  %v4058_v46 = vmax.f32 %v3984_v63, 0.0 }
 0x34a   : > { %v3707_v47 = vpop.f32.mrf.mxu1  ;;  %v3986_v53 = vpop.f32.mrf.mxu0 }
 0x34b   : > { %v3995_v15 = vadd.f32 %v5248_v10, %v3706_v21  ;;  %v3987_v28 = vadd.f32 %v3986_v53, %v3698_v3 }
 0x34d   : > { %v4061_v14 = vmax.f32 %v3995_v15, 0.0  ;;  %v4059_v11 = vmax.f32 %v3987_v28, 0.0 }
 0x34f   : > { %v5096_v34 = vpack.c.bf16 %v4061_v14, %v4060_v6  ;;  %v5091_v60 = vpack.c.bf16 %v4059_v11, %v4058_v46 }
 0x351   : > { %5128 = vst [vmem:[%s7108_s24 + $0xf8] sm:$0xff] %v5096_v34   ;;  %5127 = vst [vmem:[%s7108_s24 + $0xf0] sm:$0xff] %v5091_v60  }
 0x352 PF: > { %s13_s12 = sadd.s32 1, %s5786_s12  }
 0x353   : > { %p10_p4 = scmp.ge.s32.totalorder %s13_s12, 18  }
 0x355   :  { %12 = sbr.rel (!%p10_p4) target bundleno = 1 (0x1), region = 62 }

</bundles_post_ra>
